<compile_context>
chip_gen: v7x
topology: tpu7x:2x2x1
jax: 0.10.0
libtpu: 0.0.40
codegen_flags: <defaults>
</compile_context>

<pallas_src>
import functools
import jax
import jax.numpy as jnp
from jax import lax
from jax.experimental import pallas as pl
from jax.experimental.pallas import tpu as pltpu

KW = 4       # kernel_size
PADW = 1     # padding
BN_EPS = 1e-5
_VMEM_TILE_BUDGET = 12 * 1024 * 1024   # per-layer double-buffered tile budget
_VMEM_LIMIT_BYTES = 32 * 1024 * 1024   # explicit scoped-VMEM limit (safe all gens)


def _round_up(x, m):
    return -(-x // m) * m


# ----------------------------- Pallas kernel ---------------------------------

def _conv_mm_kernel(alpha, x_ref, w_ref, shift_ref, o_ref, acc_ref):
    # (TM, TK) @ (TK, TN) bf16 on the MXU, f32 accumulation in VMEM scratch,
    # fused per-channel shift + LeakyReLU(alpha) epilogue on the last K step.
    k = pl.program_id(2)

    @pl.when(k == 0)
    def _():
        acc_ref[...] = jnp.zeros_like(acc_ref)

    acc_ref[...] += jnp.dot(x_ref[...], w_ref[...],
                            preferred_element_type=jnp.float32)

    @pl.when(k == pl.num_programs(2) - 1)
    def _():
        y = acc_ref[...] + shift_ref[...]
        # LeakyReLU for 0 < alpha <= 1: max(y, alpha*y)  (one fewer VPU op).
        o_ref[...] = jnp.maximum(y, alpha * y).astype(o_ref.dtype)


def _pick_tiles(M, Kp, Npad, out_bytes):
    """Choose (Mp, TM, TN, TK) obeying (8,128) tiling and a VMEM budget."""
    if M <= 2048:
        Mp = _round_up(max(M, 8), 8)
        TM = Mp                                   # single M step
    else:
        TM = 2048                                 # amortize ~0.35us/step overhead
        Mp = _round_up(M, TM)
    TN = 256 if Npad % 256 == 0 else 128
    TK = 128
    for cand in (2048, 1024, 512, 256, 128):
        if Kp % cand:
            continue
        # double-buffered inputs/outputs + f32 accumulator scratch
        vmem = (2 * (TM * cand * 2 + cand * TN * 2 + TN * 4 + TM * TN * out_bytes)
                + TM * TN * 4)
        if vmem <= _VMEM_TILE_BUDGET:
            TK = cand
            break
    return Mp, TM, TN, TK


def conv_matmul_fused(patches, layer):
    """(M, K) bf16 patches @ (Kp, Npad) bf16 weights, f32 accumulation, fused
    shift + LeakyReLU.  Tiled over (M, N, K); K is the reduction axis."""
    M, K = patches.shape
    w_kn = layer["w_kn"]          # (Kp, Npad) bf16, per-channel scale folded in
    shift = layer["shift2d"]      # (1, Npad) f32
    Kp, Npad = w_kn.shape
    out_dtype = layer["out_dtype"]
    out_bytes = jnp.dtype(out_dtype).itemsize
    Mp, TM, TN, TK = _pick_tiles(M, Kp, Npad, out_bytes)

    # Patches are already bf16; pad rows/K (padded rows sliced off afterwards).
    x = jnp.pad(patches, ((0, Mp - M), (0, Kp - K)))

    cost = pl.CostEstimate(
        flops=2 * Mp * Kp * Npad,
        transcendentals=0,
        bytes_accessed=Mp * Kp * 2 + Kp * Npad * 2 + Mp * Npad * out_bytes + Npad * 4)

    out = pl.pallas_call(
        functools.partial(_conv_mm_kernel, layer["alpha"]),
        out_shape=jax.ShapeDtypeStruct((Mp, Npad), out_dtype),
        grid=(Mp // TM, Npad // TN, Kp // TK),
        in_specs=[
            pl.BlockSpec((TM, TK), lambda i, j, k: (i, k)),
            pl.BlockSpec((TK, TN), lambda i, j, k: (k, j)),
            pl.BlockSpec((1, TN), lambda i, j, k: (0, j)),
        ],
        out_specs=pl.BlockSpec((TM, TN), lambda i, j, k: (i, j)),
        scratch_shapes=[pltpu.VMEM((TM, TN), jnp.float32)],
        compiler_params=pltpu.CompilerParams(
            dimension_semantics=("parallel", "parallel", "arbitrary"),
            vmem_limit_bytes=_VMEM_LIMIT_BYTES),
        cost_estimate=cost,
    )(x, w_kn, shift)
    return out[:M, :layer["cout"]]


# ------------------------------- JAX glue -------------------------------------

def _im2col_3d_cl(x, k, s, p):
    """Channels-last im2col (bf16 in -> bf16 out).  x: (N, D, H, W, C) ->
    (N*Do*Ho*Wo, k^3*C), K axis flattened in (kd, kh, kw, C) order."""
    N, D, H, W, C = x.shape
    xp = jnp.pad(x, ((0, 0), (p, p), (p, p), (p, p), (0, 0)))
    Do = (D + 2 * p - k) // s + 1
    Ho = (H + 2 * p - k) // s + 1
    Wo = (W + 2 * p - k) // s + 1
    cols = []
    for kd in range(k):
        for kh in range(k):
            for kw in range(k):
                cols.append(xp[:, kd:kd + s * Do:s, kh:kh + s * Ho:s,
                               kw:kw + s * Wo:s, :])
    patches = jnp.stack(cols, axis=4)                 # (N, Do, Ho, Wo, k^3, C)
    patches = patches.reshape(N * Do * Ho * Wo, k * k * k * C)
    return patches, (Do, Ho, Wo)


def nlayer_discriminator_forward(x, prepped):
    n = x.shape[0]
    # NCDHW -> NDHWC once, bf16 once (matmul operands are bf16 anyway).
    h = jnp.transpose(x, (0, 2, 3, 4, 1)).astype(jnp.bfloat16)
    for layer in prepped:
        patches, (Do, Ho, Wo) = _im2col_3d_cl(h, KW, layer["stride"], PADW)
        out_flat = conv_matmul_fused(patches, layer)  # bf16 (f32 for last layer)
        h = out_flat.reshape(n, Do, Ho, Wo, layer["cout"])
    return jnp.transpose(h, (0, 4, 1, 2, 3))          # NDHWC -> NCDHW, f32


def prep_params(params):
    """One-time weight prep: fold scale into weights, reorder to channels-last
    K layout, pad K/N to 128 multiples, cast to bf16."""
    prepped = []
    for idx, layer in enumerate(params):
        w, scale, shift = layer["w"], layer["scale"], layer["shift"]
        cout, cin = w.shape[0], w.shape[1]
        K = cin * KW * KW * KW
        # (Cout, Cin, kd, kh, kw) -> (kd, kh, kw, Cin, Cout) -> (K, Cout)
        w_kn = jnp.transpose(w, (2, 3, 4, 1, 0)).reshape(K, cout)
        w_kn = w_kn * scale[None, :]                  # fold BN gamma / conv scale
        Npad = _round_up(cout, 128)
        Kp = _round_up(K, 128)
        w_kn = jnp.pad(w_kn, ((0, Kp - K), (0, Npad - cout))).astype(jnp.bfloat16)
        shift2d = jnp.pad(shift, (0, Npad - cout)).reshape(1, Npad).astype(jnp.float32)
        is_last = idx == len(params) - 1
        prepped.append(dict(
            w_kn=w_kn, shift2d=shift2d, stride=layer["stride"],
            alpha=layer["alpha"], cout=cout,
            out_dtype=jnp.float32 if is_last else jnp.bfloat16))
    return prepped


# ------------------------- deterministic parameters ---------------------------

def init_params(key, input_nc, ndf=64, n_layers=3):
    # Conv specs mirror NLayerDiscriminator.__init__ with norm_layer=BatchNorm3d
    # (=> use_bias=False for the normed convs) and use_sigmoid=False.
    specs = [(input_nc, ndf, 2, True, False)]          # (cin, cout, stride, bias, bn)
    nf_mult = 1
    for n in range(1, n_layers):
        nf_mult_prev, nf_mult = nf_mult, min(2 ** n, 8)
        specs.append((ndf * nf_mult_prev, ndf * nf_mult, 2, False, True))
    nf_mult_prev, nf_mult = nf_mult, min(2 ** n_layers, 8)
    specs.append((ndf * nf_mult_prev, ndf * nf_mult, 1, False, True))
    specs.append((ndf * nf_mult, 1, 1, True, False))

    params = []
    for i, (cin, cout, stride, has_bias, has_bn) in enumerate(specs):
        key, kw_, kb, kg, kbt, km, kv = jax.random.split(key, 7)
        w = 0.05 * jax.random.normal(kw_, (cout, cin, KW, KW, KW), jnp.float32)
        if has_bn:
            gamma = 1.0 + 0.1 * jax.random.normal(kg, (cout,), jnp.float32)
            beta = 0.05 * jax.random.normal(kbt, (cout,), jnp.float32)
            rmean = 0.05 * jax.random.normal(km, (cout,), jnp.float32)
            rvar = 1.0 + 0.1 * jnp.abs(jax.random.normal(kv, (cout,), jnp.float32))
            scale = gamma * lax.rsqrt(rvar + BN_EPS)
            shift = beta - rmean * scale
        else:
            bias = 0.05 * jax.random.normal(kb, (cout,), jnp.float32)
            scale = jnp.ones((cout,), jnp.float32)
            shift = bias
        is_last = (i == len(specs) - 1)
        alpha = 1.0 if is_last else 0.2   # LeakyReLU(0.2) everywhere but the last conv
        params.append(dict(w=w, scale=scale, shift=shift,
                           stride=stride, alpha=alpha))
    return params


# ------------------------------ reference -------------------------------------

def reference_forward(x, params):
    # Precision-matched reference: same bf16 operand quantization (scale folded
    # into weights before the cast), f32 accumulation and epilogue.
    dn = ("NCDHW", "OIDHW", "NCDHW")
    for layer in params:
        s = layer["stride"]
        w_scaled = layer["w"] * layer["scale"][:, None, None, None, None]
        y = lax.conv_general_dilated(
            x.astype(jnp.bfloat16), w_scaled.astype(jnp.bfloat16),
            (s, s, s), [(PADW, PADW)] * 3,
            dimension_numbers=dn, preferred_element_type=jnp.float32)
        y = y + layer["shift"][None, :, None, None, None]
        x = jnp.where(y >= 0, y, layer["alpha"] * y)
    return x


# -------------------------------- main -----------------------------------------

if __name__ == "__main__":
    input_nc, ndf, n_layers = 2, 8, 3
    key = jax.random.PRNGKey(0)
    kx, kp = jax.random.split(key)
    x = jax.random.normal(kx, (2, input_nc, 32, 32, 32), jnp.float32)
    params = init_params(kp, input_nc, ndf, n_layers)
    prepped = prep_params(params)

    fwd = jax.jit(lambda inp: nlayer_discriminator_forward(inp, prepped))
    out = jax.block_until_ready(fwd(x))
    ref = jax.block_until_ready(reference_forward(x, params))

    assert out.shape == ref.shape == (2, 1, 2, 2, 2), out.shape
    assert jnp.allclose(out, ref, atol=1e-2, rtol=1e-2), \
        float(jnp.max(jnp.abs(out - ref)))
    print("KERNEL_OK")
</pallas_src>

<mosaic_0001>
module attributes {stable_mosaic.version = 11 : i64} {
  func.func @_conv_mm_kernel(%arg0: i32, %arg1: i32, %arg2: i32, %arg3: memref<2048x128xbf16, #tpu.memory_space<vmem>>, %arg4: memref<128x128xbf16, #tpu.memory_space<vmem>>, %arg5: memref<1x128xf32, #tpu.memory_space<vmem>>, %arg6: memref<2048x128xbf16, #tpu.memory_space<vmem>>, %arg7: memref<2048x128xf32, #tpu.memory_space<vmem>>) attributes {dimension_semantics = [#tpu.dimension_semantics<parallel>, #tpu.dimension_semantics<parallel>, #tpu.dimension_semantics<arbitrary>], iteration_bounds = array<i64: 4, 1, 1>, scalar_prefetch = 0 : i64, scratch_operands = 1 : i64, tpu.core_type = #tpu.core_type<tc>, window_params = [{transform_indices = @transform_0, window_bounds = array<i64: 2048, 128>}, {transform_indices = @transform_1, window_bounds = array<i64: 128, 128>}, {transform_indices = @transform_2, window_bounds = array<i64: 1, 128>}, {transform_indices = @transform_3, window_bounds = array<i64: 2048, 128>}]} {
    %c0_i32 = arith.constant 0 : i32
    %0 = arith.cmpi eq, %arg2, %c0_i32 : i32
    %1 = arith.extui %0 : i1 to i32
    %c0_i32_0 = arith.constant 0 : i32
    %2 = arith.cmpi ne, %1, %c0_i32_0 : i32
    scf.if %2 {
      %cst_10 = arith.constant 0.000000e+00 : f32
      %12 = vector.broadcast %cst_10 : f32 to vector<2048x128xf32>
      %c0_11 = arith.constant 0 : index
      %c0_12 = arith.constant 0 : index
      %13 = vector.load %arg7[%c0_11, %c0_12] : memref<2048x128xf32, #tpu.memory_space<vmem>>, vector<2048x128xf32>
      tpu.vector_store %arg7[%c0_11, %c0_12], %12 {strides = array<i32>} : memref<2048x128xf32, #tpu.memory_space<vmem>>, vector<2048x128xf32>,
    } else {
    }
    %c0 = arith.constant 0 : index
    %c0_1 = arith.constant 0 : index
    %3 = vector.load %arg7[%c0, %c0_1] : memref<2048x128xf32, #tpu.memory_space<vmem>>, vector<2048x128xf32>
    %c0_2 = arith.constant 0 : index
    %c0_3 = arith.constant 0 : index
    %4 = vector.load %arg3[%c0_2, %c0_3] : memref<2048x128xbf16, #tpu.memory_space<vmem>>, vector<2048x128xbf16>
    %c0_4 = arith.constant 0 : index
    %c0_5 = arith.constant 0 : index
    %5 = vector.load %arg4[%c0_4, %c0_5] : memref<128x128xbf16, #tpu.memory_space<vmem>>, vector<128x128xbf16>
    %cst = arith.constant dense<0.000000e+00> : vector<2048x128xf32>
    %6 = tpu.matmul %4, %5, %cst {dimension_numbers = #tpu.dot_dimension_numbers<[1], [0], [0], [1], [0, 0, 1, 1], [], []>} : vector<2048x128xbf16>, vector<128x128xbf16>, vector<2048x128xf32> -> vector<2048x128xf32>
    %7 = arith.addf %3, %6 : vector<2048x128xf32>
    %c0_6 = arith.constant 0 : index
    %c0_7 = arith.constant 0 : index
    %8 = vector.load %arg7[%c0_6, %c0_7] : memref<2048x128xf32, #tpu.memory_space<vmem>>, vector<2048x128xf32>
    tpu.vector_store %arg7[%c0_6, %c0_7], %7 {strides = array<i32>} : memref<2048x128xf32, #tpu.memory_space<vmem>>, vector<2048x128xf32>,
    %c0_i32_8 = arith.constant 0 : i32
    %9 = arith.cmpi eq, %arg2, %c0_i32_8 : i32
    %10 = arith.extui %9 : i1 to i32
    %c0_i32_9 = arith.constant 0 : i32
    %11 = arith.cmpi ne, %10, %c0_i32_9 : i32
    scf.if %11 {
      %c0_10 = arith.constant 0 : index
      %c0_11 = arith.constant 0 : index
      %12 = vector.load %arg7[%c0_10, %c0_11] : memref<2048x128xf32, #tpu.memory_space<vmem>>, vector<2048x128xf32>
      %c0_12 = arith.constant 0 : index
      %c0_13 = arith.constant 0 : index
      %13 = vector.load %arg5[%c0_12, %c0_13] : memref<1x128xf32, #tpu.memory_space<vmem>>, vector<1x128xf32>
      %14 = vector.broadcast %13 : vector<1x128xf32> to vector<2048x128xf32>
      %15 = arith.addf %12, %14 : vector<2048x128xf32>
      %cst_14 = arith.constant 2.000000e-01 : f32
      %16 = vector.broadcast %cst_14 : f32 to vector<2048x128xf32>
      %17 = arith.mulf %16, %15 : vector<2048x128xf32>
      %18 = arith.maximumf %15, %17 : vector<2048x128xf32>
      %19 = arith.truncf %18 : vector<2048x128xf32> to vector<2048x128xbf16>
      %c0_15 = arith.constant 0 : index
      %c0_16 = arith.constant 0 : index
      %20 = vector.load %arg6[%c0_15, %c0_16] : memref<2048x128xbf16, #tpu.memory_space<vmem>>, vector<2048x128xbf16>
      tpu.vector_store %arg6[%c0_15, %c0_16], %19 {strides = array<i32>} : memref<2048x128xbf16, #tpu.memory_space<vmem>>, vector<2048x128xbf16>,
    } else {
    }
    return
  }
  func.func @transform_0(%arg0: i32, %arg1: i32, %arg2: i32) -> (i32, i32) {
    %c0_i32 = arith.constant 0 : i32
    return %arg0, %arg2 : i32, i32
  }
  func.func @transform_1(%arg0: i32, %arg1: i32, %arg2: i32) -> (i32, i32) {
    %c0_i32 = arith.constant 0 : i32
    return %arg2, %arg1 : i32, i32
  }
  func.func @transform_2(%arg0: i32, %arg1: i32, %arg2: i32) -> (i32, i32) {
    %c0_i32 = arith.constant 0 : i32
    %c0_i32_0 = arith.constant 0 : i32
    return %c0_i32, %arg1 : i32, i32
  }
  func.func @transform_3(%arg0: i32, %arg1: i32, %arg2: i32) -> (i32, i32) {
    %c0_i32 = arith.constant 0 : i32
    return %arg0, %arg1 : i32, i32
  }
}

module attributes {stable_mosaic.version = 11 : i64} {
  func.func @_conv_mm_kernel(%arg0: i32, %arg1: i32, %arg2: i32, %arg3: memref<1024x512xbf16, #tpu.memory_space<vmem>>, %arg4: memref<512x128xbf16, #tpu.memory_space<vmem>>, %arg5: memref<1x128xf32, #tpu.memory_space<vmem>>, %arg6: memref<1024x128xbf16, #tpu.memory_space<vmem>>, %arg7: memref<1024x128xf32, #tpu.memory_space<vmem>>) attributes {dimension_semantics = [#tpu.dimension_semantics<parallel>, #tpu.dimension_semantics<parallel>, #tpu.dimension_semantics<arbitrary>], iteration_bounds = array<i64: 1, 1, 1>, scalar_prefetch = 0 : i64, scratch_operands = 1 : i64, tpu.core_type = #tpu.core_type<tc>, window_params = [{transform_indices = @transform_0, window_bounds = array<i64: 1024, 512>}, {transform_indices = @transform_1, window_bounds = array<i64: 512, 128>}, {transform_indices = @transform_2, window_bounds = array<i64: 1, 128>}, {transform_indices = @transform_3, window_bounds = array<i64: 1024, 128>}]} {
    %c0_i32 = arith.constant 0 : i32
    %0 = arith.cmpi eq, %arg2, %c0_i32 : i32
    %1 = arith.extui %0 : i1 to i32
    %c0_i32_0 = arith.constant 0 : i32
    %2 = arith.cmpi ne, %1, %c0_i32_0 : i32
    scf.if %2 {
      %cst_10 = arith.constant 0.000000e+00 : f32
      %12 = vector.broadcast %cst_10 : f32 to vector<1024x128xf32>
      %c0_11 = arith.constant 0 : index
      %c0_12 = arith.constant 0 : index
      %13 = vector.load %arg7[%c0_11, %c0_12] : memref<1024x128xf32, #tpu.memory_space<vmem>>, vector<1024x128xf32>
      tpu.vector_store %arg7[%c0_11, %c0_12], %12 {strides = array<i32>} : memref<1024x128xf32, #tpu.memory_space<vmem>>, vector<1024x128xf32>,
    } else {
    }
    %c0 = arith.constant 0 : index
    %c0_1 = arith.constant 0 : index
    %3 = vector.load %arg7[%c0, %c0_1] : memref<1024x128xf32, #tpu.memory_space<vmem>>, vector<1024x128xf32>
    %c0_2 = arith.constant 0 : index
    %c0_3 = arith.constant 0 : index
    %4 = vector.load %arg3[%c0_2, %c0_3] : memref<1024x512xbf16, #tpu.memory_space<vmem>>, vector<1024x512xbf16>
    %c0_4 = arith.constant 0 : index
    %c0_5 = arith.constant 0 : index
    %5 = vector.load %arg4[%c0_4, %c0_5] : memref<512x128xbf16, #tpu.memory_space<vmem>>, vector<512x128xbf16>
    %cst = arith.constant dense<0.000000e+00> : vector<1024x128xf32>
    %6 = tpu.matmul %4, %5, %cst {dimension_numbers = #tpu.dot_dimension_numbers<[1], [0], [0], [1], [0, 0, 1, 1], [], []>} : vector<1024x512xbf16>, vector<512x128xbf16>, vector<1024x128xf32> -> vector<1024x128xf32>
    %7 = arith.addf %3, %6 : vector<1024x128xf32>
    %c0_6 = arith.constant 0 : index
    %c0_7 = arith.constant 0 : index
    %8 = vector.load %arg7[%c0_6, %c0_7] : memref<1024x128xf32, #tpu.memory_space<vmem>>, vector<1024x128xf32>
    tpu.vector_store %arg7[%c0_6, %c0_7], %7 {strides = array<i32>} : memref<1024x128xf32, #tpu.memory_space<vmem>>, vector<1024x128xf32>,
    %c0_i32_8 = arith.constant 0 : i32
    %9 = arith.cmpi eq, %arg2, %c0_i32_8 : i32
    %10 = arith.extui %9 : i1 to i32
    %c0_i32_9 = arith.constant 0 : i32
    %11 = arith.cmpi ne, %10, %c0_i32_9 : i32
    scf.if %11 {
      %c0_10 = arith.constant 0 : index
      %c0_11 = arith.constant 0 : index
      %12 = vector.load %arg7[%c0_10, %c0_11] : memref<1024x128xf32, #tpu.memory_space<vmem>>, vector<1024x128xf32>
      %c0_12 = arith.constant 0 : index
      %c0_13 = arith.constant 0 : index
      %13 = vector.load %arg5[%c0_12, %c0_13] : memref<1x128xf32, #tpu.memory_space<vmem>>, vector<1x128xf32>
      %14 = vector.broadcast %13 : vector<1x128xf32> to vector<1024x128xf32>
      %15 = arith.addf %12, %14 : vector<1024x128xf32>
      %cst_14 = arith.constant 2.000000e-01 : f32
      %16 = vector.broadcast %cst_14 : f32 to vector<1024x128xf32>
      %17 = arith.mulf %16, %15 : vector<1024x128xf32>
      %18 = arith.maximumf %15, %17 : vector<1024x128xf32>
      %19 = arith.truncf %18 : vector<1024x128xf32> to vector<1024x128xbf16>
      %c0_15 = arith.constant 0 : index
      %c0_16 = arith.constant 0 : index
      %20 = vector.load %arg6[%c0_15, %c0_16] : memref<1024x128xbf16, #tpu.memory_space<vmem>>, vector<1024x128xbf16>
      tpu.vector_store %arg6[%c0_15, %c0_16], %19 {strides = array<i32>} : memref<1024x128xbf16, #tpu.memory_space<vmem>>, vector<1024x128xbf16>,
    } else {
    }
    return
  }
  func.func @transform_0(%arg0: i32, %arg1: i32, %arg2: i32) -> (i32, i32) {
    %c0_i32 = arith.constant 0 : i32
    return %arg0, %arg2 : i32, i32
  }
  func.func @transform_1(%arg0: i32, %arg1: i32, %arg2: i32) -> (i32, i32) {
    %c0_i32 = arith.constant 0 : i32
    return %arg2, %arg1 : i32, i32
  }
  func.func @transform_2(%arg0: i32, %arg1: i32, %arg2: i32) -> (i32, i32) {
    %c0_i32 = arith.constant 0 : i32
    %c0_i32_0 = arith.constant 0 : i32
    return %c0_i32, %arg1 : i32, i32
  }
  func.func @transform_3(%arg0: i32, %arg1: i32, %arg2: i32) -> (i32, i32) {
    %c0_i32 = arith.constant 0 : i32
    return %arg0, %arg1 : i32, i32
  }
}

module attributes {stable_mosaic.version = 11 : i64} {
  func.func @_conv_mm_kernel(%arg0: i32, %arg1: i32, %arg2: i32, %arg3: memref<128x1024xbf16, #tpu.memory_space<vmem>>, %arg4: memref<1024x128xbf16, #tpu.memory_space<vmem>>, %arg5: memref<1x128xf32, #tpu.memory_space<vmem>>, %arg6: memref<128x128xbf16, #tpu.memory_space<vmem>>, %arg7: memref<128x128xf32, #tpu.memory_space<vmem>>) attributes {dimension_semantics = [#tpu.dimension_semantics<parallel>, #tpu.dimension_semantics<parallel>, #tpu.dimension_semantics<arbitrary>], iteration_bounds = array<i64: 1, 1, 1>, scalar_prefetch = 0 : i64, scratch_operands = 1 : i64, tpu.core_type = #tpu.core_type<tc>, window_params = [{transform_indices = @transform_0, window_bounds = array<i64: 128, 1024>}, {transform_indices = @transform_1, window_bounds = array<i64: 1024, 128>}, {transform_indices = @transform_2, window_bounds = array<i64: 1, 128>}, {transform_indices = @transform_3, window_bounds = array<i64: 128, 128>}]} {
    %c0_i32 = arith.constant 0 : i32
    %0 = arith.cmpi eq, %arg2, %c0_i32 : i32
    %1 = arith.extui %0 : i1 to i32
    %c0_i32_0 = arith.constant 0 : i32
    %2 = arith.cmpi ne, %1, %c0_i32_0 : i32
    scf.if %2 {
      %cst_10 = arith.constant 0.000000e+00 : f32
      %12 = vector.broadcast %cst_10 : f32 to vector<128x128xf32>
      %c0_11 = arith.constant 0 : index
      %c0_12 = arith.constant 0 : index
      %13 = vector.load %arg7[%c0_11, %c0_12] : memref<128x128xf32, #tpu.memory_space<vmem>>, vector<128x128xf32>
      tpu.vector_store %arg7[%c0_11, %c0_12], %12 {strides = array<i32>} : memref<128x128xf32, #tpu.memory_space<vmem>>, vector<128x128xf32>,
    } else {
    }
    %c0 = arith.constant 0 : index
    %c0_1 = arith.constant 0 : index
    %3 = vector.load %arg7[%c0, %c0_1] : memref<128x128xf32, #tpu.memory_space<vmem>>, vector<128x128xf32>
    %c0_2 = arith.constant 0 : index
    %c0_3 = arith.constant 0 : index
    %4 = vector.load %arg3[%c0_2, %c0_3] : memref<128x1024xbf16, #tpu.memory_space<vmem>>, vector<128x1024xbf16>
    %c0_4 = arith.constant 0 : index
    %c0_5 = arith.constant 0 : index
    %5 = vector.load %arg4[%c0_4, %c0_5] : memref<1024x128xbf16, #tpu.memory_space<vmem>>, vector<1024x128xbf16>
    %cst = arith.constant dense<0.000000e+00> : vector<128x128xf32>
    %6 = tpu.matmul %4, %5, %cst {dimension_numbers = #tpu.dot_dimension_numbers<[1], [0], [0], [1], [0, 0, 1, 1], [], []>} : vector<128x1024xbf16>, vector<1024x128xbf16>, vector<128x128xf32> -> vector<128x128xf32>
    %7 = arith.addf %3, %6 : vector<128x128xf32>
    %c0_6 = arith.constant 0 : index
    %c0_7 = arith.constant 0 : index
    %8 = vector.load %arg7[%c0_6, %c0_7] : memref<128x128xf32, #tpu.memory_space<vmem>>, vector<128x128xf32>
    tpu.vector_store %arg7[%c0_6, %c0_7], %7 {strides = array<i32>} : memref<128x128xf32, #tpu.memory_space<vmem>>, vector<128x128xf32>,
    %c0_i32_8 = arith.constant 0 : i32
    %9 = arith.cmpi eq, %arg2, %c0_i32_8 : i32
    %10 = arith.extui %9 : i1 to i32
    %c0_i32_9 = arith.constant 0 : i32
    %11 = arith.cmpi ne, %10, %c0_i32_9 : i32
    scf.if %11 {
      %c0_10 = arith.constant 0 : index
      %c0_11 = arith.constant 0 : index
      %12 = vector.load %arg7[%c0_10, %c0_11] : memref<128x128xf32, #tpu.memory_space<vmem>>, vector<128x128xf32>
      %c0_12 = arith.constant 0 : index
      %c0_13 = arith.constant 0 : index
      %13 = vector.load %arg5[%c0_12, %c0_13] : memref<1x128xf32, #tpu.memory_space<vmem>>, vector<1x128xf32>
      %14 = vector.broadcast %13 : vector<1x128xf32> to vector<128x128xf32>
      %15 = arith.addf %12, %14 : vector<128x128xf32>
      %cst_14 = arith.constant 2.000000e-01 : f32
      %16 = vector.broadcast %cst_14 : f32 to vector<128x128xf32>
      %17 = arith.mulf %16, %15 : vector<128x128xf32>
      %18 = arith.maximumf %15, %17 : vector<128x128xf32>
      %19 = arith.truncf %18 : vector<128x128xf32> to vector<128x128xbf16>
      %c0_15 = arith.constant 0 : index
      %c0_16 = arith.constant 0 : index
      %20 = vector.load %arg6[%c0_15, %c0_16] : memref<128x128xbf16, #tpu.memory_space<vmem>>, vector<128x128xbf16>
      tpu.vector_store %arg6[%c0_15, %c0_16], %19 {strides = array<i32>} : memref<128x128xbf16, #tpu.memory_space<vmem>>, vector<128x128xbf16>,
    } else {
    }
    return
  }
  func.func @transform_0(%arg0: i32, %arg1: i32, %arg2: i32) -> (i32, i32) {
    %c0_i32 = arith.constant 0 : i32
    return %arg0, %arg2 : i32, i32
  }
  func.func @transform_1(%arg0: i32, %arg1: i32, %arg2: i32) -> (i32, i32) {
    %c0_i32 = arith.constant 0 : i32
    return %arg2, %arg1 : i32, i32
  }
  func.func @transform_2(%arg0: i32, %arg1: i32, %arg2: i32) -> (i32, i32) {
    %c0_i32 = arith.constant 0 : i32
    %c0_i32_0 = arith.constant 0 : i32
    return %c0_i32, %arg1 : i32, i32
  }
  func.func @transform_3(%arg0: i32, %arg1: i32, %arg2: i32) -> (i32, i32) {
    %c0_i32 = arith.constant 0 : i32
    return %arg0, %arg1 : i32, i32
  }
}

module attributes {stable_mosaic.version = 11 : i64} {
  func.func @_conv_mm_kernel(%arg0: i32, %arg1: i32, %arg2: i32, %arg3: memref<56x2048xbf16, #tpu.memory_space<vmem>>, %arg4: memref<2048x128xbf16, #tpu.memory_space<vmem>>, %arg5: memref<1x128xf32, #tpu.memory_space<vmem>>, %arg6: memref<56x128xbf16, #tpu.memory_space<vmem>>, %arg7: memref<56x128xf32, #tpu.memory_space<vmem>>) attributes {dimension_semantics = [#tpu.dimension_semantics<parallel>, #tpu.dimension_semantics<parallel>, #tpu.dimension_semantics<arbitrary>], iteration_bounds = array<i64: 1, 1, 1>, scalar_prefetch = 0 : i64, scratch_operands = 1 : i64, tpu.core_type = #tpu.core_type<tc>, window_params = [{transform_indices = @transform_0, window_bounds = array<i64: 56, 2048>}, {transform_indices = @transform_1, window_bounds = array<i64: 2048, 128>}, {transform_indices = @transform_2, window_bounds = array<i64: 1, 128>}, {transform_indices = @transform_3, window_bounds = array<i64: 56, 128>}]} {
    %c0_i32 = arith.constant 0 : i32
    %0 = arith.cmpi eq, %arg2, %c0_i32 : i32
    %1 = arith.extui %0 : i1 to i32
    %c0_i32_0 = arith.constant 0 : i32
    %2 = arith.cmpi ne, %1, %c0_i32_0 : i32
    scf.if %2 {
      %cst_10 = arith.constant 0.000000e+00 : f32
      %12 = vector.broadcast %cst_10 : f32 to vector<56x128xf32>
      %c0_11 = arith.constant 0 : index
      %c0_12 = arith.constant 0 : index
      %13 = vector.load %arg7[%c0_11, %c0_12] : memref<56x128xf32, #tpu.memory_space<vmem>>, vector<56x128xf32>
      tpu.vector_store %arg7[%c0_11, %c0_12], %12 {strides = array<i32>} : memref<56x128xf32, #tpu.memory_space<vmem>>, vector<56x128xf32>,
    } else {
    }
    %c0 = arith.constant 0 : index
    %c0_1 = arith.constant 0 : index
    %3 = vector.load %arg7[%c0, %c0_1] : memref<56x128xf32, #tpu.memory_space<vmem>>, vector<56x128xf32>
    %c0_2 = arith.constant 0 : index
    %c0_3 = arith.constant 0 : index
    %4 = vector.load %arg3[%c0_2, %c0_3] : memref<56x2048xbf16, #tpu.memory_space<vmem>>, vector<56x2048xbf16>
    %c0_4 = arith.constant 0 : index
    %c0_5 = arith.constant 0 : index
    %5 = vector.load %arg4[%c0_4, %c0_5] : memref<2048x128xbf16, #tpu.memory_space<vmem>>, vector<2048x128xbf16>
    %cst = arith.constant dense<0.000000e+00> : vector<56x128xf32>
    %6 = tpu.matmul %4, %5, %cst {dimension_numbers = #tpu.dot_dimension_numbers<[1], [0], [0], [1], [0, 0, 1, 1], [], []>} : vector<56x2048xbf16>, vector<2048x128xbf16>, vector<56x128xf32> -> vector<56x128xf32>
    %7 = arith.addf %3, %6 : vector<56x128xf32>
    %c0_6 = arith.constant 0 : index
    %c0_7 = arith.constant 0 : index
    %8 = vector.load %arg7[%c0_6, %c0_7] : memref<56x128xf32, #tpu.memory_space<vmem>>, vector<56x128xf32>
    tpu.vector_store %arg7[%c0_6, %c0_7], %7 {strides = array<i32>} : memref<56x128xf32, #tpu.memory_space<vmem>>, vector<56x128xf32>,
    %c0_i32_8 = arith.constant 0 : i32
    %9 = arith.cmpi eq, %arg2, %c0_i32_8 : i32
    %10 = arith.extui %9 : i1 to i32
    %c0_i32_9 = arith.constant 0 : i32
    %11 = arith.cmpi ne, %10, %c0_i32_9 : i32
    scf.if %11 {
      %c0_10 = arith.constant 0 : index
      %c0_11 = arith.constant 0 : index
      %12 = vector.load %arg7[%c0_10, %c0_11] : memref<56x128xf32, #tpu.memory_space<vmem>>, vector<56x128xf32>
      %c0_12 = arith.constant 0 : index
      %c0_13 = arith.constant 0 : index
      %13 = vector.load %arg5[%c0_12, %c0_13] : memref<1x128xf32, #tpu.memory_space<vmem>>, vector<1x128xf32>
      %14 = vector.broadcast %13 : vector<1x128xf32> to vector<56x128xf32>
      %15 = arith.addf %12, %14 : vector<56x128xf32>
      %cst_14 = arith.constant 2.000000e-01 : f32
      %16 = vector.broadcast %cst_14 : f32 to vector<56x128xf32>
      %17 = arith.mulf %16, %15 : vector<56x128xf32>
      %18 = arith.maximumf %15, %17 : vector<56x128xf32>
      %19 = arith.truncf %18 : vector<56x128xf32> to vector<56x128xbf16>
      %c0_15 = arith.constant 0 : index
      %c0_16 = arith.constant 0 : index
      %20 = vector.load %arg6[%c0_15, %c0_16] : memref<56x128xbf16, #tpu.memory_space<vmem>>, vector<56x128xbf16>
      tpu.vector_store %arg6[%c0_15, %c0_16], %19 {strides = array<i32>} : memref<56x128xbf16, #tpu.memory_space<vmem>>, vector<56x128xbf16>,
    } else {
    }
    return
  }
  func.func @transform_0(%arg0: i32, %arg1: i32, %arg2: i32) -> (i32, i32) {
    %c0_i32 = arith.constant 0 : i32
    return %arg0, %arg2 : i32, i32
  }
  func.func @transform_1(%arg0: i32, %arg1: i32, %arg2: i32) -> (i32, i32) {
    %c0_i32 = arith.constant 0 : i32
    return %arg2, %arg1 : i32, i32
  }
  func.func @transform_2(%arg0: i32, %arg1: i32, %arg2: i32) -> (i32, i32) {
    %c0_i32 = arith.constant 0 : i32
    %c0_i32_0 = arith.constant 0 : i32
    return %c0_i32, %arg1 : i32, i32
  }
  func.func @transform_3(%arg0: i32, %arg1: i32, %arg2: i32) -> (i32, i32) {
    %c0_i32 = arith.constant 0 : i32
    return %arg0, %arg1 : i32, i32
  }
}

module attributes {stable_mosaic.version = 11 : i64} {
  func.func @_conv_mm_kernel(%arg0: i32, %arg1: i32, %arg2: i32, %arg3: memref<16x2048xbf16, #tpu.memory_space<vmem>>, %arg4: memref<2048x128xbf16, #tpu.memory_space<vmem>>, %arg5: memref<1x128xf32, #tpu.memory_space<vmem>>, %arg6: memref<16x128xf32, #tpu.memory_space<vmem>>, %arg7: memref<16x128xf32, #tpu.memory_space<vmem>>) attributes {dimension_semantics = [#tpu.dimension_semantics<parallel>, #tpu.dimension_semantics<parallel>, #tpu.dimension_semantics<arbitrary>], iteration_bounds = array<i64: 1, 1, 2>, scalar_prefetch = 0 : i64, scratch_operands = 1 : i64, tpu.core_type = #tpu.core_type<tc>, window_params = [{transform_indices = @transform_0, window_bounds = array<i64: 16, 2048>}, {transform_indices = @transform_1, window_bounds = array<i64: 2048, 128>}, {transform_indices = @transform_2, window_bounds = array<i64: 1, 128>}, {transform_indices = @transform_3, window_bounds = array<i64: 16, 128>}]} {
    %c0_i32 = arith.constant 0 : i32
    %0 = arith.cmpi eq, %arg2, %c0_i32 : i32
    %1 = arith.extui %0 : i1 to i32
    %c0_i32_0 = arith.constant 0 : i32
    %2 = arith.cmpi ne, %1, %c0_i32_0 : i32
    scf.if %2 {
      %cst_9 = arith.constant 0.000000e+00 : f32
      %12 = vector.broadcast %cst_9 : f32 to vector<16x128xf32>
      %c0_10 = arith.constant 0 : index
      %c0_11 = arith.constant 0 : index
      %13 = vector.load %arg7[%c0_10, %c0_11] : memref<16x128xf32, #tpu.memory_space<vmem>>, vector<16x128xf32>
      tpu.vector_store %arg7[%c0_10, %c0_11], %12 {strides = array<i32>} : memref<16x128xf32, #tpu.memory_space<vmem>>, vector<16x128xf32>,
    } else {
    }
    %c0 = arith.constant 0 : index
    %c0_1 = arith.constant 0 : index
    %3 = vector.load %arg7[%c0, %c0_1] : memref<16x128xf32, #tpu.memory_space<vmem>>, vector<16x128xf32>
    %c0_2 = arith.constant 0 : index
    %c0_3 = arith.constant 0 : index
    %4 = vector.load %arg3[%c0_2, %c0_3] : memref<16x2048xbf16, #tpu.memory_space<vmem>>, vector<16x2048xbf16>
    %c0_4 = arith.constant 0 : index
    %c0_5 = arith.constant 0 : index
    %5 = vector.load %arg4[%c0_4, %c0_5] : memref<2048x128xbf16, #tpu.memory_space<vmem>>, vector<2048x128xbf16>
    %cst = arith.constant dense<0.000000e+00> : vector<16x128xf32>
    %6 = tpu.matmul %4, %5, %cst {dimension_numbers = #tpu.dot_dimension_numbers<[1], [0], [0], [1], [0, 0, 1, 1], [], []>} : vector<16x2048xbf16>, vector<2048x128xbf16>, vector<16x128xf32> -> vector<16x128xf32>
    %7 = arith.addf %3, %6 : vector<16x128xf32>
    %c0_6 = arith.constant 0 : index
    %c0_7 = arith.constant 0 : index
    %8 = vector.load %arg7[%c0_6, %c0_7] : memref<16x128xf32, #tpu.memory_space<vmem>>, vector<16x128xf32>
    tpu.vector_store %arg7[%c0_6, %c0_7], %7 {strides = array<i32>} : memref<16x128xf32, #tpu.memory_space<vmem>>, vector<16x128xf32>,
    %c1_i32 = arith.constant 1 : i32
    %9 = arith.cmpi eq, %arg2, %c1_i32 : i32
    %10 = arith.extui %9 : i1 to i32
    %c0_i32_8 = arith.constant 0 : i32
    %11 = arith.cmpi ne, %10, %c0_i32_8 : i32
    scf.if %11 {
      %c0_9 = arith.constant 0 : index
      %c0_10 = arith.constant 0 : index
      %12 = vector.load %arg7[%c0_9, %c0_10] : memref<16x128xf32, #tpu.memory_space<vmem>>, vector<16x128xf32>
      %c0_11 = arith.constant 0 : index
      %c0_12 = arith.constant 0 : index
      %13 = vector.load %arg5[%c0_11, %c0_12] : memref<1x128xf32, #tpu.memory_space<vmem>>, vector<1x128xf32>
      %14 = vector.broadcast %13 : vector<1x128xf32> to vector<16x128xf32>
      %15 = arith.addf %12, %14 : vector<16x128xf32>
      %cst_13 = arith.constant 1.000000e+00 : f32
      %16 = vector.broadcast %cst_13 : f32 to vector<16x128xf32>
      %17 = arith.mulf %16, %15 : vector<16x128xf32>
      %18 = arith.maximumf %15, %17 : vector<16x128xf32>
      %c0_14 = arith.constant 0 : index
      %c0_15 = arith.constant 0 : index
      %19 = vector.load %arg6[%c0_14, %c0_15] : memref<16x128xf32, #tpu.memory_space<vmem>>, vector<16x128xf32>
      tpu.vector_store %arg6[%c0_14, %c0_15], %18 {strides = array<i32>} : memref<16x128xf32, #tpu.memory_space<vmem>>, vector<16x128xf32>,
    } else {
    }
    return
  }
  func.func @transform_0(%arg0: i32, %arg1: i32, %arg2: i32) -> (i32, i32) {
    %c0_i32 = arith.constant 0 : i32
    return %arg0, %arg2 : i32, i32
  }
  func.func @transform_1(%arg0: i32, %arg1: i32, %arg2: i32) -> (i32, i32) {
    %c0_i32 = arith.constant 0 : i32
    return %arg2, %arg1 : i32, i32
  }
  func.func @transform_2(%arg0: i32, %arg1: i32, %arg2: i32) -> (i32, i32) {
    %c0_i32 = arith.constant 0 : i32
    %c0_i32_0 = arith.constant 0 : i32
    return %c0_i32, %arg1 : i32, i32
  }
  func.func @transform_3(%arg0: i32, %arg1: i32, %arg2: i32) -> (i32, i32) {
    %c0_i32 = arith.constant 0 : i32
    return %arg0, %arg1 : i32, i32
  }
}

</mosaic_0001>

<bundles_post_ra>
// kernel: _lambda_.5
= control target key start
LH: loop header
LB: loop body
LE: loop exit
PB: predicated region body
PF: predicated region fallthrough
CT: control target
= control target key end

     0   :  { %s7917_s12 = smov 0   ;;  %s7919_s13 = smov 0   ;;  %s8512_s0 = inlined_call_operand.vmem [shape: bf16[8192,128], index: 0, kind: input, shape index: {}]   ;;  %s8513_s1 = inlined_call_operand.vmem [shape: bf16[128,128], index: 1, kind: input, shape index: {}]   ;;  %s8514_s2 = inlined_call_operand.vmem [shape: f32[1,128], index: 2, kind: input, shape index: {}]   ;;  %s8515_s3 = inlined_call_operand.vmem [shape: bf16[8192,128], index: 3, kind: output, shape index: {}]  }
   0x1   :  { %s7921_s14 = smov 0  }
   0x2 LB: > { %s32_s15 = sadd.s32 1, %s7891_s13  ;;  %p5864_p0 = scmp.ge.s32.totalorder %s7895_s14, 1  ;;  %s7895_s14 = sphi %s7921_s14, %s13_s14   ;;  %s7891_s13 = sphi %s7919_s13, %s8517_s13   ;;  %s7887_s12 = sphi %s7917_s12, %s8516_s12  }
   0x3   : > { %p34_p1 = scmp.ge.s32.totalorder %s32_s15, 4  ;;  %p188_p2 = scmp.lt.s32.totalorder %s7895_s14, 5 }
   0x5   : > { %s8519_s15 = smov (%p34_p1, %s32_s15), 0  ;;  %p189_p3 = pnand %p5864_p0, %p188_p2 }
   0x6   : > { %v7735_v0 = vld [vmem:[%s8513_s1] sm:$0xff] (!%p189_p3)   ;;  %s5865_s18 = sshll.u32 (!%p189_p3), %s7887_s12, 8  ;;  %v7736_v1 = vld [vmem:[%s8513_s1 + $0x8] sm:$0xff] (!%p189_p3)   ;;  %v7737_v2 = vld [vmem:[%s8513_s1 + $0x10] sm:$0xff] (!%p189_p3)  }
   0x7   : > { %192 = sbr.rel (%p189_p3) target bundleno = 512 (0x200), region = 32  ;;  %p230_p4 = scmp.lt.s32.totalorder (!%p189_p3), %s5865_s18, 1023  ;;  %7423 = vmatprep.subr.bf16.mxu0 (!%p189_p3), %v7735_v0  ;;  %7695 = vmatprep.subr.bf16.mxu1 (!%p189_p3), %v7735_v0  ;;  %v7738_v3 = vld [vmem:[%s8513_s1 + $0x18] sm:$0xff] (!%p189_p3)   ;;  %v7739_v6 = vld [vmem:[%s8513_s1 + $0x20] sm:$0xff] (!%p189_p3)   ;;  %v7740_v7 = vld [vmem:[%s8513_s1 + $0x28] sm:$0xff] (!%p189_p3)  }
   0x8   : > { %7424 = vmatpush3.bf16.msra.mxu0 (!%p189_p3), %v7735_v0  ;;  %7703 = vmatpush3.bf16.msra.mxu1 (!%p189_p3), %v7735_v0  ;;  %v7741_v8 = vld [vmem:[%s8513_s1 + $0x30] sm:$0xff] (!%p189_p3)   ;;  %v7742_v9 = vld [vmem:[%s8513_s1 + $0x38] sm:$0xff] (!%p189_p3)  }
   0x9   : > { %7425 = vmatprep.subr.bf16.mxu0 (!%p189_p3), %v7736_v1  ;;  %7696 = vmatprep.subr.bf16.mxu1 (!%p189_p3), %v7736_v1 }
   0xc   : > { %7426 = vmatpush3.bf16.msra.mxu0 (!%p189_p3), %v7736_v1  ;;  %7704 = vmatpush3.bf16.msra.mxu1 (!%p189_p3), %v7736_v1 }
   0xd   : > { %7427 = vmatprep.subr.bf16.mxu0 (!%p189_p3), %v7737_v2  ;;  %7697 = vmatprep.subr.bf16.mxu1 (!%p189_p3), %v7737_v2 }
   0xe   : > { %s8521_s18 = smov (!%p230_p4, %s5865_s18), 1023 }
   0xf   : > { %s5866_s23 = sshll.u32 %s8521_s18, 2 }
  0x10   : > { %s7952_s26 = scalar_lea.vmem %s8512_s0, %s5866_s23  ;;  %7428 = vmatpush3.bf16.msra.mxu0 %v7737_v2  ;;  %7705 = vmatpush3.bf16.msra.mxu1 %v7737_v2  ;;  %s8101_s17 = scalar_lea.vmem %s8515_s3, %s5866_s23 }
  0x11   : > { %v7743_v4 = vld [vmem:[%s7952_s26] sm:$0xff]   ;;  %7429 = vmatprep.subr.bf16.mxu0 %v7738_v3  ;;  %7698 = vmatprep.subr.bf16.mxu1 %v7738_v3  ;;  %v7745_v10 = vld [vmem:[%s7952_s26 + $0x8] sm:$0xff]   ;;  %v7747_v12 = vld [vmem:[%s7952_s26 + $0x10] sm:$0xff]  }
  0x12   : > { %v7744_v5 = vld [vmem:[%s7952_s26 + $0x200] sm:$0xff]   ;;  %7439 = vmatprep.mubr.bf16.mxu0 %v7743_v4  ;;  %v7746_v11 = vld [vmem:[%s7952_s26 + $0x208] sm:$0xff]   ;;  %v7748_v13 = vld [vmem:[%s7952_s26 + $0x210] sm:$0xff]  }
  0x13   : > { %7567 = vmatprep.mubr.bf16.mxu1 %v7744_v5  ;;  %v7749_v14 = vld [vmem:[%s7952_s26 + $0x18] sm:$0xff]   ;;  %v7751_v16 = vld [vmem:[%s7952_s26 + $0x20] sm:$0xff]   ;;  %v7753_v18 = vld [vmem:[%s7952_s26 + $0x28] sm:$0xff]  }
  0x14   : > { %7430 = vmatpush3.bf16.msra.mxu0 %v7738_v3  ;;  %7706 = vmatpush3.bf16.msra.mxu1 %v7738_v3  ;;  %v7750_v15 = vld [vmem:[%s7952_s26 + $0x218] sm:$0xff]   ;;  %v7752_v17 = vld [vmem:[%s7952_s26 + $0x220] sm:$0xff]   ;;  %v7754_v19 = vld [vmem:[%s7952_s26 + $0x228] sm:$0xff]  }
  0x15   : > { %7431 = vmatprep.subr.bf16.mxu0 %v7739_v6  ;;  %7699 = vmatprep.subr.bf16.mxu1 %v7739_v6  ;;  %v7755_v20 = vld [vmem:[%s7952_s26 + $0x30] sm:$0xff]   ;;  %v7757_v22 = vld [vmem:[%s7952_s26 + $0x38] sm:$0xff]   ;;  %v7759_v24 = vld [vmem:[%s7952_s26 + $0x40] sm:$0xff]  }
  0x16   : > { %v7756_v21 = vld [vmem:[%s7952_s26 + $0x230] sm:$0xff]   ;;  %v7758_v23 = vld [vmem:[%s7952_s26 + $0x238] sm:$0xff]   ;;  %v7760_v25 = vld [vmem:[%s7952_s26 + $0x240] sm:$0xff]  }
  0x17   : > { %v7761_v26 = vld [vmem:[%s7952_s26 + $0x48] sm:$0xff]   ;;  %v7763_v28 = vld [vmem:[%s7952_s26 + $0x50] sm:$0xff]   ;;  %v7765_v30 = vld [vmem:[%s7952_s26 + $0x58] sm:$0xff]  }
  0x18   : > { %7432 = vmatpush3.bf16.msra.mxu0 %v7739_v6  ;;  %7707 = vmatpush3.bf16.msra.mxu1 %v7739_v6  ;;  %v7762_v27 = vld [vmem:[%s7952_s26 + $0x248] sm:$0xff]   ;;  %v7764_v29 = vld [vmem:[%s7952_s26 + $0x250] sm:$0xff]   ;;  %v7766_v31 = vld [vmem:[%s7952_s26 + $0x258] sm:$0xff]  }
  0x19   : > { %7433 = vmatprep.subr.bf16.mxu0 %v7740_v7  ;;  %7700 = vmatprep.subr.bf16.mxu1 %v7740_v7  ;;  %v7767_v32 = vld [vmem:[%s7952_s26 + $0x60] sm:$0xff]   ;;  %v7769_v34 = vld [vmem:[%s7952_s26 + $0x68] sm:$0xff]   ;;  %v7771_v36 = vld [vmem:[%s7952_s26 + $0x70] sm:$0xff]  }
  0x1a   : > { %v7768_v33 = vld [vmem:[%s7952_s26 + $0x260] sm:$0xff]   ;;  %v7770_v35 = vld [vmem:[%s7952_s26 + $0x268] sm:$0xff]   ;;  %v7772_v37 = vld [vmem:[%s7952_s26 + $0x270] sm:$0xff]  }
  0x1b   : > { %v7773_v38 = vld [vmem:[%s7952_s26 + $0x78] sm:$0xff]   ;;  %v7775_v40 = vld [vmem:[%s7952_s26 + $0x80] sm:$0xff]   ;;  %v7777_v42 = vld [vmem:[%s7952_s26 + $0x88] sm:$0xff]  }
  0x1c   : > { %7434 = vmatpush3.bf16.msra.mxu0 %v7740_v7  ;;  %7708 = vmatpush3.bf16.msra.mxu1 %v7740_v7  ;;  %v7774_v39 = vld [vmem:[%s7952_s26 + $0x278] sm:$0xff]   ;;  %v7776_v41 = vld [vmem:[%s7952_s26 + $0x280] sm:$0xff]   ;;  %v7778_v43 = vld [vmem:[%s7952_s26 + $0x288] sm:$0xff]  }
  0x1d   : > { %7435 = vmatprep.subr.bf16.mxu0 %v7741_v8  ;;  %7701 = vmatprep.subr.bf16.mxu1 %v7741_v8  ;;  %v7779_v44 = vld [vmem:[%s7952_s26 + $0x90] sm:$0xff]   ;;  %v7781_v46 = vld [vmem:[%s7952_s26 + $0x98] sm:$0xff]   ;;  %v7783_v48 = vld [vmem:[%s7952_s26 + $0xa0] sm:$0xff]  }
  0x1e   : > { %v7780_v45 = vld [vmem:[%s7952_s26 + $0x290] sm:$0xff]   ;;  %v7782_v47 = vld [vmem:[%s7952_s26 + $0x298] sm:$0xff]   ;;  %v7784_v49 = vld [vmem:[%s7952_s26 + $0x2a0] sm:$0xff]  }
  0x1f   : > { %v7785_v50 = vld [vmem:[%s7952_s26 + $0xa8] sm:$0xff]   ;;  %v7787_v52 = vld [vmem:[%s7952_s26 + $0xb0] sm:$0xff]   ;;  %v7789_v54 = vld [vmem:[%s7952_s26 + $0xb8] sm:$0xff]  }
  0x20   : > { %7436 = vmatpush3.bf16.msra.mxu0 %v7741_v8  ;;  %7709 = vmatpush3.bf16.msra.mxu1 %v7741_v8  ;;  %v7786_v51 = vld [vmem:[%s7952_s26 + $0x2a8] sm:$0xff]   ;;  %v7788_v53 = vld [vmem:[%s7952_s26 + $0x2b0] sm:$0xff]   ;;  %v7790_v55 = vld [vmem:[%s7952_s26 + $0x2b8] sm:$0xff]  }
  0x21   : > { %7437 = vmatprep.subr.bf16.mxu0 %v7742_v9  ;;  %7702 = vmatprep.subr.bf16.mxu1 %v7742_v9  ;;  %v7791_v56 = vld [vmem:[%s7952_s26 + $0xc0] sm:$0xff]   ;;  %v7793_v58 = vld [vmem:[%s7952_s26 + $0xc8] sm:$0xff]   ;;  %v7795_v60 = vld [vmem:[%s7952_s26 + $0xd0] sm:$0xff]  }
  0x22   : > { %v7792_v57 = vld [vmem:[%s7952_s26 + $0x2c0] sm:$0xff]   ;;  %v7794_v59 = vld [vmem:[%s7952_s26 + $0x2c8] sm:$0xff]   ;;  %v7796_v61 = vld [vmem:[%s7952_s26 + $0x2d0] sm:$0xff]  }
  0x23   : > { %v7797_v62 = vld [vmem:[%s7952_s26 + $0xd8] sm:$0xff]   ;;  %v7799_v0 = vld [vmem:[%s7952_s26 + $0xe0] sm:$0xff]   ;;  %v7801_v2 = vld [vmem:[%s7952_s26 + $0xe8] sm:$0xff]  }
  0x24   : > { %7438 = vmatpush3.bf16.msra.mxu0 %v7742_v9  ;;  %7710 = vmatpush3.bf16.msra.mxu1 %v7742_v9  ;;  %v7798_v63 = vld [vmem:[%s7952_s26 + $0x2d8] sm:$0xff]   ;;  %v7800_v1 = vld [vmem:[%s7952_s26 + $0x2e0] sm:$0xff]   ;;  %v7802_v3 = vld [vmem:[%s7952_s26 + $0x2e8] sm:$0xff]  }
  0x25   : > { %v7803_v4 = vld [vmem:[%s7952_s26 + $0xf0] sm:$0xff]   ;;  %v7805_v6 = vld [vmem:[%s7952_s26 + $0xf8] sm:$0xff]   ;;  %v7807_v8 = vld [vmem:[%s7952_s26 + $0x100] sm:$0xff]  }
  0x26   : > { %v7804_v5 = vld [vmem:[%s7952_s26 + $0x2f0] sm:$0xff]   ;;  %v7806_v7 = vld [vmem:[%s7952_s26 + $0x2f8] sm:$0xff]   ;;  %v7808_v9 = vld [vmem:[%s7952_s26 + $0x300] sm:$0xff]  }
  0x27   : > { %7440 = vmatmul.mubr.bf16.vlgmr.msra.gmra.mrb[0].mxu0 %v7745_v10  ;;  %7568 = vmatmul.mubr.bf16.vlgmr.msra.gmra.mrb[0].mxu1 %v7746_v11  ;;  %v7809_v10 = vld [vmem:[%s7952_s26 + $0x108] sm:$0xff]  }
  0x28   : > { %7443 = vmatprep.mubr.bf16.mxu0 %v7747_v12  ;;  %7571 = vmatprep.mubr.bf16.mxu1 %v7748_v13  ;;  %v7810_v11 = vld [vmem:[%s7952_s26 + $0x308] sm:$0xff]   ;;  %v7811_v12 = vld [vmem:[%s7952_s26 + $0x110] sm:$0xff]  }
  0x29   : > { %v7812_v13 = vld [vmem:[%s7952_s26 + $0x310] sm:$0xff]  }
  0x2f   : > { %7444 = vmatmul.mubr.bf16.gmra.mrb[4].mxu0 %v7749_v14  ;;  %7572 = vmatmul.mubr.bf16.gmra.mrb[4].mxu1 %v7750_v15  ;;  %v7813_v14 = vld [vmem:[%s7952_s26 + $0x118] sm:$0xff]  }
  0x30   : > { %7447 = vmatprep.mubr.bf16.mxu0 %v7751_v16  ;;  %7575 = vmatprep.mubr.bf16.mxu1 %v7752_v17  ;;  %v7814_v15 = vld [vmem:[%s7952_s26 + $0x318] sm:$0xff]   ;;  %v7815_v16 = vld [vmem:[%s7952_s26 + $0x120] sm:$0xff]  }
  0x31   : > { %v7816_v17 = vld [vmem:[%s7952_s26 + $0x320] sm:$0xff]  }
  0x37   : > { %7448 = vmatmul.mubr.bf16.gmra.mrb[8].mxu0 %v7753_v18  ;;  %7576 = vmatmul.mubr.bf16.gmra.mrb[8].mxu1 %v7754_v19  ;;  %v7817_v18 = vld [vmem:[%s7952_s26 + $0x128] sm:$0xff]  }
  0x38   : > { %7451 = vmatprep.mubr.bf16.mxu0 %v7755_v20  ;;  %7579 = vmatprep.mubr.bf16.mxu1 %v7756_v21  ;;  %v7818_v19 = vld [vmem:[%s7952_s26 + $0x328] sm:$0xff]   ;;  %v7819_v20 = vld [vmem:[%s7952_s26 + $0x130] sm:$0xff]  }
  0x39   : > { %v7820_v21 = vld [vmem:[%s7952_s26 + $0x330] sm:$0xff]  }
  0x3f   : > { %7452 = vmatmul.mubr.bf16.gmra.mrb[12].mxu0 %v7757_v22  ;;  %7580 = vmatmul.mubr.bf16.gmra.mrb[12].mxu1 %v7758_v23  ;;  %v7821_v22 = vld [vmem:[%s7952_s26 + $0x138] sm:$0xff]  }
  0x40   : > { %7455 = vmatprep.mubr.bf16.mxu0 %v7759_v24  ;;  %7583 = vmatprep.mubr.bf16.mxu1 %v7760_v25  ;;  %v7822_v23 = vld [vmem:[%s7952_s26 + $0x338] sm:$0xff]   ;;  %v7823_v24 = vld [vmem:[%s7952_s26 + $0x140] sm:$0xff]  }
  0x41   : > { %v7824_v25 = vld [vmem:[%s7952_s26 + $0x340] sm:$0xff]  }
  0x47   : > { %7456 = vmatmul.mubr.bf16.gmra.mrb[16].mxu0 %v7761_v26  ;;  %7584 = vmatmul.mubr.bf16.gmra.mrb[16].mxu1 %v7762_v27  ;;  %v7825_v26 = vld [vmem:[%s7952_s26 + $0x148] sm:$0xff]  }
  0x48   : > { %7459 = vmatprep.mubr.bf16.mxu0 %v7763_v28  ;;  %7587 = vmatprep.mubr.bf16.mxu1 %v7764_v29  ;;  %v7826_v27 = vld [vmem:[%s7952_s26 + $0x348] sm:$0xff]   ;;  %v7827_v28 = vld [vmem:[%s7952_s26 + $0x150] sm:$0xff]  }
  0x49   : > { %v7828_v29 = vld [vmem:[%s7952_s26 + $0x350] sm:$0xff]  }
  0x4f   : > { %7460 = vmatmul.mubr.bf16.gmra.mrb[20].mxu0 %v7765_v30  ;;  %7588 = vmatmul.mubr.bf16.gmra.mrb[20].mxu1 %v7766_v31  ;;  %v7829_v30 = vld [vmem:[%s7952_s26 + $0x158] sm:$0xff]  }
  0x50   : > { %7463 = vmatprep.mubr.bf16.mxu0 %v7767_v32  ;;  %7591 = vmatprep.mubr.bf16.mxu1 %v7768_v33  ;;  %v7830_v31 = vld [vmem:[%s7952_s26 + $0x358] sm:$0xff]   ;;  %v7831_v32 = vld [vmem:[%s7952_s26 + $0x160] sm:$0xff]  }
  0x51   : > { %v7832_v33 = vld [vmem:[%s7952_s26 + $0x360] sm:$0xff]  }
  0x57   : > { %7464 = vmatmul.mubr.bf16.gmra.mrb[24].mxu0 %v7769_v34  ;;  %7592 = vmatmul.mubr.bf16.gmra.mrb[24].mxu1 %v7770_v35  ;;  %v7833_v34 = vld [vmem:[%s7952_s26 + $0x168] sm:$0xff]  }
  0x58   : > { %7467 = vmatprep.mubr.bf16.mxu0 %v7771_v36  ;;  %7595 = vmatprep.mubr.bf16.mxu1 %v7772_v37  ;;  %v7834_v35 = vld [vmem:[%s7952_s26 + $0x368] sm:$0xff]   ;;  %v7835_v36 = vld [vmem:[%s7952_s26 + $0x170] sm:$0xff]  }
  0x59   : > { %v7836_v37 = vld [vmem:[%s7952_s26 + $0x370] sm:$0xff]  }
  0x5f   : > { %7468 = vmatmul.mubr.bf16.gmra.mrb[28].mxu0 %v7773_v38  ;;  %7596 = vmatmul.mubr.bf16.gmra.mrb[28].mxu1 %v7774_v39  ;;  %v7837_v38 = vld [vmem:[%s7952_s26 + $0x178] sm:$0xff]  }
  0x60   : > { %7471 = vmatprep.mubr.bf16.mxu0 %v7775_v40  ;;  %7599 = vmatprep.mubr.bf16.mxu1 %v7776_v41  ;;  %v7838_v39 = vld [vmem:[%s7952_s26 + $0x378] sm:$0xff]   ;;  %v7839_v40 = vld [vmem:[%s7952_s26 + $0x180] sm:$0xff]  }
  0x61   : > { %v7840_v41 = vld [vmem:[%s7952_s26 + $0x380] sm:$0xff]  }
  0x67   : > { %7472 = vmatmul.mubr.bf16.gmra.mrb[32].mxu0 %v7777_v42  ;;  %7600 = vmatmul.mubr.bf16.gmra.mrb[32].mxu1 %v7778_v43  ;;  %v7841_v42 = vld [vmem:[%s7952_s26 + $0x188] sm:$0xff]  }
  0x68   : > { %7475 = vmatprep.mubr.bf16.mxu0 %v7779_v44  ;;  %7603 = vmatprep.mubr.bf16.mxu1 %v7780_v45  ;;  %v7842_v43 = vld [vmem:[%s7952_s26 + $0x388] sm:$0xff]   ;;  %v7843_v44 = vld [vmem:[%s7952_s26 + $0x190] sm:$0xff]  }
  0x69   : > { %v7844_v45 = vld [vmem:[%s7952_s26 + $0x390] sm:$0xff]  }
  0x6f   : > { %7476 = vmatmul.mubr.bf16.gmra.mrb[36].mxu0 %v7781_v46  ;;  %7604 = vmatmul.mubr.bf16.gmra.mrb[36].mxu1 %v7782_v47  ;;  %v7845_v46 = vld [vmem:[%s7952_s26 + $0x198] sm:$0xff]  }
  0x70   : > { %7479 = vmatprep.mubr.bf16.mxu0 %v7783_v48  ;;  %7607 = vmatprep.mubr.bf16.mxu1 %v7784_v49  ;;  %v7846_v47 = vld [vmem:[%s7952_s26 + $0x398] sm:$0xff]   ;;  %v7847_v48 = vld [vmem:[%s7952_s26 + $0x1a0] sm:$0xff]  }
  0x71   : > { %v7848_v49 = vld [vmem:[%s7952_s26 + $0x3a0] sm:$0xff]  }
  0x77   : > { %7480 = vmatmul.mubr.bf16.gmra.mrb[40].mxu0 %v7785_v50  ;;  %7608 = vmatmul.mubr.bf16.gmra.mrb[40].mxu1 %v7786_v51  ;;  %v7849_v50 = vld [vmem:[%s7952_s26 + $0x1a8] sm:$0xff]  }
  0x78   : > { %7483 = vmatprep.mubr.bf16.mxu0 %v7787_v52  ;;  %7611 = vmatprep.mubr.bf16.mxu1 %v7788_v53  ;;  %v7850_v51 = vld [vmem:[%s7952_s26 + $0x3a8] sm:$0xff]   ;;  %v7851_v52 = vld [vmem:[%s7952_s26 + $0x1b0] sm:$0xff]  }
  0x79   : > { %v7852_v53 = vld [vmem:[%s7952_s26 + $0x3b0] sm:$0xff]  }
  0x7f   : > { %7484 = vmatmul.mubr.bf16.gmra.mrb[44].mxu0 %v7789_v54  ;;  %7612 = vmatmul.mubr.bf16.gmra.mrb[44].mxu1 %v7790_v55  ;;  %v8082_v54 = vld [vmem:[%s8514_s2] ss:$0 sm:$0xff] }
  0x80   : > { %7487 = vmatprep.mubr.bf16.mxu0 %v7791_v56  ;;  %7615 = vmatprep.mubr.bf16.mxu1 %v7792_v57 }
  0x87   : > { %7488 = vmatmul.mubr.bf16.gmra.mrb[48].mxu0 %v7793_v58  ;;  %7616 = vmatmul.mubr.bf16.gmra.mrb[48].mxu1 %v7794_v59 }
  0x88   : > { %7491 = vmatprep.mubr.bf16.mxu0 %v7795_v60  ;;  %7619 = vmatprep.mubr.bf16.mxu1 %v7796_v61  ;;  %v7853_v61 = vld [vmem:[%s7952_s26 + $0x1b8] sm:$0xff]  }
  0x8f   : > { %7492 = vmatmul.mubr.bf16.gmra.mrb[52].mxu0 %v7797_v62  ;;  %7620 = vmatmul.mubr.bf16.gmra.mrb[52].mxu1 %v7798_v63  ;;  %v7854_v62 = vld [vmem:[%s7952_s26 + $0x3b8] sm:$0xff]  }
  0x90   : > { %7495 = vmatprep.mubr.bf16.mxu0 %v7799_v0  ;;  %7623 = vmatprep.mubr.bf16.mxu1 %v7800_v1 }
  0x97   : > { %7496 = vmatmul.mubr.bf16.gmra.mrb[56].mxu0 %v7801_v2  ;;  %7624 = vmatmul.mubr.bf16.gmra.mrb[56].mxu1 %v7802_v3  ;;  %v7855_v3 = vld [vmem:[%s7952_s26 + $0x1c0] sm:$0xff]  }
  0x98   : > { %7499 = vmatprep.mubr.bf16.mxu0 %v7803_v4  ;;  %7627 = vmatprep.mubr.bf16.mxu1 %v7804_v5  ;;  %v7856_v4 = vld [vmem:[%s7952_s26 + $0x3c0] sm:$0xff]  }
  0x9f   : > { %7500 = vmatmul.mubr.bf16.gmra.mrb[60].mxu0 %v7805_v6  ;;  %7628 = vmatmul.mubr.bf16.gmra.mrb[60].mxu1 %v7806_v7 }
  0xa0   : > { %7503 = vmatprep.mubr.bf16.mxu0 %v7807_v8  ;;  %7631 = vmatprep.mubr.bf16.mxu1 %v7808_v9 }
  0xa7   : > { %7504 = vmatmul.mubr.bf16.gmra.mrb[64].mxu0 %v7809_v10  ;;  %7632 = vmatmul.mubr.bf16.gmra.mrb[64].mxu1 %v7810_v11 }
  0xa8   : > { %7507 = vmatprep.mubr.bf16.mxu0 %v7811_v12  ;;  %7635 = vmatprep.mubr.bf16.mxu1 %v7812_v13 }
  0xaf   : > { %7508 = vmatmul.mubr.bf16.gmra.mrb[68].mxu0 %v7813_v14  ;;  %7636 = vmatmul.mubr.bf16.gmra.mrb[68].mxu1 %v7814_v15 }
  0xb0   : > { %7511 = vmatprep.mubr.bf16.mxu0 %v7815_v16  ;;  %7639 = vmatprep.mubr.bf16.mxu1 %v7816_v17 }
  0xb7   : > { %7512 = vmatmul.mubr.bf16.gmra.mrb[72].mxu0 %v7817_v18  ;;  %7640 = vmatmul.mubr.bf16.gmra.mrb[72].mxu1 %v7818_v19 }
  0xb8   : > { %7515 = vmatprep.mubr.bf16.mxu0 %v7819_v20  ;;  %7643 = vmatprep.mubr.bf16.mxu1 %v7820_v21 }
  0xbf   : > { %7516 = vmatmul.mubr.bf16.gmra.mrb[76].mxu0 %v7821_v22  ;;  %7644 = vmatmul.mubr.bf16.gmra.mrb[76].mxu1 %v7822_v23 }
  0xc0   : > { %7519 = vmatprep.mubr.bf16.mxu0 %v7823_v24  ;;  %7647 = vmatprep.mubr.bf16.mxu1 %v7824_v25 }
  0xc7   : > { %7520 = vmatmul.mubr.bf16.gmra.mrb[80].mxu0 %v7825_v26  ;;  %7648 = vmatmul.mubr.bf16.gmra.mrb[80].mxu1 %v7826_v27 }
  0xc8   : > { %7523 = vmatprep.mubr.bf16.mxu0 %v7827_v28  ;;  %7651 = vmatprep.mubr.bf16.mxu1 %v7828_v29 }
  0xcf   : > { %7524 = vmatmul.mubr.bf16.gmra.mrb[84].mxu0 %v7829_v30  ;;  %7652 = vmatmul.mubr.bf16.gmra.mrb[84].mxu1 %v7830_v31 }
  0xd0   : > { %7527 = vmatprep.mubr.bf16.mxu0 %v7831_v32  ;;  %7655 = vmatprep.mubr.bf16.mxu1 %v7832_v33 }
  0xd7   : > { %7528 = vmatmul.mubr.bf16.gmra.mrb[88].mxu0 %v7833_v34  ;;  %7656 = vmatmul.mubr.bf16.gmra.mrb[88].mxu1 %v7834_v35  ;;  %v7857_v35 = vld [vmem:[%s7952_s26 + $0x1c8] sm:$0xff]  }
  0xd8   : > { %7531 = vmatprep.mubr.bf16.mxu0 %v7835_v36  ;;  %7659 = vmatprep.mubr.bf16.mxu1 %v7836_v37  ;;  %v7858_v36 = vld [vmem:[%s7952_s26 + $0x3c8] sm:$0xff]  }
  0xdf   : > { %7532 = vmatmul.mubr.bf16.gmra.mrb[92].mxu0 %v7837_v38  ;;  %7660 = vmatmul.mubr.bf16.gmra.mrb[92].mxu1 %v7838_v39 }
  0xe0   : > { %7535 = vmatprep.mubr.bf16.mxu0 %v7839_v40  ;;  %7663 = vmatprep.mubr.bf16.mxu1 %v7840_v41 }
  0xe7   : > { %7536 = vmatmul.mubr.bf16.gmra.mrb[96].mxu0 %v7841_v42  ;;  %7664 = vmatmul.mubr.bf16.gmra.mrb[96].mxu1 %v7842_v43  ;;  %v7859_v43 = vld [vmem:[%s7952_s26 + $0x1d0] sm:$0xff]  }
  0xe8   : > { %7539 = vmatprep.mubr.bf16.mxu0 %v7843_v44  ;;  %7667 = vmatprep.mubr.bf16.mxu1 %v7844_v45  ;;  %v7860_v44 = vld [vmem:[%s7952_s26 + $0x3d0] sm:$0xff]  }
  0xef   : > { %7540 = vmatmul.mubr.bf16.gmra.mrb[100].mxu0 %v7845_v46  ;;  %7668 = vmatmul.mubr.bf16.gmra.mrb[100].mxu1 %v7846_v47 }
  0xf0   : > { %7543 = vmatprep.mubr.bf16.mxu0 %v7847_v48  ;;  %7671 = vmatprep.mubr.bf16.mxu1 %v7848_v49 }
  0xf7   : > { %7544 = vmatmul.mubr.bf16.gmra.mrb[104].mxu0 %v7849_v50  ;;  %7672 = vmatmul.mubr.bf16.gmra.mrb[104].mxu1 %v7850_v51 }
  0xf8   : > { %7547 = vmatprep.mubr.bf16.mxu0 %v7851_v52  ;;  %7675 = vmatprep.mubr.bf16.mxu1 %v7852_v53 }
  0xfa   : > { %v7441_v55 = vpop.f32.mrb[0].mxu0  ;;  %v7569_v56 = vpop.f32.mrb[0].mxu1 }
  0xfb   : > { %v3701_v57 = vadd.f32 %v7441_v55, %v8082_v54  ;;  %v3829_v58 = vadd.f32 %v7569_v56, %v8082_v54  ;;  %v1898_v59 = vpop.f32.mrb[1].mxu0  ;;  %v2410_v60 = vpop.f32.mrb[1].mxu1 }
  0xfc   : > { %v3699_v63 = vadd.f32 %v8082_v54, %v1898_v59  ;;  %v3827_v0 = vadd.f32 %v8082_v54, %v2410_v60  ;;  %v7442_v1 = vpop.f32.mrb[2].mxu0  ;;  %v7570_v2 = vpop.f32.mrb[2].mxu1 }
  0xfd   : > { %v3957_v5 = vmul.f32 0.2, %v3701_v57  ;;  %v4085_v6 = vmul.f32 0.2, %v3829_v58  ;;  %v3702_v7 = vadd.f32 %v7442_v1, %v8082_v54  ;;  %v3830_v8 = vadd.f32 %v7570_v2, %v8082_v54  ;;  %v1901_v9 = vpop.f32.mrb[3].mxu0  ;;  %v2413_v10 = vpop.f32.mrb[3].mxu1 }
  0xfe   : > { %v3955_v11 = vmul.f32 0.2, %v3699_v63  ;;  %v4083_v12 = vmul.f32 0.2, %v3827_v0  ;;  %v3700_v13 = vadd.f32 %v8082_v54, %v1901_v9  ;;  %v3828_v14 = vadd.f32 %v8082_v54, %v2413_v10 }
  0xff   : > { %v3958_v15 = vmul.f32 0.2, %v3702_v7  ;;  %v4086_v16 = vmul.f32 0.2, %v3830_v8  ;;  %7548 = vmatmul.mubr.bf16.gmra.mrb[108].mxu0 %v7853_v61  ;;  %7676 = vmatmul.mubr.bf16.gmra.mrb[108].mxu1 %v7854_v62  ;;  %v4213_v19 = vmax.f32 %v3701_v57, %v3957_v5  ;;  %v4341_v20 = vmax.f32 %v3829_v58, %v4085_v6 }
 0x100   : > { %v3956_v17 = vmul.f32 0.2, %v3700_v13  ;;  %v4084_v18 = vmul.f32 0.2, %v3828_v14  ;;  %7551 = vmatprep.mubr.bf16.mxu0 %v7855_v3  ;;  %7679 = vmatprep.mubr.bf16.mxu1 %v7856_v4  ;;  %v4211_v23 = vmax.f32 %v3699_v63, %v3955_v11  ;;  %v4339_v24 = vmax.f32 %v3827_v0, %v4083_v12  ;;  %v7861_v12 = vld [vmem:[%s7952_s26 + $0x1d8] sm:$0xff]  }
 0x101   : > { %v4214_v21 = vmax.f32 %v3702_v7, %v3958_v15  ;;  %v4342_v22 = vmax.f32 %v3830_v8, %v4086_v16 }
 0x102   : > { %v4212_v25 = vmax.f32 %v3700_v13, %v3956_v17  ;;  %v4340_v26 = vmax.f32 %v3828_v14, %v4084_v18  ;;  %v7445_v27 = vpop.f32.mrb[4].mxu0  ;;  %v7573_v28 = vpop.f32.mrb[4].mxu1  ;;  %v7862_v13 = vld [vmem:[%s7952_s26 + $0x3d8] sm:$0xff]  }
 0x103   : > { %v6528_v29 = vpack.c.bf16 %v4214_v21, %v4213_v19  ;;  %v6848_v30 = vpack.c.bf16 %v4342_v22, %v4341_v20  ;;  %v3705_v31 = vadd.f32 %v7445_v27, %v8082_v54  ;;  %v3833_v32 = vadd.f32 %v7573_v28, %v8082_v54  ;;  %v1914_v33 = vpop.f32.mrb[5].mxu0  ;;  %v2426_v34 = vpop.f32.mrb[5].mxu1  ;;  %v7863_v20 = vld [vmem:[%s7952_s26 + $0x1e0] sm:$0xff]  }
 0x104   : > { %v6523_v37 = vpack.c.bf16 %v4212_v25, %v4211_v23  ;;  %v6843_v38 = vpack.c.bf16 %v4340_v26, %v4339_v24  ;;  %v3703_v39 = vadd.f32 %v8082_v54, %v1914_v33  ;;  %v3831_v40 = vadd.f32 %v8082_v54, %v2426_v34  ;;  %v7446_v41 = vpop.f32.mrb[6].mxu0  ;;  %v7574_v42 = vpop.f32.mrb[6].mxu1  ;;  %v7864_v21 = vld [vmem:[%s7952_s26 + $0x3e0] sm:$0xff]  }
 0x105   : > { %7160 = vst [vmem:[%s8101_s17 + $0x8] sm:$0xff] %v6528_v29   ;;  %7224 = vst [vmem:[%s8101_s17 + $0x208] sm:$0xff] %v6848_v30   ;;  %v3961_v45 = vmul.f32 0.2, %v3705_v31  ;;  %v4089_v46 = vmul.f32 0.2, %v3833_v32  ;;  %v3706_v47 = vadd.f32 %v7446_v41, %v8082_v54  ;;  %v3834_v48 = vadd.f32 %v7574_v42, %v8082_v54 }
 0x106   : > { %v1917_v49 = vpop.f32.mrb[7].mxu0  ;;  %v2429_v50 = vpop.f32.mrb[7].mxu1  ;;  %6524 = vst [vmem:[%s8101_s17] sm:$0xff] %v6523_v37   ;;  %7223 = vst [vmem:[%s8101_s17 + $0x200] sm:$0xff] %v6843_v38   ;;  %v3959_v51 = vmul.f32 0.2, %v3703_v39 }
 0x107   : > { %v4087_v52 = vmul.f32 0.2, %v3831_v40  ;;  %v3704_v53 = vadd.f32 %v8082_v54, %v1917_v49  ;;  %v3832_v55 = vadd.f32 %v8082_v54, %v2429_v50  ;;  %v3962_v56 = vmul.f32 0.2, %v3706_v47  ;;  %7552 = vmatmul.mubr.bf16.gmra.mrb[112].mxu0 %v7857_v35  ;;  %7680 = vmatmul.mubr.bf16.gmra.mrb[112].mxu1 %v7858_v36 }
 0x108   : > { %v4090_v57 = vmul.f32 0.2, %v3834_v48  ;;  %7555 = vmatprep.mubr.bf16.mxu0 %v7859_v43  ;;  %7683 = vmatprep.mubr.bf16.mxu1 %v7860_v44  ;;  %v4217_v60 = vmax.f32 %v3705_v31, %v3961_v45  ;;  %v4345_v61 = vmax.f32 %v3833_v32, %v4089_v46  ;;  %v4215_v0 = vmax.f32 %v3703_v39, %v3959_v51 }
 0x109   : > { %v3960_v58 = vmul.f32 0.2, %v3704_v53  ;;  %v4088_v59 = vmul.f32 0.2, %v3832_v55  ;;  %v4218_v62 = vmax.f32 %v3706_v47, %v3962_v56  ;;  %v4343_v1 = vmax.f32 %v3831_v40, %v4087_v52  ;;  %v7865_v52 = vld [vmem:[%s7952_s26 + $0x1e8] sm:$0xff]  }
 0x10a   : > { %v4346_v63 = vmax.f32 %v3834_v48, %v4090_v57  ;;  %v7449_v4 = vpop.f32.mrb[8].mxu0  ;;  %v7577_v5 = vpop.f32.mrb[8].mxu1 }
 0x10b   : > { %v4216_v2 = vmax.f32 %v3704_v53, %v3960_v58  ;;  %v4344_v3 = vmax.f32 %v3832_v55, %v4088_v59  ;;  %v6538_v6 = vpack.c.bf16 %v4218_v62, %v4217_v60  ;;  %v3709_v8 = vadd.f32 %v7449_v4, %v8082_v54  ;;  %v1930_v10 = vpop.f32.mrb[9].mxu0  ;;  %v2442_v11 = vpop.f32.mrb[9].mxu1  ;;  %v7866_v53 = vld [vmem:[%s7952_s26 + $0x3e8] sm:$0xff]   ;;  %v7868_v62 = vld [vmem:[%s7952_s26 + $0x3f0] sm:$0xff]  }
 0x10c   : > { %v6858_v7 = vpack.c.bf16 %v4346_v63, %v4345_v61  ;;  %v3837_v9 = vadd.f32 %v7577_v5, %v8082_v54  ;;  %v3707_v16 = vadd.f32 %v8082_v54, %v1930_v10  ;;  %v3835_v17 = vadd.f32 %v8082_v54, %v2442_v11  ;;  %v7450_v18 = vpop.f32.mrb[10].mxu0  ;;  %v7578_v19 = vpop.f32.mrb[10].mxu1  ;;  %v7867_v61 = vld [vmem:[%s7952_s26 + $0x1f0] sm:$0xff]  }
 0x10d   : > { %v6533_v14 = vpack.c.bf16 %v4216_v2, %v4215_v0  ;;  %v6853_v15 = vpack.c.bf16 %v4344_v3, %v4343_v1  ;;  %7162 = vst [vmem:[%s8101_s17 + $0x18] sm:$0xff] %v6538_v6   ;;  %v3965_v22 = vmul.f32 0.2, %v3709_v8  ;;  %v3710_v24 = vadd.f32 %v7450_v18, %v8082_v54  ;;  %v1933_v26 = vpop.f32.mrb[11].mxu0  ;;  %v2445_v27 = vpop.f32.mrb[11].mxu1 }
 0x10e   : > { %7226 = vst [vmem:[%s8101_s17 + $0x218] sm:$0xff] %v6858_v7   ;;  %v4093_v23 = vmul.f32 0.2, %v3837_v9  ;;  %v3838_v25 = vadd.f32 %v7578_v19, %v8082_v54  ;;  %v3963_v28 = vmul.f32 0.2, %v3707_v16  ;;  %v3708_v30 = vadd.f32 %v8082_v54, %v1933_v26 }
 0x10f   : > { %7161 = vst [vmem:[%s8101_s17 + $0x10] sm:$0xff] %v6533_v14   ;;  %7225 = vst [vmem:[%s8101_s17 + $0x210] sm:$0xff] %v6853_v15   ;;  %v4091_v29 = vmul.f32 0.2, %v3835_v17  ;;  %v3836_v31 = vadd.f32 %v8082_v54, %v2445_v27  ;;  %v3966_v32 = vmul.f32 0.2, %v3710_v24  ;;  %7556 = vmatmul.mubr.bf16.gmra.mrb[116].mxu0 %v7861_v12  ;;  %7684 = vmatmul.mubr.bf16.gmra.mrb[116].mxu1 %v7862_v13 }
 0x110   : > { %v4094_v33 = vmul.f32 0.2, %v3838_v25  ;;  %v3964_v34 = vmul.f32 0.2, %v3708_v30  ;;  %7559 = vmatprep.mubr.bf16.mxu0 %v7863_v20  ;;  %7687 = vmatprep.mubr.bf16.mxu1 %v7864_v21  ;;  %v4221_v36 = vmax.f32 %v3709_v8, %v3965_v22  ;;  %v4349_v37 = vmax.f32 %v3837_v9, %v4093_v23 }
 0x111   : > { %v4092_v35 = vmul.f32 0.2, %v3836_v31  ;;  %v4222_v38 = vmax.f32 %v3710_v24, %v3966_v32  ;;  %v4219_v40 = vmax.f32 %v3707_v16, %v3963_v28  ;;  %v4347_v41 = vmax.f32 %v3835_v17, %v4091_v29  ;;  %v7869_v29 = vld [vmem:[%s7952_s26 + $0x1f8] sm:$0xff]  }
 0x112   : > { %v4350_v39 = vmax.f32 %v3838_v25, %v4094_v33  ;;  %v4220_v42 = vmax.f32 %v3708_v30, %v3964_v34  ;;  %v7453_v44 = vpop.f32.mrb[12].mxu0  ;;  %v7581_v45 = vpop.f32.mrb[12].mxu1  ;;  %v7870_v30 = vld [vmem:[%s7952_s26 + $0x3f8] sm:$0xff]  }
 0x113   : > { %v4348_v43 = vmax.f32 %v3836_v31, %v4092_v35  ;;  %v6548_v46 = vpack.c.bf16 %v4222_v38, %v4221_v36  ;;  %v3713_v48 = vadd.f32 %v7453_v44, %v8082_v54  ;;  %v3841_v49 = vadd.f32 %v7581_v45, %v8082_v54  ;;  %v1946_v50 = vpop.f32.mrb[13].mxu0  ;;  %v2458_v51 = vpop.f32.mrb[13].mxu1 }
 0x114   : > { %v6868_v47 = vpack.c.bf16 %v4350_v39, %v4349_v37  ;;  %v6543_v55 = vpack.c.bf16 %v4220_v42, %v4219_v40  ;;  %v3711_v57 = vadd.f32 %v8082_v54, %v1946_v50  ;;  %v3839_v58 = vadd.f32 %v8082_v54, %v2458_v51  ;;  %v7454_v59 = vpop.f32.mrb[14].mxu0  ;;  %v7582_v60 = vpop.f32.mrb[14].mxu1 }
 0x115   : > { %v6863_v56 = vpack.c.bf16 %v4348_v43, %v4347_v41  ;;  %7164 = vst [vmem:[%s8101_s17 + $0x28] sm:$0xff] %v6548_v46   ;;  %v3969_v63 = vmul.f32 0.2, %v3713_v48  ;;  %v4097_v0 = vmul.f32 0.2, %v3841_v49  ;;  %v3714_v1 = vadd.f32 %v7454_v59, %v8082_v54  ;;  %v1949_v3 = vpop.f32.mrb[15].mxu0 }
 0x116   : > { %7228 = vst [vmem:[%s8101_s17 + $0x228] sm:$0xff] %v6868_v47   ;;  %v3842_v2 = vadd.f32 %v7582_v60, %v8082_v54  ;;  %v2461_v4 = vpop.f32.mrb[15].mxu1  ;;  %7163 = vst [vmem:[%s8101_s17 + $0x20] sm:$0xff] %v6543_v55   ;;  %v3967_v5 = vmul.f32 0.2, %v3711_v57  ;;  %v3712_v7 = vadd.f32 %v8082_v54, %v1949_v3 }
 0x117   : > { %7227 = vst [vmem:[%s8101_s17 + $0x220] sm:$0xff] %v6863_v56   ;;  %v4095_v6 = vmul.f32 0.2, %v3839_v58  ;;  %v3840_v8 = vadd.f32 %v8082_v54, %v2461_v4  ;;  %v3970_v9 = vmul.f32 0.2, %v3714_v1  ;;  %7560 = vmatmul.mubr.bf16.gmra.mrb[120].mxu0 %v7865_v52  ;;  %7688 = vmatmul.mubr.bf16.gmra.mrb[120].mxu1 %v7866_v53  ;;  %v4225_v13 = vmax.f32 %v3713_v48, %v3969_v63 }
 0x118   : > { %v4098_v10 = vmul.f32 0.2, %v3842_v2  ;;  %v3968_v11 = vmul.f32 0.2, %v3712_v7  ;;  %7563 = vmatprep.mubr.bf16.mxu0 %v7867_v61  ;;  %7691 = vmatprep.mubr.bf16.mxu1 %v7868_v62  ;;  %v4353_v14 = vmax.f32 %v3841_v49, %v4097_v0  ;;  %v4223_v17 = vmax.f32 %v3711_v57, %v3967_v5 }
 0x119   : > { %v4096_v12 = vmul.f32 0.2, %v3840_v8  ;;  %v4226_v15 = vmax.f32 %v3714_v1, %v3970_v9  ;;  %v4351_v18 = vmax.f32 %v3839_v58, %v4095_v6 }
 0x11a   : > { %v4354_v16 = vmax.f32 %v3842_v2, %v4098_v10  ;;  %v4224_v19 = vmax.f32 %v3712_v7, %v3968_v11  ;;  %v7457_v21 = vpop.f32.mrb[16].mxu0  ;;  %v7585_v22 = vpop.f32.mrb[16].mxu1 }
 0x11b   : > { %v4352_v20 = vmax.f32 %v3840_v8, %v4096_v12  ;;  %v6558_v23 = vpack.c.bf16 %v4226_v15, %v4225_v13  ;;  %v3717_v25 = vadd.f32 %v7457_v21, %v8082_v54  ;;  %v3845_v26 = vadd.f32 %v7585_v22, %v8082_v54  ;;  %v1962_v27 = vpop.f32.mrb[17].mxu0  ;;  %v2474_v28 = vpop.f32.mrb[17].mxu1 }
 0x11c   : > { %v6878_v24 = vpack.c.bf16 %v4354_v16, %v4353_v14  ;;  %v6553_v31 = vpack.c.bf16 %v4224_v19, %v4223_v17  ;;  %v3715_v33 = vadd.f32 %v8082_v54, %v1962_v27  ;;  %v3843_v34 = vadd.f32 %v8082_v54, %v2474_v28  ;;  %v7458_v35 = vpop.f32.mrb[18].mxu0  ;;  %v7586_v36 = vpop.f32.mrb[18].mxu1 }
 0x11d   : > { %v6873_v32 = vpack.c.bf16 %v4352_v20, %v4351_v18  ;;  %7166 = vst [vmem:[%s8101_s17 + $0x38] sm:$0xff] %v6558_v23   ;;  %v3973_v37 = vmul.f32 0.2, %v3717_v25  ;;  %v4101_v38 = vmul.f32 0.2, %v3845_v26  ;;  %v3718_v39 = vadd.f32 %v7458_v35, %v8082_v54  ;;  %v1965_v41 = vpop.f32.mrb[19].mxu0 }
 0x11e   : > { %7230 = vst [vmem:[%s8101_s17 + $0x238] sm:$0xff] %v6878_v24   ;;  %v3846_v40 = vadd.f32 %v7586_v36, %v8082_v54  ;;  %v2477_v42 = vpop.f32.mrb[19].mxu1  ;;  %7165 = vst [vmem:[%s8101_s17 + $0x30] sm:$0xff] %v6553_v31   ;;  %v3971_v43 = vmul.f32 0.2, %v3715_v33  ;;  %v3716_v45 = vadd.f32 %v8082_v54, %v1965_v41 }
 0x11f   : > { %7229 = vst [vmem:[%s8101_s17 + $0x230] sm:$0xff] %v6873_v32   ;;  %v4099_v44 = vmul.f32 0.2, %v3843_v34  ;;  %v3844_v46 = vadd.f32 %v8082_v54, %v2477_v42  ;;  %v3974_v47 = vmul.f32 0.2, %v3718_v39  ;;  %7564 = vmatmul.mubr.bf16.gmra.mrb[124].mxu0 %v7869_v29  ;;  %7692 = vmatmul.mubr.bf16.gmra.mrb[124].mxu1 %v7870_v30  ;;  %v4229_v51 = vmax.f32 %v3717_v25, %v3973_v37 }
 0x120   : > { %v4102_v48 = vmul.f32 0.2, %v3846_v40  ;;  %v3972_v49 = vmul.f32 0.2, %v3716_v45  ;;  %v4357_v52 = vmax.f32 %v3845_v26, %v4101_v38  ;;  %v4227_v56 = vmax.f32 %v3715_v33, %v3971_v43 }
 0x121   : > { %v4100_v50 = vmul.f32 0.2, %v3844_v46  ;;  %v4230_v53 = vmax.f32 %v3718_v39, %v3974_v47  ;;  %v4355_v57 = vmax.f32 %v3843_v34, %v4099_v44 }
 0x122   : > { %v4358_v55 = vmax.f32 %v3846_v40, %v4102_v48  ;;  %v4228_v58 = vmax.f32 %v3716_v45, %v3972_v49  ;;  %v7461_v60 = vpop.f32.mrb[20].mxu0  ;;  %v7589_v61 = vpop.f32.mrb[20].mxu1 }
 0x123   : > { %v4356_v59 = vmax.f32 %v3844_v46, %v4100_v50  ;;  %v6568_v62 = vpack.c.bf16 %v4230_v53, %v4229_v51  ;;  %v3721_v0 = vadd.f32 %v7461_v60, %v8082_v54  ;;  %v3849_v1 = vadd.f32 %v7589_v61, %v8082_v54  ;;  %v1978_v2 = vpop.f32.mrb[21].mxu0  ;;  %v2490_v3 = vpop.f32.mrb[21].mxu1 }
 0x124   : > { %v6888_v63 = vpack.c.bf16 %v4358_v55, %v4357_v52  ;;  %v6563_v4 = vpack.c.bf16 %v4228_v58, %v4227_v56  ;;  %v3719_v6 = vadd.f32 %v8082_v54, %v1978_v2  ;;  %v3847_v7 = vadd.f32 %v8082_v54, %v2490_v3  ;;  %v7462_v8 = vpop.f32.mrb[22].mxu0  ;;  %v7590_v9 = vpop.f32.mrb[22].mxu1 }
 0x125   : > { %v6883_v5 = vpack.c.bf16 %v4356_v59, %v4355_v57  ;;  %7168 = vst [vmem:[%s8101_s17 + $0x48] sm:$0xff] %v6568_v62   ;;  %v3977_v10 = vmul.f32 0.2, %v3721_v0  ;;  %v4105_v11 = vmul.f32 0.2, %v3849_v1  ;;  %v3722_v12 = vadd.f32 %v7462_v8, %v8082_v54  ;;  %v1981_v14 = vpop.f32.mrb[23].mxu0 }
 0x126   : > { %7232 = vst [vmem:[%s8101_s17 + $0x248] sm:$0xff] %v6888_v63   ;;  %v3850_v13 = vadd.f32 %v7590_v9, %v8082_v54  ;;  %v2493_v15 = vpop.f32.mrb[23].mxu1  ;;  %7167 = vst [vmem:[%s8101_s17 + $0x40] sm:$0xff] %v6563_v4   ;;  %v3975_v16 = vmul.f32 0.2, %v3719_v6  ;;  %v3720_v18 = vadd.f32 %v8082_v54, %v1981_v14 }
 0x127   : > { %7231 = vst [vmem:[%s8101_s17 + $0x240] sm:$0xff] %v6883_v5   ;;  %v4103_v17 = vmul.f32 0.2, %v3847_v7  ;;  %v3848_v19 = vadd.f32 %v8082_v54, %v2493_v15  ;;  %v3978_v20 = vmul.f32 0.2, %v3722_v12  ;;  %v4233_v24 = vmax.f32 %v3721_v0, %v3977_v10 }
 0x128   : > { %v4106_v21 = vmul.f32 0.2, %v3850_v13  ;;  %v3976_v22 = vmul.f32 0.2, %v3720_v18  ;;  %v4361_v25 = vmax.f32 %v3849_v1, %v4105_v11  ;;  %v4231_v28 = vmax.f32 %v3719_v6, %v3975_v16 }
 0x129   : > { %v4104_v23 = vmul.f32 0.2, %v3848_v19  ;;  %v4234_v26 = vmax.f32 %v3722_v12, %v3978_v20  ;;  %v4359_v29 = vmax.f32 %v3847_v7, %v4103_v17 }
 0x12a   : > { %v4362_v27 = vmax.f32 %v3850_v13, %v4106_v21  ;;  %v4232_v30 = vmax.f32 %v3720_v18, %v3976_v22  ;;  %v7465_v32 = vpop.f32.mrb[24].mxu0  ;;  %v7593_v33 = vpop.f32.mrb[24].mxu1 }
 0x12b   : > { %v4360_v31 = vmax.f32 %v3848_v19, %v4104_v23  ;;  %v6578_v34 = vpack.c.bf16 %v4234_v26, %v4233_v24  ;;  %v3725_v36 = vadd.f32 %v7465_v32, %v8082_v54  ;;  %v3853_v37 = vadd.f32 %v7593_v33, %v8082_v54  ;;  %v1994_v38 = vpop.f32.mrb[25].mxu0  ;;  %v2506_v39 = vpop.f32.mrb[25].mxu1 }
 0x12c   : > { %v6898_v35 = vpack.c.bf16 %v4362_v27, %v4361_v25  ;;  %v6573_v40 = vpack.c.bf16 %v4232_v30, %v4231_v28  ;;  %v3723_v42 = vadd.f32 %v8082_v54, %v1994_v38  ;;  %v3851_v43 = vadd.f32 %v8082_v54, %v2506_v39  ;;  %v7466_v44 = vpop.f32.mrb[26].mxu0  ;;  %v7594_v45 = vpop.f32.mrb[26].mxu1 }
 0x12d   : > { %v6893_v41 = vpack.c.bf16 %v4360_v31, %v4359_v29  ;;  %7170 = vst [vmem:[%s8101_s17 + $0x58] sm:$0xff] %v6578_v34   ;;  %v3981_v46 = vmul.f32 0.2, %v3725_v36  ;;  %v4109_v47 = vmul.f32 0.2, %v3853_v37  ;;  %v3726_v48 = vadd.f32 %v7466_v44, %v8082_v54  ;;  %v1997_v50 = vpop.f32.mrb[27].mxu0 }
 0x12e   : > { %7234 = vst [vmem:[%s8101_s17 + $0x258] sm:$0xff] %v6898_v35   ;;  %v3854_v49 = vadd.f32 %v7594_v45, %v8082_v54  ;;  %v2509_v51 = vpop.f32.mrb[27].mxu1  ;;  %7169 = vst [vmem:[%s8101_s17 + $0x50] sm:$0xff] %v6573_v40   ;;  %v3979_v52 = vmul.f32 0.2, %v3723_v42  ;;  %v3724_v55 = vadd.f32 %v8082_v54, %v1997_v50 }
 0x12f   : > { %7233 = vst [vmem:[%s8101_s17 + $0x250] sm:$0xff] %v6893_v41   ;;  %v4107_v53 = vmul.f32 0.2, %v3851_v43  ;;  %v3852_v56 = vadd.f32 %v8082_v54, %v2509_v51  ;;  %v3982_v57 = vmul.f32 0.2, %v3726_v48  ;;  %v4237_v61 = vmax.f32 %v3725_v36, %v3981_v46 }
 0x130   : > { %v4110_v58 = vmul.f32 0.2, %v3854_v49  ;;  %v3980_v59 = vmul.f32 0.2, %v3724_v55  ;;  %v4365_v62 = vmax.f32 %v3853_v37, %v4109_v47  ;;  %v4235_v1 = vmax.f32 %v3723_v42, %v3979_v52 }
 0x131   : > { %v4108_v60 = vmul.f32 0.2, %v3852_v56  ;;  %v4238_v63 = vmax.f32 %v3726_v48, %v3982_v57  ;;  %v4363_v2 = vmax.f32 %v3851_v43, %v4107_v53 }
 0x132   : > { %v4366_v0 = vmax.f32 %v3854_v49, %v4110_v58  ;;  %v4236_v3 = vmax.f32 %v3724_v55, %v3980_v59  ;;  %v7469_v5 = vpop.f32.mrb[28].mxu0  ;;  %v7597_v6 = vpop.f32.mrb[28].mxu1 }
 0x133   : > { %v4364_v4 = vmax.f32 %v3852_v56, %v4108_v60  ;;  %v6588_v7 = vpack.c.bf16 %v4238_v63, %v4237_v61  ;;  %v3729_v9 = vadd.f32 %v7469_v5, %v8082_v54  ;;  %v3857_v10 = vadd.f32 %v7597_v6, %v8082_v54  ;;  %v2010_v11 = vpop.f32.mrb[29].mxu0  ;;  %v2522_v12 = vpop.f32.mrb[29].mxu1 }
 0x134   : > { %v6908_v8 = vpack.c.bf16 %v4366_v0, %v4365_v62  ;;  %v6583_v13 = vpack.c.bf16 %v4236_v3, %v4235_v1  ;;  %v3727_v15 = vadd.f32 %v8082_v54, %v2010_v11  ;;  %v3855_v16 = vadd.f32 %v8082_v54, %v2522_v12  ;;  %v7470_v17 = vpop.f32.mrb[30].mxu0  ;;  %v7598_v18 = vpop.f32.mrb[30].mxu1 }
 0x135   : > { %v6903_v14 = vpack.c.bf16 %v4364_v4, %v4363_v2  ;;  %7172 = vst [vmem:[%s8101_s17 + $0x68] sm:$0xff] %v6588_v7   ;;  %v3985_v19 = vmul.f32 0.2, %v3729_v9  ;;  %v4113_v20 = vmul.f32 0.2, %v3857_v10  ;;  %v3730_v21 = vadd.f32 %v7470_v17, %v8082_v54  ;;  %v2013_v23 = vpop.f32.mrb[31].mxu0 }
 0x136   : > { %7236 = vst [vmem:[%s8101_s17 + $0x268] sm:$0xff] %v6908_v8   ;;  %v3858_v22 = vadd.f32 %v7598_v18, %v8082_v54  ;;  %v2525_v24 = vpop.f32.mrb[31].mxu1  ;;  %7171 = vst [vmem:[%s8101_s17 + $0x60] sm:$0xff] %v6583_v13   ;;  %v3983_v25 = vmul.f32 0.2, %v3727_v15  ;;  %v3728_v27 = vadd.f32 %v8082_v54, %v2013_v23 }
 0x137   : > { %7235 = vst [vmem:[%s8101_s17 + $0x260] sm:$0xff] %v6903_v14   ;;  %v4111_v26 = vmul.f32 0.2, %v3855_v16  ;;  %v3856_v28 = vadd.f32 %v8082_v54, %v2525_v24  ;;  %v3986_v29 = vmul.f32 0.2, %v3730_v21  ;;  %v4241_v33 = vmax.f32 %v3729_v9, %v3985_v19 }
 0x138   : > { %v4114_v30 = vmul.f32 0.2, %v3858_v22  ;;  %v3984_v31 = vmul.f32 0.2, %v3728_v27  ;;  %v4369_v34 = vmax.f32 %v3857_v10, %v4113_v20  ;;  %v4239_v37 = vmax.f32 %v3727_v15, %v3983_v25 }
 0x139   : > { %v4112_v32 = vmul.f32 0.2, %v3856_v28  ;;  %v4242_v35 = vmax.f32 %v3730_v21, %v3986_v29  ;;  %v4367_v38 = vmax.f32 %v3855_v16, %v4111_v26 }
 0x13a   : > { %v4370_v36 = vmax.f32 %v3858_v22, %v4114_v30  ;;  %v4240_v39 = vmax.f32 %v3728_v27, %v3984_v31  ;;  %v7473_v41 = vpop.f32.mrb[32].mxu0  ;;  %v7601_v42 = vpop.f32.mrb[32].mxu1 }
 0x13b   : > { %v4368_v40 = vmax.f32 %v3856_v28, %v4112_v32  ;;  %v6598_v43 = vpack.c.bf16 %v4242_v35, %v4241_v33  ;;  %v3733_v45 = vadd.f32 %v7473_v41, %v8082_v54  ;;  %v3861_v46 = vadd.f32 %v7601_v42, %v8082_v54  ;;  %v2026_v47 = vpop.f32.mrb[33].mxu0  ;;  %v2538_v48 = vpop.f32.mrb[33].mxu1 }
 0x13c   : > { %v6918_v44 = vpack.c.bf16 %v4370_v36, %v4369_v34  ;;  %v6593_v49 = vpack.c.bf16 %v4240_v39, %v4239_v37  ;;  %v3731_v51 = vadd.f32 %v8082_v54, %v2026_v47  ;;  %v3859_v52 = vadd.f32 %v8082_v54, %v2538_v48  ;;  %v7474_v53 = vpop.f32.mrb[34].mxu0  ;;  %v7602_v55 = vpop.f32.mrb[34].mxu1 }
 0x13d   : > { %v6913_v50 = vpack.c.bf16 %v4368_v40, %v4367_v38  ;;  %7174 = vst [vmem:[%s8101_s17 + $0x78] sm:$0xff] %v6598_v43   ;;  %v3989_v56 = vmul.f32 0.2, %v3733_v45  ;;  %v4117_v57 = vmul.f32 0.2, %v3861_v46  ;;  %v3734_v58 = vadd.f32 %v7474_v53, %v8082_v54  ;;  %v2029_v60 = vpop.f32.mrb[35].mxu0 }
 0x13e   : > { %7238 = vst [vmem:[%s8101_s17 + $0x278] sm:$0xff] %v6918_v44   ;;  %v3862_v59 = vadd.f32 %v7602_v55, %v8082_v54  ;;  %v2541_v61 = vpop.f32.mrb[35].mxu1  ;;  %7173 = vst [vmem:[%s8101_s17 + $0x70] sm:$0xff] %v6593_v49   ;;  %v3987_v62 = vmul.f32 0.2, %v3731_v51  ;;  %v3732_v0 = vadd.f32 %v8082_v54, %v2029_v60 }
 0x13f   : > { %7237 = vst [vmem:[%s8101_s17 + $0x270] sm:$0xff] %v6913_v50   ;;  %v4115_v63 = vmul.f32 0.2, %v3859_v52  ;;  %v3860_v1 = vadd.f32 %v8082_v54, %v2541_v61  ;;  %v3990_v2 = vmul.f32 0.2, %v3734_v58  ;;  %v4245_v6 = vmax.f32 %v3733_v45, %v3989_v56 }
 0x140   : > { %v4118_v3 = vmul.f32 0.2, %v3862_v59  ;;  %v3988_v4 = vmul.f32 0.2, %v3732_v0  ;;  %v4373_v7 = vmax.f32 %v3861_v46, %v4117_v57  ;;  %v4243_v10 = vmax.f32 %v3731_v51, %v3987_v62 }
 0x141   : > { %v4116_v5 = vmul.f32 0.2, %v3860_v1  ;;  %v4246_v8 = vmax.f32 %v3734_v58, %v3990_v2  ;;  %v4371_v11 = vmax.f32 %v3859_v52, %v4115_v63 }
 0x142   : > { %v4374_v9 = vmax.f32 %v3862_v59, %v4118_v3  ;;  %v4244_v12 = vmax.f32 %v3732_v0, %v3988_v4  ;;  %v7477_v14 = vpop.f32.mrb[36].mxu0  ;;  %v7605_v15 = vpop.f32.mrb[36].mxu1 }
 0x143   : > { %v4372_v13 = vmax.f32 %v3860_v1, %v4116_v5  ;;  %v6608_v16 = vpack.c.bf16 %v4246_v8, %v4245_v6  ;;  %v3737_v18 = vadd.f32 %v7477_v14, %v8082_v54  ;;  %v3865_v19 = vadd.f32 %v7605_v15, %v8082_v54  ;;  %v2042_v20 = vpop.f32.mrb[37].mxu0  ;;  %v2554_v21 = vpop.f32.mrb[37].mxu1 }
 0x144   : > { %v6928_v17 = vpack.c.bf16 %v4374_v9, %v4373_v7  ;;  %v6603_v22 = vpack.c.bf16 %v4244_v12, %v4243_v10  ;;  %v3735_v24 = vadd.f32 %v8082_v54, %v2042_v20  ;;  %v3863_v25 = vadd.f32 %v8082_v54, %v2554_v21  ;;  %v7478_v26 = vpop.f32.mrb[38].mxu0  ;;  %v7606_v27 = vpop.f32.mrb[38].mxu1 }
 0x145   : > { %v6923_v23 = vpack.c.bf16 %v4372_v13, %v4371_v11  ;;  %7176 = vst [vmem:[%s8101_s17 + $0x88] sm:$0xff] %v6608_v16   ;;  %v3993_v28 = vmul.f32 0.2, %v3737_v18  ;;  %v4121_v29 = vmul.f32 0.2, %v3865_v19  ;;  %v3738_v30 = vadd.f32 %v7478_v26, %v8082_v54  ;;  %v2045_v32 = vpop.f32.mrb[39].mxu0 }
 0x146   : > { %7240 = vst [vmem:[%s8101_s17 + $0x288] sm:$0xff] %v6928_v17   ;;  %v3866_v31 = vadd.f32 %v7606_v27, %v8082_v54  ;;  %v2557_v33 = vpop.f32.mrb[39].mxu1  ;;  %7175 = vst [vmem:[%s8101_s17 + $0x80] sm:$0xff] %v6603_v22   ;;  %v3991_v34 = vmul.f32 0.2, %v3735_v24  ;;  %v3736_v36 = vadd.f32 %v8082_v54, %v2045_v32 }
 0x147   : > { %7239 = vst [vmem:[%s8101_s17 + $0x280] sm:$0xff] %v6923_v23   ;;  %v4119_v35 = vmul.f32 0.2, %v3863_v25  ;;  %v3864_v37 = vadd.f32 %v8082_v54, %v2557_v33  ;;  %v3994_v38 = vmul.f32 0.2, %v3738_v30  ;;  %v4249_v42 = vmax.f32 %v3737_v18, %v3993_v28 }
 0x148   : > { %v4122_v39 = vmul.f32 0.2, %v3866_v31  ;;  %v3992_v40 = vmul.f32 0.2, %v3736_v36  ;;  %v4377_v43 = vmax.f32 %v3865_v19, %v4121_v29  ;;  %v4247_v46 = vmax.f32 %v3735_v24, %v3991_v34 }
 0x149   : > { %v4120_v41 = vmul.f32 0.2, %v3864_v37  ;;  %v4250_v44 = vmax.f32 %v3738_v30, %v3994_v38  ;;  %v4375_v47 = vmax.f32 %v3863_v25, %v4119_v35 }
 0x14a   : > { %v4378_v45 = vmax.f32 %v3866_v31, %v4122_v39  ;;  %v4248_v48 = vmax.f32 %v3736_v36, %v3992_v40  ;;  %v7481_v50 = vpop.f32.mrb[40].mxu0  ;;  %v7609_v51 = vpop.f32.mrb[40].mxu1 }
 0x14b   : > { %v4376_v49 = vmax.f32 %v3864_v37, %v4120_v41  ;;  %v6618_v52 = vpack.c.bf16 %v4250_v44, %v4249_v42  ;;  %v3741_v55 = vadd.f32 %v7481_v50, %v8082_v54  ;;  %v3869_v56 = vadd.f32 %v7609_v51, %v8082_v54  ;;  %v2058_v57 = vpop.f32.mrb[41].mxu0  ;;  %v2570_v58 = vpop.f32.mrb[41].mxu1 }
 0x14c   : > { %v6938_v53 = vpack.c.bf16 %v4378_v45, %v4377_v43  ;;  %v6613_v59 = vpack.c.bf16 %v4248_v48, %v4247_v46  ;;  %v3739_v61 = vadd.f32 %v8082_v54, %v2058_v57  ;;  %v3867_v62 = vadd.f32 %v8082_v54, %v2570_v58  ;;  %v7482_v63 = vpop.f32.mrb[42].mxu0  ;;  %v7610_v0 = vpop.f32.mrb[42].mxu1 }
 0x14d   : > { %v6933_v60 = vpack.c.bf16 %v4376_v49, %v4375_v47  ;;  %7178 = vst [vmem:[%s8101_s17 + $0x98] sm:$0xff] %v6618_v52   ;;  %v3997_v1 = vmul.f32 0.2, %v3741_v55  ;;  %v4125_v2 = vmul.f32 0.2, %v3869_v56  ;;  %v3742_v3 = vadd.f32 %v7482_v63, %v8082_v54  ;;  %v2061_v5 = vpop.f32.mrb[43].mxu0 }
 0x14e   : > { %7242 = vst [vmem:[%s8101_s17 + $0x298] sm:$0xff] %v6938_v53   ;;  %v3870_v4 = vadd.f32 %v7610_v0, %v8082_v54  ;;  %v2573_v6 = vpop.f32.mrb[43].mxu1  ;;  %7177 = vst [vmem:[%s8101_s17 + $0x90] sm:$0xff] %v6613_v59   ;;  %v3995_v7 = vmul.f32 0.2, %v3739_v61  ;;  %v3740_v9 = vadd.f32 %v8082_v54, %v2061_v5 }
 0x14f   : > { %7241 = vst [vmem:[%s8101_s17 + $0x290] sm:$0xff] %v6933_v60   ;;  %v4123_v8 = vmul.f32 0.2, %v3867_v62  ;;  %v3868_v10 = vadd.f32 %v8082_v54, %v2573_v6  ;;  %v3998_v11 = vmul.f32 0.2, %v3742_v3  ;;  %v4253_v15 = vmax.f32 %v3741_v55, %v3997_v1 }
 0x150   : > { %v4126_v12 = vmul.f32 0.2, %v3870_v4  ;;  %v3996_v13 = vmul.f32 0.2, %v3740_v9  ;;  %v4381_v16 = vmax.f32 %v3869_v56, %v4125_v2  ;;  %v4251_v19 = vmax.f32 %v3739_v61, %v3995_v7 }
 0x151   : > { %v4124_v14 = vmul.f32 0.2, %v3868_v10  ;;  %v4254_v17 = vmax.f32 %v3742_v3, %v3998_v11  ;;  %v4379_v20 = vmax.f32 %v3867_v62, %v4123_v8 }
 0x152   : > { %v4382_v18 = vmax.f32 %v3870_v4, %v4126_v12  ;;  %v4252_v21 = vmax.f32 %v3740_v9, %v3996_v13  ;;  %v7485_v23 = vpop.f32.mrb[44].mxu0  ;;  %v7613_v24 = vpop.f32.mrb[44].mxu1 }
 0x153   : > { %v4380_v22 = vmax.f32 %v3868_v10, %v4124_v14  ;;  %v6628_v25 = vpack.c.bf16 %v4254_v17, %v4253_v15  ;;  %v3745_v27 = vadd.f32 %v7485_v23, %v8082_v54  ;;  %v3873_v28 = vadd.f32 %v7613_v24, %v8082_v54  ;;  %v2074_v29 = vpop.f32.mrb[45].mxu0  ;;  %v2586_v30 = vpop.f32.mrb[45].mxu1 }
 0x154   : > { %v6948_v26 = vpack.c.bf16 %v4382_v18, %v4381_v16  ;;  %v6623_v31 = vpack.c.bf16 %v4252_v21, %v4251_v19  ;;  %v3743_v33 = vadd.f32 %v8082_v54, %v2074_v29  ;;  %v3871_v34 = vadd.f32 %v8082_v54, %v2586_v30  ;;  %v7486_v35 = vpop.f32.mrb[46].mxu0  ;;  %v7614_v36 = vpop.f32.mrb[46].mxu1 }
 0x155   : > { %v6943_v32 = vpack.c.bf16 %v4380_v22, %v4379_v20  ;;  %7180 = vst [vmem:[%s8101_s17 + $0xa8] sm:$0xff] %v6628_v25   ;;  %v4001_v37 = vmul.f32 0.2, %v3745_v27  ;;  %v4129_v38 = vmul.f32 0.2, %v3873_v28  ;;  %v3746_v39 = vadd.f32 %v7486_v35, %v8082_v54  ;;  %v2077_v41 = vpop.f32.mrb[47].mxu0 }
 0x156   : > { %7244 = vst [vmem:[%s8101_s17 + $0x2a8] sm:$0xff] %v6948_v26   ;;  %v3874_v40 = vadd.f32 %v7614_v36, %v8082_v54  ;;  %v2589_v42 = vpop.f32.mrb[47].mxu1  ;;  %7179 = vst [vmem:[%s8101_s17 + $0xa0] sm:$0xff] %v6623_v31   ;;  %v3999_v43 = vmul.f32 0.2, %v3743_v33  ;;  %v3744_v45 = vadd.f32 %v8082_v54, %v2077_v41 }
 0x157   : > { %7243 = vst [vmem:[%s8101_s17 + $0x2a0] sm:$0xff] %v6943_v32   ;;  %v4127_v44 = vmul.f32 0.2, %v3871_v34  ;;  %v3872_v46 = vadd.f32 %v8082_v54, %v2589_v42  ;;  %v4002_v47 = vmul.f32 0.2, %v3746_v39  ;;  %v4257_v51 = vmax.f32 %v3745_v27, %v4001_v37 }
 0x158   : > { %v4130_v48 = vmul.f32 0.2, %v3874_v40  ;;  %v4000_v49 = vmul.f32 0.2, %v3744_v45  ;;  %v4385_v52 = vmax.f32 %v3873_v28, %v4129_v38  ;;  %v4255_v56 = vmax.f32 %v3743_v33, %v3999_v43  ;;  %v8252_v54 = vld [vmem:[%s8514_s2] ss:$0 sm:$0xff] }
 0x159   : > { %v4128_v50 = vmul.f32 0.2, %v3872_v46  ;;  %v4258_v53 = vmax.f32 %v3746_v39, %v4002_v47  ;;  %v4383_v57 = vmax.f32 %v3871_v34, %v4127_v44 }
 0x15a   : > { %v4386_v55 = vmax.f32 %v3874_v40, %v4130_v48  ;;  %v4256_v58 = vmax.f32 %v3744_v45, %v4000_v49  ;;  %v7489_v60 = vpop.f32.mrb[48].mxu0  ;;  %v7617_v61 = vpop.f32.mrb[48].mxu1 }
 0x15b   : > { %v4384_v59 = vmax.f32 %v3872_v46, %v4128_v50  ;;  %v6638_v62 = vpack.c.bf16 %v4258_v53, %v4257_v51  ;;  %v3749_v0 = vadd.f32 %v8252_v54, %v7489_v60  ;;  %v3877_v1 = vadd.f32 %v8252_v54, %v7617_v61  ;;  %v2090_v2 = vpop.f32.mrb[49].mxu0  ;;  %v2602_v3 = vpop.f32.mrb[49].mxu1 }
 0x15c   : > { %v6958_v63 = vpack.c.bf16 %v4386_v55, %v4385_v52  ;;  %v6633_v4 = vpack.c.bf16 %v4256_v58, %v4255_v56  ;;  %v3747_v6 = vadd.f32 %v8252_v54, %v2090_v2  ;;  %v3875_v7 = vadd.f32 %v8252_v54, %v2602_v3  ;;  %v7490_v8 = vpop.f32.mrb[50].mxu0  ;;  %v7618_v9 = vpop.f32.mrb[50].mxu1 }
 0x15d   : > { %v6953_v5 = vpack.c.bf16 %v4384_v59, %v4383_v57  ;;  %7182 = vst [vmem:[%s8101_s17 + $0xb8] sm:$0xff] %v6638_v62   ;;  %v4005_v10 = vmul.f32 0.2, %v3749_v0  ;;  %v4133_v11 = vmul.f32 0.2, %v3877_v1  ;;  %v3750_v12 = vadd.f32 %v8252_v54, %v7490_v8  ;;  %v2093_v14 = vpop.f32.mrb[51].mxu0 }
 0x15e   : > { %7246 = vst [vmem:[%s8101_s17 + $0x2b8] sm:$0xff] %v6958_v63   ;;  %v3878_v13 = vadd.f32 %v8252_v54, %v7618_v9  ;;  %v2605_v15 = vpop.f32.mrb[51].mxu1  ;;  %7181 = vst [vmem:[%s8101_s17 + $0xb0] sm:$0xff] %v6633_v4   ;;  %v4003_v16 = vmul.f32 0.2, %v3747_v6  ;;  %v3748_v18 = vadd.f32 %v8252_v54, %v2093_v14 }
 0x15f   : > { %7245 = vst [vmem:[%s8101_s17 + $0x2b0] sm:$0xff] %v6953_v5   ;;  %v4131_v17 = vmul.f32 0.2, %v3875_v7  ;;  %v3876_v19 = vadd.f32 %v8252_v54, %v2605_v15  ;;  %v4006_v20 = vmul.f32 0.2, %v3750_v12  ;;  %v4261_v24 = vmax.f32 %v3749_v0, %v4005_v10 }
 0x160   : > { %v4134_v21 = vmul.f32 0.2, %v3878_v13  ;;  %v4004_v22 = vmul.f32 0.2, %v3748_v18  ;;  %v4389_v25 = vmax.f32 %v3877_v1, %v4133_v11  ;;  %v4259_v28 = vmax.f32 %v3747_v6, %v4003_v16 }
 0x161   : > { %v4132_v23 = vmul.f32 0.2, %v3876_v19  ;;  %v4262_v26 = vmax.f32 %v3750_v12, %v4006_v20  ;;  %v4387_v29 = vmax.f32 %v3875_v7, %v4131_v17 }
 0x162   : > { %v4390_v27 = vmax.f32 %v3878_v13, %v4134_v21  ;;  %v4260_v30 = vmax.f32 %v3748_v18, %v4004_v22  ;;  %v7493_v32 = vpop.f32.mrb[52].mxu0  ;;  %v7621_v33 = vpop.f32.mrb[52].mxu1 }
 0x163   : > { %v4388_v31 = vmax.f32 %v3876_v19, %v4132_v23  ;;  %v6648_v34 = vpack.c.bf16 %v4262_v26, %v4261_v24  ;;  %v3753_v36 = vadd.f32 %v8252_v54, %v7493_v32  ;;  %v3881_v37 = vadd.f32 %v8252_v54, %v7621_v33  ;;  %v2106_v38 = vpop.f32.mrb[53].mxu0  ;;  %v2618_v39 = vpop.f32.mrb[53].mxu1 }
 0x164   : > { %v6968_v35 = vpack.c.bf16 %v4390_v27, %v4389_v25  ;;  %v6643_v40 = vpack.c.bf16 %v4260_v30, %v4259_v28  ;;  %v3751_v42 = vadd.f32 %v8252_v54, %v2106_v38  ;;  %v3879_v43 = vadd.f32 %v8252_v54, %v2618_v39  ;;  %v7494_v44 = vpop.f32.mrb[54].mxu0  ;;  %v7622_v45 = vpop.f32.mrb[54].mxu1 }
 0x165   : > { %v6963_v41 = vpack.c.bf16 %v4388_v31, %v4387_v29  ;;  %7184 = vst [vmem:[%s8101_s17 + $0xc8] sm:$0xff] %v6648_v34   ;;  %v4009_v46 = vmul.f32 0.2, %v3753_v36  ;;  %v4137_v47 = vmul.f32 0.2, %v3881_v37  ;;  %v3754_v48 = vadd.f32 %v8252_v54, %v7494_v44  ;;  %v2109_v50 = vpop.f32.mrb[55].mxu0 }
 0x166   : > { %7248 = vst [vmem:[%s8101_s17 + $0x2c8] sm:$0xff] %v6968_v35   ;;  %v3882_v49 = vadd.f32 %v8252_v54, %v7622_v45  ;;  %v2621_v51 = vpop.f32.mrb[55].mxu1  ;;  %7183 = vst [vmem:[%s8101_s17 + $0xc0] sm:$0xff] %v6643_v40   ;;  %v4007_v52 = vmul.f32 0.2, %v3751_v42  ;;  %v3752_v55 = vadd.f32 %v8252_v54, %v2109_v50 }
 0x167   : > { %7247 = vst [vmem:[%s8101_s17 + $0x2c0] sm:$0xff] %v6963_v41   ;;  %v4135_v53 = vmul.f32 0.2, %v3879_v43  ;;  %v3880_v56 = vadd.f32 %v8252_v54, %v2621_v51  ;;  %v4010_v57 = vmul.f32 0.2, %v3754_v48  ;;  %v4265_v61 = vmax.f32 %v3753_v36, %v4009_v46 }
 0x168   : > { %v4138_v58 = vmul.f32 0.2, %v3882_v49  ;;  %v4008_v59 = vmul.f32 0.2, %v3752_v55  ;;  %v4393_v62 = vmax.f32 %v3881_v37, %v4137_v47  ;;  %v4263_v1 = vmax.f32 %v3751_v42, %v4007_v52 }
 0x169   : > { %v4136_v60 = vmul.f32 0.2, %v3880_v56  ;;  %v4266_v63 = vmax.f32 %v3754_v48, %v4010_v57  ;;  %v4391_v2 = vmax.f32 %v3879_v43, %v4135_v53 }
 0x16a   : > { %v4394_v0 = vmax.f32 %v3882_v49, %v4138_v58  ;;  %v4264_v3 = vmax.f32 %v3752_v55, %v4008_v59  ;;  %v7497_v5 = vpop.f32.mrb[56].mxu0  ;;  %v7625_v6 = vpop.f32.mrb[56].mxu1 }
 0x16b   : > { %v4392_v4 = vmax.f32 %v3880_v56, %v4136_v60  ;;  %v6658_v7 = vpack.c.bf16 %v4266_v63, %v4265_v61  ;;  %v3757_v9 = vadd.f32 %v8252_v54, %v7497_v5  ;;  %v3885_v10 = vadd.f32 %v8252_v54, %v7625_v6  ;;  %v2122_v11 = vpop.f32.mrb[57].mxu0  ;;  %v2634_v12 = vpop.f32.mrb[57].mxu1 }
 0x16c   : > { %v6978_v8 = vpack.c.bf16 %v4394_v0, %v4393_v62  ;;  %v6653_v13 = vpack.c.bf16 %v4264_v3, %v4263_v1  ;;  %v3755_v15 = vadd.f32 %v8252_v54, %v2122_v11  ;;  %v3883_v16 = vadd.f32 %v8252_v54, %v2634_v12  ;;  %v7498_v17 = vpop.f32.mrb[58].mxu0  ;;  %v7626_v18 = vpop.f32.mrb[58].mxu1 }
 0x16d   : > { %v6973_v14 = vpack.c.bf16 %v4392_v4, %v4391_v2  ;;  %7186 = vst [vmem:[%s8101_s17 + $0xd8] sm:$0xff] %v6658_v7   ;;  %v4013_v19 = vmul.f32 0.2, %v3757_v9  ;;  %v4141_v20 = vmul.f32 0.2, %v3885_v10  ;;  %v3758_v21 = vadd.f32 %v8252_v54, %v7498_v17  ;;  %v2125_v23 = vpop.f32.mrb[59].mxu0 }
 0x16e   : > { %7250 = vst [vmem:[%s8101_s17 + $0x2d8] sm:$0xff] %v6978_v8   ;;  %v3886_v22 = vadd.f32 %v8252_v54, %v7626_v18  ;;  %v2637_v24 = vpop.f32.mrb[59].mxu1  ;;  %7185 = vst [vmem:[%s8101_s17 + $0xd0] sm:$0xff] %v6653_v13   ;;  %v4011_v25 = vmul.f32 0.2, %v3755_v15  ;;  %v3756_v27 = vadd.f32 %v8252_v54, %v2125_v23 }
 0x16f   : > { %7249 = vst [vmem:[%s8101_s17 + $0x2d0] sm:$0xff] %v6973_v14   ;;  %v4139_v26 = vmul.f32 0.2, %v3883_v16  ;;  %v3884_v28 = vadd.f32 %v8252_v54, %v2637_v24  ;;  %v4014_v29 = vmul.f32 0.2, %v3758_v21  ;;  %v4269_v33 = vmax.f32 %v3757_v9, %v4013_v19 }
 0x170   : > { %v4142_v30 = vmul.f32 0.2, %v3886_v22  ;;  %v4012_v31 = vmul.f32 0.2, %v3756_v27  ;;  %v4397_v34 = vmax.f32 %v3885_v10, %v4141_v20  ;;  %v4267_v37 = vmax.f32 %v3755_v15, %v4011_v25 }
 0x171   : > { %v4140_v32 = vmul.f32 0.2, %v3884_v28  ;;  %v4270_v35 = vmax.f32 %v3758_v21, %v4014_v29  ;;  %v4395_v38 = vmax.f32 %v3883_v16, %v4139_v26 }
 0x172   : > { %v4398_v36 = vmax.f32 %v3886_v22, %v4142_v30  ;;  %v4268_v39 = vmax.f32 %v3756_v27, %v4012_v31  ;;  %v7501_v41 = vpop.f32.mrb[60].mxu0  ;;  %v7629_v42 = vpop.f32.mrb[60].mxu1 }
 0x173   : > { %v4396_v40 = vmax.f32 %v3884_v28, %v4140_v32  ;;  %v6668_v43 = vpack.c.bf16 %v4270_v35, %v4269_v33  ;;  %v3761_v45 = vadd.f32 %v8252_v54, %v7501_v41  ;;  %v3889_v46 = vadd.f32 %v8252_v54, %v7629_v42  ;;  %v2138_v47 = vpop.f32.mrb[61].mxu0  ;;  %v2650_v48 = vpop.f32.mrb[61].mxu1 }
 0x174   : > { %v6988_v44 = vpack.c.bf16 %v4398_v36, %v4397_v34  ;;  %v6663_v49 = vpack.c.bf16 %v4268_v39, %v4267_v37  ;;  %v3759_v51 = vadd.f32 %v8252_v54, %v2138_v47  ;;  %v3887_v52 = vadd.f32 %v8252_v54, %v2650_v48  ;;  %v7502_v53 = vpop.f32.mrb[62].mxu0  ;;  %v7630_v55 = vpop.f32.mrb[62].mxu1 }
 0x175   : > { %v6983_v50 = vpack.c.bf16 %v4396_v40, %v4395_v38  ;;  %7188 = vst [vmem:[%s8101_s17 + $0xe8] sm:$0xff] %v6668_v43   ;;  %v4017_v56 = vmul.f32 0.2, %v3761_v45  ;;  %v4145_v57 = vmul.f32 0.2, %v3889_v46  ;;  %v3762_v58 = vadd.f32 %v8252_v54, %v7502_v53  ;;  %v2141_v60 = vpop.f32.mrb[63].mxu0 }
 0x176   : > { %7252 = vst [vmem:[%s8101_s17 + $0x2e8] sm:$0xff] %v6988_v44   ;;  %v3890_v59 = vadd.f32 %v8252_v54, %v7630_v55  ;;  %v2653_v61 = vpop.f32.mrb[63].mxu1  ;;  %7187 = vst [vmem:[%s8101_s17 + $0xe0] sm:$0xff] %v6663_v49   ;;  %v4015_v62 = vmul.f32 0.2, %v3759_v51  ;;  %v3760_v0 = vadd.f32 %v8252_v54, %v2141_v60 }
 0x177   : > { %7251 = vst [vmem:[%s8101_s17 + $0x2e0] sm:$0xff] %v6983_v50   ;;  %v4143_v63 = vmul.f32 0.2, %v3887_v52  ;;  %v3888_v1 = vadd.f32 %v8252_v54, %v2653_v61  ;;  %v4018_v2 = vmul.f32 0.2, %v3762_v58  ;;  %v4273_v6 = vmax.f32 %v3761_v45, %v4017_v56 }
 0x178   : > { %v4146_v3 = vmul.f32 0.2, %v3890_v59  ;;  %v4016_v4 = vmul.f32 0.2, %v3760_v0  ;;  %v4401_v7 = vmax.f32 %v3889_v46, %v4145_v57  ;;  %v4271_v10 = vmax.f32 %v3759_v51, %v4015_v62 }
 0x179   : > { %v4144_v5 = vmul.f32 0.2, %v3888_v1  ;;  %v4274_v8 = vmax.f32 %v3762_v58, %v4018_v2  ;;  %v4399_v11 = vmax.f32 %v3887_v52, %v4143_v63 }
 0x17a   : > { %v4402_v9 = vmax.f32 %v3890_v59, %v4146_v3  ;;  %v4272_v12 = vmax.f32 %v3760_v0, %v4016_v4  ;;  %v7505_v14 = vpop.f32.mrb[64].mxu0  ;;  %v7633_v15 = vpop.f32.mrb[64].mxu1 }
 0x17b   : > { %v4400_v13 = vmax.f32 %v3888_v1, %v4144_v5  ;;  %v6678_v16 = vpack.c.bf16 %v4274_v8, %v4273_v6  ;;  %v3765_v18 = vadd.f32 %v8252_v54, %v7505_v14  ;;  %v3893_v19 = vadd.f32 %v8252_v54, %v7633_v15  ;;  %v2154_v20 = vpop.f32.mrb[65].mxu0  ;;  %v2666_v21 = vpop.f32.mrb[65].mxu1 }
 0x17c   : > { %v6998_v17 = vpack.c.bf16 %v4402_v9, %v4401_v7  ;;  %v6673_v22 = vpack.c.bf16 %v4272_v12, %v4271_v10  ;;  %v3763_v24 = vadd.f32 %v8252_v54, %v2154_v20  ;;  %v3891_v25 = vadd.f32 %v8252_v54, %v2666_v21  ;;  %v7506_v26 = vpop.f32.mrb[66].mxu0  ;;  %v7634_v27 = vpop.f32.mrb[66].mxu1 }
 0x17d   : > { %v6993_v23 = vpack.c.bf16 %v4400_v13, %v4399_v11  ;;  %7190 = vst [vmem:[%s8101_s17 + $0xf8] sm:$0xff] %v6678_v16   ;;  %v4021_v28 = vmul.f32 0.2, %v3765_v18  ;;  %v4149_v29 = vmul.f32 0.2, %v3893_v19  ;;  %v3766_v30 = vadd.f32 %v8252_v54, %v7506_v26  ;;  %v2157_v32 = vpop.f32.mrb[67].mxu0 }
 0x17e   : > { %7254 = vst [vmem:[%s8101_s17 + $0x2f8] sm:$0xff] %v6998_v17   ;;  %v3894_v31 = vadd.f32 %v8252_v54, %v7634_v27  ;;  %v2669_v33 = vpop.f32.mrb[67].mxu1  ;;  %7189 = vst [vmem:[%s8101_s17 + $0xf0] sm:$0xff] %v6673_v22   ;;  %v4019_v34 = vmul.f32 0.2, %v3763_v24  ;;  %v3764_v36 = vadd.f32 %v8252_v54, %v2157_v32 }
 0x17f   : > { %7253 = vst [vmem:[%s8101_s17 + $0x2f0] sm:$0xff] %v6993_v23   ;;  %v4147_v35 = vmul.f32 0.2, %v3891_v25  ;;  %v3892_v37 = vadd.f32 %v8252_v54, %v2669_v33  ;;  %v4022_v38 = vmul.f32 0.2, %v3766_v30  ;;  %v4277_v42 = vmax.f32 %v3765_v18, %v4021_v28 }
 0x180   : > { %v4150_v39 = vmul.f32 0.2, %v3894_v31  ;;  %v4020_v40 = vmul.f32 0.2, %v3764_v36  ;;  %v4405_v43 = vmax.f32 %v3893_v19, %v4149_v29  ;;  %v4275_v46 = vmax.f32 %v3763_v24, %v4019_v34 }
 0x181   : > { %v4148_v41 = vmul.f32 0.2, %v3892_v37  ;;  %v4278_v44 = vmax.f32 %v3766_v30, %v4022_v38  ;;  %v4403_v47 = vmax.f32 %v3891_v25, %v4147_v35 }
 0x182   : > { %v4406_v45 = vmax.f32 %v3894_v31, %v4150_v39  ;;  %v4276_v48 = vmax.f32 %v3764_v36, %v4020_v40  ;;  %v7509_v50 = vpop.f32.mrb[68].mxu0  ;;  %v7637_v51 = vpop.f32.mrb[68].mxu1 }
 0x183   : > { %v4404_v49 = vmax.f32 %v3892_v37, %v4148_v41  ;;  %v6688_v52 = vpack.c.bf16 %v4278_v44, %v4277_v42  ;;  %v3769_v55 = vadd.f32 %v8252_v54, %v7509_v50  ;;  %v3897_v56 = vadd.f32 %v8252_v54, %v7637_v51  ;;  %v2170_v57 = vpop.f32.mrb[69].mxu0  ;;  %v2682_v58 = vpop.f32.mrb[69].mxu1 }
 0x184   : > { %v7008_v53 = vpack.c.bf16 %v4406_v45, %v4405_v43  ;;  %v6683_v59 = vpack.c.bf16 %v4276_v48, %v4275_v46  ;;  %v3767_v61 = vadd.f32 %v8252_v54, %v2170_v57  ;;  %v3895_v62 = vadd.f32 %v8252_v54, %v2682_v58  ;;  %v7510_v63 = vpop.f32.mrb[70].mxu0  ;;  %v7638_v0 = vpop.f32.mrb[70].mxu1 }
 0x185   : > { %v7003_v60 = vpack.c.bf16 %v4404_v49, %v4403_v47  ;;  %7192 = vst [vmem:[%s8101_s17 + $0x108] sm:$0xff] %v6688_v52   ;;  %v4025_v1 = vmul.f32 0.2, %v3769_v55  ;;  %v4153_v2 = vmul.f32 0.2, %v3897_v56  ;;  %v3770_v3 = vadd.f32 %v8252_v54, %v7510_v63  ;;  %v2173_v5 = vpop.f32.mrb[71].mxu0 }
 0x186   : > { %7256 = vst [vmem:[%s8101_s17 + $0x308] sm:$0xff] %v7008_v53   ;;  %v3898_v4 = vadd.f32 %v8252_v54, %v7638_v0  ;;  %v2685_v6 = vpop.f32.mrb[71].mxu1  ;;  %7191 = vst [vmem:[%s8101_s17 + $0x100] sm:$0xff] %v6683_v59   ;;  %v4023_v7 = vmul.f32 0.2, %v3767_v61  ;;  %v3768_v9 = vadd.f32 %v8252_v54, %v2173_v5 }
 0x187   : > { %7255 = vst [vmem:[%s8101_s17 + $0x300] sm:$0xff] %v7003_v60   ;;  %v4151_v8 = vmul.f32 0.2, %v3895_v62  ;;  %v3896_v10 = vadd.f32 %v8252_v54, %v2685_v6  ;;  %v4026_v11 = vmul.f32 0.2, %v3770_v3  ;;  %v4281_v15 = vmax.f32 %v3769_v55, %v4025_v1 }
 0x188   : > { %v4154_v12 = vmul.f32 0.2, %v3898_v4  ;;  %v4024_v13 = vmul.f32 0.2, %v3768_v9  ;;  %v4409_v16 = vmax.f32 %v3897_v56, %v4153_v2  ;;  %v4279_v19 = vmax.f32 %v3767_v61, %v4023_v7 }
 0x189   : > { %v4152_v14 = vmul.f32 0.2, %v3896_v10  ;;  %v4282_v17 = vmax.f32 %v3770_v3, %v4026_v11  ;;  %v4407_v20 = vmax.f32 %v3895_v62, %v4151_v8 }
 0x18a   : > { %v4410_v18 = vmax.f32 %v3898_v4, %v4154_v12  ;;  %v4280_v21 = vmax.f32 %v3768_v9, %v4024_v13  ;;  %v7513_v23 = vpop.f32.mrb[72].mxu0  ;;  %v7641_v24 = vpop.f32.mrb[72].mxu1 }
 0x18b   : > { %v4408_v22 = vmax.f32 %v3896_v10, %v4152_v14  ;;  %v6698_v25 = vpack.c.bf16 %v4282_v17, %v4281_v15  ;;  %v3773_v27 = vadd.f32 %v8252_v54, %v7513_v23  ;;  %v3901_v28 = vadd.f32 %v8252_v54, %v7641_v24  ;;  %v2186_v29 = vpop.f32.mrb[73].mxu0  ;;  %v2698_v30 = vpop.f32.mrb[73].mxu1 }
 0x18c   : > { %v7018_v26 = vpack.c.bf16 %v4410_v18, %v4409_v16  ;;  %v6693_v31 = vpack.c.bf16 %v4280_v21, %v4279_v19  ;;  %v3771_v33 = vadd.f32 %v8252_v54, %v2186_v29  ;;  %v3899_v34 = vadd.f32 %v8252_v54, %v2698_v30  ;;  %v7514_v35 = vpop.f32.mrb[74].mxu0  ;;  %v7642_v36 = vpop.f32.mrb[74].mxu1 }
 0x18d   : > { %v7013_v32 = vpack.c.bf16 %v4408_v22, %v4407_v20  ;;  %7194 = vst [vmem:[%s8101_s17 + $0x118] sm:$0xff] %v6698_v25   ;;  %v4029_v37 = vmul.f32 0.2, %v3773_v27  ;;  %v4157_v38 = vmul.f32 0.2, %v3901_v28  ;;  %v3774_v39 = vadd.f32 %v8252_v54, %v7514_v35  ;;  %v2189_v41 = vpop.f32.mrb[75].mxu0 }
 0x18e   : > { %7258 = vst [vmem:[%s8101_s17 + $0x318] sm:$0xff] %v7018_v26   ;;  %v3902_v40 = vadd.f32 %v8252_v54, %v7642_v36  ;;  %v2701_v42 = vpop.f32.mrb[75].mxu1  ;;  %7193 = vst [vmem:[%s8101_s17 + $0x110] sm:$0xff] %v6693_v31   ;;  %v4027_v43 = vmul.f32 0.2, %v3771_v33  ;;  %v3772_v45 = vadd.f32 %v8252_v54, %v2189_v41 }
 0x18f   : > { %7257 = vst [vmem:[%s8101_s17 + $0x310] sm:$0xff] %v7013_v32   ;;  %v4155_v44 = vmul.f32 0.2, %v3899_v34  ;;  %v3900_v46 = vadd.f32 %v8252_v54, %v2701_v42  ;;  %v4030_v47 = vmul.f32 0.2, %v3774_v39  ;;  %v4285_v51 = vmax.f32 %v3773_v27, %v4029_v37 }
 0x190   : > { %v4158_v48 = vmul.f32 0.2, %v3902_v40  ;;  %v4028_v49 = vmul.f32 0.2, %v3772_v45  ;;  %v4413_v52 = vmax.f32 %v3901_v28, %v4157_v38  ;;  %v4283_v56 = vmax.f32 %v3771_v33, %v4027_v43 }
 0x191   : > { %v4156_v50 = vmul.f32 0.2, %v3900_v46  ;;  %v4286_v53 = vmax.f32 %v3774_v39, %v4030_v47  ;;  %v4411_v57 = vmax.f32 %v3899_v34, %v4155_v44 }
 0x192   : > { %v4414_v55 = vmax.f32 %v3902_v40, %v4158_v48  ;;  %v4284_v58 = vmax.f32 %v3772_v45, %v4028_v49  ;;  %v7517_v60 = vpop.f32.mrb[76].mxu0  ;;  %v7645_v61 = vpop.f32.mrb[76].mxu1 }
 0x193   : > { %v4412_v59 = vmax.f32 %v3900_v46, %v4156_v50  ;;  %v6708_v62 = vpack.c.bf16 %v4286_v53, %v4285_v51  ;;  %v3777_v0 = vadd.f32 %v8252_v54, %v7517_v60  ;;  %v3905_v1 = vadd.f32 %v8252_v54, %v7645_v61  ;;  %v2202_v2 = vpop.f32.mrb[77].mxu0  ;;  %v2714_v3 = vpop.f32.mrb[77].mxu1 }
 0x194   : > { %v7028_v63 = vpack.c.bf16 %v4414_v55, %v4413_v52  ;;  %v6703_v4 = vpack.c.bf16 %v4284_v58, %v4283_v56  ;;  %v3775_v6 = vadd.f32 %v8252_v54, %v2202_v2  ;;  %v3903_v7 = vadd.f32 %v8252_v54, %v2714_v3  ;;  %v7518_v8 = vpop.f32.mrb[78].mxu0  ;;  %v7646_v9 = vpop.f32.mrb[78].mxu1 }
 0x195   : > { %v7023_v5 = vpack.c.bf16 %v4412_v59, %v4411_v57  ;;  %7196 = vst [vmem:[%s8101_s17 + $0x128] sm:$0xff] %v6708_v62   ;;  %v4033_v10 = vmul.f32 0.2, %v3777_v0  ;;  %v4161_v11 = vmul.f32 0.2, %v3905_v1  ;;  %v3778_v12 = vadd.f32 %v8252_v54, %v7518_v8  ;;  %v2205_v14 = vpop.f32.mrb[79].mxu0 }
 0x196   : > { %7260 = vst [vmem:[%s8101_s17 + $0x328] sm:$0xff] %v7028_v63   ;;  %v3906_v13 = vadd.f32 %v8252_v54, %v7646_v9  ;;  %v2717_v15 = vpop.f32.mrb[79].mxu1  ;;  %7195 = vst [vmem:[%s8101_s17 + $0x120] sm:$0xff] %v6703_v4   ;;  %v4031_v16 = vmul.f32 0.2, %v3775_v6  ;;  %v3776_v18 = vadd.f32 %v8252_v54, %v2205_v14 }
 0x197   : > { %7259 = vst [vmem:[%s8101_s17 + $0x320] sm:$0xff] %v7023_v5   ;;  %v4159_v17 = vmul.f32 0.2, %v3903_v7  ;;  %v3904_v19 = vadd.f32 %v8252_v54, %v2717_v15  ;;  %v4034_v20 = vmul.f32 0.2, %v3778_v12  ;;  %v4289_v24 = vmax.f32 %v3777_v0, %v4033_v10 }
 0x198   : > { %v4162_v21 = vmul.f32 0.2, %v3906_v13  ;;  %v4032_v22 = vmul.f32 0.2, %v3776_v18  ;;  %v4417_v25 = vmax.f32 %v3905_v1, %v4161_v11  ;;  %v4287_v28 = vmax.f32 %v3775_v6, %v4031_v16 }
 0x199   : > { %v4160_v23 = vmul.f32 0.2, %v3904_v19  ;;  %v4290_v26 = vmax.f32 %v3778_v12, %v4034_v20  ;;  %v4415_v29 = vmax.f32 %v3903_v7, %v4159_v17 }
 0x19a   : > { %v4418_v27 = vmax.f32 %v3906_v13, %v4162_v21  ;;  %v4288_v30 = vmax.f32 %v3776_v18, %v4032_v22  ;;  %v7521_v32 = vpop.f32.mrb[80].mxu0  ;;  %v7649_v33 = vpop.f32.mrb[80].mxu1 }
 0x19b   : > { %v4416_v31 = vmax.f32 %v3904_v19, %v4160_v23  ;;  %v6718_v34 = vpack.c.bf16 %v4290_v26, %v4289_v24  ;;  %v3781_v36 = vadd.f32 %v8252_v54, %v7521_v32  ;;  %v3909_v37 = vadd.f32 %v8252_v54, %v7649_v33  ;;  %v2218_v38 = vpop.f32.mrb[81].mxu0  ;;  %v2730_v39 = vpop.f32.mrb[81].mxu1 }
 0x19c   : > { %v7038_v35 = vpack.c.bf16 %v4418_v27, %v4417_v25  ;;  %v6713_v40 = vpack.c.bf16 %v4288_v30, %v4287_v28  ;;  %v3779_v42 = vadd.f32 %v8252_v54, %v2218_v38  ;;  %v3907_v43 = vadd.f32 %v8252_v54, %v2730_v39  ;;  %v7522_v44 = vpop.f32.mrb[82].mxu0  ;;  %v7650_v45 = vpop.f32.mrb[82].mxu1 }
 0x19d   : > { %v7033_v41 = vpack.c.bf16 %v4416_v31, %v4415_v29  ;;  %7198 = vst [vmem:[%s8101_s17 + $0x138] sm:$0xff] %v6718_v34   ;;  %v4037_v46 = vmul.f32 0.2, %v3781_v36  ;;  %v4165_v47 = vmul.f32 0.2, %v3909_v37  ;;  %v3782_v48 = vadd.f32 %v8252_v54, %v7522_v44  ;;  %v2221_v50 = vpop.f32.mrb[83].mxu0 }
 0x19e   : > { %7262 = vst [vmem:[%s8101_s17 + $0x338] sm:$0xff] %v7038_v35   ;;  %v3910_v49 = vadd.f32 %v8252_v54, %v7650_v45  ;;  %v2733_v51 = vpop.f32.mrb[83].mxu1  ;;  %7197 = vst [vmem:[%s8101_s17 + $0x130] sm:$0xff] %v6713_v40   ;;  %v4035_v52 = vmul.f32 0.2, %v3779_v42  ;;  %v3780_v55 = vadd.f32 %v8252_v54, %v2221_v50 }
 0x19f   : > { %7261 = vst [vmem:[%s8101_s17 + $0x330] sm:$0xff] %v7033_v41   ;;  %v4163_v53 = vmul.f32 0.2, %v3907_v43  ;;  %v3908_v56 = vadd.f32 %v8252_v54, %v2733_v51  ;;  %v4038_v57 = vmul.f32 0.2, %v3782_v48  ;;  %v4293_v61 = vmax.f32 %v3781_v36, %v4037_v46 }
 0x1a0   : > { %v4166_v58 = vmul.f32 0.2, %v3910_v49  ;;  %v4036_v59 = vmul.f32 0.2, %v3780_v55  ;;  %v4421_v62 = vmax.f32 %v3909_v37, %v4165_v47  ;;  %v4291_v1 = vmax.f32 %v3779_v42, %v4035_v52 }
 0x1a1   : > { %v4164_v60 = vmul.f32 0.2, %v3908_v56  ;;  %v4294_v63 = vmax.f32 %v3782_v48, %v4038_v57  ;;  %v4419_v2 = vmax.f32 %v3907_v43, %v4163_v53 }
 0x1a2   : > { %v4422_v0 = vmax.f32 %v3910_v49, %v4166_v58  ;;  %v4292_v3 = vmax.f32 %v3780_v55, %v4036_v59  ;;  %v7525_v5 = vpop.f32.mrb[84].mxu0  ;;  %v7653_v6 = vpop.f32.mrb[84].mxu1 }
 0x1a3   : > { %v4420_v4 = vmax.f32 %v3908_v56, %v4164_v60  ;;  %v6728_v7 = vpack.c.bf16 %v4294_v63, %v4293_v61  ;;  %v3785_v9 = vadd.f32 %v8252_v54, %v7525_v5  ;;  %v3913_v10 = vadd.f32 %v8252_v54, %v7653_v6  ;;  %v2234_v11 = vpop.f32.mrb[85].mxu0  ;;  %v2746_v12 = vpop.f32.mrb[85].mxu1 }
 0x1a4   : > { %v7048_v8 = vpack.c.bf16 %v4422_v0, %v4421_v62  ;;  %v6723_v13 = vpack.c.bf16 %v4292_v3, %v4291_v1  ;;  %v3783_v15 = vadd.f32 %v8252_v54, %v2234_v11  ;;  %v3911_v16 = vadd.f32 %v8252_v54, %v2746_v12  ;;  %v7526_v17 = vpop.f32.mrb[86].mxu0  ;;  %v7654_v18 = vpop.f32.mrb[86].mxu1 }
 0x1a5   : > { %v7043_v14 = vpack.c.bf16 %v4420_v4, %v4419_v2  ;;  %7200 = vst [vmem:[%s8101_s17 + $0x148] sm:$0xff] %v6728_v7   ;;  %v4041_v19 = vmul.f32 0.2, %v3785_v9  ;;  %v4169_v20 = vmul.f32 0.2, %v3913_v10  ;;  %v3786_v21 = vadd.f32 %v8252_v54, %v7526_v17  ;;  %v2237_v23 = vpop.f32.mrb[87].mxu0 }
 0x1a6   : > { %7264 = vst [vmem:[%s8101_s17 + $0x348] sm:$0xff] %v7048_v8   ;;  %v3914_v22 = vadd.f32 %v8252_v54, %v7654_v18  ;;  %v2749_v24 = vpop.f32.mrb[87].mxu1  ;;  %7199 = vst [vmem:[%s8101_s17 + $0x140] sm:$0xff] %v6723_v13   ;;  %v4039_v25 = vmul.f32 0.2, %v3783_v15  ;;  %v3784_v27 = vadd.f32 %v8252_v54, %v2237_v23 }
 0x1a7   : > { %7263 = vst [vmem:[%s8101_s17 + $0x340] sm:$0xff] %v7043_v14   ;;  %v4167_v26 = vmul.f32 0.2, %v3911_v16  ;;  %v3912_v28 = vadd.f32 %v8252_v54, %v2749_v24  ;;  %v4042_v29 = vmul.f32 0.2, %v3786_v21  ;;  %v4297_v33 = vmax.f32 %v3785_v9, %v4041_v19 }
 0x1a8   : > { %v4170_v30 = vmul.f32 0.2, %v3914_v22  ;;  %v4040_v31 = vmul.f32 0.2, %v3784_v27  ;;  %v4425_v34 = vmax.f32 %v3913_v10, %v4169_v20  ;;  %v4295_v37 = vmax.f32 %v3783_v15, %v4039_v25 }
 0x1a9   : > { %v4168_v32 = vmul.f32 0.2, %v3912_v28  ;;  %v4298_v35 = vmax.f32 %v3786_v21, %v4042_v29  ;;  %v4423_v38 = vmax.f32 %v3911_v16, %v4167_v26 }
 0x1aa   : > { %v4426_v36 = vmax.f32 %v3914_v22, %v4170_v30  ;;  %v4296_v39 = vmax.f32 %v3784_v27, %v4040_v31  ;;  %v7529_v41 = vpop.f32.mrb[88].mxu0  ;;  %v7657_v42 = vpop.f32.mrb[88].mxu1 }
 0x1ab   : > { %v4424_v40 = vmax.f32 %v3912_v28, %v4168_v32  ;;  %v6738_v43 = vpack.c.bf16 %v4298_v35, %v4297_v33  ;;  %v3789_v45 = vadd.f32 %v8252_v54, %v7529_v41  ;;  %v3917_v46 = vadd.f32 %v8252_v54, %v7657_v42  ;;  %v2250_v47 = vpop.f32.mrb[89].mxu0  ;;  %v2762_v48 = vpop.f32.mrb[89].mxu1 }
 0x1ac   : > { %v7058_v44 = vpack.c.bf16 %v4426_v36, %v4425_v34  ;;  %v6733_v49 = vpack.c.bf16 %v4296_v39, %v4295_v37  ;;  %v3787_v51 = vadd.f32 %v8252_v54, %v2250_v47  ;;  %v3915_v52 = vadd.f32 %v8252_v54, %v2762_v48  ;;  %v7530_v53 = vpop.f32.mrb[90].mxu0  ;;  %v7658_v55 = vpop.f32.mrb[90].mxu1 }
 0x1ad   : > { %v7053_v50 = vpack.c.bf16 %v4424_v40, %v4423_v38  ;;  %7202 = vst [vmem:[%s8101_s17 + $0x158] sm:$0xff] %v6738_v43   ;;  %v4045_v56 = vmul.f32 0.2, %v3789_v45  ;;  %v4173_v57 = vmul.f32 0.2, %v3917_v46  ;;  %v3790_v58 = vadd.f32 %v8252_v54, %v7530_v53  ;;  %v2253_v60 = vpop.f32.mrb[91].mxu0 }
 0x1ae   : > { %7266 = vst [vmem:[%s8101_s17 + $0x358] sm:$0xff] %v7058_v44   ;;  %v3918_v59 = vadd.f32 %v8252_v54, %v7658_v55  ;;  %v2765_v61 = vpop.f32.mrb[91].mxu1  ;;  %7201 = vst [vmem:[%s8101_s17 + $0x150] sm:$0xff] %v6733_v49   ;;  %v4043_v62 = vmul.f32 0.2, %v3787_v51  ;;  %v3788_v0 = vadd.f32 %v8252_v54, %v2253_v60 }
 0x1af   : > { %7265 = vst [vmem:[%s8101_s17 + $0x350] sm:$0xff] %v7053_v50   ;;  %v4171_v63 = vmul.f32 0.2, %v3915_v52  ;;  %v3916_v1 = vadd.f32 %v8252_v54, %v2765_v61  ;;  %v4046_v2 = vmul.f32 0.2, %v3790_v58  ;;  %v4301_v6 = vmax.f32 %v3789_v45, %v4045_v56 }
 0x1b0   : > { %v4174_v3 = vmul.f32 0.2, %v3918_v59  ;;  %v4044_v4 = vmul.f32 0.2, %v3788_v0  ;;  %v4429_v7 = vmax.f32 %v3917_v46, %v4173_v57  ;;  %v4299_v10 = vmax.f32 %v3787_v51, %v4043_v62 }
 0x1b1   : > { %v4172_v5 = vmul.f32 0.2, %v3916_v1  ;;  %v4302_v8 = vmax.f32 %v3790_v58, %v4046_v2  ;;  %v4427_v11 = vmax.f32 %v3915_v52, %v4171_v63 }
 0x1b2   : > { %v4430_v9 = vmax.f32 %v3918_v59, %v4174_v3  ;;  %v4300_v12 = vmax.f32 %v3788_v0, %v4044_v4  ;;  %v7533_v14 = vpop.f32.mrb[92].mxu0  ;;  %v7661_v15 = vpop.f32.mrb[92].mxu1 }
 0x1b3   : > { %v4428_v13 = vmax.f32 %v3916_v1, %v4172_v5  ;;  %v6748_v16 = vpack.c.bf16 %v4302_v8, %v4301_v6  ;;  %v3793_v18 = vadd.f32 %v8252_v54, %v7533_v14  ;;  %v3921_v19 = vadd.f32 %v8252_v54, %v7661_v15  ;;  %v2266_v20 = vpop.f32.mrb[93].mxu0  ;;  %v2778_v21 = vpop.f32.mrb[93].mxu1 }
 0x1b4   : > { %v7068_v17 = vpack.c.bf16 %v4430_v9, %v4429_v7  ;;  %v6743_v22 = vpack.c.bf16 %v4300_v12, %v4299_v10  ;;  %v3791_v24 = vadd.f32 %v8252_v54, %v2266_v20  ;;  %v3919_v25 = vadd.f32 %v8252_v54, %v2778_v21  ;;  %v7534_v26 = vpop.f32.mrb[94].mxu0  ;;  %v7662_v27 = vpop.f32.mrb[94].mxu1 }
 0x1b5   : > { %v7063_v23 = vpack.c.bf16 %v4428_v13, %v4427_v11  ;;  %7204 = vst [vmem:[%s8101_s17 + $0x168] sm:$0xff] %v6748_v16   ;;  %v4049_v28 = vmul.f32 0.2, %v3793_v18  ;;  %v4177_v29 = vmul.f32 0.2, %v3921_v19  ;;  %v3794_v30 = vadd.f32 %v8252_v54, %v7534_v26  ;;  %v2269_v32 = vpop.f32.mrb[95].mxu0 }
 0x1b6   : > { %7268 = vst [vmem:[%s8101_s17 + $0x368] sm:$0xff] %v7068_v17   ;;  %v3922_v31 = vadd.f32 %v8252_v54, %v7662_v27  ;;  %v2781_v33 = vpop.f32.mrb[95].mxu1  ;;  %7203 = vst [vmem:[%s8101_s17 + $0x160] sm:$0xff] %v6743_v22   ;;  %v4047_v34 = vmul.f32 0.2, %v3791_v24  ;;  %v3792_v36 = vadd.f32 %v8252_v54, %v2269_v32 }
 0x1b7   : > { %7267 = vst [vmem:[%s8101_s17 + $0x360] sm:$0xff] %v7063_v23   ;;  %v4175_v35 = vmul.f32 0.2, %v3919_v25  ;;  %v3920_v37 = vadd.f32 %v8252_v54, %v2781_v33  ;;  %v4050_v38 = vmul.f32 0.2, %v3794_v30  ;;  %v4305_v42 = vmax.f32 %v3793_v18, %v4049_v28 }
 0x1b8   : > { %v4178_v39 = vmul.f32 0.2, %v3922_v31  ;;  %v4048_v40 = vmul.f32 0.2, %v3792_v36  ;;  %v4433_v43 = vmax.f32 %v3921_v19, %v4177_v29  ;;  %v4303_v46 = vmax.f32 %v3791_v24, %v4047_v34 }
 0x1b9   : > { %v4176_v41 = vmul.f32 0.2, %v3920_v37  ;;  %v4306_v44 = vmax.f32 %v3794_v30, %v4050_v38  ;;  %v4431_v47 = vmax.f32 %v3919_v25, %v4175_v35 }
 0x1ba   : > { %v4434_v45 = vmax.f32 %v3922_v31, %v4178_v39  ;;  %v4304_v48 = vmax.f32 %v3792_v36, %v4048_v40  ;;  %v7537_v50 = vpop.f32.mrb[96].mxu0  ;;  %v7665_v51 = vpop.f32.mrb[96].mxu1 }
 0x1bb   : > { %v4432_v49 = vmax.f32 %v3920_v37, %v4176_v41  ;;  %v6758_v52 = vpack.c.bf16 %v4306_v44, %v4305_v42  ;;  %v3797_v55 = vadd.f32 %v8252_v54, %v7537_v50  ;;  %v3925_v56 = vadd.f32 %v8252_v54, %v7665_v51  ;;  %v2282_v57 = vpop.f32.mrb[97].mxu0  ;;  %v2794_v58 = vpop.f32.mrb[97].mxu1 }
 0x1bc   : > { %v7078_v53 = vpack.c.bf16 %v4434_v45, %v4433_v43  ;;  %v6753_v59 = vpack.c.bf16 %v4304_v48, %v4303_v46  ;;  %v3795_v61 = vadd.f32 %v8252_v54, %v2282_v57  ;;  %v3923_v62 = vadd.f32 %v8252_v54, %v2794_v58  ;;  %v7538_v63 = vpop.f32.mrb[98].mxu0  ;;  %v7666_v0 = vpop.f32.mrb[98].mxu1 }
 0x1bd   : > { %v7073_v60 = vpack.c.bf16 %v4432_v49, %v4431_v47  ;;  %7206 = vst [vmem:[%s8101_s17 + $0x178] sm:$0xff] %v6758_v52   ;;  %v4053_v1 = vmul.f32 0.2, %v3797_v55  ;;  %v4181_v2 = vmul.f32 0.2, %v3925_v56  ;;  %v3798_v3 = vadd.f32 %v8252_v54, %v7538_v63  ;;  %v2285_v5 = vpop.f32.mrb[99].mxu0 }
 0x1be   : > { %7270 = vst [vmem:[%s8101_s17 + $0x378] sm:$0xff] %v7078_v53   ;;  %v3926_v4 = vadd.f32 %v8252_v54, %v7666_v0  ;;  %v2797_v6 = vpop.f32.mrb[99].mxu1  ;;  %7205 = vst [vmem:[%s8101_s17 + $0x170] sm:$0xff] %v6753_v59   ;;  %v4051_v7 = vmul.f32 0.2, %v3795_v61  ;;  %v3796_v9 = vadd.f32 %v8252_v54, %v2285_v5 }
 0x1bf   : > { %7269 = vst [vmem:[%s8101_s17 + $0x370] sm:$0xff] %v7073_v60   ;;  %v4179_v8 = vmul.f32 0.2, %v3923_v62  ;;  %v3924_v10 = vadd.f32 %v8252_v54, %v2797_v6  ;;  %v4054_v11 = vmul.f32 0.2, %v3798_v3  ;;  %v4309_v15 = vmax.f32 %v3797_v55, %v4053_v1 }
 0x1c0   : > { %v4182_v12 = vmul.f32 0.2, %v3926_v4  ;;  %v4052_v13 = vmul.f32 0.2, %v3796_v9  ;;  %v4437_v16 = vmax.f32 %v3925_v56, %v4181_v2  ;;  %v4307_v19 = vmax.f32 %v3795_v61, %v4051_v7  ;;  %v8413_v54 = vld [vmem:[%s8514_s2] ss:$0 sm:$0xff] }
 0x1c1   : > { %v4180_v14 = vmul.f32 0.2, %v3924_v10  ;;  %v4310_v17 = vmax.f32 %v3798_v3, %v4054_v11  ;;  %v4435_v20 = vmax.f32 %v3923_v62, %v4179_v8 }
 0x1c2   : > { %v4438_v18 = vmax.f32 %v3926_v4, %v4182_v12  ;;  %v4308_v21 = vmax.f32 %v3796_v9, %v4052_v13  ;;  %v7541_v23 = vpop.f32.mrb[100].mxu0  ;;  %v7669_v24 = vpop.f32.mrb[100].mxu1 }
 0x1c3   : > { %v4436_v22 = vmax.f32 %v3924_v10, %v4180_v14  ;;  %v6768_v25 = vpack.c.bf16 %v4310_v17, %v4309_v15  ;;  %v3801_v27 = vadd.f32 %v8413_v54, %v7541_v23  ;;  %v3929_v28 = vadd.f32 %v8413_v54, %v7669_v24  ;;  %v2298_v29 = vpop.f32.mrb[101].mxu0  ;;  %v2810_v30 = vpop.f32.mrb[101].mxu1 }
 0x1c4   : > { %v7088_v26 = vpack.c.bf16 %v4438_v18, %v4437_v16  ;;  %v6763_v31 = vpack.c.bf16 %v4308_v21, %v4307_v19  ;;  %v3799_v33 = vadd.f32 %v8413_v54, %v2298_v29  ;;  %v3927_v34 = vadd.f32 %v8413_v54, %v2810_v30  ;;  %v7542_v35 = vpop.f32.mrb[102].mxu0  ;;  %v7670_v36 = vpop.f32.mrb[102].mxu1 }
 0x1c5   : > { %v7083_v32 = vpack.c.bf16 %v4436_v22, %v4435_v20  ;;  %7208 = vst [vmem:[%s8101_s17 + $0x188] sm:$0xff] %v6768_v25   ;;  %v4057_v37 = vmul.f32 0.2, %v3801_v27  ;;  %v4185_v38 = vmul.f32 0.2, %v3929_v28  ;;  %v3802_v39 = vadd.f32 %v8413_v54, %v7542_v35  ;;  %v2301_v41 = vpop.f32.mrb[103].mxu0 }
 0x1c6   : > { %7272 = vst [vmem:[%s8101_s17 + $0x388] sm:$0xff] %v7088_v26   ;;  %v3930_v40 = vadd.f32 %v8413_v54, %v7670_v36  ;;  %v2813_v42 = vpop.f32.mrb[103].mxu1  ;;  %7207 = vst [vmem:[%s8101_s17 + $0x180] sm:$0xff] %v6763_v31   ;;  %v4055_v43 = vmul.f32 0.2, %v3799_v33  ;;  %v3800_v45 = vadd.f32 %v8413_v54, %v2301_v41 }
 0x1c7   : > { %7271 = vst [vmem:[%s8101_s17 + $0x380] sm:$0xff] %v7083_v32   ;;  %v4183_v44 = vmul.f32 0.2, %v3927_v34  ;;  %v3928_v46 = vadd.f32 %v8413_v54, %v2813_v42  ;;  %v4058_v47 = vmul.f32 0.2, %v3802_v39  ;;  %v4313_v51 = vmax.f32 %v3801_v27, %v4057_v37 }
 0x1c8   : > { %v4186_v48 = vmul.f32 0.2, %v3930_v40  ;;  %v4056_v49 = vmul.f32 0.2, %v3800_v45  ;;  %v4441_v52 = vmax.f32 %v3929_v28, %v4185_v38  ;;  %v4311_v56 = vmax.f32 %v3799_v33, %v4055_v43 }
 0x1c9   : > { %v4184_v50 = vmul.f32 0.2, %v3928_v46  ;;  %v4314_v53 = vmax.f32 %v3802_v39, %v4058_v47  ;;  %v4439_v57 = vmax.f32 %v3927_v34, %v4183_v44 }
 0x1ca   : > { %v4442_v55 = vmax.f32 %v3930_v40, %v4186_v48  ;;  %v4312_v58 = vmax.f32 %v3800_v45, %v4056_v49  ;;  %v7545_v60 = vpop.f32.mrb[104].mxu0  ;;  %v7673_v61 = vpop.f32.mrb[104].mxu1 }
 0x1cb   : > { %v4440_v59 = vmax.f32 %v3928_v46, %v4184_v50  ;;  %v6778_v62 = vpack.c.bf16 %v4314_v53, %v4313_v51  ;;  %v3805_v0 = vadd.f32 %v8413_v54, %v7545_v60  ;;  %v3933_v1 = vadd.f32 %v8413_v54, %v7673_v61  ;;  %v2314_v2 = vpop.f32.mrb[105].mxu0  ;;  %v2826_v3 = vpop.f32.mrb[105].mxu1 }
 0x1cc   : > { %v7098_v63 = vpack.c.bf16 %v4442_v55, %v4441_v52  ;;  %v6773_v4 = vpack.c.bf16 %v4312_v58, %v4311_v56  ;;  %v3803_v6 = vadd.f32 %v8413_v54, %v2314_v2  ;;  %v3931_v7 = vadd.f32 %v8413_v54, %v2826_v3  ;;  %v7546_v8 = vpop.f32.mrb[106].mxu0  ;;  %v7674_v9 = vpop.f32.mrb[106].mxu1 }
 0x1cd   : > { %v7093_v5 = vpack.c.bf16 %v4440_v59, %v4439_v57  ;;  %7210 = vst [vmem:[%s8101_s17 + $0x198] sm:$0xff] %v6778_v62   ;;  %v4061_v10 = vmul.f32 0.2, %v3805_v0  ;;  %v4189_v11 = vmul.f32 0.2, %v3933_v1  ;;  %v3806_v12 = vadd.f32 %v8413_v54, %v7546_v8  ;;  %v2317_v14 = vpop.f32.mrb[107].mxu0 }
 0x1ce   : > { %7274 = vst [vmem:[%s8101_s17 + $0x398] sm:$0xff] %v7098_v63   ;;  %v3934_v13 = vadd.f32 %v8413_v54, %v7674_v9  ;;  %v2829_v15 = vpop.f32.mrb[107].mxu1  ;;  %7209 = vst [vmem:[%s8101_s17 + $0x190] sm:$0xff] %v6773_v4   ;;  %v4059_v16 = vmul.f32 0.2, %v3803_v6  ;;  %v3804_v18 = vadd.f32 %v8413_v54, %v2317_v14 }
 0x1cf   : > { %7273 = vst [vmem:[%s8101_s17 + $0x390] sm:$0xff] %v7093_v5   ;;  %v4187_v17 = vmul.f32 0.2, %v3931_v7  ;;  %v3932_v19 = vadd.f32 %v8413_v54, %v2829_v15  ;;  %v4062_v20 = vmul.f32 0.2, %v3806_v12  ;;  %v4317_v24 = vmax.f32 %v3805_v0, %v4061_v10 }
 0x1d0   : > { %v4190_v21 = vmul.f32 0.2, %v3934_v13  ;;  %v4060_v22 = vmul.f32 0.2, %v3804_v18  ;;  %v4445_v25 = vmax.f32 %v3933_v1, %v4189_v11  ;;  %v4315_v28 = vmax.f32 %v3803_v6, %v4059_v16 }
 0x1d1   : > { %v4188_v23 = vmul.f32 0.2, %v3932_v19  ;;  %v4318_v26 = vmax.f32 %v3806_v12, %v4062_v20  ;;  %v4443_v29 = vmax.f32 %v3931_v7, %v4187_v17 }
 0x1d2   : > { %v4446_v27 = vmax.f32 %v3934_v13, %v4190_v21  ;;  %v4316_v30 = vmax.f32 %v3804_v18, %v4060_v22  ;;  %v7549_v32 = vpop.f32.mrb[108].mxu0  ;;  %v7677_v33 = vpop.f32.mrb[108].mxu1 }
 0x1d3   : > { %v4444_v31 = vmax.f32 %v3932_v19, %v4188_v23  ;;  %v6788_v34 = vpack.c.bf16 %v4318_v26, %v4317_v24  ;;  %v3809_v36 = vadd.f32 %v8413_v54, %v7549_v32  ;;  %v3937_v37 = vadd.f32 %v8413_v54, %v7677_v33  ;;  %v2330_v38 = vpop.f32.mrb[109].mxu0  ;;  %v2842_v39 = vpop.f32.mrb[109].mxu1 }
 0x1d4   : > { %v7108_v35 = vpack.c.bf16 %v4446_v27, %v4445_v25  ;;  %v6783_v40 = vpack.c.bf16 %v4316_v30, %v4315_v28  ;;  %v3807_v42 = vadd.f32 %v8413_v54, %v2330_v38  ;;  %v3935_v43 = vadd.f32 %v8413_v54, %v2842_v39  ;;  %v7550_v44 = vpop.f32.mrb[110].mxu0  ;;  %v7678_v45 = vpop.f32.mrb[110].mxu1 }
 0x1d5   : > { %v7103_v41 = vpack.c.bf16 %v4444_v31, %v4443_v29  ;;  %7212 = vst [vmem:[%s8101_s17 + $0x1a8] sm:$0xff] %v6788_v34   ;;  %v4065_v46 = vmul.f32 0.2, %v3809_v36  ;;  %v4193_v47 = vmul.f32 0.2, %v3937_v37  ;;  %v3810_v48 = vadd.f32 %v8413_v54, %v7550_v44  ;;  %v2333_v50 = vpop.f32.mrb[111].mxu0 }
 0x1d6   : > { %7276 = vst [vmem:[%s8101_s17 + $0x3a8] sm:$0xff] %v7108_v35   ;;  %v3938_v49 = vadd.f32 %v8413_v54, %v7678_v45  ;;  %v2845_v51 = vpop.f32.mrb[111].mxu1  ;;  %7211 = vst [vmem:[%s8101_s17 + $0x1a0] sm:$0xff] %v6783_v40   ;;  %v4063_v52 = vmul.f32 0.2, %v3807_v42  ;;  %v3808_v55 = vadd.f32 %v8413_v54, %v2333_v50 }
 0x1d7   : > { %7275 = vst [vmem:[%s8101_s17 + $0x3a0] sm:$0xff] %v7103_v41   ;;  %v4191_v53 = vmul.f32 0.2, %v3935_v43  ;;  %v3936_v56 = vadd.f32 %v8413_v54, %v2845_v51  ;;  %v4066_v57 = vmul.f32 0.2, %v3810_v48  ;;  %v4321_v61 = vmax.f32 %v3809_v36, %v4065_v46 }
 0x1d8   : > { %v4194_v58 = vmul.f32 0.2, %v3938_v49  ;;  %v4064_v59 = vmul.f32 0.2, %v3808_v55  ;;  %v4449_v62 = vmax.f32 %v3937_v37, %v4193_v47  ;;  %v4319_v1 = vmax.f32 %v3807_v42, %v4063_v52 }
 0x1d9   : > { %v4192_v60 = vmul.f32 0.2, %v3936_v56  ;;  %v4322_v63 = vmax.f32 %v3810_v48, %v4066_v57  ;;  %v4447_v2 = vmax.f32 %v3935_v43, %v4191_v53 }
 0x1da   : > { %v4450_v0 = vmax.f32 %v3938_v49, %v4194_v58  ;;  %v4320_v3 = vmax.f32 %v3808_v55, %v4064_v59  ;;  %v7553_v5 = vpop.f32.mrb[112].mxu0  ;;  %v7681_v6 = vpop.f32.mrb[112].mxu1 }
 0x1db   : > { %v4448_v4 = vmax.f32 %v3936_v56, %v4192_v60  ;;  %v6798_v7 = vpack.c.bf16 %v4322_v63, %v4321_v61  ;;  %v3813_v9 = vadd.f32 %v8413_v54, %v7553_v5  ;;  %v3941_v10 = vadd.f32 %v8413_v54, %v7681_v6  ;;  %v2346_v11 = vpop.f32.mrb[113].mxu0  ;;  %v2858_v12 = vpop.f32.mrb[113].mxu1 }
 0x1dc   : > { %v7118_v8 = vpack.c.bf16 %v4450_v0, %v4449_v62  ;;  %v6793_v13 = vpack.c.bf16 %v4320_v3, %v4319_v1  ;;  %v3811_v15 = vadd.f32 %v8413_v54, %v2346_v11  ;;  %v3939_v16 = vadd.f32 %v8413_v54, %v2858_v12  ;;  %v7554_v17 = vpop.f32.mrb[114].mxu0  ;;  %v7682_v18 = vpop.f32.mrb[114].mxu1 }
 0x1dd   : > { %v7113_v14 = vpack.c.bf16 %v4448_v4, %v4447_v2  ;;  %7214 = vst [vmem:[%s8101_s17 + $0x1b8] sm:$0xff] %v6798_v7   ;;  %v4069_v19 = vmul.f32 0.2, %v3813_v9  ;;  %v4197_v20 = vmul.f32 0.2, %v3941_v10  ;;  %v3814_v21 = vadd.f32 %v8413_v54, %v7554_v17  ;;  %v2349_v23 = vpop.f32.mrb[115].mxu0 }
 0x1de   : > { %7278 = vst [vmem:[%s8101_s17 + $0x3b8] sm:$0xff] %v7118_v8   ;;  %v3942_v22 = vadd.f32 %v8413_v54, %v7682_v18  ;;  %v2861_v24 = vpop.f32.mrb[115].mxu1  ;;  %7213 = vst [vmem:[%s8101_s17 + $0x1b0] sm:$0xff] %v6793_v13   ;;  %v4067_v25 = vmul.f32 0.2, %v3811_v15  ;;  %v3812_v27 = vadd.f32 %v8413_v54, %v2349_v23 }
 0x1df   : > { %7277 = vst [vmem:[%s8101_s17 + $0x3b0] sm:$0xff] %v7113_v14   ;;  %v4195_v26 = vmul.f32 0.2, %v3939_v16  ;;  %v3940_v28 = vadd.f32 %v8413_v54, %v2861_v24  ;;  %v4070_v29 = vmul.f32 0.2, %v3814_v21  ;;  %v4325_v33 = vmax.f32 %v3813_v9, %v4069_v19 }
 0x1e0   : > { %v4198_v30 = vmul.f32 0.2, %v3942_v22  ;;  %v4068_v31 = vmul.f32 0.2, %v3812_v27  ;;  %v4453_v34 = vmax.f32 %v3941_v10, %v4197_v20  ;;  %v4323_v37 = vmax.f32 %v3811_v15, %v4067_v25 }
 0x1e1   : > { %v4196_v32 = vmul.f32 0.2, %v3940_v28  ;;  %v4326_v35 = vmax.f32 %v3814_v21, %v4070_v29  ;;  %v4451_v38 = vmax.f32 %v3939_v16, %v4195_v26 }
 0x1e2   : > { %v4454_v36 = vmax.f32 %v3942_v22, %v4198_v30  ;;  %v4324_v39 = vmax.f32 %v3812_v27, %v4068_v31  ;;  %v7557_v41 = vpop.f32.mrb[116].mxu0  ;;  %v7685_v42 = vpop.f32.mrb[116].mxu1 }
 0x1e3   : > { %v4452_v40 = vmax.f32 %v3940_v28, %v4196_v32  ;;  %v6808_v43 = vpack.c.bf16 %v4326_v35, %v4325_v33  ;;  %v3817_v45 = vadd.f32 %v8413_v54, %v7557_v41  ;;  %v3945_v46 = vadd.f32 %v8413_v54, %v7685_v42  ;;  %v2362_v47 = vpop.f32.mrb[117].mxu0  ;;  %v2874_v48 = vpop.f32.mrb[117].mxu1 }
 0x1e4   : > { %v7128_v44 = vpack.c.bf16 %v4454_v36, %v4453_v34  ;;  %v6803_v49 = vpack.c.bf16 %v4324_v39, %v4323_v37  ;;  %v3815_v51 = vadd.f32 %v8413_v54, %v2362_v47  ;;  %v3943_v52 = vadd.f32 %v8413_v54, %v2874_v48  ;;  %v7558_v53 = vpop.f32.mrb[118].mxu0  ;;  %v7686_v55 = vpop.f32.mrb[118].mxu1 }
 0x1e5   : > { %v7123_v50 = vpack.c.bf16 %v4452_v40, %v4451_v38  ;;  %7216 = vst [vmem:[%s8101_s17 + $0x1c8] sm:$0xff] %v6808_v43   ;;  %v4073_v56 = vmul.f32 0.2, %v3817_v45  ;;  %v4201_v57 = vmul.f32 0.2, %v3945_v46  ;;  %v3818_v58 = vadd.f32 %v8413_v54, %v7558_v53  ;;  %v2365_v60 = vpop.f32.mrb[119].mxu0 }
 0x1e6   : > { %7280 = vst [vmem:[%s8101_s17 + $0x3c8] sm:$0xff] %v7128_v44   ;;  %v3946_v59 = vadd.f32 %v8413_v54, %v7686_v55  ;;  %v2877_v61 = vpop.f32.mrb[119].mxu1  ;;  %7215 = vst [vmem:[%s8101_s17 + $0x1c0] sm:$0xff] %v6803_v49   ;;  %v4071_v62 = vmul.f32 0.2, %v3815_v51  ;;  %v3816_v0 = vadd.f32 %v8413_v54, %v2365_v60 }
 0x1e7   : > { %7279 = vst [vmem:[%s8101_s17 + $0x3c0] sm:$0xff] %v7123_v50   ;;  %v4199_v63 = vmul.f32 0.2, %v3943_v52  ;;  %v3944_v1 = vadd.f32 %v8413_v54, %v2877_v61  ;;  %v4074_v2 = vmul.f32 0.2, %v3818_v58  ;;  %v4329_v6 = vmax.f32 %v3817_v45, %v4073_v56 }
 0x1e8   : > { %v4202_v3 = vmul.f32 0.2, %v3946_v59  ;;  %v4072_v4 = vmul.f32 0.2, %v3816_v0  ;;  %v4457_v7 = vmax.f32 %v3945_v46, %v4201_v57  ;;  %v4327_v10 = vmax.f32 %v3815_v51, %v4071_v62 }
 0x1e9   : > { %v4200_v5 = vmul.f32 0.2, %v3944_v1  ;;  %v4330_v8 = vmax.f32 %v3818_v58, %v4074_v2  ;;  %v4455_v11 = vmax.f32 %v3943_v52, %v4199_v63 }
 0x1ea   : > { %v4458_v9 = vmax.f32 %v3946_v59, %v4202_v3  ;;  %v4328_v12 = vmax.f32 %v3816_v0, %v4072_v4  ;;  %v7561_v14 = vpop.f32.mrb[120].mxu0  ;;  %v7689_v15 = vpop.f32.mrb[120].mxu1 }
 0x1eb   : > { %v4456_v13 = vmax.f32 %v3944_v1, %v4200_v5  ;;  %v6818_v16 = vpack.c.bf16 %v4330_v8, %v4329_v6  ;;  %v3821_v18 = vadd.f32 %v8413_v54, %v7561_v14  ;;  %v3949_v19 = vadd.f32 %v8413_v54, %v7689_v15  ;;  %v2378_v20 = vpop.f32.mrb[121].mxu0  ;;  %v2890_v21 = vpop.f32.mrb[121].mxu1 }
 0x1ec   : > { %v7138_v17 = vpack.c.bf16 %v4458_v9, %v4457_v7  ;;  %v6813_v22 = vpack.c.bf16 %v4328_v12, %v4327_v10  ;;  %v3819_v24 = vadd.f32 %v8413_v54, %v2378_v20  ;;  %v3947_v25 = vadd.f32 %v8413_v54, %v2890_v21  ;;  %v7562_v26 = vpop.f32.mrb[122].mxu0  ;;  %v7690_v27 = vpop.f32.mrb[122].mxu1 }
 0x1ed   : > { %v7133_v23 = vpack.c.bf16 %v4456_v13, %v4455_v11  ;;  %7218 = vst [vmem:[%s8101_s17 + $0x1d8] sm:$0xff] %v6818_v16   ;;  %v4077_v28 = vmul.f32 0.2, %v3821_v18  ;;  %v4205_v29 = vmul.f32 0.2, %v3949_v19  ;;  %v3822_v30 = vadd.f32 %v8413_v54, %v7562_v26  ;;  %v2381_v32 = vpop.f32.mrb[123].mxu0 }
 0x1ee   : > { %7282 = vst [vmem:[%s8101_s17 + $0x3d8] sm:$0xff] %v7138_v17   ;;  %v3950_v31 = vadd.f32 %v8413_v54, %v7690_v27  ;;  %v2893_v33 = vpop.f32.mrb[123].mxu1  ;;  %7217 = vst [vmem:[%s8101_s17 + $0x1d0] sm:$0xff] %v6813_v22   ;;  %v4075_v34 = vmul.f32 0.2, %v3819_v24  ;;  %v3820_v36 = vadd.f32 %v8413_v54, %v2381_v32 }
 0x1ef   : > { %7281 = vst [vmem:[%s8101_s17 + $0x3d0] sm:$0xff] %v7133_v23   ;;  %v4203_v35 = vmul.f32 0.2, %v3947_v25  ;;  %v3948_v37 = vadd.f32 %v8413_v54, %v2893_v33  ;;  %v4078_v38 = vmul.f32 0.2, %v3822_v30  ;;  %v4333_v42 = vmax.f32 %v3821_v18, %v4077_v28 }
 0x1f0   : > { %v4206_v39 = vmul.f32 0.2, %v3950_v31  ;;  %v4076_v40 = vmul.f32 0.2, %v3820_v36  ;;  %v4461_v43 = vmax.f32 %v3949_v19, %v4205_v29  ;;  %v4331_v46 = vmax.f32 %v3819_v24, %v4075_v34 }
 0x1f1   : > { %v4204_v41 = vmul.f32 0.2, %v3948_v37  ;;  %v4334_v44 = vmax.f32 %v3822_v30, %v4078_v38  ;;  %v4459_v47 = vmax.f32 %v3947_v25, %v4203_v35 }
 0x1f2   : > { %v4462_v45 = vmax.f32 %v3950_v31, %v4206_v39  ;;  %v4332_v48 = vmax.f32 %v3820_v36, %v4076_v40  ;;  %v7565_v50 = vpop.f32.mrb[124].mxu0  ;;  %v7693_v51 = vpop.f32.mrb[124].mxu1 }
 0x1f3   : > { %v4460_v49 = vmax.f32 %v3948_v37, %v4204_v41  ;;  %v6828_v52 = vpack.c.bf16 %v4334_v44, %v4333_v42  ;;  %v3825_v55 = vadd.f32 %v8413_v54, %v7565_v50  ;;  %v3953_v56 = vadd.f32 %v8413_v54, %v7693_v51  ;;  %v2394_v57 = vpop.f32.mrb[125].mxu0  ;;  %v2906_v58 = vpop.f32.mrb[125].mxu1 }
 0x1f4   : > { %v7148_v53 = vpack.c.bf16 %v4462_v45, %v4461_v43  ;;  %v6823_v59 = vpack.c.bf16 %v4332_v48, %v4331_v46  ;;  %v3823_v61 = vadd.f32 %v8413_v54, %v2394_v57  ;;  %v3951_v62 = vadd.f32 %v8413_v54, %v2906_v58  ;;  %v7566_v63 = vpop.f32.mrb[126].mxu0  ;;  %v7694_v0 = vpop.f32.mrb[126].mxu1 }
 0x1f5   : > { %v7143_v60 = vpack.c.bf16 %v4460_v49, %v4459_v47  ;;  %7220 = vst [vmem:[%s8101_s17 + $0x1e8] sm:$0xff] %v6828_v52   ;;  %v4081_v1 = vmul.f32 0.2, %v3825_v55  ;;  %v4209_v2 = vmul.f32 0.2, %v3953_v56  ;;  %v3826_v3 = vadd.f32 %v8413_v54, %v7566_v63  ;;  %v2397_v5 = vpop.f32.mrb[127].mxu0 }
 0x1f6   : > { %7284 = vst [vmem:[%s8101_s17 + $0x3e8] sm:$0xff] %v7148_v53   ;;  %v3954_v4 = vadd.f32 %v8413_v54, %v7694_v0  ;;  %v2909_v6 = vpop.f32.mrb[127].mxu1  ;;  %7219 = vst [vmem:[%s8101_s17 + $0x1e0] sm:$0xff] %v6823_v59   ;;  %v4079_v7 = vmul.f32 0.2, %v3823_v61  ;;  %v3824_v9 = vadd.f32 %v8413_v54, %v2397_v5 }
 0x1f7   : > { %7283 = vst [vmem:[%s8101_s17 + $0x3e0] sm:$0xff] %v7143_v60   ;;  %v4207_v8 = vmul.f32 0.2, %v3951_v62  ;;  %v3952_v10 = vadd.f32 %v8413_v54, %v2909_v6  ;;  %v4082_v11 = vmul.f32 0.2, %v3826_v3  ;;  %v4337_v15 = vmax.f32 %v3825_v55, %v4081_v1 }
 0x1f8   : > { %v4210_v12 = vmul.f32 0.2, %v3954_v4  ;;  %v4080_v13 = vmul.f32 0.2, %v3824_v9  ;;  %v4465_v16 = vmax.f32 %v3953_v56, %v4209_v2  ;;  %v4335_v19 = vmax.f32 %v3823_v61, %v4079_v7 }
 0x1f9   : > { %v4208_v14 = vmul.f32 0.2, %v3952_v10  ;;  %v4338_v17 = vmax.f32 %v3826_v3, %v4082_v11  ;;  %v4463_v20 = vmax.f32 %v3951_v62, %v4207_v8 }
 0x1fa   : > { %v4466_v18 = vmax.f32 %v3954_v4, %v4210_v12  ;;  %v4336_v21 = vmax.f32 %v3824_v9, %v4080_v13 }
 0x1fb   : > { %v4464_v22 = vmax.f32 %v3952_v10, %v4208_v14  ;;  %v6838_v23 = vpack.c.bf16 %v4338_v17, %v4337_v15 }
 0x1fc   : > { %v7158_v24 = vpack.c.bf16 %v4466_v18, %v4465_v16  ;;  %v6833_v25 = vpack.c.bf16 %v4336_v21, %v4335_v19 }
 0x1fd   : > { %v7153_v54 = vpack.c.bf16 %v4464_v22, %v4463_v20  ;;  %7222 = vst [vmem:[%s8101_s17 + $0x1f8] sm:$0xff] %v6838_v23  }
 0x1fe   : > { %7286 = vst [vmem:[%s8101_s17 + $0x3f8] sm:$0xff] %v7158_v24   ;;  %7221 = vst [vmem:[%s8101_s17 + $0x1f0] sm:$0xff] %v6833_v25  }
 0x1ff   : > { %7285 = vst [vmem:[%s8101_s17 + $0x3f0] sm:$0xff] %v7153_v54  }
 0x200 PF: > { %s13_s14 = sadd.s32 1, %s7895_s14   ;;  %s8516_s12 = smov %s7891_s13 }
 0x201   : > { %p10_p5 = scmp.ge.s32.totalorder %s13_s14, 6   ;;  %s8517_s13 = smov %s8519_s15 }
 0x203   :  { %12 = sbr.rel (!%p10_p5) target bundleno = 2 (0x2), region = 76 }

// kernel: _lambda_.6
= control target key start
LH: loop header
LB: loop body
LE: loop exit
PB: predicated region body
PF: predicated region fallthrough
CT: control target
= control target key end

     0   :  { %v5926_v0 = vmov 0   ;;  %s7178_s1 = inlined_call_operand.vmem [shape: bf16[512,128], index: 1, kind: input, shape index: {}]   ;;  %s7179_s0 = inlined_call_operand.vmem [shape: bf16[1024,512], index: 0, kind: input, shape index: {}]   ;;  %s7180_s2 = inlined_call_operand.vmem [shape: f32[1,128], index: 2, kind: input, shape index: {}]   ;;  %s7181_s3 = inlined_call_operand.vmem [shape: bf16[1024,128], index: 3, kind: output, shape index: {}]  }
   0x1   :  { %2067 = vmatprep.subr.bf16.mxu0 %v5926_v0  ;;  %2612 = vmatprep.subr.bf16.mxu1 %v5926_v0  ;;  %v5508_v1 = vld [vmem:[%s7178_s1] sm:$0xff]   ;;  %v5510_v3 = vld [vmem:[%s7178_s1 + $0x8] sm:$0xff]   ;;  %v5512_v5 = vld [vmem:[%s7178_s1 + $0x10] sm:$0xff]  }
   0x2   :  { %v5509_v2 = vld [vmem:[%s7178_s1 + $0x80] sm:$0xff]   ;;  %2068 = vmatpush1.bf16.msra.mxu0 %v5508_v1  ;;  %v5511_v4 = vld [vmem:[%s7178_s1 + $0x88] sm:$0xff]   ;;  %v5513_v6 = vld [vmem:[%s7178_s1 + $0x90] sm:$0xff]  }
   0x3   :  { %2613 = vmatpush1.bf16.msra.mxu1 %v5509_v2  ;;  %2069 = vmatprep.subr.bf16.mxu0 %v5926_v0  ;;  %v5514_v7 = vld [vmem:[%s7178_s1 + $0x18] sm:$0xff]   ;;  %v5516_v9 = vld [vmem:[%s7178_s1 + $0x20] sm:$0xff]   ;;  %v5518_v11 = vld [vmem:[%s7178_s1 + $0x28] sm:$0xff]  }
   0x4   :  { %2614 = vmatprep.subr.bf16.mxu1 %v5926_v0  ;;  %v5515_v8 = vld [vmem:[%s7178_s1 + $0x98] sm:$0xff]   ;;  %v5517_v10 = vld [vmem:[%s7178_s1 + $0xa0] sm:$0xff]   ;;  %v5519_v12 = vld [vmem:[%s7178_s1 + $0xa8] sm:$0xff]  }
   0x5   :  { %v5520_v13 = vld [vmem:[%s7178_s1 + $0x30] sm:$0xff]   ;;  %v5522_v15 = vld [vmem:[%s7178_s1 + $0x38] sm:$0xff]   ;;  %v5524_v17 = vld [vmem:[%s7178_s1 + $0x40] sm:$0xff]  }
   0x6   :  { %2070 = vmatpush1.bf16.msra.mxu0 %v5510_v3  ;;  %v5521_v14 = vld [vmem:[%s7178_s1 + $0xb0] sm:$0xff]   ;;  %v5523_v16 = vld [vmem:[%s7178_s1 + $0xb8] sm:$0xff]   ;;  %v5525_v18 = vld [vmem:[%s7178_s1 + $0xc0] sm:$0xff]  }
   0x7   :  { %2615 = vmatpush1.bf16.msra.mxu1 %v5511_v4  ;;  %2071 = vmatprep.subr.bf16.mxu0 %v5926_v0  ;;  %v5542_v19 = vld [vmem:[%s7179_s0 + $0x4] ss:$16 sps:$4 sm:$0xff]   ;;  %v5526_v20 = vld [vmem:[%s7178_s1 + $0x48] sm:$0xff]   ;;  %v5530_v25 = vld [vmem:[%s7178_s1 + $0x58] sm:$0xff]  }
   0x8   :  { %2616 = vmatprep.subr.bf16.mxu1 %v5926_v0  ;;  %v5545_v21 = vld [vmem:[%s7179_s0 + $0xc] ss:$16 sps:$4 sm:$0xff]   ;;  %2099 = vmatprep.mubr.bf16.mxu0 %v5542_v19  ;;  %v5528_v23 = vld [vmem:[%s7178_s1 + $0x50] sm:$0xff]   ;;  %v5532_v27 = vld [vmem:[%s7178_s1 + $0x60] sm:$0xff]  }
   0x9   :  { %v5527_v22 = vld [vmem:[%s7178_s1 + $0xc8] sm:$0xff]   ;;  %2644 = vmatprep.mubr.bf16.mxu1 %v5545_v21  ;;  %v5529_v24 = vld [vmem:[%s7178_s1 + $0xd0] sm:$0xff]   ;;  %v5531_v26 = vld [vmem:[%s7178_s1 + $0xd8] sm:$0xff]  }
   0xa   :  { %2072 = vmatpush1.bf16.msra.mxu0 %v5512_v5  ;;  %v5533_v28 = vld [vmem:[%s7178_s1 + $0xe0] sm:$0xff]   ;;  %v5534_v29 = vld [vmem:[%s7178_s1 + $0x68] sm:$0xff]   ;;  %v5536_v31 = vld [vmem:[%s7178_s1 + $0x70] sm:$0xff]  }
   0xb   :  { %2617 = vmatpush1.bf16.msra.mxu1 %v5513_v6  ;;  %2073 = vmatprep.subr.bf16.mxu0 %v5926_v0  ;;  %v5535_v30 = vld [vmem:[%s7178_s1 + $0xe8] sm:$0xff]   ;;  %v5537_v32 = vld [vmem:[%s7178_s1 + $0xf0] sm:$0xff]   ;;  %v5538_v33 = vld [vmem:[%s7178_s1 + $0x78] sm:$0xff]  }
   0xc   :  { %2618 = vmatprep.subr.bf16.mxu1 %v5926_v0  ;;  %v5539_v34 = vld [vmem:[%s7178_s1 + $0xf8] sm:$0xff]   ;;  %v5540_v35 = vld [vmem:[%s7179_s0] ss:$16 sps:$4 sm:$0xff]   ;;  %v5546_v37 = vld [vmem:[%s7179_s0 + $0x24] ss:$16 sps:$4 sm:$0xff]  }
   0xd   :  { %v5543_v36 = vld [vmem:[%s7179_s0 + $0x8] ss:$16 sps:$4 sm:$0xff]   ;;  %v5548_v38 = vld [vmem:[%s7179_s0 + $0x2c] ss:$16 sps:$4 sm:$0xff]   ;;  %v5550_v39 = vld [vmem:[%s7179_s0 + $0x20] ss:$16 sps:$4 sm:$0xff]  }
   0xe   :  { %2074 = vmatpush1.bf16.msra.mxu0 %v5514_v7  ;;  %v5551_v40 = vld [vmem:[%s7179_s0 + $0x28] ss:$16 sps:$4 sm:$0xff]   ;;  %v5552_v41 = vld [vmem:[%s7179_s0 + $0x44] ss:$16 sps:$4 sm:$0xff]   ;;  %v5554_v42 = vld [vmem:[%s7179_s0 + $0x4c] ss:$16 sps:$4 sm:$0xff]  }
   0xf   :  { %2619 = vmatpush1.bf16.msra.mxu1 %v5515_v8  ;;  %2075 = vmatprep.subr.bf16.mxu0 %v5926_v0  ;;  %v5556_v43 = vld [vmem:[%s7179_s0 + $0x40] ss:$16 sps:$4 sm:$0xff]   ;;  %v5557_v44 = vld [vmem:[%s7179_s0 + $0x48] ss:$16 sps:$4 sm:$0xff]   ;;  %v5558_v45 = vld [vmem:[%s7179_s0 + $0x64] ss:$16 sps:$4 sm:$0xff]  }
  0x10   :  { %2620 = vmatprep.subr.bf16.mxu1 %v5926_v0  ;;  %v5560_v46 = vld [vmem:[%s7179_s0 + $0x6c] ss:$16 sps:$4 sm:$0xff]   ;;  %v5562_v47 = vld [vmem:[%s7179_s0 + $0x60] ss:$16 sps:$4 sm:$0xff]   ;;  %v5563_v48 = vld [vmem:[%s7179_s0 + $0x68] ss:$16 sps:$4 sm:$0xff]  }
  0x11   :  { %v5564_v49 = vld [vmem:[%s7179_s0 + $0x84] ss:$16 sps:$4 sm:$0xff]   ;;  %v5566_v50 = vld [vmem:[%s7179_s0 + $0x8c] ss:$16 sps:$4 sm:$0xff]   ;;  %v5568_v51 = vld [vmem:[%s7179_s0 + $0x80] ss:$16 sps:$4 sm:$0xff]  }
  0x12   :  { %2076 = vmatpush1.bf16.msra.mxu0 %v5516_v9  ;;  %v5569_v52 = vld [vmem:[%s7179_s0 + $0x88] ss:$16 sps:$4 sm:$0xff]   ;;  %v5570_v53 = vld [vmem:[%s7179_s0 + $0xa4] ss:$16 sps:$4 sm:$0xff]   ;;  %v5572_v54 = vld [vmem:[%s7179_s0 + $0xac] ss:$16 sps:$4 sm:$0xff]  }
  0x13   :  { %2621 = vmatpush1.bf16.msra.mxu1 %v5517_v10  ;;  %2077 = vmatprep.subr.bf16.mxu0 %v5926_v0  ;;  %v5574_v55 = vld [vmem:[%s7179_s0 + $0xa0] ss:$16 sps:$4 sm:$0xff]   ;;  %v5575_v56 = vld [vmem:[%s7179_s0 + $0xa8] ss:$16 sps:$4 sm:$0xff]   ;;  %v5576_v57 = vld [vmem:[%s7179_s0 + $0xc4] ss:$16 sps:$4 sm:$0xff]  }
  0x14   :  { %2622 = vmatprep.subr.bf16.mxu1 %v5926_v0  ;;  %v5578_v58 = vld [vmem:[%s7179_s0 + $0xcc] ss:$16 sps:$4 sm:$0xff]   ;;  %v5580_v59 = vld [vmem:[%s7179_s0 + $0xc0] ss:$16 sps:$4 sm:$0xff]   ;;  %v5581_v60 = vld [vmem:[%s7179_s0 + $0xc8] ss:$16 sps:$4 sm:$0xff]  }
  0x15   :  { %v5582_v61 = vld [vmem:[%s7179_s0 + $0xe4] ss:$16 sps:$4 sm:$0xff]   ;;  %v5584_v62 = vld [vmem:[%s7179_s0 + $0xec] ss:$16 sps:$4 sm:$0xff]   ;;  %v5586_v63 = vld [vmem:[%s7179_s0 + $0xe0] ss:$16 sps:$4 sm:$0xff]  }
  0x16   :  { %2078 = vmatpush1.bf16.msra.mxu0 %v5518_v11  ;;  %v5588_v1 = vld [vmem:[%s7179_s0 + $0x104] ss:$16 sps:$4 sm:$0xff]   ;;  %v5590_v2 = vld [vmem:[%s7179_s0 + $0x10c] ss:$16 sps:$4 sm:$0xff]   ;;  %v5592_v3 = vld [vmem:[%s7179_s0 + $0x100] ss:$16 sps:$4 sm:$0xff]  }
  0x17   :  { %2623 = vmatpush1.bf16.msra.mxu1 %v5519_v12  ;;  %2079 = vmatprep.subr.bf16.mxu0 %v5926_v0  ;;  %v5593_v4 = vld [vmem:[%s7179_s0 + $0x108] ss:$16 sps:$4 sm:$0xff]   ;;  %v5594_v5 = vld [vmem:[%s7179_s0 + $0x124] ss:$16 sps:$4 sm:$0xff]   ;;  %v5596_v6 = vld [vmem:[%s7179_s0 + $0x12c] ss:$16 sps:$4 sm:$0xff]  }
  0x18   :  { %2624 = vmatprep.subr.bf16.mxu1 %v5926_v0  ;;  %v5598_v7 = vld [vmem:[%s7179_s0 + $0x120] ss:$16 sps:$4 sm:$0xff]   ;;  %v5599_v8 = vld [vmem:[%s7179_s0 + $0x128] ss:$16 sps:$4 sm:$0xff]   ;;  %v5600_v9 = vld [vmem:[%s7179_s0 + $0x144] ss:$16 sps:$4 sm:$0xff]  }
  0x19   :  { %v5602_v10 = vld [vmem:[%s7179_s0 + $0x14c] ss:$16 sps:$4 sm:$0xff]   ;;  %v5604_v11 = vld [vmem:[%s7179_s0 + $0x140] ss:$16 sps:$4 sm:$0xff]   ;;  %v5605_v12 = vld [vmem:[%s7179_s0 + $0x148] ss:$16 sps:$4 sm:$0xff]  }
  0x1a   :  { %2080 = vmatpush1.bf16.msra.mxu0 %v5520_v13  ;;  %v5606_v13 = vld [vmem:[%s7179_s0 + $0x164] ss:$16 sps:$4 sm:$0xff]   ;;  %v5616_v19 = vld [vmem:[%s7179_s0 + $0x180] ss:$16 sps:$4 sm:$0xff]  }
  0x1b   :  { %2625 = vmatpush1.bf16.msra.mxu1 %v5521_v14  ;;  %2081 = vmatprep.subr.bf16.mxu0 %v5926_v0  ;;  %v5608_v14 = vld [vmem:[%s7179_s0 + $0x16c] ss:$16 sps:$4 sm:$0xff]   ;;  %v5618_v21 = vld [vmem:[%s7179_s0 + $0x1a4] ss:$16 sps:$4 sm:$0xff]  }
  0x1c   :  { %2626 = vmatprep.subr.bf16.mxu1 %v5926_v0 }
  0x1e   :  { %2082 = vmatpush1.bf16.msra.mxu0 %v5522_v15  ;;  %v5610_v15 = vld [vmem:[%s7179_s0 + $0x160] ss:$16 sps:$4 sm:$0xff]  }
  0x1f   :  { %2627 = vmatpush1.bf16.msra.mxu1 %v5523_v16  ;;  %2083 = vmatprep.subr.bf16.mxu0 %v5926_v0  ;;  %v5611_v16 = vld [vmem:[%s7179_s0 + $0x168] ss:$16 sps:$4 sm:$0xff]  }
  0x20   :  { %2628 = vmatprep.subr.bf16.mxu1 %v5926_v0 }
  0x22   :  { %2084 = vmatpush1.bf16.msra.mxu0 %v5524_v17  ;;  %v5612_v17 = vld [vmem:[%s7179_s0 + $0x184] ss:$16 sps:$4 sm:$0xff]  }
  0x23   :  { %2629 = vmatpush1.bf16.msra.mxu1 %v5525_v18  ;;  %2085 = vmatprep.subr.bf16.mxu0 %v5926_v0  ;;  %v5614_v18 = vld [vmem:[%s7179_s0 + $0x18c] ss:$16 sps:$4 sm:$0xff]  }
  0x24   :  { %2630 = vmatprep.subr.bf16.mxu1 %v5926_v0 }
  0x26   :  { %2086 = vmatpush1.bf16.msra.mxu0 %v5526_v20  ;;  %v5617_v20 = vld [vmem:[%s7179_s0 + $0x188] ss:$16 sps:$4 sm:$0xff]  }
  0x27   :  { %2631 = vmatpush1.bf16.msra.mxu1 %v5527_v22  ;;  %2087 = vmatprep.subr.bf16.mxu0 %v5926_v0  ;;  %v5620_v22 = vld [vmem:[%s7179_s0 + $0x1ac] ss:$16 sps:$4 sm:$0xff]  }
  0x28   :  { %2632 = vmatprep.subr.bf16.mxu1 %v5926_v0 }
  0x2a   :  { %2088 = vmatpush1.bf16.msra.mxu0 %v5528_v23  ;;  %v5622_v23 = vld [vmem:[%s7179_s0 + $0x1a0] ss:$16 sps:$4 sm:$0xff]  }
  0x2b   :  { %2633 = vmatpush1.bf16.msra.mxu1 %v5529_v24  ;;  %2089 = vmatprep.subr.bf16.mxu0 %v5926_v0  ;;  %v5623_v24 = vld [vmem:[%s7179_s0 + $0x1a8] ss:$16 sps:$4 sm:$0xff]  }
  0x2c   :  { %2634 = vmatprep.subr.bf16.mxu1 %v5926_v0 }
  0x2e   :  { %2090 = vmatpush1.bf16.msra.mxu0 %v5530_v25  ;;  %v5624_v25 = vld [vmem:[%s7179_s0 + $0x1c4] ss:$16 sps:$4 sm:$0xff]  }
  0x2f   :  { %2635 = vmatpush1.bf16.msra.mxu1 %v5531_v26  ;;  %2091 = vmatprep.subr.bf16.mxu0 %v5926_v0  ;;  %v5626_v26 = vld [vmem:[%s7179_s0 + $0x1cc] ss:$16 sps:$4 sm:$0xff]  }
  0x30   :  { %2636 = vmatprep.subr.bf16.mxu1 %v5926_v0 }
  0x32   :  { %2092 = vmatpush1.bf16.msra.mxu0 %v5532_v27  ;;  %v5628_v27 = vld [vmem:[%s7179_s0 + $0x1c0] ss:$16 sps:$4 sm:$0xff]  }
  0x33   :  { %2637 = vmatpush1.bf16.msra.mxu1 %v5533_v28  ;;  %2093 = vmatprep.subr.bf16.mxu0 %v5926_v0  ;;  %v5629_v28 = vld [vmem:[%s7179_s0 + $0x1c8] ss:$16 sps:$4 sm:$0xff]  }
  0x34   :  { %2638 = vmatprep.subr.bf16.mxu1 %v5926_v0 }
  0x36   :  { %2094 = vmatpush1.bf16.msra.mxu0 %v5534_v29  ;;  %v5630_v29 = vld [vmem:[%s7179_s0 + $0x1e4] ss:$16 sps:$4 sm:$0xff]  }
  0x37   :  { %2639 = vmatpush1.bf16.msra.mxu1 %v5535_v30  ;;  %2095 = vmatprep.subr.bf16.mxu0 %v5926_v0  ;;  %v5632_v30 = vld [vmem:[%s7179_s0 + $0x1ec] ss:$16 sps:$4 sm:$0xff]  }
  0x38   :  { %2640 = vmatprep.subr.bf16.mxu1 %v5926_v0 }
  0x3a   :  { %2096 = vmatpush1.bf16.msra.mxu0 %v5536_v31  ;;  %v5634_v31 = vld [vmem:[%s7179_s0 + $0x1e0] ss:$16 sps:$4 sm:$0xff]  }
  0x3b   :  { %2641 = vmatpush1.bf16.msra.mxu1 %v5537_v32  ;;  %2097 = vmatprep.subr.bf16.mxu0 %v5926_v0  ;;  %v5635_v32 = vld [vmem:[%s7179_s0 + $0x1e8] ss:$16 sps:$4 sm:$0xff]  }
  0x3c   :  { %2642 = vmatprep.subr.bf16.mxu1 %v5926_v0  ;;  %v5587_v0 = vld [vmem:[%s7179_s0 + $0xe8] ss:$16 sps:$4 sm:$0xff]  }
  0x3e   :  { %2098 = vmatpush1.bf16.msra.mxu0 %v5538_v33  ;;  %v5636_v33 = vld [vmem:[%s7179_s0 + $0x204] ss:$16 sps:$4 sm:$0xff]  }
  0x3f   :  { %2643 = vmatpush1.bf16.msra.mxu1 %v5539_v34  ;;  %v5638_v34 = vld [vmem:[%s7179_s0 + $0x20c] ss:$16 sps:$4 sm:$0xff]  }
  0x41   :  { %2100 = vmatmul.mubr.bf16.vlgmr.msra.gmra.mrb[0].mxu0 %v5540_v35  ;;  %v5640_v35 = vld [vmem:[%s7179_s0 + $0x200] ss:$16 sps:$4 sm:$0xff]  }
  0x42   :  { %2645 = vmatmul.mubr.bf16.vlgmr.msra.gmra.mrb[0].mxu1 %v5543_v36  ;;  %2107 = vmatprep.mubr.bf16.mxu0 %v5546_v37  ;;  %v5641_v36 = vld [vmem:[%s7179_s0 + $0x208] ss:$16 sps:$4 sm:$0xff]   ;;  %v5642_v37 = vld [vmem:[%s7179_s0 + $0x224] ss:$16 sps:$4 sm:$0xff]  }
  0x43   :  { %2652 = vmatprep.mubr.bf16.mxu1 %v5548_v38  ;;  %v5644_v38 = vld [vmem:[%s7179_s0 + $0x22c] ss:$16 sps:$4 sm:$0xff]  }
  0x49   :  { %2108 = vmatmul.mubr.bf16.gmra.mrb[4].mxu0 %v5550_v39  ;;  %v5646_v39 = vld [vmem:[%s7179_s0 + $0x220] ss:$16 sps:$4 sm:$0xff]  }
  0x4a   :  { %2653 = vmatmul.mubr.bf16.gmra.mrb[4].mxu1 %v5551_v40  ;;  %2115 = vmatprep.mubr.bf16.mxu0 %v5552_v41  ;;  %v5647_v40 = vld [vmem:[%s7179_s0 + $0x228] ss:$16 sps:$4 sm:$0xff]   ;;  %v5648_v41 = vld [vmem:[%s7179_s0 + $0x244] ss:$16 sps:$4 sm:$0xff]  }
  0x4b   :  { %2660 = vmatprep.mubr.bf16.mxu1 %v5554_v42  ;;  %v5650_v42 = vld [vmem:[%s7179_s0 + $0x24c] ss:$16 sps:$4 sm:$0xff]  }
  0x51   :  { %2116 = vmatmul.mubr.bf16.gmra.mrb[8].mxu0 %v5556_v43  ;;  %v5652_v43 = vld [vmem:[%s7179_s0 + $0x240] ss:$16 sps:$4 sm:$0xff]  }
  0x52   :  { %2661 = vmatmul.mubr.bf16.gmra.mrb[8].mxu1 %v5557_v44  ;;  %2123 = vmatprep.mubr.bf16.mxu0 %v5558_v45  ;;  %v5653_v44 = vld [vmem:[%s7179_s0 + $0x248] ss:$16 sps:$4 sm:$0xff]   ;;  %v5654_v45 = vld [vmem:[%s7179_s0 + $0x264] ss:$16 sps:$4 sm:$0xff]  }
  0x53   :  { %2668 = vmatprep.mubr.bf16.mxu1 %v5560_v46  ;;  %v5656_v46 = vld [vmem:[%s7179_s0 + $0x26c] ss:$16 sps:$4 sm:$0xff]  }
  0x59   :  { %2124 = vmatmul.mubr.bf16.gmra.mrb[12].mxu0 %v5562_v47  ;;  %v5658_v47 = vld [vmem:[%s7179_s0 + $0x260] ss:$16 sps:$4 sm:$0xff]  }
  0x5a   :  { %2669 = vmatmul.mubr.bf16.gmra.mrb[12].mxu1 %v5563_v48  ;;  %2131 = vmatprep.mubr.bf16.mxu0 %v5564_v49  ;;  %v5659_v48 = vld [vmem:[%s7179_s0 + $0x268] ss:$16 sps:$4 sm:$0xff]   ;;  %v5660_v49 = vld [vmem:[%s7179_s0 + $0x284] ss:$16 sps:$4 sm:$0xff]  }
  0x5b   :  { %2676 = vmatprep.mubr.bf16.mxu1 %v5566_v50  ;;  %v5662_v50 = vld [vmem:[%s7179_s0 + $0x28c] ss:$16 sps:$4 sm:$0xff]  }
  0x61   :  { %2132 = vmatmul.mubr.bf16.gmra.mrb[16].mxu0 %v5568_v51  ;;  %v5664_v51 = vld [vmem:[%s7179_s0 + $0x280] ss:$16 sps:$4 sm:$0xff]  }
  0x62   :  { %2677 = vmatmul.mubr.bf16.gmra.mrb[16].mxu1 %v5569_v52  ;;  %2139 = vmatprep.mubr.bf16.mxu0 %v5570_v53  ;;  %v5665_v52 = vld [vmem:[%s7179_s0 + $0x288] ss:$16 sps:$4 sm:$0xff]   ;;  %v5666_v53 = vld [vmem:[%s7179_s0 + $0x2a4] ss:$16 sps:$4 sm:$0xff]  }
  0x63   :  { %2684 = vmatprep.mubr.bf16.mxu1 %v5572_v54  ;;  %v5668_v54 = vld [vmem:[%s7179_s0 + $0x2ac] ss:$16 sps:$4 sm:$0xff]  }
  0x69   :  { %2140 = vmatmul.mubr.bf16.gmra.mrb[20].mxu0 %v5574_v55  ;;  %v5670_v55 = vld [vmem:[%s7179_s0 + $0x2a0] ss:$16 sps:$4 sm:$0xff]  }
  0x6a   :  { %2685 = vmatmul.mubr.bf16.gmra.mrb[20].mxu1 %v5575_v56  ;;  %2147 = vmatprep.mubr.bf16.mxu0 %v5576_v57  ;;  %v5671_v56 = vld [vmem:[%s7179_s0 + $0x2a8] ss:$16 sps:$4 sm:$0xff]   ;;  %v5672_v57 = vld [vmem:[%s7179_s0 + $0x2c4] ss:$16 sps:$4 sm:$0xff]  }
  0x6b   :  { %2692 = vmatprep.mubr.bf16.mxu1 %v5578_v58  ;;  %v5674_v58 = vld [vmem:[%s7179_s0 + $0x2cc] ss:$16 sps:$4 sm:$0xff]  }
  0x71   :  { %2148 = vmatmul.mubr.bf16.gmra.mrb[24].mxu0 %v5580_v59  ;;  %v5676_v59 = vld [vmem:[%s7179_s0 + $0x2c0] ss:$16 sps:$4 sm:$0xff]  }
  0x72   :  { %2693 = vmatmul.mubr.bf16.gmra.mrb[24].mxu1 %v5581_v60  ;;  %2155 = vmatprep.mubr.bf16.mxu0 %v5582_v61  ;;  %v5677_v60 = vld [vmem:[%s7179_s0 + $0x2c8] ss:$16 sps:$4 sm:$0xff]   ;;  %v5678_v61 = vld [vmem:[%s7179_s0 + $0x2e4] ss:$16 sps:$4 sm:$0xff]  }
  0x73   :  { %2700 = vmatprep.mubr.bf16.mxu1 %v5584_v62  ;;  %v5680_v62 = vld [vmem:[%s7179_s0 + $0x2ec] ss:$16 sps:$4 sm:$0xff]  }
  0x79   :  { %2156 = vmatmul.mubr.bf16.gmra.mrb[28].mxu0 %v5586_v63  ;;  %v5682_v63 = vld [vmem:[%s7179_s0 + $0x2e0] ss:$16 sps:$4 sm:$0xff]  }
  0x7a   :  { %2701 = vmatmul.mubr.bf16.gmra.mrb[28].mxu1 %v5587_v0  ;;  %2163 = vmatprep.mubr.bf16.mxu0 %v5588_v1  ;;  %v5683_v0 = vld [vmem:[%s7179_s0 + $0x2e8] ss:$16 sps:$4 sm:$0xff]   ;;  %v5684_v1 = vld [vmem:[%s7179_s0 + $0x304] ss:$16 sps:$4 sm:$0xff]  }
  0x7b   :  { %2708 = vmatprep.mubr.bf16.mxu1 %v5590_v2  ;;  %v5686_v2 = vld [vmem:[%s7179_s0 + $0x30c] ss:$16 sps:$4 sm:$0xff]  }
  0x81   :  { %2164 = vmatmul.mubr.bf16.gmra.mrb[32].mxu0 %v5592_v3  ;;  %v5688_v3 = vld [vmem:[%s7179_s0 + $0x300] ss:$16 sps:$4 sm:$0xff]  }
  0x82   :  { %2709 = vmatmul.mubr.bf16.gmra.mrb[32].mxu1 %v5593_v4  ;;  %2171 = vmatprep.mubr.bf16.mxu0 %v5594_v5  ;;  %v5689_v4 = vld [vmem:[%s7179_s0 + $0x308] ss:$16 sps:$4 sm:$0xff]   ;;  %v5690_v5 = vld [vmem:[%s7179_s0 + $0x324] ss:$16 sps:$4 sm:$0xff]  }
  0x83   :  { %2716 = vmatprep.mubr.bf16.mxu1 %v5596_v6  ;;  %v5692_v6 = vld [vmem:[%s7179_s0 + $0x32c] ss:$16 sps:$4 sm:$0xff]  }
  0x89   :  { %2172 = vmatmul.mubr.bf16.gmra.mrb[36].mxu0 %v5598_v7  ;;  %v5694_v7 = vld [vmem:[%s7179_s0 + $0x320] ss:$16 sps:$4 sm:$0xff]  }
  0x8a   :  { %2717 = vmatmul.mubr.bf16.gmra.mrb[36].mxu1 %v5599_v8  ;;  %2179 = vmatprep.mubr.bf16.mxu0 %v5600_v9  ;;  %v5695_v8 = vld [vmem:[%s7179_s0 + $0x328] ss:$16 sps:$4 sm:$0xff]   ;;  %v5696_v9 = vld [vmem:[%s7179_s0 + $0x344] ss:$16 sps:$4 sm:$0xff]  }
  0x8b   :  { %2724 = vmatprep.mubr.bf16.mxu1 %v5602_v10  ;;  %v5698_v10 = vld [vmem:[%s7179_s0 + $0x34c] ss:$16 sps:$4 sm:$0xff]  }
  0x91   :  { %2180 = vmatmul.mubr.bf16.gmra.mrb[40].mxu0 %v5604_v11  ;;  %v5700_v11 = vld [vmem:[%s7179_s0 + $0x340] ss:$16 sps:$4 sm:$0xff]  }
  0x92   :  { %2725 = vmatmul.mubr.bf16.gmra.mrb[40].mxu1 %v5605_v12  ;;  %2187 = vmatprep.mubr.bf16.mxu0 %v5606_v13  ;;  %v5701_v12 = vld [vmem:[%s7179_s0 + $0x348] ss:$16 sps:$4 sm:$0xff]   ;;  %v5702_v13 = vld [vmem:[%s7179_s0 + $0x364] ss:$16 sps:$4 sm:$0xff]  }
  0x93   :  { %2732 = vmatprep.mubr.bf16.mxu1 %v5608_v14  ;;  %v5704_v14 = vld [vmem:[%s7179_s0 + $0x36c] ss:$16 sps:$4 sm:$0xff]  }
  0x99   :  { %2188 = vmatmul.mubr.bf16.gmra.mrb[44].mxu0 %v5610_v15 }
  0x9a   :  { %2733 = vmatmul.mubr.bf16.gmra.mrb[44].mxu1 %v5611_v16  ;;  %2195 = vmatprep.mubr.bf16.mxu0 %v5612_v17  ;;  %v6408_v17 = vld [vmem:[%s7180_s2] ss:$0 sm:$0xff] }
  0x9b   :  { %2740 = vmatprep.mubr.bf16.mxu1 %v5614_v18 }
  0xa1   :  { %2196 = vmatmul.mubr.bf16.gmra.mrb[48].mxu0 %v5616_v19  ;;  %v5706_v19 = vld [vmem:[%s7179_s0 + $0x360] ss:$16 sps:$4 sm:$0xff]  }
  0xa2   :  { %2741 = vmatmul.mubr.bf16.gmra.mrb[48].mxu1 %v5617_v20  ;;  %2203 = vmatprep.mubr.bf16.mxu0 %v5618_v21 }
  0xa3   :  { %2748 = vmatprep.mubr.bf16.mxu1 %v5620_v22 }
  0xa9   :  { %2204 = vmatmul.mubr.bf16.gmra.mrb[52].mxu0 %v5622_v23  ;;  %v5707_v23 = vld [vmem:[%s7179_s0 + $0x368] ss:$16 sps:$4 sm:$0xff]  }
  0xaa   :  { %2749 = vmatmul.mubr.bf16.gmra.mrb[52].mxu1 %v5623_v24  ;;  %2211 = vmatprep.mubr.bf16.mxu0 %v5624_v25  ;;  %v5708_v24 = vld [vmem:[%s7179_s0 + $0x384] ss:$16 sps:$4 sm:$0xff]  }
  0xab   :  { %2756 = vmatprep.mubr.bf16.mxu1 %v5626_v26 }
  0xb1   :  { %2212 = vmatmul.mubr.bf16.gmra.mrb[56].mxu0 %v5628_v27  ;;  %v5710_v27 = vld [vmem:[%s7179_s0 + $0x38c] ss:$16 sps:$4 sm:$0xff]  }
  0xb2   :  { %2757 = vmatmul.mubr.bf16.gmra.mrb[56].mxu1 %v5629_v28  ;;  %2219 = vmatprep.mubr.bf16.mxu0 %v5630_v29 }
  0xb3   :  { %2764 = vmatprep.mubr.bf16.mxu1 %v5632_v30 }
  0xb9   :  { %2220 = vmatmul.mubr.bf16.gmra.mrb[60].mxu0 %v5634_v31 }
  0xba   :  { %2765 = vmatmul.mubr.bf16.gmra.mrb[60].mxu1 %v5635_v32  ;;  %2227 = vmatprep.mubr.bf16.mxu0 %v5636_v33 }
  0xbb   :  { %2772 = vmatprep.mubr.bf16.mxu1 %v5638_v34 }
  0xc1   :  { %2228 = vmatmul.mubr.bf16.gmra.mrb[64].mxu0 %v5640_v35 }
  0xc2   :  { %2773 = vmatmul.mubr.bf16.gmra.mrb[64].mxu1 %v5641_v36  ;;  %2235 = vmatprep.mubr.bf16.mxu0 %v5642_v37  ;;  %v5712_v37 = vld [vmem:[%s7179_s0 + $0x380] ss:$16 sps:$4 sm:$0xff]  }
  0xc3   :  { %2780 = vmatprep.mubr.bf16.mxu1 %v5644_v38 }
  0xc9   :  { %2236 = vmatmul.mubr.bf16.gmra.mrb[68].mxu0 %v5646_v39 }
  0xca   :  { %2781 = vmatmul.mubr.bf16.gmra.mrb[68].mxu1 %v5647_v40  ;;  %2243 = vmatprep.mubr.bf16.mxu0 %v5648_v41 }
  0xcb   :  { %2788 = vmatprep.mubr.bf16.mxu1 %v5650_v42 }
  0xd1   :  { %2244 = vmatmul.mubr.bf16.gmra.mrb[72].mxu0 %v5652_v43  ;;  %v5713_v43 = vld [vmem:[%s7179_s0 + $0x388] ss:$16 sps:$4 sm:$0xff]  }
  0xd2   :  { %2789 = vmatmul.mubr.bf16.gmra.mrb[72].mxu1 %v5653_v44  ;;  %2251 = vmatprep.mubr.bf16.mxu0 %v5654_v45  ;;  %v5714_v44 = vld [vmem:[%s7179_s0 + $0x3a4] ss:$16 sps:$4 sm:$0xff]  }
  0xd3   :  { %2796 = vmatprep.mubr.bf16.mxu1 %v5656_v46 }
  0xd9   :  { %2252 = vmatmul.mubr.bf16.gmra.mrb[76].mxu0 %v5658_v47  ;;  %v5716_v47 = vld [vmem:[%s7179_s0 + $0x3ac] ss:$16 sps:$4 sm:$0xff]  }
  0xda   :  { %2797 = vmatmul.mubr.bf16.gmra.mrb[76].mxu1 %v5659_v48  ;;  %2259 = vmatprep.mubr.bf16.mxu0 %v5660_v49 }
  0xdb   :  { %2804 = vmatprep.mubr.bf16.mxu1 %v5662_v50 }
  0xe1   :  { %2260 = vmatmul.mubr.bf16.gmra.mrb[80].mxu0 %v5664_v51 }
  0xe2   :  { %2805 = vmatmul.mubr.bf16.gmra.mrb[80].mxu1 %v5665_v52  ;;  %2267 = vmatprep.mubr.bf16.mxu0 %v5666_v53 }
  0xe3   :  { %2812 = vmatprep.mubr.bf16.mxu1 %v5668_v54 }
  0xe9   :  { %2268 = vmatmul.mubr.bf16.gmra.mrb[84].mxu0 %v5670_v55 }
  0xea   :  { %2813 = vmatmul.mubr.bf16.gmra.mrb[84].mxu1 %v5671_v56  ;;  %2275 = vmatprep.mubr.bf16.mxu0 %v5672_v57 }
  0xeb   :  { %2820 = vmatprep.mubr.bf16.mxu1 %v5674_v58  ;;  %v5718_v58 = vld [vmem:[%s7179_s0 + $0x3a0] ss:$16 sps:$4 sm:$0xff]  }
  0xf1   :  { %2276 = vmatmul.mubr.bf16.gmra.mrb[88].mxu0 %v5676_v59 }
  0xf2   :  { %2821 = vmatmul.mubr.bf16.gmra.mrb[88].mxu1 %v5677_v60  ;;  %2283 = vmatprep.mubr.bf16.mxu0 %v5678_v61 }
  0xf3   :  { %2828 = vmatprep.mubr.bf16.mxu1 %v5680_v62 }
  0xf9   :  { %2284 = vmatmul.mubr.bf16.gmra.mrb[92].mxu0 %v5682_v63 }
  0xfa   :  { %2829 = vmatmul.mubr.bf16.gmra.mrb[92].mxu1 %v5683_v0  ;;  %2291 = vmatprep.mubr.bf16.mxu0 %v5684_v1  ;;  %v5719_v0 = vld [vmem:[%s7179_s0 + $0x3a8] ss:$16 sps:$4 sm:$0xff]   ;;  %v5720_v1 = vld [vmem:[%s7179_s0 + $0x3c4] ss:$16 sps:$4 sm:$0xff]  }
  0xfb   :  { %2836 = vmatprep.mubr.bf16.mxu1 %v5686_v2 }
 0x101   :  { %2292 = vmatmul.mubr.bf16.gmra.mrb[96].mxu0 %v5688_v3 }
 0x102   :  { %2837 = vmatmul.mubr.bf16.gmra.mrb[96].mxu1 %v5689_v4  ;;  %2299 = vmatprep.mubr.bf16.mxu0 %v5690_v5  ;;  %v5722_v4 = vld [vmem:[%s7179_s0 + $0x3cc] ss:$16 sps:$4 sm:$0xff]  }
 0x103   :  { %2844 = vmatprep.mubr.bf16.mxu1 %v5692_v6 }
 0x109   :  { %2300 = vmatmul.mubr.bf16.gmra.mrb[100].mxu0 %v5694_v7 }
 0x10a   :  { %2845 = vmatmul.mubr.bf16.gmra.mrb[100].mxu1 %v5695_v8  ;;  %2307 = vmatprep.mubr.bf16.mxu0 %v5696_v9 }
 0x10b   :  { %2852 = vmatprep.mubr.bf16.mxu1 %v5698_v10 }
 0x111   :  { %2308 = vmatmul.mubr.bf16.gmra.mrb[104].mxu0 %v5700_v11 }
 0x112   :  { %2853 = vmatmul.mubr.bf16.gmra.mrb[104].mxu1 %v5701_v12  ;;  %2315 = vmatprep.mubr.bf16.mxu0 %v5702_v13 }
 0x113   :  { %2860 = vmatprep.mubr.bf16.mxu1 %v5704_v14 }
 0x114   :  { %v2101_v15 = vpop.f32.mrb[0].mxu0 }
 0x115   :  { %v2646_v16 = vpop.f32.mrb[0].mxu1  ;;  %v2103_v18 = vpop.f32.mrb[1].mxu0 }
 0x116   :  { %v2647_v20 = vadd.f32 %v2646_v16, %v2101_v15  ;;  %v2648_v21 = vpop.f32.mrb[1].mxu1  ;;  %v2104_v22 = vpop.f32.mrb[2].mxu0  ;;  %v5724_v15 = vld [vmem:[%s7179_s0 + $0x3c0] ss:$16 sps:$4 sm:$0xff]  }
 0x117   :  { %v2649_v25 = vpop.f32.mrb[2].mxu1  ;;  %v2106_v26 = vpop.f32.mrb[3].mxu0 }
 0x118   :  { %v3551_v28 = vadd.f32 %v6408_v17, %v2647_v20  ;;  %v2650_v29 = vadd.f32 %v2649_v25, %v2104_v22  ;;  %v2651_v30 = vpop.f32.mrb[3].mxu1  ;;  %v5725_v22 = vld [vmem:[%s7179_s0 + $0x3c8] ss:$16 sps:$4 sm:$0xff]   ;;  %v5728_v26 = vld [vmem:[%s7179_s0 + $0x3ec] ss:$16 sps:$4 sm:$0xff]  }
 0x119   :  { %2316 = vmatmul.mubr.bf16.gmra.mrb[108].mxu0 %v5706_v19 }
 0x11a   :  { %v3679_v31 = vmul.f32 0.2, %v3551_v28  ;;  %v3552_v32 = vadd.f32 %v6408_v17, %v2650_v29  ;;  %2861 = vmatmul.mubr.bf16.gmra.mrb[108].mxu1 %v5707_v23  ;;  %2323 = vmatprep.mubr.bf16.mxu0 %v5708_v24  ;;  %v5726_v23 = vld [vmem:[%s7179_s0 + $0x3e4] ss:$16 sps:$4 sm:$0xff]  }
 0x11b   :  { %2868 = vmatprep.mubr.bf16.mxu1 %v5710_v27 }
 0x11c   :  { %v3680_v33 = vmul.f32 0.2, %v3552_v32  ;;  %v2109_v34 = vpop.f32.mrb[4].mxu0  ;;  %v3807_v38 = vmax.f32 %v3551_v28, %v3679_v31 }
 0x11d   :  { %v2654_v35 = vpop.f32.mrb[4].mxu1  ;;  %v2111_v36 = vpop.f32.mrb[5].mxu0 }
 0x11e   :  { %v3808_v39 = vmax.f32 %v3552_v32, %v3680_v33  ;;  %v2655_v40 = vadd.f32 %v2654_v35, %v2109_v34  ;;  %v2656_v41 = vpop.f32.mrb[5].mxu1  ;;  %v2112_v42 = vpop.f32.mrb[6].mxu0 }
 0x11f   :  { %v2657_v45 = vpop.f32.mrb[6].mxu1  ;;  %v2114_v46 = vpop.f32.mrb[7].mxu0 }
 0x120   :  { %v5127_v48 = vpack.c.bf16 %v3808_v39, %v3807_v38  ;;  %v3553_v49 = vadd.f32 %v6408_v17, %v2655_v40  ;;  %v2658_v50 = vadd.f32 %v2657_v45, %v2112_v42  ;;  %v2659_v51 = vpop.f32.mrb[7].mxu1 }
 0x121   :  { %2324 = vmatmul.mubr.bf16.gmra.mrb[112].mxu0 %v5712_v37  ;;  %v5730_v37 = vld [vmem:[%s7179_s0 + $0x3e0] ss:$16 sps:$4 sm:$0xff]  }
 0x122   :  { %5128 = vst [vmem:[%s7181_s3] sm:$0xff] %v5127_v48   ;;  %v3681_v52 = vmul.f32 0.2, %v3553_v49  ;;  %v3554_v53 = vadd.f32 %v6408_v17, %v2658_v50  ;;  %2869 = vmatmul.mubr.bf16.gmra.mrb[112].mxu1 %v5713_v43  ;;  %2331 = vmatprep.mubr.bf16.mxu0 %v5714_v44  ;;  %v5731_v43 = vld [vmem:[%s7179_s0 + $0x3e8] ss:$16 sps:$4 sm:$0xff]   ;;  %v5732_v44 = vld [vmem:[%s7179_s0 + $0x404] ss:$16 sps:$4 sm:$0xff]  }
 0x123   :  { %2876 = vmatprep.mubr.bf16.mxu1 %v5716_v47  ;;  %v5734_v47 = vld [vmem:[%s7179_s0 + $0x40c] ss:$16 sps:$4 sm:$0xff]  }
 0x124   :  { %v3682_v54 = vmul.f32 0.2, %v3554_v53  ;;  %v2117_v55 = vpop.f32.mrb[8].mxu0  ;;  %v3809_v59 = vmax.f32 %v3553_v49, %v3681_v52 }
 0x125   :  { %v2662_v56 = vpop.f32.mrb[8].mxu1  ;;  %v2119_v57 = vpop.f32.mrb[9].mxu0 }
 0x126   :  { %v3810_v60 = vmax.f32 %v3554_v53, %v3682_v54  ;;  %v2663_v61 = vadd.f32 %v2662_v56, %v2117_v55  ;;  %v2664_v62 = vpop.f32.mrb[9].mxu1  ;;  %v2120_v63 = vpop.f32.mrb[10].mxu0 }
 0x127   :  { %v2665_v2 = vpop.f32.mrb[10].mxu1  ;;  %v2122_v3 = vpop.f32.mrb[11].mxu0 }
 0x128   :  { %v5132_v5 = vpack.c.bf16 %v3810_v60, %v3809_v59  ;;  %v3555_v6 = vadd.f32 %v6408_v17, %v2663_v61  ;;  %v2666_v7 = vadd.f32 %v2665_v2, %v2120_v63  ;;  %v2667_v8 = vpop.f32.mrb[11].mxu1 }
 0x129   :  { %2332 = vmatmul.mubr.bf16.gmra.mrb[116].mxu0 %v5718_v58  ;;  %v5736_v58 = vld [vmem:[%s7179_s0 + $0x400] ss:$16 sps:$4 sm:$0xff]  }
 0x12a   :  { %5444 = vst [vmem:[%s7181_s3 + $0x8] sm:$0xff] %v5132_v5   ;;  %v3683_v9 = vmul.f32 0.2, %v3555_v6  ;;  %v3556_v10 = vadd.f32 %v6408_v17, %v2666_v7  ;;  %2877 = vmatmul.mubr.bf16.gmra.mrb[116].mxu1 %v5719_v0  ;;  %2339 = vmatprep.mubr.bf16.mxu0 %v5720_v1  ;;  %v5737_v0 = vld [vmem:[%s7179_s0 + $0x408] ss:$16 sps:$4 sm:$0xff]  }
 0x12b   :  { %2884 = vmatprep.mubr.bf16.mxu1 %v5722_v4  ;;  %v5738_v1 = vld [vmem:[%s7179_s0 + $0x424] ss:$16 sps:$4 sm:$0xff]   ;;  %v5740_v4 = vld [vmem:[%s7179_s0 + $0x42c] ss:$16 sps:$4 sm:$0xff]  }
 0x12c   :  { %v3684_v11 = vmul.f32 0.2, %v3556_v10  ;;  %v2125_v12 = vpop.f32.mrb[12].mxu0  ;;  %v3811_v16 = vmax.f32 %v3555_v6, %v3683_v9 }
 0x12d   :  { %v2670_v13 = vpop.f32.mrb[12].mxu1  ;;  %v2127_v14 = vpop.f32.mrb[13].mxu0 }
 0x12e   :  { %v3812_v18 = vmax.f32 %v3556_v10, %v3684_v11  ;;  %v2671_v19 = vadd.f32 %v2670_v13, %v2125_v12  ;;  %v2672_v20 = vpop.f32.mrb[13].mxu1  ;;  %v2128_v21 = vpop.f32.mrb[14].mxu0 }
 0x12f   :  { %v2673_v24 = vpop.f32.mrb[14].mxu1  ;;  %v2130_v25 = vpop.f32.mrb[15].mxu0 }
 0x130   :  { %v5137_v27 = vpack.c.bf16 %v3812_v18, %v3811_v16  ;;  %v3557_v28 = vadd.f32 %v6408_v17, %v2671_v19  ;;  %v2674_v29 = vadd.f32 %v2673_v24, %v2128_v21  ;;  %v2675_v30 = vpop.f32.mrb[15].mxu1 }
 0x131   :  { %2340 = vmatmul.mubr.bf16.gmra.mrb[120].mxu0 %v5724_v15  ;;  %v5742_v15 = vld [vmem:[%s7179_s0 + $0x420] ss:$16 sps:$4 sm:$0xff]  }
 0x132   :  { %5445 = vst [vmem:[%s7181_s3 + $0x10] sm:$0xff] %v5137_v27   ;;  %v3685_v31 = vmul.f32 0.2, %v3557_v28  ;;  %v3558_v32 = vadd.f32 %v6408_v17, %v2674_v29  ;;  %2885 = vmatmul.mubr.bf16.gmra.mrb[120].mxu1 %v5725_v22  ;;  %2347 = vmatprep.mubr.bf16.mxu0 %v5726_v23  ;;  %v5743_v22 = vld [vmem:[%s7179_s0 + $0x428] ss:$16 sps:$4 sm:$0xff]  }
 0x133   :  { %2892 = vmatprep.mubr.bf16.mxu1 %v5728_v26  ;;  %v5744_v23 = vld [vmem:[%s7179_s0 + $0x444] ss:$16 sps:$4 sm:$0xff]   ;;  %v5746_v26 = vld [vmem:[%s7179_s0 + $0x44c] ss:$16 sps:$4 sm:$0xff]  }
 0x134   :  { %v3686_v33 = vmul.f32 0.2, %v3558_v32  ;;  %v2133_v34 = vpop.f32.mrb[16].mxu0  ;;  %v3813_v38 = vmax.f32 %v3557_v28, %v3685_v31 }
 0x135   :  { %v2678_v35 = vpop.f32.mrb[16].mxu1  ;;  %v2135_v36 = vpop.f32.mrb[17].mxu0 }
 0x136   :  { %v3814_v39 = vmax.f32 %v3558_v32, %v3686_v33  ;;  %v2679_v40 = vadd.f32 %v2678_v35, %v2133_v34  ;;  %v2680_v41 = vpop.f32.mrb[17].mxu1  ;;  %v2136_v42 = vpop.f32.mrb[18].mxu0 }
 0x137   :  { %v2681_v45 = vpop.f32.mrb[18].mxu1  ;;  %v2138_v46 = vpop.f32.mrb[19].mxu0 }
 0x138   :  { %v5142_v48 = vpack.c.bf16 %v3814_v39, %v3813_v38  ;;  %v3559_v49 = vadd.f32 %v6408_v17, %v2679_v40  ;;  %v2682_v50 = vadd.f32 %v2681_v45, %v2136_v42  ;;  %v2683_v51 = vpop.f32.mrb[19].mxu1 }
 0x139   :  { %2348 = vmatmul.mubr.bf16.gmra.mrb[124].mxu0 %v5730_v37  ;;  %v5748_v37 = vld [vmem:[%s7179_s0 + $0x440] ss:$16 sps:$4 sm:$0xff]  }
 0x13a   :  { %5446 = vst [vmem:[%s7181_s3 + $0x18] sm:$0xff] %v5142_v48   ;;  %v3687_v52 = vmul.f32 0.2, %v3559_v49  ;;  %v3560_v53 = vadd.f32 %v6408_v17, %v2682_v50  ;;  %2893 = vmatmul.mubr.bf16.gmra.mrb[124].mxu1 %v5731_v43  ;;  %2355 = vmatprep.mubr.bf16.mxu0 %v5732_v44  ;;  %v5749_v43 = vld [vmem:[%s7179_s0 + $0x448] ss:$16 sps:$4 sm:$0xff]  }
 0x13b   :  { %2900 = vmatprep.mubr.bf16.mxu1 %v5734_v47  ;;  %v5750_v44 = vld [vmem:[%s7179_s0 + $0x464] ss:$16 sps:$4 sm:$0xff]   ;;  %v5752_v47 = vld [vmem:[%s7179_s0 + $0x46c] ss:$16 sps:$4 sm:$0xff]  }
 0x13c   :  { %v3688_v54 = vmul.f32 0.2, %v3560_v53  ;;  %v2141_v55 = vpop.f32.mrb[20].mxu0  ;;  %v3815_v59 = vmax.f32 %v3559_v49, %v3687_v52 }
 0x13d   :  { %v2686_v56 = vpop.f32.mrb[20].mxu1  ;;  %v2143_v57 = vpop.f32.mrb[21].mxu0 }
 0x13e   :  { %v3816_v60 = vmax.f32 %v3560_v53, %v3688_v54  ;;  %v2687_v61 = vadd.f32 %v2686_v56, %v2141_v55  ;;  %v2688_v62 = vpop.f32.mrb[21].mxu1  ;;  %v2144_v63 = vpop.f32.mrb[22].mxu0 }
 0x13f   :  { %v2689_v2 = vpop.f32.mrb[22].mxu1  ;;  %v2146_v3 = vpop.f32.mrb[23].mxu0 }
 0x140   :  { %v5147_v5 = vpack.c.bf16 %v3816_v60, %v3815_v59  ;;  %v3561_v6 = vadd.f32 %v6408_v17, %v2687_v61  ;;  %v2690_v7 = vadd.f32 %v2689_v2, %v2144_v63  ;;  %v2691_v8 = vpop.f32.mrb[23].mxu1 }
 0x141   :  { %2356 = vmatmul.mubr.bf16.gmra.mrb[128].mxu0 %v5736_v58  ;;  %v5754_v58 = vld [vmem:[%s7179_s0 + $0x460] ss:$16 sps:$4 sm:$0xff]  }
 0x142   :  { %5447 = vst [vmem:[%s7181_s3 + $0x20] sm:$0xff] %v5147_v5   ;;  %v3689_v9 = vmul.f32 0.2, %v3561_v6  ;;  %v3562_v10 = vadd.f32 %v6408_v17, %v2690_v7  ;;  %2901 = vmatmul.mubr.bf16.gmra.mrb[128].mxu1 %v5737_v0  ;;  %2363 = vmatprep.mubr.bf16.mxu0 %v5738_v1  ;;  %v5755_v0 = vld [vmem:[%s7179_s0 + $0x468] ss:$16 sps:$4 sm:$0xff]  }
 0x143   :  { %2908 = vmatprep.mubr.bf16.mxu1 %v5740_v4  ;;  %v5756_v1 = vld [vmem:[%s7179_s0 + $0x484] ss:$16 sps:$4 sm:$0xff]   ;;  %v5758_v4 = vld [vmem:[%s7179_s0 + $0x48c] ss:$16 sps:$4 sm:$0xff]  }
 0x144   :  { %v3690_v11 = vmul.f32 0.2, %v3562_v10  ;;  %v2149_v12 = vpop.f32.mrb[24].mxu0  ;;  %v3817_v16 = vmax.f32 %v3561_v6, %v3689_v9 }
 0x145   :  { %v2694_v13 = vpop.f32.mrb[24].mxu1  ;;  %v2151_v14 = vpop.f32.mrb[25].mxu0 }
 0x146   :  { %v3818_v18 = vmax.f32 %v3562_v10, %v3690_v11  ;;  %v2695_v19 = vadd.f32 %v2694_v13, %v2149_v12  ;;  %v2696_v20 = vpop.f32.mrb[25].mxu1  ;;  %v2152_v21 = vpop.f32.mrb[26].mxu0 }
 0x147   :  { %v2697_v24 = vpop.f32.mrb[26].mxu1  ;;  %v2154_v25 = vpop.f32.mrb[27].mxu0 }
 0x148   :  { %v5152_v27 = vpack.c.bf16 %v3818_v18, %v3817_v16  ;;  %v3563_v28 = vadd.f32 %v6408_v17, %v2695_v19  ;;  %v2698_v29 = vadd.f32 %v2697_v24, %v2152_v21  ;;  %v2699_v30 = vpop.f32.mrb[27].mxu1 }
 0x149   :  { %2364 = vmatmul.mubr.bf16.gmra.mrb[132].mxu0 %v5742_v15  ;;  %v5760_v15 = vld [vmem:[%s7179_s0 + $0x480] ss:$16 sps:$4 sm:$0xff]  }
 0x14a   :  { %5448 = vst [vmem:[%s7181_s3 + $0x28] sm:$0xff] %v5152_v27   ;;  %v3691_v31 = vmul.f32 0.2, %v3563_v28  ;;  %v3564_v32 = vadd.f32 %v6408_v17, %v2698_v29  ;;  %2909 = vmatmul.mubr.bf16.gmra.mrb[132].mxu1 %v5743_v22  ;;  %2371 = vmatprep.mubr.bf16.mxu0 %v5744_v23  ;;  %v5761_v22 = vld [vmem:[%s7179_s0 + $0x488] ss:$16 sps:$4 sm:$0xff]  }
 0x14b   :  { %2916 = vmatprep.mubr.bf16.mxu1 %v5746_v26  ;;  %v5762_v23 = vld [vmem:[%s7179_s0 + $0x4a4] ss:$16 sps:$4 sm:$0xff]   ;;  %v5764_v26 = vld [vmem:[%s7179_s0 + $0x4ac] ss:$16 sps:$4 sm:$0xff]  }
 0x14c   :  { %v3692_v33 = vmul.f32 0.2, %v3564_v32  ;;  %v2157_v34 = vpop.f32.mrb[28].mxu0  ;;  %v3819_v38 = vmax.f32 %v3563_v28, %v3691_v31 }
 0x14d   :  { %v2702_v35 = vpop.f32.mrb[28].mxu1  ;;  %v2159_v36 = vpop.f32.mrb[29].mxu0 }
 0x14e   :  { %v3820_v39 = vmax.f32 %v3564_v32, %v3692_v33  ;;  %v2703_v40 = vadd.f32 %v2702_v35, %v2157_v34  ;;  %v2704_v41 = vpop.f32.mrb[29].mxu1  ;;  %v2160_v42 = vpop.f32.mrb[30].mxu0 }
 0x14f   :  { %v2705_v45 = vpop.f32.mrb[30].mxu1  ;;  %v2162_v46 = vpop.f32.mrb[31].mxu0 }
 0x150   :  { %v5157_v48 = vpack.c.bf16 %v3820_v39, %v3819_v38  ;;  %v3565_v49 = vadd.f32 %v6408_v17, %v2703_v40  ;;  %v2706_v50 = vadd.f32 %v2705_v45, %v2160_v42  ;;  %v2707_v51 = vpop.f32.mrb[31].mxu1 }
 0x151   :  { %2372 = vmatmul.mubr.bf16.gmra.mrb[136].mxu0 %v5748_v37  ;;  %v5766_v37 = vld [vmem:[%s7179_s0 + $0x4a0] ss:$16 sps:$4 sm:$0xff]  }
 0x152   :  { %5449 = vst [vmem:[%s7181_s3 + $0x30] sm:$0xff] %v5157_v48   ;;  %v3693_v52 = vmul.f32 0.2, %v3565_v49  ;;  %v3566_v53 = vadd.f32 %v6408_v17, %v2706_v50  ;;  %2917 = vmatmul.mubr.bf16.gmra.mrb[136].mxu1 %v5749_v43  ;;  %2379 = vmatprep.mubr.bf16.mxu0 %v5750_v44  ;;  %v5767_v43 = vld [vmem:[%s7179_s0 + $0x4a8] ss:$16 sps:$4 sm:$0xff]  }
 0x153   :  { %2924 = vmatprep.mubr.bf16.mxu1 %v5752_v47  ;;  %v5768_v44 = vld [vmem:[%s7179_s0 + $0x4c4] ss:$16 sps:$4 sm:$0xff]   ;;  %v5770_v47 = vld [vmem:[%s7179_s0 + $0x4cc] ss:$16 sps:$4 sm:$0xff]  }
 0x154   :  { %v3694_v54 = vmul.f32 0.2, %v3566_v53  ;;  %v2165_v55 = vpop.f32.mrb[32].mxu0  ;;  %v3821_v59 = vmax.f32 %v3565_v49, %v3693_v52 }
 0x155   :  { %v2710_v56 = vpop.f32.mrb[32].mxu1  ;;  %v2167_v57 = vpop.f32.mrb[33].mxu0 }
 0x156   :  { %v3822_v60 = vmax.f32 %v3566_v53, %v3694_v54  ;;  %v2711_v61 = vadd.f32 %v2710_v56, %v2165_v55  ;;  %v2712_v62 = vpop.f32.mrb[33].mxu1  ;;  %v2168_v63 = vpop.f32.mrb[34].mxu0 }
 0x157   :  { %v2713_v2 = vpop.f32.mrb[34].mxu1  ;;  %v2170_v3 = vpop.f32.mrb[35].mxu0 }
 0x158   :  { %v5162_v5 = vpack.c.bf16 %v3822_v60, %v3821_v59  ;;  %v3567_v6 = vadd.f32 %v6408_v17, %v2711_v61  ;;  %v2714_v7 = vadd.f32 %v2713_v2, %v2168_v63  ;;  %v2715_v8 = vpop.f32.mrb[35].mxu1 }
 0x159   :  { %2380 = vmatmul.mubr.bf16.gmra.mrb[140].mxu0 %v5754_v58  ;;  %v5772_v58 = vld [vmem:[%s7179_s0 + $0x4c0] ss:$16 sps:$4 sm:$0xff]  }
 0x15a   :  { %5450 = vst [vmem:[%s7181_s3 + $0x38] sm:$0xff] %v5162_v5   ;;  %v3695_v9 = vmul.f32 0.2, %v3567_v6  ;;  %v3568_v10 = vadd.f32 %v6408_v17, %v2714_v7  ;;  %2925 = vmatmul.mubr.bf16.gmra.mrb[140].mxu1 %v5755_v0  ;;  %2387 = vmatprep.mubr.bf16.mxu0 %v5756_v1  ;;  %v5773_v0 = vld [vmem:[%s7179_s0 + $0x4c8] ss:$16 sps:$4 sm:$0xff]  }
 0x15b   :  { %2932 = vmatprep.mubr.bf16.mxu1 %v5758_v4  ;;  %v5774_v1 = vld [vmem:[%s7179_s0 + $0x4e4] ss:$16 sps:$4 sm:$0xff]   ;;  %v5776_v4 = vld [vmem:[%s7179_s0 + $0x4ec] ss:$16 sps:$4 sm:$0xff]  }
 0x15c   :  { %v3696_v11 = vmul.f32 0.2, %v3568_v10  ;;  %v2173_v12 = vpop.f32.mrb[36].mxu0  ;;  %v3823_v16 = vmax.f32 %v3567_v6, %v3695_v9 }
 0x15d   :  { %v2718_v13 = vpop.f32.mrb[36].mxu1  ;;  %v2175_v14 = vpop.f32.mrb[37].mxu0 }
 0x15e   :  { %v3824_v18 = vmax.f32 %v3568_v10, %v3696_v11  ;;  %v2719_v19 = vadd.f32 %v2718_v13, %v2173_v12  ;;  %v2720_v20 = vpop.f32.mrb[37].mxu1  ;;  %v2176_v21 = vpop.f32.mrb[38].mxu0 }
 0x15f   :  { %v2721_v24 = vpop.f32.mrb[38].mxu1  ;;  %v2178_v25 = vpop.f32.mrb[39].mxu0 }
 0x160   :  { %v5167_v27 = vpack.c.bf16 %v3824_v18, %v3823_v16  ;;  %v3569_v28 = vadd.f32 %v6408_v17, %v2719_v19  ;;  %v2722_v29 = vadd.f32 %v2721_v24, %v2176_v21  ;;  %v2723_v30 = vpop.f32.mrb[39].mxu1 }
 0x161   :  { %2388 = vmatmul.mubr.bf16.gmra.mrb[144].mxu0 %v5760_v15  ;;  %v5778_v15 = vld [vmem:[%s7179_s0 + $0x4e0] ss:$16 sps:$4 sm:$0xff]  }
 0x162   :  { %5451 = vst [vmem:[%s7181_s3 + $0x40] sm:$0xff] %v5167_v27   ;;  %v3697_v31 = vmul.f32 0.2, %v3569_v28  ;;  %v3570_v32 = vadd.f32 %v6408_v17, %v2722_v29  ;;  %2933 = vmatmul.mubr.bf16.gmra.mrb[144].mxu1 %v5761_v22  ;;  %2395 = vmatprep.mubr.bf16.mxu0 %v5762_v23  ;;  %v5779_v22 = vld [vmem:[%s7179_s0 + $0x4e8] ss:$16 sps:$4 sm:$0xff]  }
 0x163   :  { %2940 = vmatprep.mubr.bf16.mxu1 %v5764_v26  ;;  %v5780_v23 = vld [vmem:[%s7179_s0 + $0x504] ss:$16 sps:$4 sm:$0xff]   ;;  %v5782_v26 = vld [vmem:[%s7179_s0 + $0x50c] ss:$16 sps:$4 sm:$0xff]  }
 0x164   :  { %v3698_v33 = vmul.f32 0.2, %v3570_v32  ;;  %v2181_v34 = vpop.f32.mrb[40].mxu0  ;;  %v3825_v38 = vmax.f32 %v3569_v28, %v3697_v31 }
 0x165   :  { %v2726_v35 = vpop.f32.mrb[40].mxu1  ;;  %v2183_v36 = vpop.f32.mrb[41].mxu0 }
 0x166   :  { %v3826_v39 = vmax.f32 %v3570_v32, %v3698_v33  ;;  %v2727_v40 = vadd.f32 %v2726_v35, %v2181_v34  ;;  %v2728_v41 = vpop.f32.mrb[41].mxu1  ;;  %v2184_v42 = vpop.f32.mrb[42].mxu0 }
 0x167   :  { %v2729_v45 = vpop.f32.mrb[42].mxu1  ;;  %v2186_v46 = vpop.f32.mrb[43].mxu0 }
 0x168   :  { %v5172_v48 = vpack.c.bf16 %v3826_v39, %v3825_v38  ;;  %v3571_v49 = vadd.f32 %v6408_v17, %v2727_v40  ;;  %v2730_v50 = vadd.f32 %v2729_v45, %v2184_v42  ;;  %v2731_v51 = vpop.f32.mrb[43].mxu1 }
 0x169   :  { %2396 = vmatmul.mubr.bf16.gmra.mrb[148].mxu0 %v5766_v37  ;;  %v5784_v37 = vld [vmem:[%s7179_s0 + $0x500] ss:$16 sps:$4 sm:$0xff]  }
 0x16a   :  { %5452 = vst [vmem:[%s7181_s3 + $0x48] sm:$0xff] %v5172_v48   ;;  %v3699_v52 = vmul.f32 0.2, %v3571_v49  ;;  %v3572_v53 = vadd.f32 %v6408_v17, %v2730_v50  ;;  %2941 = vmatmul.mubr.bf16.gmra.mrb[148].mxu1 %v5767_v43  ;;  %2403 = vmatprep.mubr.bf16.mxu0 %v5768_v44  ;;  %v5785_v43 = vld [vmem:[%s7179_s0 + $0x508] ss:$16 sps:$4 sm:$0xff]  }
 0x16b   :  { %2948 = vmatprep.mubr.bf16.mxu1 %v5770_v47  ;;  %v5786_v44 = vld [vmem:[%s7179_s0 + $0x524] ss:$16 sps:$4 sm:$0xff]   ;;  %v5788_v47 = vld [vmem:[%s7179_s0 + $0x52c] ss:$16 sps:$4 sm:$0xff]  }
 0x16c   :  { %v3700_v54 = vmul.f32 0.2, %v3572_v53  ;;  %v2189_v55 = vpop.f32.mrb[44].mxu0  ;;  %v3827_v59 = vmax.f32 %v3571_v49, %v3699_v52 }
 0x16d   :  { %v2734_v56 = vpop.f32.mrb[44].mxu1  ;;  %v2191_v57 = vpop.f32.mrb[45].mxu0 }
 0x16e   :  { %v3828_v60 = vmax.f32 %v3572_v53, %v3700_v54  ;;  %v2735_v61 = vadd.f32 %v2734_v56, %v2189_v55  ;;  %v2736_v62 = vpop.f32.mrb[45].mxu1  ;;  %v2192_v63 = vpop.f32.mrb[46].mxu0 }
 0x16f   :  { %v2737_v2 = vpop.f32.mrb[46].mxu1  ;;  %v2194_v3 = vpop.f32.mrb[47].mxu0 }
 0x170   :  { %v5177_v5 = vpack.c.bf16 %v3828_v60, %v3827_v59  ;;  %v3573_v6 = vadd.f32 %v6408_v17, %v2735_v61  ;;  %v2738_v7 = vadd.f32 %v2737_v2, %v2192_v63  ;;  %v2739_v8 = vpop.f32.mrb[47].mxu1 }
 0x171   :  { %2404 = vmatmul.mubr.bf16.gmra.mrb[152].mxu0 %v5772_v58  ;;  %v5790_v58 = vld [vmem:[%s7179_s0 + $0x520] ss:$16 sps:$4 sm:$0xff]  }
 0x172   :  { %5453 = vst [vmem:[%s7181_s3 + $0x50] sm:$0xff] %v5177_v5   ;;  %v3701_v9 = vmul.f32 0.2, %v3573_v6  ;;  %v3574_v10 = vadd.f32 %v6408_v17, %v2738_v7  ;;  %2949 = vmatmul.mubr.bf16.gmra.mrb[152].mxu1 %v5773_v0  ;;  %2411 = vmatprep.mubr.bf16.mxu0 %v5774_v1  ;;  %v5791_v0 = vld [vmem:[%s7179_s0 + $0x528] ss:$16 sps:$4 sm:$0xff]  }
 0x173   :  { %2956 = vmatprep.mubr.bf16.mxu1 %v5776_v4  ;;  %v5792_v1 = vld [vmem:[%s7179_s0 + $0x544] ss:$16 sps:$4 sm:$0xff]   ;;  %v5794_v4 = vld [vmem:[%s7179_s0 + $0x54c] ss:$16 sps:$4 sm:$0xff]  }
 0x174   :  { %v3702_v11 = vmul.f32 0.2, %v3574_v10  ;;  %v2197_v12 = vpop.f32.mrb[48].mxu0  ;;  %v3829_v16 = vmax.f32 %v3573_v6, %v3701_v9 }
 0x175   :  { %v2742_v13 = vpop.f32.mrb[48].mxu1  ;;  %v2199_v14 = vpop.f32.mrb[49].mxu0 }
 0x176   :  { %v3830_v18 = vmax.f32 %v3574_v10, %v3702_v11  ;;  %v2743_v19 = vadd.f32 %v2742_v13, %v2197_v12  ;;  %v2744_v20 = vpop.f32.mrb[49].mxu1  ;;  %v2200_v21 = vpop.f32.mrb[50].mxu0 }
 0x177   :  { %v2745_v24 = vpop.f32.mrb[50].mxu1  ;;  %v2202_v25 = vpop.f32.mrb[51].mxu0 }
 0x178   :  { %v5182_v27 = vpack.c.bf16 %v3830_v18, %v3829_v16  ;;  %v3575_v28 = vadd.f32 %v6408_v17, %v2743_v19  ;;  %v2746_v29 = vadd.f32 %v2745_v24, %v2200_v21  ;;  %v2747_v30 = vpop.f32.mrb[51].mxu1 }
 0x179   :  { %2412 = vmatmul.mubr.bf16.gmra.mrb[156].mxu0 %v5778_v15  ;;  %v5796_v15 = vld [vmem:[%s7179_s0 + $0x540] ss:$16 sps:$4 sm:$0xff]  }
 0x17a   :  { %5454 = vst [vmem:[%s7181_s3 + $0x58] sm:$0xff] %v5182_v27   ;;  %v3703_v31 = vmul.f32 0.2, %v3575_v28  ;;  %v3576_v32 = vadd.f32 %v6408_v17, %v2746_v29  ;;  %2957 = vmatmul.mubr.bf16.gmra.mrb[156].mxu1 %v5779_v22  ;;  %2419 = vmatprep.mubr.bf16.mxu0 %v5780_v23  ;;  %v5797_v22 = vld [vmem:[%s7179_s0 + $0x548] ss:$16 sps:$4 sm:$0xff]  }
 0x17b   :  { %2964 = vmatprep.mubr.bf16.mxu1 %v5782_v26  ;;  %v5798_v23 = vld [vmem:[%s7179_s0 + $0x564] ss:$16 sps:$4 sm:$0xff]   ;;  %v5800_v26 = vld [vmem:[%s7179_s0 + $0x56c] ss:$16 sps:$4 sm:$0xff]  }
 0x17c   :  { %v3704_v33 = vmul.f32 0.2, %v3576_v32  ;;  %v2205_v34 = vpop.f32.mrb[52].mxu0  ;;  %v3831_v38 = vmax.f32 %v3575_v28, %v3703_v31 }
 0x17d   :  { %v2750_v35 = vpop.f32.mrb[52].mxu1  ;;  %v2207_v36 = vpop.f32.mrb[53].mxu0 }
 0x17e   :  { %v3832_v39 = vmax.f32 %v3576_v32, %v3704_v33  ;;  %v2751_v40 = vadd.f32 %v2750_v35, %v2205_v34  ;;  %v2752_v41 = vpop.f32.mrb[53].mxu1  ;;  %v2208_v42 = vpop.f32.mrb[54].mxu0 }
 0x17f   :  { %v2753_v45 = vpop.f32.mrb[54].mxu1  ;;  %v2210_v46 = vpop.f32.mrb[55].mxu0 }
 0x180   :  { %v5187_v48 = vpack.c.bf16 %v3832_v39, %v3831_v38  ;;  %v3577_v49 = vadd.f32 %v6408_v17, %v2751_v40  ;;  %v2754_v50 = vadd.f32 %v2753_v45, %v2208_v42  ;;  %v2755_v51 = vpop.f32.mrb[55].mxu1 }
 0x181   :  { %2420 = vmatmul.mubr.bf16.gmra.mrb[160].mxu0 %v5784_v37  ;;  %v5802_v37 = vld [vmem:[%s7179_s0 + $0x560] ss:$16 sps:$4 sm:$0xff]  }
 0x182   :  { %5455 = vst [vmem:[%s7181_s3 + $0x60] sm:$0xff] %v5187_v48   ;;  %v3705_v52 = vmul.f32 0.2, %v3577_v49  ;;  %v3578_v53 = vadd.f32 %v6408_v17, %v2754_v50  ;;  %2965 = vmatmul.mubr.bf16.gmra.mrb[160].mxu1 %v5785_v43  ;;  %2427 = vmatprep.mubr.bf16.mxu0 %v5786_v44  ;;  %v5803_v43 = vld [vmem:[%s7179_s0 + $0x568] ss:$16 sps:$4 sm:$0xff]  }
 0x183   :  { %2972 = vmatprep.mubr.bf16.mxu1 %v5788_v47  ;;  %v5804_v44 = vld [vmem:[%s7179_s0 + $0x584] ss:$16 sps:$4 sm:$0xff]   ;;  %v5806_v47 = vld [vmem:[%s7179_s0 + $0x58c] ss:$16 sps:$4 sm:$0xff]  }
 0x184   :  { %v3706_v54 = vmul.f32 0.2, %v3578_v53  ;;  %v2213_v55 = vpop.f32.mrb[56].mxu0  ;;  %v3833_v59 = vmax.f32 %v3577_v49, %v3705_v52 }
 0x185   :  { %v2758_v56 = vpop.f32.mrb[56].mxu1  ;;  %v2215_v57 = vpop.f32.mrb[57].mxu0 }
 0x186   :  { %v3834_v60 = vmax.f32 %v3578_v53, %v3706_v54  ;;  %v2759_v61 = vadd.f32 %v2758_v56, %v2213_v55  ;;  %v2760_v62 = vpop.f32.mrb[57].mxu1  ;;  %v2216_v63 = vpop.f32.mrb[58].mxu0 }
 0x187   :  { %v2761_v2 = vpop.f32.mrb[58].mxu1  ;;  %v2218_v3 = vpop.f32.mrb[59].mxu0 }
 0x188   :  { %v5192_v5 = vpack.c.bf16 %v3834_v60, %v3833_v59  ;;  %v3579_v6 = vadd.f32 %v6408_v17, %v2759_v61  ;;  %v2762_v7 = vadd.f32 %v2761_v2, %v2216_v63  ;;  %v2763_v8 = vpop.f32.mrb[59].mxu1 }
 0x189   :  { %2428 = vmatmul.mubr.bf16.gmra.mrb[164].mxu0 %v5790_v58  ;;  %v5808_v58 = vld [vmem:[%s7179_s0 + $0x580] ss:$16 sps:$4 sm:$0xff]  }
 0x18a   :  { %5456 = vst [vmem:[%s7181_s3 + $0x68] sm:$0xff] %v5192_v5   ;;  %v3707_v9 = vmul.f32 0.2, %v3579_v6  ;;  %v3580_v10 = vadd.f32 %v6408_v17, %v2762_v7  ;;  %2973 = vmatmul.mubr.bf16.gmra.mrb[164].mxu1 %v5791_v0  ;;  %2435 = vmatprep.mubr.bf16.mxu0 %v5792_v1  ;;  %v5809_v0 = vld [vmem:[%s7179_s0 + $0x588] ss:$16 sps:$4 sm:$0xff]  }
 0x18b   :  { %2980 = vmatprep.mubr.bf16.mxu1 %v5794_v4  ;;  %v5810_v1 = vld [vmem:[%s7179_s0 + $0x5a4] ss:$16 sps:$4 sm:$0xff]   ;;  %v5812_v4 = vld [vmem:[%s7179_s0 + $0x5ac] ss:$16 sps:$4 sm:$0xff]  }
 0x18c   :  { %v3708_v11 = vmul.f32 0.2, %v3580_v10  ;;  %v2221_v12 = vpop.f32.mrb[60].mxu0  ;;  %v3835_v16 = vmax.f32 %v3579_v6, %v3707_v9 }
 0x18d   :  { %v2766_v13 = vpop.f32.mrb[60].mxu1  ;;  %v2223_v14 = vpop.f32.mrb[61].mxu0 }
 0x18e   :  { %v3836_v18 = vmax.f32 %v3580_v10, %v3708_v11  ;;  %v2767_v19 = vadd.f32 %v2766_v13, %v2221_v12  ;;  %v2768_v20 = vpop.f32.mrb[61].mxu1  ;;  %v2224_v21 = vpop.f32.mrb[62].mxu0 }
 0x18f   :  { %v2769_v24 = vpop.f32.mrb[62].mxu1  ;;  %v2226_v25 = vpop.f32.mrb[63].mxu0 }
 0x190   :  { %v5197_v27 = vpack.c.bf16 %v3836_v18, %v3835_v16  ;;  %v3581_v28 = vadd.f32 %v6408_v17, %v2767_v19  ;;  %v2770_v29 = vadd.f32 %v2769_v24, %v2224_v21  ;;  %v2771_v30 = vpop.f32.mrb[63].mxu1 }
 0x191   :  { %2436 = vmatmul.mubr.bf16.gmra.mrb[168].mxu0 %v5796_v15  ;;  %v5814_v15 = vld [vmem:[%s7179_s0 + $0x5a0] ss:$16 sps:$4 sm:$0xff]  }
 0x192   :  { %5457 = vst [vmem:[%s7181_s3 + $0x70] sm:$0xff] %v5197_v27   ;;  %v3709_v31 = vmul.f32 0.2, %v3581_v28  ;;  %v3582_v32 = vadd.f32 %v6408_v17, %v2770_v29  ;;  %2981 = vmatmul.mubr.bf16.gmra.mrb[168].mxu1 %v5797_v22  ;;  %2443 = vmatprep.mubr.bf16.mxu0 %v5798_v23  ;;  %v5815_v22 = vld [vmem:[%s7179_s0 + $0x5a8] ss:$16 sps:$4 sm:$0xff]  }
 0x193   :  { %2988 = vmatprep.mubr.bf16.mxu1 %v5800_v26  ;;  %v5816_v23 = vld [vmem:[%s7179_s0 + $0x5c4] ss:$16 sps:$4 sm:$0xff]   ;;  %v5818_v26 = vld [vmem:[%s7179_s0 + $0x5cc] ss:$16 sps:$4 sm:$0xff]  }
 0x194   :  { %v3710_v33 = vmul.f32 0.2, %v3582_v32  ;;  %v2229_v34 = vpop.f32.mrb[64].mxu0  ;;  %v3837_v38 = vmax.f32 %v3581_v28, %v3709_v31 }
 0x195   :  { %v2774_v35 = vpop.f32.mrb[64].mxu1  ;;  %v2231_v36 = vpop.f32.mrb[65].mxu0 }
 0x196   :  { %v3838_v39 = vmax.f32 %v3582_v32, %v3710_v33  ;;  %v2775_v40 = vadd.f32 %v2774_v35, %v2229_v34  ;;  %v2776_v41 = vpop.f32.mrb[65].mxu1  ;;  %v2232_v42 = vpop.f32.mrb[66].mxu0 }
 0x197   :  { %v2777_v45 = vpop.f32.mrb[66].mxu1  ;;  %v2234_v46 = vpop.f32.mrb[67].mxu0 }
 0x198   :  { %v5202_v48 = vpack.c.bf16 %v3838_v39, %v3837_v38  ;;  %v3583_v49 = vadd.f32 %v6408_v17, %v2775_v40  ;;  %v2778_v50 = vadd.f32 %v2777_v45, %v2232_v42  ;;  %v2779_v51 = vpop.f32.mrb[67].mxu1 }
 0x199   :  { %2444 = vmatmul.mubr.bf16.gmra.mrb[172].mxu0 %v5802_v37  ;;  %v5820_v37 = vld [vmem:[%s7179_s0 + $0x5c0] ss:$16 sps:$4 sm:$0xff]  }
 0x19a   :  { %5458 = vst [vmem:[%s7181_s3 + $0x78] sm:$0xff] %v5202_v48   ;;  %v3711_v52 = vmul.f32 0.2, %v3583_v49  ;;  %v3584_v53 = vadd.f32 %v6408_v17, %v2778_v50  ;;  %2989 = vmatmul.mubr.bf16.gmra.mrb[172].mxu1 %v5803_v43  ;;  %2451 = vmatprep.mubr.bf16.mxu0 %v5804_v44  ;;  %v5821_v43 = vld [vmem:[%s7179_s0 + $0x5c8] ss:$16 sps:$4 sm:$0xff]  }
 0x19b   :  { %2996 = vmatprep.mubr.bf16.mxu1 %v5806_v47  ;;  %v5822_v44 = vld [vmem:[%s7179_s0 + $0x5e4] ss:$16 sps:$4 sm:$0xff]   ;;  %v5824_v47 = vld [vmem:[%s7179_s0 + $0x5ec] ss:$16 sps:$4 sm:$0xff]  }
 0x19c   :  { %v3712_v54 = vmul.f32 0.2, %v3584_v53  ;;  %v2237_v55 = vpop.f32.mrb[68].mxu0  ;;  %v3839_v59 = vmax.f32 %v3583_v49, %v3711_v52 }
 0x19d   :  { %v2782_v56 = vpop.f32.mrb[68].mxu1  ;;  %v2239_v57 = vpop.f32.mrb[69].mxu0 }
 0x19e   :  { %v3840_v60 = vmax.f32 %v3584_v53, %v3712_v54  ;;  %v2783_v61 = vadd.f32 %v2782_v56, %v2237_v55  ;;  %v2784_v62 = vpop.f32.mrb[69].mxu1  ;;  %v2240_v63 = vpop.f32.mrb[70].mxu0 }
 0x19f   :  { %v2785_v2 = vpop.f32.mrb[70].mxu1  ;;  %v2242_v3 = vpop.f32.mrb[71].mxu0 }
 0x1a0   :  { %v5207_v5 = vpack.c.bf16 %v3840_v60, %v3839_v59  ;;  %v3585_v6 = vadd.f32 %v6408_v17, %v2783_v61  ;;  %v2786_v7 = vadd.f32 %v2785_v2, %v2240_v63  ;;  %v2787_v8 = vpop.f32.mrb[71].mxu1  ;;  %v5830_v3 = vld [vmem:[%s7179_s0 + $0x60c] ss:$16 sps:$4 sm:$0xff]  }
 0x1a1   :  { %2452 = vmatmul.mubr.bf16.gmra.mrb[176].mxu0 %v5808_v58  ;;  %v5826_v58 = vld [vmem:[%s7179_s0 + $0x5e0] ss:$16 sps:$4 sm:$0xff]  }
 0x1a2   :  { %5459 = vst [vmem:[%s7181_s3 + $0x80] sm:$0xff] %v5207_v5   ;;  %v3713_v9 = vmul.f32 0.2, %v3585_v6  ;;  %v3586_v10 = vadd.f32 %v6408_v17, %v2786_v7  ;;  %2997 = vmatmul.mubr.bf16.gmra.mrb[176].mxu1 %v5809_v0  ;;  %2459 = vmatprep.mubr.bf16.mxu0 %v5810_v1  ;;  %v5828_v0 = vld [vmem:[%s7179_s0 + $0x604] ss:$16 sps:$4 sm:$0xff]  }
 0x1a3   :  { %3004 = vmatprep.mubr.bf16.mxu1 %v5812_v4  ;;  %v6762_v5 = vld [vmem:[%s7180_s2] ss:$0 sm:$0xff] }
 0x1a4   :  { %v3714_v11 = vmul.f32 0.2, %v3586_v10  ;;  %v2245_v12 = vpop.f32.mrb[72].mxu0  ;;  %v3841_v16 = vmax.f32 %v3585_v6, %v3713_v9 }
 0x1a5   :  { %v2790_v13 = vpop.f32.mrb[72].mxu1  ;;  %v2247_v14 = vpop.f32.mrb[73].mxu0 }
 0x1a6   :  { %v3842_v18 = vmax.f32 %v3586_v10, %v3714_v11  ;;  %v2791_v19 = vadd.f32 %v2790_v13, %v2245_v12  ;;  %v2792_v20 = vpop.f32.mrb[73].mxu1  ;;  %v2248_v21 = vpop.f32.mrb[74].mxu0 }
 0x1a7   :  { %v2793_v24 = vpop.f32.mrb[74].mxu1  ;;  %v2250_v25 = vpop.f32.mrb[75].mxu0 }
 0x1a8   :  { %v5212_v27 = vpack.c.bf16 %v3842_v18, %v3841_v16  ;;  %v3587_v28 = vadd.f32 %v6408_v17, %v2791_v19  ;;  %v2794_v29 = vadd.f32 %v2793_v24, %v2248_v21  ;;  %v2795_v30 = vpop.f32.mrb[75].mxu1 }
 0x1a9   :  { %2460 = vmatmul.mubr.bf16.gmra.mrb[180].mxu0 %v5814_v15  ;;  %v5832_v15 = vld [vmem:[%s7179_s0 + $0x600] ss:$16 sps:$4 sm:$0xff]  }
 0x1aa   :  { %5460 = vst [vmem:[%s7181_s3 + $0x88] sm:$0xff] %v5212_v27   ;;  %v3715_v31 = vmul.f32 0.2, %v3587_v28  ;;  %v3588_v32 = vadd.f32 %v6408_v17, %v2794_v29  ;;  %3005 = vmatmul.mubr.bf16.gmra.mrb[180].mxu1 %v5815_v22  ;;  %2467 = vmatprep.mubr.bf16.mxu0 %v5816_v23  ;;  %v5833_v22 = vld [vmem:[%s7179_s0 + $0x608] ss:$16 sps:$4 sm:$0xff]  }
 0x1ab   :  { %3012 = vmatprep.mubr.bf16.mxu1 %v5818_v26  ;;  %v5834_v23 = vld [vmem:[%s7179_s0 + $0x624] ss:$16 sps:$4 sm:$0xff]   ;;  %v5836_v26 = vld [vmem:[%s7179_s0 + $0x62c] ss:$16 sps:$4 sm:$0xff]  }
 0x1ac   :  { %v3716_v33 = vmul.f32 0.2, %v3588_v32  ;;  %v2253_v34 = vpop.f32.mrb[76].mxu0  ;;  %v3843_v38 = vmax.f32 %v3587_v28, %v3715_v31 }
 0x1ad   :  { %v2798_v35 = vpop.f32.mrb[76].mxu1  ;;  %v2255_v36 = vpop.f32.mrb[77].mxu0 }
 0x1ae   :  { %v3844_v39 = vmax.f32 %v3588_v32, %v3716_v33  ;;  %v2799_v40 = vadd.f32 %v2798_v35, %v2253_v34  ;;  %v2800_v41 = vpop.f32.mrb[77].mxu1  ;;  %v2256_v42 = vpop.f32.mrb[78].mxu0 }
 0x1af   :  { %v2801_v45 = vpop.f32.mrb[78].mxu1  ;;  %v2258_v46 = vpop.f32.mrb[79].mxu0 }
 0x1b0   :  { %v5217_v48 = vpack.c.bf16 %v3844_v39, %v3843_v38  ;;  %v3589_v49 = vadd.f32 %v6408_v17, %v2799_v40  ;;  %v2802_v50 = vadd.f32 %v2801_v45, %v2256_v42  ;;  %v2803_v51 = vpop.f32.mrb[79].mxu1 }
 0x1b1   :  { %2468 = vmatmul.mubr.bf16.gmra.mrb[184].mxu0 %v5820_v37  ;;  %v5838_v37 = vld [vmem:[%s7179_s0 + $0x620] ss:$16 sps:$4 sm:$0xff]  }
 0x1b2   :  { %5461 = vst [vmem:[%s7181_s3 + $0x90] sm:$0xff] %v5217_v48   ;;  %v3717_v52 = vmul.f32 0.2, %v3589_v49  ;;  %v3590_v53 = vadd.f32 %v6408_v17, %v2802_v50  ;;  %3013 = vmatmul.mubr.bf16.gmra.mrb[184].mxu1 %v5821_v43  ;;  %2475 = vmatprep.mubr.bf16.mxu0 %v5822_v44  ;;  %v5827_v17 = vld [vmem:[%s7179_s0 + $0x5e8] ss:$16 sps:$4 sm:$0xff]  }
 0x1b3   :  { %3020 = vmatprep.mubr.bf16.mxu1 %v5824_v47  ;;  %v5839_v43 = vld [vmem:[%s7179_s0 + $0x628] ss:$16 sps:$4 sm:$0xff]   ;;  %v5840_v44 = vld [vmem:[%s7179_s0 + $0x644] ss:$16 sps:$4 sm:$0xff]   ;;  %v5842_v47 = vld [vmem:[%s7179_s0 + $0x64c] ss:$16 sps:$4 sm:$0xff]  }
 0x1b4   :  { %v3718_v54 = vmul.f32 0.2, %v3590_v53  ;;  %v2261_v55 = vpop.f32.mrb[80].mxu0  ;;  %v3845_v59 = vmax.f32 %v3589_v49, %v3717_v52 }
 0x1b5   :  { %v2806_v56 = vpop.f32.mrb[80].mxu1  ;;  %v2263_v57 = vpop.f32.mrb[81].mxu0 }
 0x1b6   :  { %v3846_v60 = vmax.f32 %v3590_v53, %v3718_v54  ;;  %v2807_v61 = vadd.f32 %v2806_v56, %v2261_v55  ;;  %v2808_v62 = vpop.f32.mrb[81].mxu1  ;;  %v2264_v63 = vpop.f32.mrb[82].mxu0 }
 0x1b7   :  { %v2809_v1 = vpop.f32.mrb[82].mxu1  ;;  %v2266_v2 = vpop.f32.mrb[83].mxu0 }
 0x1b8   :  { %v5222_v4 = vpack.c.bf16 %v3846_v60, %v3845_v59  ;;  %v3591_v6 = vadd.f32 %v6762_v5, %v2807_v61  ;;  %v2810_v7 = vadd.f32 %v2809_v1, %v2264_v63  ;;  %v2811_v8 = vpop.f32.mrb[83].mxu1 }
 0x1b9   :  { %2476 = vmatmul.mubr.bf16.gmra.mrb[188].mxu0 %v5826_v58  ;;  %v5844_v58 = vld [vmem:[%s7179_s0 + $0x640] ss:$16 sps:$4 sm:$0xff]  }
 0x1ba   :  { %5462 = vst [vmem:[%s7181_s3 + $0x98] sm:$0xff] %v5222_v4   ;;  %v3719_v9 = vmul.f32 0.2, %v3591_v6  ;;  %v3592_v10 = vadd.f32 %v6762_v5, %v2810_v7  ;;  %3021 = vmatmul.mubr.bf16.gmra.mrb[188].mxu1 %v5827_v17  ;;  %2483 = vmatprep.mubr.bf16.mxu0 %v5828_v0  ;;  %v5845_v17 = vld [vmem:[%s7179_s0 + $0x648] ss:$16 sps:$4 sm:$0xff]  }
 0x1bb   :  { %3028 = vmatprep.mubr.bf16.mxu1 %v5830_v3  ;;  %v5846_v0 = vld [vmem:[%s7179_s0 + $0x664] ss:$16 sps:$4 sm:$0xff]   ;;  %v5848_v3 = vld [vmem:[%s7179_s0 + $0x66c] ss:$16 sps:$4 sm:$0xff]  }
 0x1bc   :  { %v3720_v11 = vmul.f32 0.2, %v3592_v10  ;;  %v2269_v12 = vpop.f32.mrb[84].mxu0  ;;  %v3847_v16 = vmax.f32 %v3591_v6, %v3719_v9 }
 0x1bd   :  { %v2814_v13 = vpop.f32.mrb[84].mxu1  ;;  %v2271_v14 = vpop.f32.mrb[85].mxu0 }
 0x1be   :  { %v3848_v18 = vmax.f32 %v3592_v10, %v3720_v11  ;;  %v2815_v19 = vadd.f32 %v2814_v13, %v2269_v12  ;;  %v2816_v20 = vpop.f32.mrb[85].mxu1  ;;  %v2272_v21 = vpop.f32.mrb[86].mxu0 }
 0x1bf   :  { %v2817_v24 = vpop.f32.mrb[86].mxu1  ;;  %v2274_v25 = vpop.f32.mrb[87].mxu0 }
 0x1c0   :  { %v5227_v27 = vpack.c.bf16 %v3848_v18, %v3847_v16  ;;  %v3593_v28 = vadd.f32 %v6762_v5, %v2815_v19  ;;  %v2818_v29 = vadd.f32 %v2817_v24, %v2272_v21  ;;  %v2819_v30 = vpop.f32.mrb[87].mxu1 }
 0x1c1   :  { %2484 = vmatmul.mubr.bf16.gmra.mrb[192].mxu0 %v5832_v15  ;;  %v5850_v15 = vld [vmem:[%s7179_s0 + $0x660] ss:$16 sps:$4 sm:$0xff]  }
 0x1c2   :  { %5463 = vst [vmem:[%s7181_s3 + $0xa0] sm:$0xff] %v5227_v27   ;;  %v3721_v31 = vmul.f32 0.2, %v3593_v28  ;;  %v3594_v32 = vadd.f32 %v6762_v5, %v2818_v29  ;;  %3029 = vmatmul.mubr.bf16.gmra.mrb[192].mxu1 %v5833_v22  ;;  %2491 = vmatprep.mubr.bf16.mxu0 %v5834_v23  ;;  %v5851_v22 = vld [vmem:[%s7179_s0 + $0x668] ss:$16 sps:$4 sm:$0xff]  }
 0x1c3   :  { %3036 = vmatprep.mubr.bf16.mxu1 %v5836_v26  ;;  %v5852_v23 = vld [vmem:[%s7179_s0 + $0x684] ss:$16 sps:$4 sm:$0xff]   ;;  %v5854_v26 = vld [vmem:[%s7179_s0 + $0x68c] ss:$16 sps:$4 sm:$0xff]  }
 0x1c4   :  { %v3722_v33 = vmul.f32 0.2, %v3594_v32  ;;  %v2277_v34 = vpop.f32.mrb[88].mxu0  ;;  %v3849_v38 = vmax.f32 %v3593_v28, %v3721_v31 }
 0x1c5   :  { %v2822_v35 = vpop.f32.mrb[88].mxu1  ;;  %v2279_v36 = vpop.f32.mrb[89].mxu0 }
 0x1c6   :  { %v3850_v39 = vmax.f32 %v3594_v32, %v3722_v33  ;;  %v2823_v40 = vadd.f32 %v2822_v35, %v2277_v34  ;;  %v2824_v41 = vpop.f32.mrb[89].mxu1  ;;  %v2280_v42 = vpop.f32.mrb[90].mxu0 }
 0x1c7   :  { %v2825_v45 = vpop.f32.mrb[90].mxu1  ;;  %v2282_v46 = vpop.f32.mrb[91].mxu0 }
 0x1c8   :  { %v5232_v48 = vpack.c.bf16 %v3850_v39, %v3849_v38  ;;  %v3595_v49 = vadd.f32 %v6762_v5, %v2823_v40  ;;  %v2826_v50 = vadd.f32 %v2825_v45, %v2280_v42  ;;  %v2827_v51 = vpop.f32.mrb[91].mxu1 }
 0x1c9   :  { %2492 = vmatmul.mubr.bf16.gmra.mrb[196].mxu0 %v5838_v37  ;;  %v5856_v37 = vld [vmem:[%s7179_s0 + $0x680] ss:$16 sps:$4 sm:$0xff]  }
 0x1ca   :  { %5464 = vst [vmem:[%s7181_s3 + $0xa8] sm:$0xff] %v5232_v48   ;;  %v3723_v52 = vmul.f32 0.2, %v3595_v49  ;;  %v3596_v53 = vadd.f32 %v6762_v5, %v2826_v50  ;;  %3037 = vmatmul.mubr.bf16.gmra.mrb[196].mxu1 %v5839_v43  ;;  %2499 = vmatprep.mubr.bf16.mxu0 %v5840_v44  ;;  %v5857_v43 = vld [vmem:[%s7179_s0 + $0x688] ss:$16 sps:$4 sm:$0xff]  }
 0x1cb   :  { %3044 = vmatprep.mubr.bf16.mxu1 %v5842_v47  ;;  %v5858_v44 = vld [vmem:[%s7179_s0 + $0x6a4] ss:$16 sps:$4 sm:$0xff]   ;;  %v5860_v47 = vld [vmem:[%s7179_s0 + $0x6ac] ss:$16 sps:$4 sm:$0xff]  }
 0x1cc   :  { %v3724_v54 = vmul.f32 0.2, %v3596_v53  ;;  %v2285_v55 = vpop.f32.mrb[92].mxu0  ;;  %v3851_v59 = vmax.f32 %v3595_v49, %v3723_v52 }
 0x1cd   :  { %v2830_v56 = vpop.f32.mrb[92].mxu1  ;;  %v2287_v57 = vpop.f32.mrb[93].mxu0 }
 0x1ce   :  { %v3852_v60 = vmax.f32 %v3596_v53, %v3724_v54  ;;  %v2831_v61 = vadd.f32 %v2830_v56, %v2285_v55  ;;  %v2832_v62 = vpop.f32.mrb[93].mxu1  ;;  %v2288_v63 = vpop.f32.mrb[94].mxu0 }
 0x1cf   :  { %v2833_v1 = vpop.f32.mrb[94].mxu1  ;;  %v2290_v2 = vpop.f32.mrb[95].mxu0 }
 0x1d0   :  { %v5237_v4 = vpack.c.bf16 %v3852_v60, %v3851_v59  ;;  %v3597_v6 = vadd.f32 %v6762_v5, %v2831_v61  ;;  %v2834_v7 = vadd.f32 %v2833_v1, %v2288_v63  ;;  %v2835_v8 = vpop.f32.mrb[95].mxu1 }
 0x1d1   :  { %2500 = vmatmul.mubr.bf16.gmra.mrb[200].mxu0 %v5844_v58  ;;  %v5862_v58 = vld [vmem:[%s7179_s0 + $0x6a0] ss:$16 sps:$4 sm:$0xff]  }
 0x1d2   :  { %5465 = vst [vmem:[%s7181_s3 + $0xb0] sm:$0xff] %v5237_v4   ;;  %v3725_v9 = vmul.f32 0.2, %v3597_v6  ;;  %v3598_v10 = vadd.f32 %v6762_v5, %v2834_v7  ;;  %3045 = vmatmul.mubr.bf16.gmra.mrb[200].mxu1 %v5845_v17  ;;  %2507 = vmatprep.mubr.bf16.mxu0 %v5846_v0  ;;  %v5863_v17 = vld [vmem:[%s7179_s0 + $0x6a8] ss:$16 sps:$4 sm:$0xff]  }
 0x1d3   :  { %3052 = vmatprep.mubr.bf16.mxu1 %v5848_v3  ;;  %v5864_v0 = vld [vmem:[%s7179_s0 + $0x6c4] ss:$16 sps:$4 sm:$0xff]   ;;  %v5866_v3 = vld [vmem:[%s7179_s0 + $0x6cc] ss:$16 sps:$4 sm:$0xff]  }
 0x1d4   :  { %v3726_v11 = vmul.f32 0.2, %v3598_v10  ;;  %v2293_v12 = vpop.f32.mrb[96].mxu0  ;;  %v3853_v16 = vmax.f32 %v3597_v6, %v3725_v9 }
 0x1d5   :  { %v2838_v13 = vpop.f32.mrb[96].mxu1  ;;  %v2295_v14 = vpop.f32.mrb[97].mxu0 }
 0x1d6   :  { %v3854_v18 = vmax.f32 %v3598_v10, %v3726_v11  ;;  %v2839_v19 = vadd.f32 %v2838_v13, %v2293_v12  ;;  %v2840_v20 = vpop.f32.mrb[97].mxu1  ;;  %v2296_v21 = vpop.f32.mrb[98].mxu0 }
 0x1d7   :  { %v2841_v24 = vpop.f32.mrb[98].mxu1  ;;  %v2298_v25 = vpop.f32.mrb[99].mxu0 }
 0x1d8   :  { %v5242_v27 = vpack.c.bf16 %v3854_v18, %v3853_v16  ;;  %v3599_v28 = vadd.f32 %v6762_v5, %v2839_v19  ;;  %v2842_v29 = vadd.f32 %v2841_v24, %v2296_v21  ;;  %v2843_v30 = vpop.f32.mrb[99].mxu1 }
 0x1d9   :  { %2508 = vmatmul.mubr.bf16.gmra.mrb[204].mxu0 %v5850_v15  ;;  %v5868_v15 = vld [vmem:[%s7179_s0 + $0x6c0] ss:$16 sps:$4 sm:$0xff]  }
 0x1da   :  { %5466 = vst [vmem:[%s7181_s3 + $0xb8] sm:$0xff] %v5242_v27   ;;  %v3727_v31 = vmul.f32 0.2, %v3599_v28  ;;  %v3600_v32 = vadd.f32 %v6762_v5, %v2842_v29  ;;  %3053 = vmatmul.mubr.bf16.gmra.mrb[204].mxu1 %v5851_v22  ;;  %2515 = vmatprep.mubr.bf16.mxu0 %v5852_v23  ;;  %v5869_v22 = vld [vmem:[%s7179_s0 + $0x6c8] ss:$16 sps:$4 sm:$0xff]  }
 0x1db   :  { %3060 = vmatprep.mubr.bf16.mxu1 %v5854_v26  ;;  %v5870_v23 = vld [vmem:[%s7179_s0 + $0x6e4] ss:$16 sps:$4 sm:$0xff]   ;;  %v5872_v26 = vld [vmem:[%s7179_s0 + $0x6ec] ss:$16 sps:$4 sm:$0xff]  }
 0x1dc   :  { %v3728_v33 = vmul.f32 0.2, %v3600_v32  ;;  %v2301_v34 = vpop.f32.mrb[100].mxu0  ;;  %v3855_v38 = vmax.f32 %v3599_v28, %v3727_v31 }
 0x1dd   :  { %v2846_v35 = vpop.f32.mrb[100].mxu1  ;;  %v2303_v36 = vpop.f32.mrb[101].mxu0 }
 0x1de   :  { %v3856_v39 = vmax.f32 %v3600_v32, %v3728_v33  ;;  %v2847_v40 = vadd.f32 %v2846_v35, %v2301_v34  ;;  %v2848_v41 = vpop.f32.mrb[101].mxu1  ;;  %v2304_v42 = vpop.f32.mrb[102].mxu0 }
 0x1df   :  { %v2849_v45 = vpop.f32.mrb[102].mxu1  ;;  %v2306_v46 = vpop.f32.mrb[103].mxu0 }
 0x1e0   :  { %v5247_v48 = vpack.c.bf16 %v3856_v39, %v3855_v38  ;;  %v3601_v49 = vadd.f32 %v6762_v5, %v2847_v40  ;;  %v2850_v50 = vadd.f32 %v2849_v45, %v2304_v42  ;;  %v2851_v51 = vpop.f32.mrb[103].mxu1 }
 0x1e1   :  { %2516 = vmatmul.mubr.bf16.gmra.mrb[208].mxu0 %v5856_v37  ;;  %v5874_v37 = vld [vmem:[%s7179_s0 + $0x6e0] ss:$16 sps:$4 sm:$0xff]  }
 0x1e2   :  { %5467 = vst [vmem:[%s7181_s3 + $0xc0] sm:$0xff] %v5247_v48   ;;  %v3729_v52 = vmul.f32 0.2, %v3601_v49  ;;  %v3602_v53 = vadd.f32 %v6762_v5, %v2850_v50  ;;  %3061 = vmatmul.mubr.bf16.gmra.mrb[208].mxu1 %v5857_v43  ;;  %2523 = vmatprep.mubr.bf16.mxu0 %v5858_v44  ;;  %v5875_v43 = vld [vmem:[%s7179_s0 + $0x6e8] ss:$16 sps:$4 sm:$0xff]  }
 0x1e3   :  { %3068 = vmatprep.mubr.bf16.mxu1 %v5860_v47  ;;  %v5876_v44 = vld [vmem:[%s7179_s0 + $0x704] ss:$16 sps:$4 sm:$0xff]   ;;  %v5878_v47 = vld [vmem:[%s7179_s0 + $0x70c] ss:$16 sps:$4 sm:$0xff]  }
 0x1e4   :  { %v3730_v54 = vmul.f32 0.2, %v3602_v53  ;;  %v2309_v55 = vpop.f32.mrb[104].mxu0  ;;  %v3857_v59 = vmax.f32 %v3601_v49, %v3729_v52 }
 0x1e5   :  { %v2854_v56 = vpop.f32.mrb[104].mxu1  ;;  %v2311_v57 = vpop.f32.mrb[105].mxu0 }
 0x1e6   :  { %v3858_v60 = vmax.f32 %v3602_v53, %v3730_v54  ;;  %v2855_v61 = vadd.f32 %v2854_v56, %v2309_v55  ;;  %v2856_v62 = vpop.f32.mrb[105].mxu1  ;;  %v2312_v63 = vpop.f32.mrb[106].mxu0 }
 0x1e7   :  { %v2857_v1 = vpop.f32.mrb[106].mxu1  ;;  %v2314_v2 = vpop.f32.mrb[107].mxu0 }
 0x1e8   :  { %v5252_v4 = vpack.c.bf16 %v3858_v60, %v3857_v59  ;;  %v3603_v6 = vadd.f32 %v6762_v5, %v2855_v61  ;;  %v2858_v7 = vadd.f32 %v2857_v1, %v2312_v63  ;;  %v2859_v8 = vpop.f32.mrb[107].mxu1 }
 0x1e9   :  { %2524 = vmatmul.mubr.bf16.gmra.mrb[212].mxu0 %v5862_v58  ;;  %v5880_v58 = vld [vmem:[%s7179_s0 + $0x700] ss:$16 sps:$4 sm:$0xff]  }
 0x1ea   :  { %5468 = vst [vmem:[%s7181_s3 + $0xc8] sm:$0xff] %v5252_v4   ;;  %v3731_v9 = vmul.f32 0.2, %v3603_v6  ;;  %v3604_v10 = vadd.f32 %v6762_v5, %v2858_v7  ;;  %3069 = vmatmul.mubr.bf16.gmra.mrb[212].mxu1 %v5863_v17  ;;  %2531 = vmatprep.mubr.bf16.mxu0 %v5864_v0  ;;  %v5881_v17 = vld [vmem:[%s7179_s0 + $0x708] ss:$16 sps:$4 sm:$0xff]  }
 0x1eb   :  { %3076 = vmatprep.mubr.bf16.mxu1 %v5866_v3  ;;  %v5882_v0 = vld [vmem:[%s7179_s0 + $0x724] ss:$16 sps:$4 sm:$0xff]   ;;  %v5884_v3 = vld [vmem:[%s7179_s0 + $0x72c] ss:$16 sps:$4 sm:$0xff]  }
 0x1ec   :  { %v3732_v11 = vmul.f32 0.2, %v3604_v10  ;;  %v2317_v12 = vpop.f32.mrb[108].mxu0  ;;  %v3859_v16 = vmax.f32 %v3603_v6, %v3731_v9 }
 0x1ed   :  { %v2862_v13 = vpop.f32.mrb[108].mxu1  ;;  %v2319_v14 = vpop.f32.mrb[109].mxu0 }
 0x1ee   :  { %v3860_v18 = vmax.f32 %v3604_v10, %v3732_v11  ;;  %v2863_v19 = vadd.f32 %v2862_v13, %v2317_v12  ;;  %v2864_v20 = vpop.f32.mrb[109].mxu1  ;;  %v2320_v21 = vpop.f32.mrb[110].mxu0 }
 0x1ef   :  { %v2865_v24 = vpop.f32.mrb[110].mxu1  ;;  %v2322_v25 = vpop.f32.mrb[111].mxu0 }
 0x1f0   :  { %v5257_v27 = vpack.c.bf16 %v3860_v18, %v3859_v16  ;;  %v3605_v28 = vadd.f32 %v6762_v5, %v2863_v19  ;;  %v2866_v29 = vadd.f32 %v2865_v24, %v2320_v21  ;;  %v2867_v30 = vpop.f32.mrb[111].mxu1 }
 0x1f1   :  { %2532 = vmatmul.mubr.bf16.gmra.mrb[216].mxu0 %v5868_v15  ;;  %v5886_v15 = vld [vmem:[%s7179_s0 + $0x720] ss:$16 sps:$4 sm:$0xff]  }
 0x1f2   :  { %5469 = vst [vmem:[%s7181_s3 + $0xd0] sm:$0xff] %v5257_v27   ;;  %v3733_v31 = vmul.f32 0.2, %v3605_v28  ;;  %v3606_v32 = vadd.f32 %v6762_v5, %v2866_v29  ;;  %3077 = vmatmul.mubr.bf16.gmra.mrb[216].mxu1 %v5869_v22  ;;  %2539 = vmatprep.mubr.bf16.mxu0 %v5870_v23  ;;  %v5887_v22 = vld [vmem:[%s7179_s0 + $0x728] ss:$16 sps:$4 sm:$0xff]  }
 0x1f3   :  { %3084 = vmatprep.mubr.bf16.mxu1 %v5872_v26  ;;  %v5888_v23 = vld [vmem:[%s7179_s0 + $0x744] ss:$16 sps:$4 sm:$0xff]   ;;  %v5890_v26 = vld [vmem:[%s7179_s0 + $0x74c] ss:$16 sps:$4 sm:$0xff]  }
 0x1f4   :  { %v3734_v33 = vmul.f32 0.2, %v3606_v32  ;;  %v2325_v34 = vpop.f32.mrb[112].mxu0  ;;  %v3861_v38 = vmax.f32 %v3605_v28, %v3733_v31 }
 0x1f5   :  { %v2870_v35 = vpop.f32.mrb[112].mxu1  ;;  %v2327_v36 = vpop.f32.mrb[113].mxu0 }
 0x1f6   :  { %v3862_v39 = vmax.f32 %v3606_v32, %v3734_v33  ;;  %v2871_v40 = vadd.f32 %v2870_v35, %v2325_v34  ;;  %v2872_v41 = vpop.f32.mrb[113].mxu1  ;;  %v2328_v42 = vpop.f32.mrb[114].mxu0 }
 0x1f7   :  { %v2873_v45 = vpop.f32.mrb[114].mxu1  ;;  %v2330_v46 = vpop.f32.mrb[115].mxu0 }
 0x1f8   :  { %v5262_v48 = vpack.c.bf16 %v3862_v39, %v3861_v38  ;;  %v3607_v49 = vadd.f32 %v6762_v5, %v2871_v40  ;;  %v2874_v50 = vadd.f32 %v2873_v45, %v2328_v42  ;;  %v2875_v51 = vpop.f32.mrb[115].mxu1 }
 0x1f9   :  { %2540 = vmatmul.mubr.bf16.gmra.mrb[220].mxu0 %v5874_v37  ;;  %v5892_v37 = vld [vmem:[%s7179_s0 + $0x740] ss:$16 sps:$4 sm:$0xff]  }
 0x1fa   :  { %5470 = vst [vmem:[%s7181_s3 + $0xd8] sm:$0xff] %v5262_v48   ;;  %v3735_v52 = vmul.f32 0.2, %v3607_v49  ;;  %v3608_v53 = vadd.f32 %v6762_v5, %v2874_v50  ;;  %3085 = vmatmul.mubr.bf16.gmra.mrb[220].mxu1 %v5875_v43  ;;  %2547 = vmatprep.mubr.bf16.mxu0 %v5876_v44  ;;  %v5893_v43 = vld [vmem:[%s7179_s0 + $0x748] ss:$16 sps:$4 sm:$0xff]  }
 0x1fb   :  { %3092 = vmatprep.mubr.bf16.mxu1 %v5878_v47  ;;  %v5894_v44 = vld [vmem:[%s7179_s0 + $0x764] ss:$16 sps:$4 sm:$0xff]   ;;  %v5896_v47 = vld [vmem:[%s7179_s0 + $0x76c] ss:$16 sps:$4 sm:$0xff]  }
 0x1fc   :  { %v3736_v54 = vmul.f32 0.2, %v3608_v53  ;;  %v2333_v55 = vpop.f32.mrb[116].mxu0  ;;  %v3863_v59 = vmax.f32 %v3607_v49, %v3735_v52 }
 0x1fd   :  { %v2878_v56 = vpop.f32.mrb[116].mxu1  ;;  %v2335_v57 = vpop.f32.mrb[117].mxu0 }
 0x1fe   :  { %v3864_v60 = vmax.f32 %v3608_v53, %v3736_v54  ;;  %v2879_v61 = vadd.f32 %v2878_v56, %v2333_v55  ;;  %v2880_v62 = vpop.f32.mrb[117].mxu1  ;;  %v2336_v63 = vpop.f32.mrb[118].mxu0 }
 0x1ff   :  { %v2881_v1 = vpop.f32.mrb[118].mxu1  ;;  %v2338_v2 = vpop.f32.mrb[119].mxu0 }
 0x200   :  { %v5267_v4 = vpack.c.bf16 %v3864_v60, %v3863_v59  ;;  %v3609_v6 = vadd.f32 %v6762_v5, %v2879_v61  ;;  %v2882_v7 = vadd.f32 %v2881_v1, %v2336_v63  ;;  %v2883_v8 = vpop.f32.mrb[119].mxu1 }
 0x201   :  { %2548 = vmatmul.mubr.bf16.gmra.mrb[224].mxu0 %v5880_v58  ;;  %v5898_v58 = vld [vmem:[%s7179_s0 + $0x760] ss:$16 sps:$4 sm:$0xff]  }
 0x202   :  { %5471 = vst [vmem:[%s7181_s3 + $0xe0] sm:$0xff] %v5267_v4   ;;  %v3737_v9 = vmul.f32 0.2, %v3609_v6  ;;  %v3610_v10 = vadd.f32 %v6762_v5, %v2882_v7  ;;  %3093 = vmatmul.mubr.bf16.gmra.mrb[224].mxu1 %v5881_v17  ;;  %2555 = vmatprep.mubr.bf16.mxu0 %v5882_v0  ;;  %v5899_v17 = vld [vmem:[%s7179_s0 + $0x768] ss:$16 sps:$4 sm:$0xff]  }
 0x203   :  { %3100 = vmatprep.mubr.bf16.mxu1 %v5884_v3  ;;  %v5900_v0 = vld [vmem:[%s7179_s0 + $0x784] ss:$16 sps:$4 sm:$0xff]   ;;  %v5902_v3 = vld [vmem:[%s7179_s0 + $0x78c] ss:$16 sps:$4 sm:$0xff]  }
 0x204   :  { %v3738_v11 = vmul.f32 0.2, %v3610_v10  ;;  %v2341_v12 = vpop.f32.mrb[120].mxu0  ;;  %v3865_v16 = vmax.f32 %v3609_v6, %v3737_v9 }
 0x205   :  { %v2886_v13 = vpop.f32.mrb[120].mxu1  ;;  %v2343_v14 = vpop.f32.mrb[121].mxu0 }
 0x206   :  { %v3866_v18 = vmax.f32 %v3610_v10, %v3738_v11  ;;  %v2887_v19 = vadd.f32 %v2886_v13, %v2341_v12  ;;  %v2888_v20 = vpop.f32.mrb[121].mxu1  ;;  %v2344_v21 = vpop.f32.mrb[122].mxu0 }
 0x207   :  { %v2889_v24 = vpop.f32.mrb[122].mxu1  ;;  %v2346_v25 = vpop.f32.mrb[123].mxu0 }
 0x208   :  { %v5272_v27 = vpack.c.bf16 %v3866_v18, %v3865_v16  ;;  %v3611_v28 = vadd.f32 %v6762_v5, %v2887_v19  ;;  %v2890_v29 = vadd.f32 %v2889_v24, %v2344_v21  ;;  %v2891_v30 = vpop.f32.mrb[123].mxu1 }
 0x209   :  { %2556 = vmatmul.mubr.bf16.gmra.mrb[228].mxu0 %v5886_v15  ;;  %v5904_v15 = vld [vmem:[%s7179_s0 + $0x780] ss:$16 sps:$4 sm:$0xff]  }
 0x20a   :  { %5472 = vst [vmem:[%s7181_s3 + $0xe8] sm:$0xff] %v5272_v27   ;;  %v3739_v31 = vmul.f32 0.2, %v3611_v28  ;;  %v3612_v32 = vadd.f32 %v6762_v5, %v2890_v29  ;;  %3101 = vmatmul.mubr.bf16.gmra.mrb[228].mxu1 %v5887_v22  ;;  %2563 = vmatprep.mubr.bf16.mxu0 %v5888_v23  ;;  %v5905_v22 = vld [vmem:[%s7179_s0 + $0x788] ss:$16 sps:$4 sm:$0xff]  }
 0x20b   :  { %3108 = vmatprep.mubr.bf16.mxu1 %v5890_v26  ;;  %v5906_v23 = vld [vmem:[%s7179_s0 + $0x7a4] ss:$16 sps:$4 sm:$0xff]   ;;  %v5908_v26 = vld [vmem:[%s7179_s0 + $0x7ac] ss:$16 sps:$4 sm:$0xff]  }
 0x20c   :  { %v3740_v33 = vmul.f32 0.2, %v3612_v32  ;;  %v2349_v34 = vpop.f32.mrb[124].mxu0  ;;  %v3867_v38 = vmax.f32 %v3611_v28, %v3739_v31 }
 0x20d   :  { %v2894_v35 = vpop.f32.mrb[124].mxu1  ;;  %v2351_v36 = vpop.f32.mrb[125].mxu0 }
 0x20e   :  { %v3868_v39 = vmax.f32 %v3612_v32, %v3740_v33  ;;  %v2895_v40 = vadd.f32 %v2894_v35, %v2349_v34  ;;  %v2896_v41 = vpop.f32.mrb[125].mxu1  ;;  %v2352_v42 = vpop.f32.mrb[126].mxu0 }
 0x20f   :  { %v2897_v45 = vpop.f32.mrb[126].mxu1  ;;  %v2354_v46 = vpop.f32.mrb[127].mxu0 }
 0x210   :  { %v5277_v48 = vpack.c.bf16 %v3868_v39, %v3867_v38  ;;  %v3613_v49 = vadd.f32 %v6762_v5, %v2895_v40  ;;  %v2898_v50 = vadd.f32 %v2897_v45, %v2352_v42  ;;  %v2899_v51 = vpop.f32.mrb[127].mxu1 }
 0x211   :  { %2564 = vmatmul.mubr.bf16.gmra.mrb[232].mxu0 %v5892_v37  ;;  %v5910_v37 = vld [vmem:[%s7179_s0 + $0x7a0] ss:$16 sps:$4 sm:$0xff]  }
 0x212   :  { %5473 = vst [vmem:[%s7181_s3 + $0xf0] sm:$0xff] %v5277_v48   ;;  %v3741_v52 = vmul.f32 0.2, %v3613_v49  ;;  %v3614_v53 = vadd.f32 %v6762_v5, %v2898_v50  ;;  %3109 = vmatmul.mubr.bf16.gmra.mrb[232].mxu1 %v5893_v43  ;;  %2571 = vmatprep.mubr.bf16.mxu0 %v5894_v44  ;;  %v5911_v43 = vld [vmem:[%s7179_s0 + $0x7a8] ss:$16 sps:$4 sm:$0xff]  }
 0x213   :  { %3116 = vmatprep.mubr.bf16.mxu1 %v5896_v47  ;;  %v5912_v44 = vld [vmem:[%s7179_s0 + $0x7c4] ss:$16 sps:$4 sm:$0xff]   ;;  %v5914_v47 = vld [vmem:[%s7179_s0 + $0x7cc] ss:$16 sps:$4 sm:$0xff]  }
 0x214   :  { %v3742_v54 = vmul.f32 0.2, %v3614_v53  ;;  %v2357_v55 = vpop.f32.mrb[128].mxu0  ;;  %v3869_v59 = vmax.f32 %v3613_v49, %v3741_v52 }
 0x215   :  { %v2902_v56 = vpop.f32.mrb[128].mxu1  ;;  %v2359_v57 = vpop.f32.mrb[129].mxu0 }
 0x216   :  { %v3870_v60 = vmax.f32 %v3614_v53, %v3742_v54  ;;  %v2903_v61 = vadd.f32 %v2902_v56, %v2357_v55  ;;  %v2904_v62 = vpop.f32.mrb[129].mxu1  ;;  %v2360_v63 = vpop.f32.mrb[130].mxu0 }
 0x217   :  { %v2905_v1 = vpop.f32.mrb[130].mxu1  ;;  %v2362_v2 = vpop.f32.mrb[131].mxu0 }
 0x218   :  { %v5282_v4 = vpack.c.bf16 %v3870_v60, %v3869_v59  ;;  %v3615_v6 = vadd.f32 %v6762_v5, %v2903_v61  ;;  %v2906_v7 = vadd.f32 %v2905_v1, %v2360_v63  ;;  %v2907_v8 = vpop.f32.mrb[131].mxu1 }
 0x219   :  { %2572 = vmatmul.mubr.bf16.gmra.mrb[236].mxu0 %v5898_v58  ;;  %v5916_v58 = vld [vmem:[%s7179_s0 + $0x7c0] ss:$16 sps:$4 sm:$0xff]  }
 0x21a   :  { %5474 = vst [vmem:[%s7181_s3 + $0xf8] sm:$0xff] %v5282_v4   ;;  %v3743_v9 = vmul.f32 0.2, %v3615_v6  ;;  %v3616_v10 = vadd.f32 %v6762_v5, %v2906_v7  ;;  %3117 = vmatmul.mubr.bf16.gmra.mrb[236].mxu1 %v5899_v17  ;;  %2579 = vmatprep.mubr.bf16.mxu0 %v5900_v0  ;;  %v5917_v17 = vld [vmem:[%s7179_s0 + $0x7c8] ss:$16 sps:$4 sm:$0xff]  }
 0x21b   :  { %3124 = vmatprep.mubr.bf16.mxu1 %v5902_v3  ;;  %v5918_v0 = vld [vmem:[%s7179_s0 + $0x7e4] ss:$16 sps:$4 sm:$0xff]   ;;  %v5920_v3 = vld [vmem:[%s7179_s0 + $0x7ec] ss:$16 sps:$4 sm:$0xff]  }
 0x21c   :  { %v3744_v11 = vmul.f32 0.2, %v3616_v10  ;;  %v2365_v12 = vpop.f32.mrb[132].mxu0  ;;  %v3871_v16 = vmax.f32 %v3615_v6, %v3743_v9 }
 0x21d   :  { %v2910_v13 = vpop.f32.mrb[132].mxu1  ;;  %v2367_v14 = vpop.f32.mrb[133].mxu0 }
 0x21e   :  { %v3872_v18 = vmax.f32 %v3616_v10, %v3744_v11  ;;  %v2911_v19 = vadd.f32 %v2910_v13, %v2365_v12  ;;  %v2912_v20 = vpop.f32.mrb[133].mxu1  ;;  %v2368_v21 = vpop.f32.mrb[134].mxu0 }
 0x21f   :  { %v2913_v24 = vpop.f32.mrb[134].mxu1  ;;  %v2370_v25 = vpop.f32.mrb[135].mxu0 }
 0x220   :  { %v5287_v27 = vpack.c.bf16 %v3872_v18, %v3871_v16  ;;  %v3617_v28 = vadd.f32 %v6762_v5, %v2911_v19  ;;  %v2914_v29 = vadd.f32 %v2913_v24, %v2368_v21  ;;  %v2915_v30 = vpop.f32.mrb[135].mxu1 }
 0x221   :  { %2580 = vmatmul.mubr.bf16.gmra.mrb[240].mxu0 %v5904_v15  ;;  %v5922_v15 = vld [vmem:[%s7179_s0 + $0x7e0] ss:$16 sps:$4 sm:$0xff]  }
 0x222   :  { %5475 = vst [vmem:[%s7181_s3 + $0x100] sm:$0xff] %v5287_v27   ;;  %v3745_v31 = vmul.f32 0.2, %v3617_v28  ;;  %v3618_v32 = vadd.f32 %v6762_v5, %v2914_v29  ;;  %3125 = vmatmul.mubr.bf16.gmra.mrb[240].mxu1 %v5905_v22  ;;  %2587 = vmatprep.mubr.bf16.mxu0 %v5906_v23  ;;  %v5923_v22 = vld [vmem:[%s7179_s0 + $0x7e8] ss:$16 sps:$4 sm:$0xff]  }
 0x223   :  { %3132 = vmatprep.mubr.bf16.mxu1 %v5908_v26 }
 0x224   :  { %v3746_v33 = vmul.f32 0.2, %v3618_v32  ;;  %v2373_v34 = vpop.f32.mrb[136].mxu0  ;;  %v3873_v38 = vmax.f32 %v3617_v28, %v3745_v31 }
 0x225   :  { %v2918_v35 = vpop.f32.mrb[136].mxu1  ;;  %v2375_v36 = vpop.f32.mrb[137].mxu0 }
 0x226   :  { %v3874_v39 = vmax.f32 %v3618_v32, %v3746_v33  ;;  %v2919_v40 = vadd.f32 %v2918_v35, %v2373_v34  ;;  %v2920_v41 = vpop.f32.mrb[137].mxu1  ;;  %v2376_v42 = vpop.f32.mrb[138].mxu0 }
 0x227   :  { %v2921_v45 = vpop.f32.mrb[138].mxu1  ;;  %v2378_v46 = vpop.f32.mrb[139].mxu0 }
 0x228   :  { %v5292_v48 = vpack.c.bf16 %v3874_v39, %v3873_v38  ;;  %v3619_v49 = vadd.f32 %v6762_v5, %v2919_v40  ;;  %v2922_v50 = vadd.f32 %v2921_v45, %v2376_v42  ;;  %v2923_v51 = vpop.f32.mrb[139].mxu1 }
 0x229   :  { %2588 = vmatmul.mubr.bf16.gmra.mrb[244].mxu0 %v5910_v37 }
 0x22a   :  { %5476 = vst [vmem:[%s7181_s3 + $0x108] sm:$0xff] %v5292_v48   ;;  %v3747_v52 = vmul.f32 0.2, %v3619_v49  ;;  %v3620_v53 = vadd.f32 %v6762_v5, %v2922_v50  ;;  %3133 = vmatmul.mubr.bf16.gmra.mrb[244].mxu1 %v5911_v43  ;;  %2595 = vmatprep.mubr.bf16.mxu0 %v5912_v44 }
 0x22b   :  { %3140 = vmatprep.mubr.bf16.mxu1 %v5914_v47 }
 0x22c   :  { %v3748_v54 = vmul.f32 0.2, %v3620_v53  ;;  %v2381_v55 = vpop.f32.mrb[140].mxu0  ;;  %v3875_v59 = vmax.f32 %v3619_v49, %v3747_v52 }
 0x22d   :  { %v2926_v56 = vpop.f32.mrb[140].mxu1  ;;  %v2383_v57 = vpop.f32.mrb[141].mxu0 }
 0x22e   :  { %v3876_v60 = vmax.f32 %v3620_v53, %v3748_v54  ;;  %v2927_v61 = vadd.f32 %v2926_v56, %v2381_v55  ;;  %v2928_v62 = vpop.f32.mrb[141].mxu1  ;;  %v2384_v63 = vpop.f32.mrb[142].mxu0 }
 0x22f   :  { %v2929_v1 = vpop.f32.mrb[142].mxu1  ;;  %v2386_v2 = vpop.f32.mrb[143].mxu0 }
 0x230   :  { %v5297_v4 = vpack.c.bf16 %v3876_v60, %v3875_v59  ;;  %v3621_v6 = vadd.f32 %v6762_v5, %v2927_v61  ;;  %v2930_v7 = vadd.f32 %v2929_v1, %v2384_v63  ;;  %v2931_v8 = vpop.f32.mrb[143].mxu1 }
 0x231   :  { %2596 = vmatmul.mubr.bf16.gmra.mrb[248].mxu0 %v5916_v58 }
 0x232   :  { %5477 = vst [vmem:[%s7181_s3 + $0x110] sm:$0xff] %v5297_v4   ;;  %v3749_v9 = vmul.f32 0.2, %v3621_v6  ;;  %v3622_v10 = vadd.f32 %v6762_v5, %v2930_v7  ;;  %3141 = vmatmul.mubr.bf16.gmra.mrb[248].mxu1 %v5917_v17  ;;  %2603 = vmatprep.mubr.bf16.mxu0 %v5918_v0 }
 0x233   :  { %3148 = vmatprep.mubr.bf16.mxu1 %v5920_v3 }
 0x234   :  { %v3750_v11 = vmul.f32 0.2, %v3622_v10  ;;  %v2389_v12 = vpop.f32.mrb[144].mxu0  ;;  %v3877_v16 = vmax.f32 %v3621_v6, %v3749_v9 }
 0x235   :  { %v2934_v13 = vpop.f32.mrb[144].mxu1  ;;  %v2391_v14 = vpop.f32.mrb[145].mxu0 }
 0x236   :  { %v3878_v18 = vmax.f32 %v3622_v10, %v3750_v11  ;;  %v2935_v19 = vadd.f32 %v2934_v13, %v2389_v12  ;;  %v2936_v20 = vpop.f32.mrb[145].mxu1  ;;  %v2392_v21 = vpop.f32.mrb[146].mxu0 }
 0x237   :  { %v2937_v23 = vpop.f32.mrb[146].mxu1  ;;  %v2394_v24 = vpop.f32.mrb[147].mxu0 }
 0x238   :  { %v5302_v25 = vpack.c.bf16 %v3878_v18, %v3877_v16  ;;  %v3623_v26 = vadd.f32 %v6762_v5, %v2935_v19  ;;  %v2938_v27 = vadd.f32 %v2937_v23, %v2392_v21  ;;  %v2939_v28 = vpop.f32.mrb[147].mxu1 }
 0x239   :  { %2604 = vmatmul.mubr.bf16.gmra.mrb[252].mxu0 %v5922_v15 }
 0x23a   :  { %5478 = vst [vmem:[%s7181_s3 + $0x118] sm:$0xff] %v5302_v25   ;;  %v3751_v29 = vmul.f32 0.2, %v3623_v26  ;;  %v3624_v30 = vadd.f32 %v6762_v5, %v2938_v27  ;;  %3149 = vmatmul.mubr.bf16.gmra.mrb[252].mxu1 %v5923_v22 }
 0x23c   :  { %v3752_v31 = vmul.f32 0.2, %v3624_v30  ;;  %v2397_v32 = vpop.f32.mrb[148].mxu0  ;;  %v3879_v35 = vmax.f32 %v3623_v26, %v3751_v29 }
 0x23d   :  { %v2942_v33 = vpop.f32.mrb[148].mxu1  ;;  %v2399_v34 = vpop.f32.mrb[149].mxu0 }
 0x23e   :  { %v3880_v36 = vmax.f32 %v3624_v30, %v3752_v31  ;;  %v2943_v37 = vadd.f32 %v2942_v33, %v2397_v32  ;;  %v2944_v38 = vpop.f32.mrb[149].mxu1  ;;  %v2400_v39 = vpop.f32.mrb[150].mxu0 }
 0x23f   :  { %v2945_v40 = vpop.f32.mrb[150].mxu1  ;;  %v2402_v41 = vpop.f32.mrb[151].mxu0 }
 0x240   :  { %v5307_v42 = vpack.c.bf16 %v3880_v36, %v3879_v35  ;;  %v3625_v43 = vadd.f32 %v6762_v5, %v2943_v37  ;;  %v2946_v44 = vadd.f32 %v2945_v40, %v2400_v39  ;;  %v2947_v45 = vpop.f32.mrb[151].mxu1 }
 0x242   :  { %5479 = vst [vmem:[%s7181_s3 + $0x120] sm:$0xff] %v5307_v42   ;;  %v3753_v46 = vmul.f32 0.2, %v3625_v43  ;;  %v3626_v47 = vadd.f32 %v6762_v5, %v2946_v44 }
 0x244   :  { %v3754_v48 = vmul.f32 0.2, %v3626_v47  ;;  %v2405_v49 = vpop.f32.mrb[152].mxu0  ;;  %v3881_v52 = vmax.f32 %v3625_v43, %v3753_v46 }
 0x245   :  { %v2950_v50 = vpop.f32.mrb[152].mxu1  ;;  %v2407_v51 = vpop.f32.mrb[153].mxu0 }
 0x246   :  { %v3882_v53 = vmax.f32 %v3626_v47, %v3754_v48  ;;  %v2951_v54 = vadd.f32 %v2950_v50, %v2405_v49  ;;  %v2952_v55 = vpop.f32.mrb[153].mxu1  ;;  %v2408_v56 = vpop.f32.mrb[154].mxu0 }
 0x247   :  { %v2953_v57 = vpop.f32.mrb[154].mxu1  ;;  %v2410_v58 = vpop.f32.mrb[155].mxu0 }
 0x248   :  { %v5312_v59 = vpack.c.bf16 %v3882_v53, %v3881_v52  ;;  %v3627_v60 = vadd.f32 %v6762_v5, %v2951_v54  ;;  %v2954_v61 = vadd.f32 %v2953_v57, %v2408_v56  ;;  %v2955_v62 = vpop.f32.mrb[155].mxu1 }
 0x24a   :  { %5480 = vst [vmem:[%s7181_s3 + $0x128] sm:$0xff] %v5312_v59   ;;  %v3755_v63 = vmul.f32 0.2, %v3627_v60  ;;  %v3628_v17 = vadd.f32 %v6762_v5, %v2954_v61 }
 0x24c   :  { %v3756_v0 = vmul.f32 0.2, %v3628_v17  ;;  %v2413_v1 = vpop.f32.mrb[156].mxu0  ;;  %v3883_v4 = vmax.f32 %v3627_v60, %v3755_v63 }
 0x24d   :  { %v2958_v2 = vpop.f32.mrb[156].mxu1  ;;  %v2415_v3 = vpop.f32.mrb[157].mxu0 }
 0x24e   :  { %v3884_v6 = vmax.f32 %v3628_v17, %v3756_v0  ;;  %v2959_v7 = vadd.f32 %v2958_v2, %v2413_v1  ;;  %v2960_v8 = vpop.f32.mrb[157].mxu1  ;;  %v2416_v9 = vpop.f32.mrb[158].mxu0  ;;  %v7063_v0 = vld [vmem:[%s7180_s2] ss:$0 sm:$0xff] }
 0x24f   :  { %v2961_v10 = vpop.f32.mrb[158].mxu1  ;;  %v2418_v11 = vpop.f32.mrb[159].mxu0 }
 0x250   :  { %v5317_v12 = vpack.c.bf16 %v3884_v6, %v3883_v4  ;;  %v3629_v13 = vadd.f32 %v6762_v5, %v2959_v7  ;;  %v2962_v14 = vadd.f32 %v2961_v10, %v2416_v9  ;;  %v2963_v15 = vpop.f32.mrb[159].mxu1 }
 0x252   :  { %5481 = vst [vmem:[%s7181_s3 + $0x130] sm:$0xff] %v5317_v12   ;;  %v3757_v16 = vmul.f32 0.2, %v3629_v13  ;;  %v3630_v18 = vadd.f32 %v6762_v5, %v2962_v14 }
 0x254   :  { %v3758_v19 = vmul.f32 0.2, %v3630_v18  ;;  %v2421_v20 = vpop.f32.mrb[160].mxu0  ;;  %v3885_v23 = vmax.f32 %v3629_v13, %v3757_v16 }
 0x255   :  { %v2966_v21 = vpop.f32.mrb[160].mxu1  ;;  %v2423_v22 = vpop.f32.mrb[161].mxu0 }
 0x256   :  { %v3886_v24 = vmax.f32 %v3630_v18, %v3758_v19  ;;  %v2967_v25 = vadd.f32 %v2966_v21, %v2421_v20  ;;  %v2968_v26 = vpop.f32.mrb[161].mxu1  ;;  %v2424_v27 = vpop.f32.mrb[162].mxu0 }
 0x257   :  { %v2969_v28 = vpop.f32.mrb[162].mxu1  ;;  %v2426_v29 = vpop.f32.mrb[163].mxu0 }
 0x258   :  { %v5322_v30 = vpack.c.bf16 %v3886_v24, %v3885_v23  ;;  %v3631_v31 = vadd.f32 %v6762_v5, %v2967_v25  ;;  %v2970_v32 = vadd.f32 %v2969_v28, %v2424_v27  ;;  %v2971_v33 = vpop.f32.mrb[163].mxu1 }
 0x25a   :  { %5482 = vst [vmem:[%s7181_s3 + $0x138] sm:$0xff] %v5322_v30   ;;  %v3759_v34 = vmul.f32 0.2, %v3631_v31  ;;  %v3632_v35 = vadd.f32 %v6762_v5, %v2970_v32 }
 0x25c   :  { %v3760_v36 = vmul.f32 0.2, %v3632_v35  ;;  %v2429_v37 = vpop.f32.mrb[164].mxu0  ;;  %v3887_v40 = vmax.f32 %v3631_v31, %v3759_v34 }
 0x25d   :  { %v2974_v38 = vpop.f32.mrb[164].mxu1  ;;  %v2431_v39 = vpop.f32.mrb[165].mxu0 }
 0x25e   :  { %v3888_v41 = vmax.f32 %v3632_v35, %v3760_v36  ;;  %v2975_v42 = vadd.f32 %v2974_v38, %v2429_v37  ;;  %v2976_v43 = vpop.f32.mrb[165].mxu1  ;;  %v2432_v44 = vpop.f32.mrb[166].mxu0 }
 0x25f   :  { %v2977_v45 = vpop.f32.mrb[166].mxu1  ;;  %v2434_v46 = vpop.f32.mrb[167].mxu0 }
 0x260   :  { %v5327_v47 = vpack.c.bf16 %v3888_v41, %v3887_v40  ;;  %v3633_v48 = vadd.f32 %v6762_v5, %v2975_v42  ;;  %v2978_v49 = vadd.f32 %v2977_v45, %v2432_v44  ;;  %v2979_v50 = vpop.f32.mrb[167].mxu1 }
 0x262   :  { %5483 = vst [vmem:[%s7181_s3 + $0x140] sm:$0xff] %v5327_v47   ;;  %v3761_v51 = vmul.f32 0.2, %v3633_v48  ;;  %v3634_v52 = vadd.f32 %v6762_v5, %v2978_v49 }
 0x264   :  { %v3762_v53 = vmul.f32 0.2, %v3634_v52  ;;  %v2437_v54 = vpop.f32.mrb[168].mxu0  ;;  %v3889_v57 = vmax.f32 %v3633_v48, %v3761_v51 }
 0x265   :  { %v2982_v55 = vpop.f32.mrb[168].mxu1  ;;  %v2439_v56 = vpop.f32.mrb[169].mxu0 }
 0x266   :  { %v3890_v58 = vmax.f32 %v3634_v52, %v3762_v53  ;;  %v2983_v59 = vadd.f32 %v2982_v55, %v2437_v54  ;;  %v2984_v60 = vpop.f32.mrb[169].mxu1  ;;  %v2440_v61 = vpop.f32.mrb[170].mxu0 }
 0x267   :  { %v2985_v62 = vpop.f32.mrb[170].mxu1  ;;  %v2442_v63 = vpop.f32.mrb[171].mxu0 }
 0x268   :  { %v5332_v17 = vpack.c.bf16 %v3890_v58, %v3889_v57  ;;  %v3635_v1 = vadd.f32 %v7063_v0, %v2983_v59  ;;  %v2986_v5 = vadd.f32 %v2985_v62, %v2440_v61  ;;  %v2987_v2 = vpop.f32.mrb[171].mxu1 }
 0x26a   :  { %5484 = vst [vmem:[%s7181_s3 + $0x148] sm:$0xff] %v5332_v17   ;;  %v3763_v3 = vmul.f32 0.2, %v3635_v1  ;;  %v3636_v4 = vadd.f32 %v7063_v0, %v2986_v5 }
 0x26c   :  { %v3764_v6 = vmul.f32 0.2, %v3636_v4  ;;  %v2445_v7 = vpop.f32.mrb[172].mxu0  ;;  %v3891_v10 = vmax.f32 %v3635_v1, %v3763_v3 }
 0x26d   :  { %v2990_v8 = vpop.f32.mrb[172].mxu1  ;;  %v2447_v9 = vpop.f32.mrb[173].mxu0 }
 0x26e   :  { %v3892_v11 = vmax.f32 %v3636_v4, %v3764_v6  ;;  %v2991_v12 = vadd.f32 %v2990_v8, %v2445_v7  ;;  %v2992_v13 = vpop.f32.mrb[173].mxu1  ;;  %v2448_v14 = vpop.f32.mrb[174].mxu0 }
 0x26f   :  { %v2993_v15 = vpop.f32.mrb[174].mxu1  ;;  %v2450_v16 = vpop.f32.mrb[175].mxu0 }
 0x270   :  { %v5337_v18 = vpack.c.bf16 %v3892_v11, %v3891_v10  ;;  %v3637_v19 = vadd.f32 %v7063_v0, %v2991_v12  ;;  %v2994_v20 = vadd.f32 %v2993_v15, %v2448_v14  ;;  %v2995_v21 = vpop.f32.mrb[175].mxu1 }
 0x272   :  { %5485 = vst [vmem:[%s7181_s3 + $0x150] sm:$0xff] %v5337_v18   ;;  %v3765_v22 = vmul.f32 0.2, %v3637_v19  ;;  %v3638_v23 = vadd.f32 %v7063_v0, %v2994_v20 }
 0x274   :  { %v3766_v24 = vmul.f32 0.2, %v3638_v23  ;;  %v2453_v25 = vpop.f32.mrb[176].mxu0  ;;  %v3893_v28 = vmax.f32 %v3637_v19, %v3765_v22 }
 0x275   :  { %v2998_v26 = vpop.f32.mrb[176].mxu1  ;;  %v2455_v27 = vpop.f32.mrb[177].mxu0 }
 0x276   :  { %v3894_v29 = vmax.f32 %v3638_v23, %v3766_v24  ;;  %v2999_v30 = vadd.f32 %v2998_v26, %v2453_v25  ;;  %v3000_v31 = vpop.f32.mrb[177].mxu1  ;;  %v2456_v32 = vpop.f32.mrb[178].mxu0 }
 0x277   :  { %v3001_v33 = vpop.f32.mrb[178].mxu1  ;;  %v2458_v34 = vpop.f32.mrb[179].mxu0 }
 0x278   :  { %v5342_v35 = vpack.c.bf16 %v3894_v29, %v3893_v28  ;;  %v3639_v36 = vadd.f32 %v7063_v0, %v2999_v30  ;;  %v3002_v37 = vadd.f32 %v3001_v33, %v2456_v32  ;;  %v3003_v38 = vpop.f32.mrb[179].mxu1 }
 0x27a   :  { %5486 = vst [vmem:[%s7181_s3 + $0x158] sm:$0xff] %v5342_v35   ;;  %v3767_v39 = vmul.f32 0.2, %v3639_v36  ;;  %v3640_v40 = vadd.f32 %v7063_v0, %v3002_v37 }
 0x27c   :  { %v3768_v41 = vmul.f32 0.2, %v3640_v40  ;;  %v2461_v42 = vpop.f32.mrb[180].mxu0  ;;  %v3895_v45 = vmax.f32 %v3639_v36, %v3767_v39 }
 0x27d   :  { %v3006_v43 = vpop.f32.mrb[180].mxu1  ;;  %v2463_v44 = vpop.f32.mrb[181].mxu0 }
 0x27e   :  { %v3896_v46 = vmax.f32 %v3640_v40, %v3768_v41  ;;  %v3007_v47 = vadd.f32 %v3006_v43, %v2461_v42  ;;  %v3008_v48 = vpop.f32.mrb[181].mxu1  ;;  %v2464_v49 = vpop.f32.mrb[182].mxu0 }
 0x27f   :  { %v3009_v50 = vpop.f32.mrb[182].mxu1  ;;  %v2466_v51 = vpop.f32.mrb[183].mxu0 }
 0x280   :  { %v5347_v52 = vpack.c.bf16 %v3896_v46, %v3895_v45  ;;  %v3641_v53 = vadd.f32 %v7063_v0, %v3007_v47  ;;  %v3010_v54 = vadd.f32 %v3009_v50, %v2464_v49  ;;  %v3011_v55 = vpop.f32.mrb[183].mxu1 }
 0x282   :  { %5487 = vst [vmem:[%s7181_s3 + $0x160] sm:$0xff] %v5347_v52   ;;  %v3769_v56 = vmul.f32 0.2, %v3641_v53  ;;  %v3642_v57 = vadd.f32 %v7063_v0, %v3010_v54 }
 0x284   :  { %v3770_v58 = vmul.f32 0.2, %v3642_v57  ;;  %v2469_v59 = vpop.f32.mrb[184].mxu0  ;;  %v3897_v62 = vmax.f32 %v3641_v53, %v3769_v56 }
 0x285   :  { %v3014_v60 = vpop.f32.mrb[184].mxu1  ;;  %v2471_v61 = vpop.f32.mrb[185].mxu0 }
 0x286   :  { %v3898_v63 = vmax.f32 %v3642_v57, %v3770_v58  ;;  %v3015_v17 = vadd.f32 %v3014_v60, %v2469_v59  ;;  %v3016_v1 = vpop.f32.mrb[185].mxu1  ;;  %v2472_v5 = vpop.f32.mrb[186].mxu0 }
 0x287   :  { %v3017_v2 = vpop.f32.mrb[186].mxu1  ;;  %v2474_v3 = vpop.f32.mrb[187].mxu0 }
 0x288   :  { %v5352_v4 = vpack.c.bf16 %v3898_v63, %v3897_v62  ;;  %v3643_v6 = vadd.f32 %v7063_v0, %v3015_v17  ;;  %v3018_v7 = vadd.f32 %v3017_v2, %v2472_v5  ;;  %v3019_v8 = vpop.f32.mrb[187].mxu1 }
 0x28a   :  { %5488 = vst [vmem:[%s7181_s3 + $0x168] sm:$0xff] %v5352_v4   ;;  %v3771_v9 = vmul.f32 0.2, %v3643_v6  ;;  %v3644_v10 = vadd.f32 %v7063_v0, %v3018_v7 }
 0x28c   :  { %v3772_v11 = vmul.f32 0.2, %v3644_v10  ;;  %v2477_v12 = vpop.f32.mrb[188].mxu0  ;;  %v3899_v15 = vmax.f32 %v3643_v6, %v3771_v9 }
 0x28d   :  { %v3022_v13 = vpop.f32.mrb[188].mxu1  ;;  %v2479_v14 = vpop.f32.mrb[189].mxu0 }
 0x28e   :  { %v3900_v16 = vmax.f32 %v3644_v10, %v3772_v11  ;;  %v3023_v18 = vadd.f32 %v3022_v13, %v2477_v12  ;;  %v3024_v19 = vpop.f32.mrb[189].mxu1  ;;  %v2480_v20 = vpop.f32.mrb[190].mxu0 }
 0x28f   :  { %v3025_v21 = vpop.f32.mrb[190].mxu1  ;;  %v2482_v22 = vpop.f32.mrb[191].mxu0 }
 0x290   :  { %v5357_v23 = vpack.c.bf16 %v3900_v16, %v3899_v15  ;;  %v3645_v24 = vadd.f32 %v7063_v0, %v3023_v18  ;;  %v3026_v25 = vadd.f32 %v3025_v21, %v2480_v20  ;;  %v3027_v26 = vpop.f32.mrb[191].mxu1 }
 0x292   :  { %5489 = vst [vmem:[%s7181_s3 + $0x170] sm:$0xff] %v5357_v23   ;;  %v3773_v27 = vmul.f32 0.2, %v3645_v24  ;;  %v3646_v28 = vadd.f32 %v7063_v0, %v3026_v25 }
 0x294   :  { %v3774_v29 = vmul.f32 0.2, %v3646_v28  ;;  %v2485_v30 = vpop.f32.mrb[192].mxu0  ;;  %v3901_v33 = vmax.f32 %v3645_v24, %v3773_v27 }
 0x295   :  { %v3030_v31 = vpop.f32.mrb[192].mxu1  ;;  %v2487_v32 = vpop.f32.mrb[193].mxu0 }
 0x296   :  { %v3902_v34 = vmax.f32 %v3646_v28, %v3774_v29  ;;  %v3031_v35 = vadd.f32 %v3030_v31, %v2485_v30  ;;  %v3032_v36 = vpop.f32.mrb[193].mxu1  ;;  %v2488_v37 = vpop.f32.mrb[194].mxu0 }
 0x297   :  { %v3033_v38 = vpop.f32.mrb[194].mxu1  ;;  %v2490_v39 = vpop.f32.mrb[195].mxu0 }
 0x298   :  { %v5362_v40 = vpack.c.bf16 %v3902_v34, %v3901_v33  ;;  %v3647_v41 = vadd.f32 %v7063_v0, %v3031_v35  ;;  %v3034_v42 = vadd.f32 %v3033_v38, %v2488_v37  ;;  %v3035_v43 = vpop.f32.mrb[195].mxu1 }
 0x29a   :  { %5490 = vst [vmem:[%s7181_s3 + $0x178] sm:$0xff] %v5362_v40   ;;  %v3775_v44 = vmul.f32 0.2, %v3647_v41  ;;  %v3648_v45 = vadd.f32 %v7063_v0, %v3034_v42 }
 0x29c   :  { %v3776_v46 = vmul.f32 0.2, %v3648_v45  ;;  %v2493_v47 = vpop.f32.mrb[196].mxu0  ;;  %v3903_v50 = vmax.f32 %v3647_v41, %v3775_v44 }
 0x29d   :  { %v3038_v48 = vpop.f32.mrb[196].mxu1  ;;  %v2495_v49 = vpop.f32.mrb[197].mxu0 }
 0x29e   :  { %v3904_v51 = vmax.f32 %v3648_v45, %v3776_v46  ;;  %v3039_v52 = vadd.f32 %v3038_v48, %v2493_v47  ;;  %v3040_v53 = vpop.f32.mrb[197].mxu1  ;;  %v2496_v54 = vpop.f32.mrb[198].mxu0 }
 0x29f   :  { %v3041_v55 = vpop.f32.mrb[198].mxu1  ;;  %v2498_v56 = vpop.f32.mrb[199].mxu0 }
 0x2a0   :  { %v5367_v57 = vpack.c.bf16 %v3904_v51, %v3903_v50  ;;  %v3649_v58 = vadd.f32 %v7063_v0, %v3039_v52  ;;  %v3042_v59 = vadd.f32 %v3041_v55, %v2496_v54  ;;  %v3043_v60 = vpop.f32.mrb[199].mxu1 }
 0x2a2   :  { %5491 = vst [vmem:[%s7181_s3 + $0x180] sm:$0xff] %v5367_v57   ;;  %v3777_v61 = vmul.f32 0.2, %v3649_v58  ;;  %v3650_v62 = vadd.f32 %v7063_v0, %v3042_v59 }
 0x2a4   :  { %v3778_v63 = vmul.f32 0.2, %v3650_v62  ;;  %v2501_v17 = vpop.f32.mrb[200].mxu0  ;;  %v3905_v2 = vmax.f32 %v3649_v58, %v3777_v61 }
 0x2a5   :  { %v3046_v1 = vpop.f32.mrb[200].mxu1  ;;  %v2503_v5 = vpop.f32.mrb[201].mxu0 }
 0x2a6   :  { %v3906_v3 = vmax.f32 %v3650_v62, %v3778_v63  ;;  %v3047_v4 = vadd.f32 %v3046_v1, %v2501_v17  ;;  %v3048_v6 = vpop.f32.mrb[201].mxu1  ;;  %v2504_v7 = vpop.f32.mrb[202].mxu0 }
 0x2a7   :  { %v3049_v8 = vpop.f32.mrb[202].mxu1  ;;  %v2506_v9 = vpop.f32.mrb[203].mxu0 }
 0x2a8   :  { %v5372_v10 = vpack.c.bf16 %v3906_v3, %v3905_v2  ;;  %v3651_v11 = vadd.f32 %v7063_v0, %v3047_v4  ;;  %v3050_v12 = vadd.f32 %v3049_v8, %v2504_v7  ;;  %v3051_v13 = vpop.f32.mrb[203].mxu1 }
 0x2aa   :  { %5492 = vst [vmem:[%s7181_s3 + $0x188] sm:$0xff] %v5372_v10   ;;  %v3779_v14 = vmul.f32 0.2, %v3651_v11  ;;  %v3652_v15 = vadd.f32 %v7063_v0, %v3050_v12 }
 0x2ac   :  { %v3780_v16 = vmul.f32 0.2, %v3652_v15  ;;  %v2509_v18 = vpop.f32.mrb[204].mxu0  ;;  %v3907_v21 = vmax.f32 %v3651_v11, %v3779_v14 }
 0x2ad   :  { %v3054_v19 = vpop.f32.mrb[204].mxu1  ;;  %v2511_v20 = vpop.f32.mrb[205].mxu0 }
 0x2ae   :  { %v3908_v22 = vmax.f32 %v3652_v15, %v3780_v16  ;;  %v3055_v23 = vadd.f32 %v3054_v19, %v2509_v18  ;;  %v3056_v24 = vpop.f32.mrb[205].mxu1  ;;  %v2512_v25 = vpop.f32.mrb[206].mxu0 }
 0x2af   :  { %v3057_v26 = vpop.f32.mrb[206].mxu1  ;;  %v2514_v27 = vpop.f32.mrb[207].mxu0 }
 0x2b0   :  { %v5377_v28 = vpack.c.bf16 %v3908_v22, %v3907_v21  ;;  %v3653_v29 = vadd.f32 %v7063_v0, %v3055_v23  ;;  %v3058_v30 = vadd.f32 %v3057_v26, %v2512_v25  ;;  %v3059_v31 = vpop.f32.mrb[207].mxu1 }
 0x2b2   :  { %5493 = vst [vmem:[%s7181_s3 + $0x190] sm:$0xff] %v5377_v28   ;;  %v3781_v32 = vmul.f32 0.2, %v3653_v29  ;;  %v3654_v33 = vadd.f32 %v7063_v0, %v3058_v30 }
 0x2b4   :  { %v3782_v34 = vmul.f32 0.2, %v3654_v33  ;;  %v2517_v35 = vpop.f32.mrb[208].mxu0  ;;  %v3909_v38 = vmax.f32 %v3653_v29, %v3781_v32 }
 0x2b5   :  { %v3062_v36 = vpop.f32.mrb[208].mxu1  ;;  %v2519_v37 = vpop.f32.mrb[209].mxu0 }
 0x2b6   :  { %v3910_v39 = vmax.f32 %v3654_v33, %v3782_v34  ;;  %v3063_v40 = vadd.f32 %v3062_v36, %v2517_v35  ;;  %v3064_v41 = vpop.f32.mrb[209].mxu1  ;;  %v2520_v42 = vpop.f32.mrb[210].mxu0 }
 0x2b7   :  { %v3065_v43 = vpop.f32.mrb[210].mxu1  ;;  %v2522_v44 = vpop.f32.mrb[211].mxu0 }
 0x2b8   :  { %v5382_v45 = vpack.c.bf16 %v3910_v39, %v3909_v38  ;;  %v3655_v46 = vadd.f32 %v7063_v0, %v3063_v40  ;;  %v3066_v47 = vadd.f32 %v3065_v43, %v2520_v42  ;;  %v3067_v48 = vpop.f32.mrb[211].mxu1 }
 0x2ba   :  { %5494 = vst [vmem:[%s7181_s3 + $0x198] sm:$0xff] %v5382_v45   ;;  %v3783_v49 = vmul.f32 0.2, %v3655_v46  ;;  %v3656_v50 = vadd.f32 %v7063_v0, %v3066_v47 }
 0x2bc   :  { %v3784_v51 = vmul.f32 0.2, %v3656_v50  ;;  %v2525_v52 = vpop.f32.mrb[212].mxu0  ;;  %v3911_v55 = vmax.f32 %v3655_v46, %v3783_v49 }
 0x2bd   :  { %v3070_v53 = vpop.f32.mrb[212].mxu1  ;;  %v2527_v54 = vpop.f32.mrb[213].mxu0 }
 0x2be   :  { %v3912_v56 = vmax.f32 %v3656_v50, %v3784_v51  ;;  %v3071_v57 = vadd.f32 %v3070_v53, %v2525_v52  ;;  %v3072_v58 = vpop.f32.mrb[213].mxu1  ;;  %v2528_v59 = vpop.f32.mrb[214].mxu0 }
 0x2bf   :  { %v3073_v60 = vpop.f32.mrb[214].mxu1  ;;  %v2530_v61 = vpop.f32.mrb[215].mxu0 }
 0x2c0   :  { %v5387_v62 = vpack.c.bf16 %v3912_v56, %v3911_v55  ;;  %v3657_v63 = vadd.f32 %v7063_v0, %v3071_v57  ;;  %v3074_v17 = vadd.f32 %v3073_v60, %v2528_v59  ;;  %v3075_v1 = vpop.f32.mrb[215].mxu1 }
 0x2c2   :  { %5495 = vst [vmem:[%s7181_s3 + $0x1a0] sm:$0xff] %v5387_v62   ;;  %v3785_v5 = vmul.f32 0.2, %v3657_v63  ;;  %v3658_v2 = vadd.f32 %v7063_v0, %v3074_v17 }
 0x2c4   :  { %v3786_v3 = vmul.f32 0.2, %v3658_v2  ;;  %v2533_v4 = vpop.f32.mrb[216].mxu0  ;;  %v3913_v8 = vmax.f32 %v3657_v63, %v3785_v5 }
 0x2c5   :  { %v3078_v6 = vpop.f32.mrb[216].mxu1  ;;  %v2535_v7 = vpop.f32.mrb[217].mxu0 }
 0x2c6   :  { %v3914_v9 = vmax.f32 %v3658_v2, %v3786_v3  ;;  %v3079_v10 = vadd.f32 %v3078_v6, %v2533_v4  ;;  %v3080_v11 = vpop.f32.mrb[217].mxu1  ;;  %v2536_v12 = vpop.f32.mrb[218].mxu0 }
 0x2c7   :  { %v3081_v13 = vpop.f32.mrb[218].mxu1  ;;  %v2538_v14 = vpop.f32.mrb[219].mxu0 }
 0x2c8   :  { %v5392_v15 = vpack.c.bf16 %v3914_v9, %v3913_v8  ;;  %v3659_v16 = vadd.f32 %v7063_v0, %v3079_v10  ;;  %v3082_v18 = vadd.f32 %v3081_v13, %v2536_v12  ;;  %v3083_v19 = vpop.f32.mrb[219].mxu1 }
 0x2ca   :  { %5496 = vst [vmem:[%s7181_s3 + $0x1a8] sm:$0xff] %v5392_v15   ;;  %v3787_v20 = vmul.f32 0.2, %v3659_v16  ;;  %v3660_v21 = vadd.f32 %v7063_v0, %v3082_v18 }
 0x2cc   :  { %v3788_v22 = vmul.f32 0.2, %v3660_v21  ;;  %v2541_v23 = vpop.f32.mrb[220].mxu0  ;;  %v3915_v26 = vmax.f32 %v3659_v16, %v3787_v20 }
 0x2cd   :  { %v3086_v24 = vpop.f32.mrb[220].mxu1  ;;  %v2543_v25 = vpop.f32.mrb[221].mxu0 }
 0x2ce   :  { %v3916_v27 = vmax.f32 %v3660_v21, %v3788_v22  ;;  %v3087_v28 = vadd.f32 %v3086_v24, %v2541_v23  ;;  %v3088_v29 = vpop.f32.mrb[221].mxu1  ;;  %v2544_v30 = vpop.f32.mrb[222].mxu0 }
 0x2cf   :  { %v3089_v31 = vpop.f32.mrb[222].mxu1  ;;  %v2546_v32 = vpop.f32.mrb[223].mxu0 }
 0x2d0   :  { %v5397_v33 = vpack.c.bf16 %v3916_v27, %v3915_v26  ;;  %v3661_v34 = vadd.f32 %v7063_v0, %v3087_v28  ;;  %v3090_v35 = vadd.f32 %v3089_v31, %v2544_v30  ;;  %v3091_v36 = vpop.f32.mrb[223].mxu1 }
 0x2d2   :  { %5497 = vst [vmem:[%s7181_s3 + $0x1b0] sm:$0xff] %v5397_v33   ;;  %v3789_v37 = vmul.f32 0.2, %v3661_v34  ;;  %v3662_v38 = vadd.f32 %v7063_v0, %v3090_v35 }
 0x2d4   :  { %v3790_v39 = vmul.f32 0.2, %v3662_v38  ;;  %v2549_v40 = vpop.f32.mrb[224].mxu0  ;;  %v3917_v43 = vmax.f32 %v3661_v34, %v3789_v37 }
 0x2d5   :  { %v3094_v41 = vpop.f32.mrb[224].mxu1  ;;  %v2551_v42 = vpop.f32.mrb[225].mxu0 }
 0x2d6   :  { %v3918_v44 = vmax.f32 %v3662_v38, %v3790_v39  ;;  %v3095_v45 = vadd.f32 %v3094_v41, %v2549_v40  ;;  %v3096_v46 = vpop.f32.mrb[225].mxu1  ;;  %v2552_v47 = vpop.f32.mrb[226].mxu0 }
 0x2d7   :  { %v3097_v48 = vpop.f32.mrb[226].mxu1  ;;  %v2554_v49 = vpop.f32.mrb[227].mxu0 }
 0x2d8   :  { %v5402_v50 = vpack.c.bf16 %v3918_v44, %v3917_v43  ;;  %v3663_v51 = vadd.f32 %v7063_v0, %v3095_v45  ;;  %v3098_v52 = vadd.f32 %v3097_v48, %v2552_v47  ;;  %v3099_v53 = vpop.f32.mrb[227].mxu1 }
 0x2da   :  { %5498 = vst [vmem:[%s7181_s3 + $0x1b8] sm:$0xff] %v5402_v50   ;;  %v3791_v54 = vmul.f32 0.2, %v3663_v51  ;;  %v3664_v55 = vadd.f32 %v7063_v0, %v3098_v52 }
 0x2dc   :  { %v3792_v56 = vmul.f32 0.2, %v3664_v55  ;;  %v2557_v57 = vpop.f32.mrb[228].mxu0  ;;  %v3919_v60 = vmax.f32 %v3663_v51, %v3791_v54 }
 0x2dd   :  { %v3102_v58 = vpop.f32.mrb[228].mxu1  ;;  %v2559_v59 = vpop.f32.mrb[229].mxu0 }
 0x2de   :  { %v3920_v61 = vmax.f32 %v3664_v55, %v3792_v56  ;;  %v3103_v62 = vadd.f32 %v3102_v58, %v2557_v57  ;;  %v3104_v63 = vpop.f32.mrb[229].mxu1  ;;  %v2560_v17 = vpop.f32.mrb[230].mxu0 }
 0x2df   :  { %v3105_v1 = vpop.f32.mrb[230].mxu1  ;;  %v2562_v5 = vpop.f32.mrb[231].mxu0 }
 0x2e0   :  { %v5407_v2 = vpack.c.bf16 %v3920_v61, %v3919_v60  ;;  %v3665_v3 = vadd.f32 %v7063_v0, %v3103_v62  ;;  %v3106_v4 = vadd.f32 %v3105_v1, %v2560_v17  ;;  %v3107_v6 = vpop.f32.mrb[231].mxu1 }
 0x2e2   :  { %5499 = vst [vmem:[%s7181_s3 + $0x1c0] sm:$0xff] %v5407_v2   ;;  %v3793_v7 = vmul.f32 0.2, %v3665_v3  ;;  %v3666_v8 = vadd.f32 %v7063_v0, %v3106_v4 }
 0x2e4   :  { %v3794_v9 = vmul.f32 0.2, %v3666_v8  ;;  %v2565_v10 = vpop.f32.mrb[232].mxu0  ;;  %v3921_v13 = vmax.f32 %v3665_v3, %v3793_v7 }
 0x2e5   :  { %v3110_v11 = vpop.f32.mrb[232].mxu1  ;;  %v2567_v12 = vpop.f32.mrb[233].mxu0 }
 0x2e6   :  { %v3922_v14 = vmax.f32 %v3666_v8, %v3794_v9  ;;  %v3111_v15 = vadd.f32 %v3110_v11, %v2565_v10  ;;  %v3112_v16 = vpop.f32.mrb[233].mxu1  ;;  %v2568_v18 = vpop.f32.mrb[234].mxu0 }
 0x2e7   :  { %v3113_v19 = vpop.f32.mrb[234].mxu1  ;;  %v2570_v20 = vpop.f32.mrb[235].mxu0 }
 0x2e8   :  { %v5412_v21 = vpack.c.bf16 %v3922_v14, %v3921_v13  ;;  %v3667_v22 = vadd.f32 %v7063_v0, %v3111_v15  ;;  %v3114_v23 = vadd.f32 %v3113_v19, %v2568_v18  ;;  %v3115_v24 = vpop.f32.mrb[235].mxu1 }
 0x2ea   :  { %5500 = vst [vmem:[%s7181_s3 + $0x1c8] sm:$0xff] %v5412_v21   ;;  %v3795_v25 = vmul.f32 0.2, %v3667_v22  ;;  %v3668_v26 = vadd.f32 %v7063_v0, %v3114_v23 }
 0x2ec   :  { %v3796_v27 = vmul.f32 0.2, %v3668_v26  ;;  %v2573_v28 = vpop.f32.mrb[236].mxu0  ;;  %v3923_v31 = vmax.f32 %v3667_v22, %v3795_v25 }
 0x2ed   :  { %v3118_v29 = vpop.f32.mrb[236].mxu1  ;;  %v2575_v30 = vpop.f32.mrb[237].mxu0 }
 0x2ee   :  { %v3924_v32 = vmax.f32 %v3668_v26, %v3796_v27  ;;  %v3119_v33 = vadd.f32 %v3118_v29, %v2573_v28  ;;  %v3120_v34 = vpop.f32.mrb[237].mxu1  ;;  %v2576_v35 = vpop.f32.mrb[238].mxu0 }
 0x2ef   :  { %v3121_v36 = vpop.f32.mrb[238].mxu1  ;;  %v2578_v37 = vpop.f32.mrb[239].mxu0 }
 0x2f0   :  { %v5417_v38 = vpack.c.bf16 %v3924_v32, %v3923_v31  ;;  %v3669_v39 = vadd.f32 %v7063_v0, %v3119_v33  ;;  %v3122_v40 = vadd.f32 %v3121_v36, %v2576_v35  ;;  %v3123_v41 = vpop.f32.mrb[239].mxu1 }
 0x2f2   :  { %5501 = vst [vmem:[%s7181_s3 + $0x1d0] sm:$0xff] %v5417_v38   ;;  %v3797_v42 = vmul.f32 0.2, %v3669_v39  ;;  %v3670_v43 = vadd.f32 %v7063_v0, %v3122_v40 }
 0x2f4   :  { %v3798_v44 = vmul.f32 0.2, %v3670_v43  ;;  %v2581_v45 = vpop.f32.mrb[240].mxu0  ;;  %v3925_v48 = vmax.f32 %v3669_v39, %v3797_v42 }
 0x2f5   :  { %v3126_v46 = vpop.f32.mrb[240].mxu1  ;;  %v2583_v47 = vpop.f32.mrb[241].mxu0 }
 0x2f6   :  { %v3926_v49 = vmax.f32 %v3670_v43, %v3798_v44  ;;  %v3127_v50 = vadd.f32 %v3126_v46, %v2581_v45  ;;  %v3128_v51 = vpop.f32.mrb[241].mxu1  ;;  %v2584_v52 = vpop.f32.mrb[242].mxu0 }
 0x2f7   :  { %v3129_v53 = vpop.f32.mrb[242].mxu1  ;;  %v2586_v54 = vpop.f32.mrb[243].mxu0 }
 0x2f8   :  { %v5422_v55 = vpack.c.bf16 %v3926_v49, %v3925_v48  ;;  %v3671_v56 = vadd.f32 %v7063_v0, %v3127_v50  ;;  %v3130_v57 = vadd.f32 %v3129_v53, %v2584_v52  ;;  %v3131_v58 = vpop.f32.mrb[243].mxu1 }
 0x2fa   :  { %5502 = vst [vmem:[%s7181_s3 + $0x1d8] sm:$0xff] %v5422_v55   ;;  %v3799_v59 = vmul.f32 0.2, %v3671_v56  ;;  %v3672_v60 = vadd.f32 %v7063_v0, %v3130_v57 }
 0x2fc   :  { %v3800_v61 = vmul.f32 0.2, %v3672_v60  ;;  %v2589_v62 = vpop.f32.mrb[244].mxu0  ;;  %v3927_v1 = vmax.f32 %v3671_v56, %v3799_v59 }
 0x2fd   :  { %v3134_v63 = vpop.f32.mrb[244].mxu1  ;;  %v2591_v17 = vpop.f32.mrb[245].mxu0 }
 0x2fe   :  { %v3928_v5 = vmax.f32 %v3672_v60, %v3800_v61  ;;  %v3135_v2 = vadd.f32 %v3134_v63, %v2589_v62  ;;  %v3136_v3 = vpop.f32.mrb[245].mxu1  ;;  %v2592_v4 = vpop.f32.mrb[246].mxu0 }
 0x2ff   :  { %v3137_v6 = vpop.f32.mrb[246].mxu1  ;;  %v2594_v7 = vpop.f32.mrb[247].mxu0 }
 0x300   :  { %v5427_v8 = vpack.c.bf16 %v3928_v5, %v3927_v1  ;;  %v3673_v9 = vadd.f32 %v7063_v0, %v3135_v2  ;;  %v3138_v10 = vadd.f32 %v3137_v6, %v2592_v4  ;;  %v3139_v11 = vpop.f32.mrb[247].mxu1 }
 0x302   :  { %5503 = vst [vmem:[%s7181_s3 + $0x1e0] sm:$0xff] %v5427_v8   ;;  %v3801_v12 = vmul.f32 0.2, %v3673_v9  ;;  %v3674_v13 = vadd.f32 %v7063_v0, %v3138_v10 }
 0x304   :  { %v3802_v14 = vmul.f32 0.2, %v3674_v13  ;;  %v2597_v15 = vpop.f32.mrb[248].mxu0  ;;  %v3929_v19 = vmax.f32 %v3673_v9, %v3801_v12 }
 0x305   :  { %v3142_v16 = vpop.f32.mrb[248].mxu1  ;;  %v2599_v18 = vpop.f32.mrb[249].mxu0 }
 0x306   :  { %v3930_v20 = vmax.f32 %v3674_v13, %v3802_v14  ;;  %v3143_v21 = vadd.f32 %v3142_v16, %v2597_v15  ;;  %v3144_v22 = vpop.f32.mrb[249].mxu1  ;;  %v2600_v23 = vpop.f32.mrb[250].mxu0 }
 0x307   :  { %v3145_v24 = vpop.f32.mrb[250].mxu1  ;;  %v2602_v25 = vpop.f32.mrb[251].mxu0 }
 0x308   :  { %v5432_v26 = vpack.c.bf16 %v3930_v20, %v3929_v19  ;;  %v3675_v27 = vadd.f32 %v7063_v0, %v3143_v21  ;;  %v3146_v28 = vadd.f32 %v3145_v24, %v2600_v23  ;;  %v3147_v29 = vpop.f32.mrb[251].mxu1 }
 0x30a   :  { %5504 = vst [vmem:[%s7181_s3 + $0x1e8] sm:$0xff] %v5432_v26   ;;  %v3803_v30 = vmul.f32 0.2, %v3675_v27  ;;  %v3676_v31 = vadd.f32 %v7063_v0, %v3146_v28 }
 0x30c   :  { %v3804_v32 = vmul.f32 0.2, %v3676_v31  ;;  %v2605_v33 = vpop.f32.mrb[252].mxu0  ;;  %v3931_v36 = vmax.f32 %v3675_v27, %v3803_v30 }
 0x30d   :  { %v3150_v34 = vpop.f32.mrb[252].mxu1  ;;  %v2607_v35 = vpop.f32.mrb[253].mxu0 }
 0x30e   :  { %v3932_v37 = vmax.f32 %v3676_v31, %v3804_v32  ;;  %v3151_v38 = vadd.f32 %v3150_v34, %v2605_v33  ;;  %v3152_v39 = vpop.f32.mrb[253].mxu1  ;;  %v2608_v40 = vpop.f32.mrb[254].mxu0 }
 0x30f   :  { %v3153_v41 = vpop.f32.mrb[254].mxu1  ;;  %v2610_v42 = vpop.f32.mrb[255].mxu0 }
 0x310   :  { %v5437_v43 = vpack.c.bf16 %v3932_v37, %v3931_v36  ;;  %v3677_v44 = vadd.f32 %v7063_v0, %v3151_v38  ;;  %v3154_v45 = vadd.f32 %v3153_v41, %v2608_v40  ;;  %v3155_v46 = vpop.f32.mrb[255].mxu1 }
 0x312   :  { %5505 = vst [vmem:[%s7181_s3 + $0x1f0] sm:$0xff] %v5437_v43   ;;  %v3805_v47 = vmul.f32 0.2, %v3677_v44  ;;  %v3678_v48 = vadd.f32 %v7063_v0, %v3154_v45 }
 0x314   :  { %v3806_v49 = vmul.f32 0.2, %v3678_v48  ;;  %v3933_v50 = vmax.f32 %v3677_v44, %v3805_v47 }
 0x316   :  { %v3934_v51 = vmax.f32 %v3678_v48, %v3806_v49 }
 0x318   :  { %v5442_v52 = vpack.c.bf16 %v3934_v51, %v3933_v50 }
 0x31a   :  { %5506 = vst [vmem:[%s7181_s3 + $0x1f8] sm:$0xff] %v5442_v52  }

// kernel: _lambda_.7
= control target key start
LH: loop header
LB: loop body
LE: loop exit
PB: predicated region body
PF: predicated region fallthrough
CT: control target
= control target key end

     0   :  { %s2550_s1 = inlined_call_operand.vmem [shape: bf16[1024,128], index: 1, kind: input, shape index: {}]   ;;  %s2551_s0 = inlined_call_operand.vmem [shape: bf16[128,1024], index: 0, kind: input, shape index: {}]   ;;  %s2552_s2 = inlined_call_operand.vmem [shape: f32[1,128], index: 2, kind: input, shape index: {}]   ;;  %s2553_s3 = inlined_call_operand.vmem [shape: bf16[128,128], index: 3, kind: output, shape index: {}]  }
   0x1   :  { %v1989_v0 = vld [vmem:[%s2550_s1 + $0x40] sm:$0xff]   ;;  %v1993_v4 = vld [vmem:[%s2550_s1 + $0x48] sm:$0xff]   ;;  %v1997_v8 = vld [vmem:[%s2550_s1 + $0x50] sm:$0xff]  }
   0x2   :  { %v1990_v1 = vld [vmem:[%s2550_s1 + $0xc0] sm:$0xff]   ;;  %1733 = vmatprep.subr.bf16.mxu0 %v1989_v0  ;;  %v1994_v5 = vld [vmem:[%s2550_s1 + $0xc8] sm:$0xff]   ;;  %v1998_v9 = vld [vmem:[%s2550_s1 + $0xd0] sm:$0xff]  }
   0x3   :  { %v1991_v2 = vld [vmem:[%s2550_s1] sm:$0xff]   ;;  %1797 = vmatprep.subr.bf16.mxu1 %v1990_v1  ;;  %v1995_v6 = vld [vmem:[%s2550_s1 + $0x8] sm:$0xff]   ;;  %v1999_v10 = vld [vmem:[%s2550_s1 + $0x10] sm:$0xff]  }
   0x4   :  { %v1992_v3 = vld [vmem:[%s2550_s1 + $0x80] sm:$0xff]   ;;  %1734 = vmatpush3.bf16.msra.mxu0 %v1991_v2  ;;  %v1996_v7 = vld [vmem:[%s2550_s1 + $0x88] sm:$0xff]   ;;  %v2000_v11 = vld [vmem:[%s2550_s1 + $0x90] sm:$0xff]  }
   0x5   :  { %1798 = vmatpush3.bf16.msra.mxu1 %v1992_v3  ;;  %1735 = vmatprep.subr.bf16.mxu0 %v1993_v4  ;;  %v2001_v12 = vld [vmem:[%s2550_s1 + $0x58] sm:$0xff]   ;;  %v2005_v16 = vld [vmem:[%s2550_s1 + $0x60] sm:$0xff]   ;;  %v2009_v20 = vld [vmem:[%s2550_s1 + $0x68] sm:$0xff]  }
   0x6   :  { %1799 = vmatprep.subr.bf16.mxu1 %v1994_v5  ;;  %v2002_v13 = vld [vmem:[%s2550_s1 + $0xd8] sm:$0xff]   ;;  %v2006_v17 = vld [vmem:[%s2550_s1 + $0xe0] sm:$0xff]   ;;  %v2010_v21 = vld [vmem:[%s2550_s1 + $0xe8] sm:$0xff]  }
   0x7   :  { %v2003_v14 = vld [vmem:[%s2550_s1 + $0x18] sm:$0xff]   ;;  %v2007_v18 = vld [vmem:[%s2550_s1 + $0x20] sm:$0xff]   ;;  %v2011_v22 = vld [vmem:[%s2550_s1 + $0x28] sm:$0xff]  }
   0x8   :  { %1736 = vmatpush3.bf16.msra.mxu0 %v1995_v6  ;;  %v2004_v15 = vld [vmem:[%s2550_s1 + $0x98] sm:$0xff]   ;;  %v2008_v19 = vld [vmem:[%s2550_s1 + $0xa0] sm:$0xff]   ;;  %v2012_v23 = vld [vmem:[%s2550_s1 + $0xa8] sm:$0xff]  }
   0x9   :  { %1800 = vmatpush3.bf16.msra.mxu1 %v1996_v7  ;;  %1737 = vmatprep.subr.bf16.mxu0 %v1997_v8  ;;  %v2013_v24 = vld [vmem:[%s2550_s1 + $0x70] sm:$0xff]   ;;  %v2017_v28 = vld [vmem:[%s2550_s1 + $0x78] sm:$0xff]   ;;  %v51_v32 = vld [vmem:[%s2551_s0] sm:$0xff] }
   0xa   :  { %1801 = vmatprep.subr.bf16.mxu1 %v1998_v9  ;;  %v2014_v25 = vld [vmem:[%s2550_s1 + $0xf0] sm:$0xff]   ;;  %v2018_v29 = vld [vmem:[%s2550_s1 + $0xf8] sm:$0xff]   ;;  %v55_v33 = vld [vmem:[%s2551_s0 + $0x20] sm:$0xff] }
   0xb   :  { %v2015_v26 = vld [vmem:[%s2550_s1 + $0x30] sm:$0xff]   ;;  %v2019_v30 = vld [vmem:[%s2550_s1 + $0x38] sm:$0xff]   ;;  %v52_v34 = vld [vmem:[%s2551_s0 + $0x8] sm:$0xff]  ;;  %v1525_v35 = vcombine.low %v51_v32, %v55_v33  ;;  %v1526_v36 = vcombine.high %v51_v32, %v55_v33 }
   0xc   :  { %1738 = vmatpush3.bf16.msra.mxu0 %v1999_v10  ;;  %v2016_v27 = vld [vmem:[%s2550_s1 + $0xb0] sm:$0xff]   ;;  %v2020_v31 = vld [vmem:[%s2550_s1 + $0xb8] sm:$0xff]   ;;  %v56_v37 = vld [vmem:[%s2551_s0 + $0x28] sm:$0xff] }
   0xd   :  { %1802 = vmatpush3.bf16.msra.mxu1 %v2000_v11  ;;  %1739 = vmatprep.subr.bf16.mxu0 %v2001_v12  ;;  %v1527_v38 = vcombine.low %v52_v34, %v56_v37  ;;  %v1528_v39 = vcombine.high %v52_v34, %v56_v37  ;;  %v2021_v40 = vld [vmem:[%s2550_s1 + $0x140] sm:$0xff]   ;;  %v60_v47 = vld [vmem:[%s2551_s0 + $0x48] sm:$0xff]  ;;  %v2029_v62 = vld [vmem:[%s2550_s1 + $0x150] sm:$0xff]  }
   0xe   :  { %1803 = vmatprep.subr.bf16.mxu1 %v2002_v13  ;;  %979 = vmatprep.mubr.bf16.mxu0 %v1526_v36  ;;  %v2022_v41 = vld [vmem:[%s2550_s1 + $0x100] sm:$0xff]   ;;  %v64_v48 = vld [vmem:[%s2551_s0 + $0x68] sm:$0xff]  ;;  %v2030_v63 = vld [vmem:[%s2550_s1 + $0x110] sm:$0xff]  }
   0xf   :  { %1076 = vmatprep.mubr.bf16.mxu1 %v1528_v39  ;;  %v2023_v42 = vld [vmem:[%s2550_s1 + $0x1c0] sm:$0xff]   ;;  %v1536_v49 = vcombine.high %v60_v47, %v64_v48  ;;  %v2025_v50 = vld [vmem:[%s2550_s1 + $0x148] sm:$0xff]   ;;  %v1535_v53 = vcombine.low %v60_v47, %v64_v48  ;;  %v2031_v0 = vld [vmem:[%s2550_s1 + $0x1d0] sm:$0xff]  }
  0x10   :  { %1740 = vmatpush3.bf16.msra.mxu0 %v2003_v14  ;;  %v2024_v43 = vld [vmem:[%s2550_s1 + $0x180] sm:$0xff]   ;;  %v2026_v52 = vld [vmem:[%s2550_s1 + $0x108] sm:$0xff]   ;;  %v2032_v1 = vld [vmem:[%s2550_s1 + $0x190] sm:$0xff]  }
  0x11   :  { %1804 = vmatpush3.bf16.msra.mxu1 %v2004_v15  ;;  %1741 = vmatprep.subr.bf16.mxu0 %v2005_v16  ;;  %v59_v44 = vld [vmem:[%s2551_s0 + $0x40] sm:$0xff]  ;;  %v2027_v54 = vld [vmem:[%s2550_s1 + $0x1c8] sm:$0xff]   ;;  %v2033_v10 = vld [vmem:[%s2550_s1 + $0x158] sm:$0xff]  }
  0x12   :  { %1805 = vmatprep.subr.bf16.mxu1 %v2006_v17  ;;  %v63_v45 = vld [vmem:[%s2551_s0 + $0x60] sm:$0xff]  ;;  %v2028_v55 = vld [vmem:[%s2550_s1 + $0x188] sm:$0xff]   ;;  %v2034_v11 = vld [vmem:[%s2550_s1 + $0x118] sm:$0xff]  }
  0x13   :  { %v1534_v46 = vcombine.high %v59_v44, %v63_v45  ;;  %v1533_v51 = vcombine.low %v59_v44, %v63_v45  ;;  %v67_v56 = vld [vmem:[%s2551_s0 + $0x80] sm:$0xff]  ;;  %v68_v58 = vld [vmem:[%s2551_s0 + $0x88] sm:$0xff]  ;;  %v2035_v12 = vld [vmem:[%s2550_s1 + $0x1d8] sm:$0xff]  }
  0x14   :  { %1742 = vmatpush3.bf16.msra.mxu0 %v2007_v18  ;;  %v71_v57 = vld [vmem:[%s2551_s0 + $0xa0] sm:$0xff]  ;;  %v72_v59 = vld [vmem:[%s2551_s0 + $0xa8] sm:$0xff]  ;;  %v2036_v13 = vld [vmem:[%s2550_s1 + $0x198] sm:$0xff]  }
  0x15   :  { %1806 = vmatpush3.bf16.msra.mxu1 %v2008_v19  ;;  %1743 = vmatprep.subr.bf16.mxu0 %v2009_v20  ;;  %v1542_v60 = vcombine.high %v67_v56, %v71_v57  ;;  %v1544_v61 = vcombine.high %v68_v58, %v72_v59  ;;  %v1541_v2 = vcombine.low %v67_v56, %v71_v57  ;;  %v75_v3 = vld [vmem:[%s2551_s0 + $0xc0] sm:$0xff]  ;;  %v76_v5 = vld [vmem:[%s2551_s0 + $0xc8] sm:$0xff]  ;;  %v2046_v39 = vld [vmem:[%s2550_s1 + $0x130] sm:$0xff]  }
  0x16   :  { %1807 = vmatprep.subr.bf16.mxu1 %v2010_v21  ;;  %v79_v4 = vld [vmem:[%s2551_s0 + $0xe0] sm:$0xff]  ;;  %v1543_v6 = vcombine.low %v68_v58, %v72_v59  ;;  %v80_v8 = vld [vmem:[%s2551_s0 + $0xe8] sm:$0xff]  ;;  %v2050_v48 = vld [vmem:[%s2550_s1 + $0x138] sm:$0xff]  }
  0x17   :  { %v1550_v7 = vcombine.high %v75_v3, %v79_v4  ;;  %v1552_v9 = vcombine.high %v76_v5, %v80_v8  ;;  %v83_v14 = vld [vmem:[%s2551_s0 + $0x100] sm:$0xff]  ;;  %v84_v16 = vld [vmem:[%s2551_s0 + $0x108] sm:$0xff]  ;;  %v1549_v19 = vcombine.low %v75_v3, %v79_v4  ;;  %v1551_v21 = vcombine.low %v76_v5, %v80_v8  ;;  %v62_v8 = vld [vmem:[%s2551_s0 + $0x58] sm:$0xff] }
  0x18   :  { %1744 = vmatpush3.bf16.msra.mxu0 %v2011_v22  ;;  %v87_v15 = vld [vmem:[%s2551_s0 + $0x120] sm:$0xff]  ;;  %v88_v17 = vld [vmem:[%s2551_s0 + $0x128] sm:$0xff] }
  0x19   :  { %1808 = vmatpush3.bf16.msra.mxu1 %v2012_v23  ;;  %1745 = vmatprep.subr.bf16.mxu0 %v2013_v24  ;;  %v2037_v18 = vld [vmem:[%s2550_s1 + $0x160] sm:$0xff]   ;;  %v1558_v22 = vcombine.high %v83_v14, %v87_v15  ;;  %v1560_v24 = vcombine.high %v84_v16, %v88_v17  ;;  %v2043_v32 = vld [vmem:[%s2550_s1 + $0x1e8] sm:$0xff]   ;;  %v1557_v34 = vcombine.low %v83_v14, %v87_v15  ;;  %v69_v14 = vld [vmem:[%s2551_s0 + $0x90] sm:$0xff] }
  0x1a   :  { %1809 = vmatprep.subr.bf16.mxu1 %v2014_v25  ;;  %v2038_v20 = vld [vmem:[%s2550_s1 + $0x120] sm:$0xff]   ;;  %v2044_v33 = vld [vmem:[%s2550_s1 + $0x1a8] sm:$0xff]   ;;  %v73_v15 = vld [vmem:[%s2551_s0 + $0xb0] sm:$0xff] }
  0x1b   :  { %v2039_v23 = vld [vmem:[%s2550_s1 + $0x1e0] sm:$0xff]   ;;  %v100_v44 = vld [vmem:[%s2551_s0 + $0x188] sm:$0xff] }
  0x1c   :  { %1746 = vmatpush3.bf16.msra.mxu0 %v2015_v26  ;;  %v2040_v25 = vld [vmem:[%s2550_s1 + $0x1a0] sm:$0xff]   ;;  %v104_v45 = vld [vmem:[%s2551_s0 + $0x1a8] sm:$0xff] }
  0x1d   :  { %1810 = vmatpush3.bf16.msra.mxu1 %v2016_v27  ;;  %1747 = vmatprep.subr.bf16.mxu0 %v2017_v28  ;;  %v91_v26 = vld [vmem:[%s2551_s0 + $0x140] sm:$0xff]  ;;  %v2041_v28 = vld [vmem:[%s2550_s1 + $0x168] sm:$0xff]   ;;  %v1575_v59 = vcombine.low %v100_v44, %v104_v45 }
  0x1e   :  { %1811 = vmatprep.subr.bf16.mxu1 %v2018_v29  ;;  %v95_v27 = vld [vmem:[%s2551_s0 + $0x160] sm:$0xff]  ;;  %v92_v29 = vld [vmem:[%s2551_s0 + $0x148] sm:$0xff] }
  0x1f   :  { %v1566_v36 = vcombine.high %v91_v26, %v95_v27  ;;  %v1565_v47 = vcombine.low %v91_v26, %v95_v27  ;;  %v108_v56 = vld [vmem:[%s2551_s0 + $0x1c8] sm:$0xff]  ;;  %v1545_v26 = vcombine.low %v69_v14, %v73_v15 }
  0x20   :  { %1748 = vmatpush3.bf16.msra.mxu0 %v2019_v30  ;;  %v96_v30 = vld [vmem:[%s2551_s0 + $0x168] sm:$0xff] }
  0x21   :  { %1812 = vmatpush3.bf16.msra.mxu1 %v2020_v31  ;;  %1861 = vmatprep.subr.bf16.mxu0 %v2021_v40  ;;  %v2042_v31 = vld [vmem:[%s2550_s1 + $0x128] sm:$0xff]   ;;  %v1568_v37 = vcombine.high %v92_v29, %v96_v30  ;;  %v2047_v40 = vld [vmem:[%s2550_s1 + $0x1f0] sm:$0xff]  }
  0x22   :  { %1925 = vmatprep.subr.bf16.mxu1 %v2023_v42  ;;  %v103_v42 = vld [vmem:[%s2551_s0 + $0x1a0] sm:$0xff]  ;;  %v112_v57 = vld [vmem:[%s2551_s0 + $0x1e8] sm:$0xff] }
  0x23   :  { %980 = vmatmul.mubr.bf16.vlgmr.msra.gmra.mrb[0].mxu0 %v1525_v35  ;;  %v1559_v35 = vcombine.low %v84_v16, %v88_v17  ;;  %v1583_v3 = vcombine.low %v108_v56, %v112_v57  ;;  %v70_v16 = vld [vmem:[%s2551_s0 + $0x98] sm:$0xff] }
  0x24   :  { %1077 = vmatmul.mubr.bf16.vlgmr.msra.gmra.mrb[0].mxu1 %v1527_v38  ;;  %1862 = vmatpush3.bf16.msra.mxu0 %v2022_v41  ;;  %v2045_v38 = vld [vmem:[%s2550_s1 + $0x170] sm:$0xff]   ;;  %v99_v41 = vld [vmem:[%s2551_s0 + $0x180] sm:$0xff]  ;;  %v74_v17 = vld [vmem:[%s2551_s0 + $0xb8] sm:$0xff] }
  0x25   :  { %1926 = vmatpush3.bf16.msra.mxu1 %v2024_v43  ;;  %987 = vmatprep.mubr.bf16.mxu0 %v1534_v46  ;;  %v2048_v43 = vld [vmem:[%s2550_s1 + $0x1b0] sm:$0xff]   ;;  %v2049_v46 = vld [vmem:[%s2550_s1 + $0x178] sm:$0xff]   ;;  %v1573_v58 = vcombine.low %v99_v41, %v103_v42  ;;  %v1547_v27 = vcombine.low %v70_v16, %v74_v17 }
  0x26   :  { %1084 = vmatprep.mubr.bf16.mxu1 %v1536_v49  ;;  %1863 = vmatprep.subr.bf16.mxu0 %v2025_v50  ;;  %v1567_v49 = vcombine.low %v92_v29, %v96_v30  ;;  %v1574_v50 = vcombine.high %v99_v41, %v103_v42  ;;  %v85_v30 = vld [vmem:[%s2551_s0 + $0x110] sm:$0xff]  ;;  %v98_v41 = vld [vmem:[%s2551_s0 + $0x178] sm:$0xff] }
  0x27   :  { %1927 = vmatprep.subr.bf16.mxu1 %v2027_v54  ;;  %v107_v54 = vld [vmem:[%s2551_s0 + $0x1c0] sm:$0xff] }
  0x28   :  { %1864 = vmatpush3.bf16.msra.mxu0 %v2026_v52  ;;  %v1576_v52 = vcombine.high %v100_v44, %v104_v45 }
  0x29   :  { %1928 = vmatpush3.bf16.msra.mxu1 %v2028_v55  ;;  %1865 = vmatprep.subr.bf16.mxu0 %v2029_v62  ;;  %v111_v55 = vld [vmem:[%s2551_s0 + $0x1e0] sm:$0xff]  ;;  %v53_v62 = vld [vmem:[%s2551_s0 + $0x10] sm:$0xff] }
  0x2a   :  { %1929 = vmatprep.subr.bf16.mxu1 %v2031_v0  ;;  %v54_v0 = vld [vmem:[%s2551_s0 + $0x18] sm:$0xff] }
  0x2b   :  { %988 = vmatmul.mubr.bf16.gmra.mrb[4].mxu0 %v1533_v51  ;;  %v2051_v51 = vld [vmem:[%s2550_s1 + $0x1f8] sm:$0xff]  }
  0x2c   :  { %1085 = vmatmul.mubr.bf16.gmra.mrb[4].mxu1 %v1535_v53  ;;  %995 = vmatprep.mubr.bf16.mxu0 %v1542_v60  ;;  %v2052_v53 = vld [vmem:[%s2550_s1 + $0x1b8] sm:$0xff]   ;;  %v1582_v60 = vcombine.high %v107_v54, %v111_v55 }
  0x2d   :  { %1092 = vmatprep.mubr.bf16.mxu1 %v1544_v61  ;;  %1866 = vmatpush3.bf16.msra.mxu0 %v2030_v63  ;;  %v1584_v61 = vcombine.high %v108_v56, %v112_v57  ;;  %v57_v63 = vld [vmem:[%s2551_s0 + $0x30] sm:$0xff]  ;;  %v110_v56 = vld [vmem:[%s2551_s0 + $0x1d8] sm:$0xff] }
  0x2e   :  { %1930 = vmatpush3.bf16.msra.mxu1 %v2032_v1  ;;  %1867 = vmatprep.subr.bf16.mxu0 %v2033_v10  ;;  %v58_v1 = vld [vmem:[%s2551_s0 + $0x38] sm:$0xff]  ;;  %v1530_v4 = vcombine.high %v53_v62, %v57_v63  ;;  %v1529_v10 = vcombine.low %v53_v62, %v57_v63 }
  0x2f   :  { %1931 = vmatprep.subr.bf16.mxu1 %v2035_v12  ;;  %v1532_v5 = vcombine.high %v54_v0, %v58_v1  ;;  %v114_v57 = vld [vmem:[%s2551_s0 + $0x1f8] sm:$0xff] }
  0x30   :  { %v1587_v63 = vcombine.low %v110_v56, %v114_v57 }
  0x31   :  { %1868 = vmatpush3.bf16.msra.mxu0 %v2034_v11  ;;  %v1531_v11 = vcombine.low %v54_v0, %v58_v1 }
  0x32   :  { %1932 = vmatpush3.bf16.msra.mxu1 %v2036_v13  ;;  %1869 = vmatprep.subr.bf16.mxu0 %v2037_v18 }
  0x33   :  { %996 = vmatmul.mubr.bf16.gmra.mrb[8].mxu0 %v1541_v2  ;;  %1933 = vmatprep.subr.bf16.mxu1 %v2039_v23  ;;  %v1581_v2 = vcombine.low %v107_v54, %v111_v55  ;;  %v81_v23 = vld [vmem:[%s2551_s0 + $0xf0] sm:$0xff] }
  0x34   :  { %1093 = vmatmul.mubr.bf16.gmra.mrb[8].mxu1 %v1543_v6  ;;  %1003 = vmatprep.mubr.bf16.mxu0 %v1550_v7  ;;  %v61_v6 = vld [vmem:[%s2551_s0 + $0x50] sm:$0xff] }
  0x35   :  { %1100 = vmatprep.mubr.bf16.mxu1 %v1552_v9  ;;  %1870 = vmatpush3.bf16.msra.mxu0 %v2038_v20  ;;  %v65_v7 = vld [vmem:[%s2551_s0 + $0x70] sm:$0xff]  ;;  %v66_v9 = vld [vmem:[%s2551_s0 + $0x78] sm:$0xff]  ;;  %v1546_v20 = vcombine.high %v69_v14, %v73_v15 }
  0x36   :  { %1934 = vmatpush3.bf16.msra.mxu1 %v2040_v25  ;;  %1871 = vmatprep.subr.bf16.mxu0 %v2041_v28  ;;  %v1538_v12 = vcombine.high %v61_v6, %v65_v7  ;;  %v1540_v13 = vcombine.high %v62_v8, %v66_v9  ;;  %v1537_v18 = vcombine.low %v61_v6, %v65_v7  ;;  %v82_v25 = vld [vmem:[%s2551_s0 + $0xf8] sm:$0xff]  ;;  %v109_v54 = vld [vmem:[%s2551_s0 + $0x1d0] sm:$0xff] }
  0x37   :  { %1935 = vmatprep.subr.bf16.mxu1 %v2043_v32  ;;  %v86_v32 = vld [vmem:[%s2551_s0 + $0x118] sm:$0xff]  ;;  %v113_v55 = vld [vmem:[%s2551_s0 + $0x1f0] sm:$0xff] }
  0x38   :  { %v1585_v62 = vcombine.low %v109_v54, %v113_v55 }
  0x39   :  { %1872 = vmatpush3.bf16.msra.mxu0 %v2042_v31  ;;  %v89_v31 = vld [vmem:[%s2551_s0 + $0x130] sm:$0xff] }
  0x3a   :  { %1936 = vmatpush3.bf16.msra.mxu1 %v2044_v33  ;;  %1873 = vmatprep.subr.bf16.mxu0 %v2045_v38  ;;  %v90_v33 = vld [vmem:[%s2551_s0 + $0x138] sm:$0xff]  ;;  %v93_v38 = vld [vmem:[%s2551_s0 + $0x150] sm:$0xff]  ;;  %v1561_v42 = vcombine.low %v85_v30, %v89_v31 }
  0x3b   :  { %1004 = vmatmul.mubr.bf16.gmra.mrb[12].mxu0 %v1549_v19  ;;  %1937 = vmatprep.subr.bf16.mxu1 %v2047_v40  ;;  %v1539_v19 = vcombine.low %v62_v8, %v66_v9  ;;  %v94_v40 = vld [vmem:[%s2551_s0 + $0x158] sm:$0xff] }
  0x3c   :  { %1101 = vmatmul.mubr.bf16.gmra.mrb[12].mxu1 %v1551_v21  ;;  %1011 = vmatprep.mubr.bf16.mxu0 %v1558_v22  ;;  %v1548_v21 = vcombine.high %v70_v16, %v74_v17  ;;  %v77_v22 = vld [vmem:[%s2551_s0 + $0xd0] sm:$0xff]  ;;  %v1572_v45 = vcombine.high %v94_v40, %v98_v41 }
  0x3d   :  { %1108 = vmatprep.mubr.bf16.mxu1 %v1560_v24  ;;  %1874 = vmatpush3.bf16.msra.mxu0 %v2046_v39  ;;  %v78_v24 = vld [vmem:[%s2551_s0 + $0xd8] sm:$0xff]  ;;  %v1554_v28 = vcombine.high %v77_v22, %v81_v23  ;;  %v97_v39 = vld [vmem:[%s2551_s0 + $0x170] sm:$0xff] }
  0x3e   :  { %1938 = vmatpush3.bf16.msra.mxu1 %v2048_v43  ;;  %1875 = vmatprep.subr.bf16.mxu0 %v2049_v46  ;;  %v1556_v29 = vcombine.high %v78_v24, %v82_v25  ;;  %v1563_v43 = vcombine.low %v86_v32, %v90_v33  ;;  %v1570_v44 = vcombine.high %v93_v38, %v97_v39  ;;  %v101_v46 = vld [vmem:[%s2551_s0 + $0x190] sm:$0xff] }
  0x3f   :  { %1939 = vmatprep.subr.bf16.mxu1 %v2051_v51  ;;  %v1571_v51 = vcombine.low %v94_v40, %v98_v41 }
  0x41   :  { %1876 = vmatpush3.bf16.msra.mxu0 %v2050_v48  ;;  %v102_v48 = vld [vmem:[%s2551_s0 + $0x198] sm:$0xff] }
  0x42   :  { %1940 = vmatpush3.bf16.msra.mxu1 %v2052_v53 }
  0x43   :  { %1012 = vmatmul.mubr.bf16.gmra.mrb[16].mxu0 %v1557_v34  ;;  %v1553_v34 = vcombine.low %v77_v22, %v81_v23 }
  0x44   :  { %1109 = vmatmul.mubr.bf16.gmra.mrb[16].mxu1 %v1559_v35  ;;  %1019 = vmatprep.mubr.bf16.mxu0 %v1566_v36  ;;  %v1555_v35 = vcombine.low %v78_v24, %v82_v25  ;;  %v1562_v36 = vcombine.high %v85_v30, %v89_v31 }
  0x45   :  { %1116 = vmatprep.mubr.bf16.mxu1 %v1568_v37  ;;  %v1564_v37 = vcombine.high %v86_v32, %v90_v33 }
  0x4b   :  { %1020 = vmatmul.mubr.bf16.gmra.mrb[20].mxu0 %v1565_v47  ;;  %v105_v47 = vld [vmem:[%s2551_s0 + $0x1b0] sm:$0xff] }
  0x4c   :  { %1117 = vmatmul.mubr.bf16.gmra.mrb[20].mxu1 %v1567_v49  ;;  %1027 = vmatprep.mubr.bf16.mxu0 %v1574_v50  ;;  %v106_v49 = vld [vmem:[%s2551_s0 + $0x1b8] sm:$0xff]  ;;  %v1569_v50 = vcombine.low %v93_v38, %v97_v39 }
  0x4d   :  { %1124 = vmatprep.mubr.bf16.mxu1 %v1576_v52  ;;  %v1578_v52 = vcombine.high %v101_v46, %v105_v47  ;;  %v1580_v53 = vcombine.high %v102_v48, %v106_v49 }
  0x53   :  { %1028 = vmatmul.mubr.bf16.gmra.mrb[24].mxu0 %v1573_v58  ;;  %v1577_v58 = vcombine.low %v101_v46, %v105_v47 }
  0x54   :  { %1125 = vmatmul.mubr.bf16.gmra.mrb[24].mxu1 %v1575_v59  ;;  %1035 = vmatprep.mubr.bf16.mxu0 %v1582_v60  ;;  %v1579_v59 = vcombine.low %v102_v48, %v106_v49  ;;  %v1586_v60 = vcombine.high %v109_v54, %v113_v55 }
  0x55   :  { %1132 = vmatprep.mubr.bf16.mxu1 %v1584_v61  ;;  %v1588_v61 = vcombine.high %v110_v56, %v114_v57 }
  0x5b   :  { %1036 = vmatmul.mubr.bf16.gmra.mrb[28].mxu0 %v1581_v2 }
  0x5c   :  { %1133 = vmatmul.mubr.bf16.gmra.mrb[28].mxu1 %v1583_v3  ;;  %1173 = vmatprep.mubr.bf16.mxu0 %v1530_v4 }
  0x5d   :  { %1270 = vmatprep.mubr.bf16.mxu1 %v1532_v5 }
  0x63   :  { %1174 = vmatmul.mubr.bf16.vlgmr.msra.gmra.mrb[32].mxu0 %v1529_v10 }
  0x64   :  { %1271 = vmatmul.mubr.bf16.vlgmr.msra.gmra.mrb[32].mxu1 %v1531_v11  ;;  %1181 = vmatprep.mubr.bf16.mxu0 %v1538_v12 }
  0x65   :  { %1278 = vmatprep.mubr.bf16.mxu1 %v1540_v13 }
  0x6b   :  { %1182 = vmatmul.mubr.bf16.gmra.mrb[36].mxu0 %v1537_v18 }
  0x6c   :  { %1279 = vmatmul.mubr.bf16.gmra.mrb[36].mxu1 %v1539_v19  ;;  %1189 = vmatprep.mubr.bf16.mxu0 %v1546_v20 }
  0x6d   :  { %1286 = vmatprep.mubr.bf16.mxu1 %v1548_v21 }
  0x73   :  { %1190 = vmatmul.mubr.bf16.gmra.mrb[40].mxu0 %v1545_v26 }
  0x74   :  { %1287 = vmatmul.mubr.bf16.gmra.mrb[40].mxu1 %v1547_v27  ;;  %1197 = vmatprep.mubr.bf16.mxu0 %v1554_v28 }
  0x75   :  { %1294 = vmatprep.mubr.bf16.mxu1 %v1556_v29 }
  0x7b   :  { %1198 = vmatmul.mubr.bf16.gmra.mrb[44].mxu0 %v1553_v34 }
  0x7c   :  { %1295 = vmatmul.mubr.bf16.gmra.mrb[44].mxu1 %v1555_v35  ;;  %1205 = vmatprep.mubr.bf16.mxu0 %v1562_v36 }
  0x7d   :  { %1302 = vmatprep.mubr.bf16.mxu1 %v1564_v37 }
  0x83   :  { %1206 = vmatmul.mubr.bf16.gmra.mrb[48].mxu0 %v1561_v42 }
  0x84   :  { %1303 = vmatmul.mubr.bf16.gmra.mrb[48].mxu1 %v1563_v43  ;;  %1213 = vmatprep.mubr.bf16.mxu0 %v1570_v44 }
  0x85   :  { %1310 = vmatprep.mubr.bf16.mxu1 %v1572_v45 }
  0x8b   :  { %1214 = vmatmul.mubr.bf16.gmra.mrb[52].mxu0 %v1569_v50 }
  0x8c   :  { %1311 = vmatmul.mubr.bf16.gmra.mrb[52].mxu1 %v1571_v51  ;;  %1221 = vmatprep.mubr.bf16.mxu0 %v1578_v52 }
  0x8d   :  { %1318 = vmatprep.mubr.bf16.mxu1 %v1580_v53 }
  0x93   :  { %1222 = vmatmul.mubr.bf16.gmra.mrb[56].mxu0 %v1577_v58 }
  0x94   :  { %1319 = vmatmul.mubr.bf16.gmra.mrb[56].mxu1 %v1579_v59  ;;  %1229 = vmatprep.mubr.bf16.mxu0 %v1586_v60 }
  0x95   :  { %1326 = vmatprep.mubr.bf16.mxu1 %v1588_v61 }
  0x9b   :  { %1230 = vmatmul.mubr.bf16.gmra.mrb[60].mxu0 %v1585_v62 }
  0x9c   :  { %1327 = vmatmul.mubr.bf16.gmra.mrb[60].mxu1 %v1587_v63 }
  0xf6   :  { %v1749_v0 = vpop.f32.mrb[0].mxu0 }
  0xf7   :  { %v1813_v1 = vpop.f32.mrb[0].mxu1  ;;  %v1750_v2 = vpop.f32.mrb[1].mxu0 }
  0xf8   :  { %v1751_v3 = vadd.f32 %v1750_v2, %v1749_v0  ;;  %v1814_v4 = vpop.f32.mrb[1].mxu1  ;;  %v1752_v5 = vpop.f32.mrb[2].mxu0 }
  0xf9   :  { %v1815_v6 = vadd.f32 %v1814_v4, %v1813_v1  ;;  %v1816_v7 = vpop.f32.mrb[2].mxu1  ;;  %v1753_v8 = vpop.f32.mrb[3].mxu0 }
  0xfa   :  { %v1754_v9 = vadd.f32 %v1753_v8, %v1752_v5  ;;  %v1817_v10 = vpop.f32.mrb[3].mxu1 }
  0xfb   :  { %v2457_v11 = vadd.f32 %v1815_v6, %v1751_v3  ;;  %v1818_v12 = vadd.f32 %v1817_v10, %v1816_v7 }
  0xfd   :  { %v2459_v13 = vadd.f32 %v1818_v12, %v1754_v9 }
  0xfe   :  { %v1755_v14 = vpop.f32.mrb[4].mxu0 }
  0xff   :  { %v1819_v15 = vpop.f32.mrb[4].mxu1  ;;  %v1756_v16 = vpop.f32.mrb[5].mxu0 }
 0x100   :  { %v1757_v17 = vadd.f32 %v1756_v16, %v1755_v14  ;;  %v1820_v18 = vpop.f32.mrb[5].mxu1  ;;  %v1758_v19 = vpop.f32.mrb[6].mxu0 }
 0x101   :  { %v1821_v20 = vadd.f32 %v1820_v18, %v1819_v15  ;;  %v1822_v21 = vpop.f32.mrb[6].mxu1  ;;  %v1759_v22 = vpop.f32.mrb[7].mxu0 }
 0x102   :  { %v1760_v23 = vadd.f32 %v1759_v22, %v1758_v19  ;;  %v1823_v24 = vpop.f32.mrb[7].mxu1 }
 0x103   :  { %v2461_v25 = vadd.f32 %v1821_v20, %v1757_v17  ;;  %v1824_v26 = vadd.f32 %v1823_v24, %v1822_v21 }
 0x105   :  { %v2463_v27 = vadd.f32 %v1824_v26, %v1760_v23 }
 0x106   :  { %v1761_v28 = vpop.f32.mrb[8].mxu0 }
 0x107   :  { %v1825_v29 = vpop.f32.mrb[8].mxu1  ;;  %v1762_v30 = vpop.f32.mrb[9].mxu0 }
 0x108   :  { %v1763_v31 = vadd.f32 %v1762_v30, %v1761_v28  ;;  %v1826_v32 = vpop.f32.mrb[9].mxu1  ;;  %v1764_v33 = vpop.f32.mrb[10].mxu0 }
 0x109   :  { %v1827_v34 = vadd.f32 %v1826_v32, %v1825_v29  ;;  %v1828_v35 = vpop.f32.mrb[10].mxu1  ;;  %v1765_v36 = vpop.f32.mrb[11].mxu0 }
 0x10a   :  { %v1766_v37 = vadd.f32 %v1765_v36, %v1764_v33  ;;  %v1829_v38 = vpop.f32.mrb[11].mxu1 }
 0x10b   :  { %v2465_v39 = vadd.f32 %v1827_v34, %v1763_v31  ;;  %v1830_v40 = vadd.f32 %v1829_v38, %v1828_v35 }
 0x10d   :  { %v2467_v41 = vadd.f32 %v1830_v40, %v1766_v37 }
 0x10e   :  { %v1767_v42 = vpop.f32.mrb[12].mxu0 }
 0x10f   :  { %v1831_v43 = vpop.f32.mrb[12].mxu1  ;;  %v1768_v44 = vpop.f32.mrb[13].mxu0 }
 0x110   :  { %v1769_v45 = vadd.f32 %v1768_v44, %v1767_v42  ;;  %v1832_v46 = vpop.f32.mrb[13].mxu1  ;;  %v1770_v47 = vpop.f32.mrb[14].mxu0 }
 0x111   :  { %v1833_v48 = vadd.f32 %v1832_v46, %v1831_v43  ;;  %v1834_v49 = vpop.f32.mrb[14].mxu1  ;;  %v1771_v50 = vpop.f32.mrb[15].mxu0 }
 0x112   :  { %v1772_v51 = vadd.f32 %v1771_v50, %v1770_v47  ;;  %v1835_v52 = vpop.f32.mrb[15].mxu1 }
 0x113   :  { %v2469_v53 = vadd.f32 %v1833_v48, %v1769_v45  ;;  %v1836_v54 = vadd.f32 %v1835_v52, %v1834_v49 }
 0x115   :  { %v2471_v55 = vadd.f32 %v1836_v54, %v1772_v51 }
 0x116   :  { %v1773_v56 = vpop.f32.mrb[16].mxu0 }
 0x117   :  { %v1837_v57 = vpop.f32.mrb[16].mxu1  ;;  %v1774_v58 = vpop.f32.mrb[17].mxu0 }
 0x118   :  { %v1775_v59 = vadd.f32 %v1774_v58, %v1773_v56  ;;  %v1838_v60 = vpop.f32.mrb[17].mxu1  ;;  %v1776_v61 = vpop.f32.mrb[18].mxu0 }
 0x119   :  { %v1839_v62 = vadd.f32 %v1838_v60, %v1837_v57  ;;  %v1840_v63 = vpop.f32.mrb[18].mxu1  ;;  %v1777_v0 = vpop.f32.mrb[19].mxu0 }
 0x11a   :  { %v1778_v1 = vadd.f32 %v1777_v0, %v1776_v61  ;;  %v1841_v2 = vpop.f32.mrb[19].mxu1 }
 0x11b   :  { %v2473_v3 = vadd.f32 %v1839_v62, %v1775_v59  ;;  %v1842_v4 = vadd.f32 %v1841_v2, %v1840_v63 }
 0x11d   :  { %v2475_v5 = vadd.f32 %v1842_v4, %v1778_v1 }
 0x11e   :  { %v1779_v6 = vpop.f32.mrb[20].mxu0 }
 0x11f   :  { %v1843_v7 = vpop.f32.mrb[20].mxu1  ;;  %v1780_v8 = vpop.f32.mrb[21].mxu0 }
 0x120   :  { %v1781_v9 = vadd.f32 %v1780_v8, %v1779_v6  ;;  %v1844_v10 = vpop.f32.mrb[21].mxu1  ;;  %v1782_v12 = vpop.f32.mrb[22].mxu0  ;;  %v2493_v6 = vld [vmem:[%s2552_s2] ss:$0 sm:$0xff] }
 0x121   :  { %v1845_v14 = vadd.f32 %v1844_v10, %v1843_v7  ;;  %v1846_v15 = vpop.f32.mrb[22].mxu1  ;;  %v1783_v16 = vpop.f32.mrb[23].mxu0 }
 0x122   :  { %v1784_v17 = vadd.f32 %v1783_v16, %v1782_v12  ;;  %v1847_v18 = vpop.f32.mrb[23].mxu1 }
 0x123   :  { %v2477_v19 = vadd.f32 %v1845_v14, %v1781_v9  ;;  %v1848_v20 = vadd.f32 %v1847_v18, %v1846_v15 }
 0x125   :  { %v2479_v21 = vadd.f32 %v1848_v20, %v1784_v17 }
 0x126   :  { %v1785_v22 = vpop.f32.mrb[24].mxu0 }
 0x127   :  { %v1849_v23 = vpop.f32.mrb[24].mxu1  ;;  %v1786_v24 = vpop.f32.mrb[25].mxu0 }
 0x128   :  { %v1787_v26 = vadd.f32 %v1786_v24, %v1785_v22  ;;  %v1850_v28 = vpop.f32.mrb[25].mxu1  ;;  %v1788_v29 = vpop.f32.mrb[26].mxu0 }
 0x129   :  { %v1851_v30 = vadd.f32 %v1850_v28, %v1849_v23  ;;  %v1852_v31 = vpop.f32.mrb[26].mxu1  ;;  %v1789_v32 = vpop.f32.mrb[27].mxu0 }
 0x12a   :  { %v1790_v33 = vadd.f32 %v1789_v32, %v1788_v29  ;;  %v1853_v34 = vpop.f32.mrb[27].mxu1 }
 0x12b   :  { %v2481_v35 = vadd.f32 %v1851_v30, %v1787_v26  ;;  %v1854_v36 = vadd.f32 %v1853_v34, %v1852_v31 }
 0x12d   :  { %v2483_v37 = vadd.f32 %v1854_v36, %v1790_v33 }
 0x12e   :  { %v1791_v38 = vpop.f32.mrb[28].mxu0 }
 0x12f   :  { %v1855_v40 = vpop.f32.mrb[28].mxu1  ;;  %v1792_v42 = vpop.f32.mrb[29].mxu0 }
 0x130   :  { %v1793_v43 = vadd.f32 %v1792_v42, %v1791_v38  ;;  %v1856_v44 = vpop.f32.mrb[29].mxu1  ;;  %v1794_v45 = vpop.f32.mrb[30].mxu0 }
 0x131   :  { %v1857_v46 = vadd.f32 %v1856_v44, %v1855_v40  ;;  %v1858_v47 = vpop.f32.mrb[30].mxu1  ;;  %v1795_v48 = vpop.f32.mrb[31].mxu0 }
 0x132   :  { %v1796_v49 = vadd.f32 %v1795_v48, %v1794_v45  ;;  %v1859_v50 = vpop.f32.mrb[31].mxu1 }
 0x133   :  { %v2485_v51 = vadd.f32 %v1857_v46, %v1793_v43  ;;  %v1860_v52 = vadd.f32 %v1859_v50, %v1858_v47 }
 0x135   :  { %v2487_v54 = vadd.f32 %v1860_v52, %v1796_v49 }
 0x136   :  { %v1877_v56 = vpop.f32.mrb[32].mxu0 }
 0x137   :  { %v1941_v57 = vpop.f32.mrb[32].mxu1  ;;  %v1878_v58 = vpop.f32.mrb[33].mxu0 }
 0x138   :  { %v1879_v59 = vadd.f32 %v1878_v58, %v1877_v56  ;;  %v1942_v60 = vpop.f32.mrb[33].mxu1  ;;  %v1880_v61 = vpop.f32.mrb[34].mxu0 }
 0x139   :  { %v1943_v62 = vadd.f32 %v1942_v60, %v1941_v57  ;;  %v1944_v63 = vpop.f32.mrb[34].mxu1  ;;  %v1881_v0 = vpop.f32.mrb[35].mxu0 }
 0x13a   :  { %v1176_v1 = vadd.f32 %v1879_v59, %v2457_v11  ;;  %v1882_v2 = vadd.f32 %v1881_v0, %v1880_v61  ;;  %v1945_v4 = vpop.f32.mrb[35].mxu1 }
 0x13b   :  { %v1946_v7 = vadd.f32 %v1945_v4, %v1944_v63 }
 0x13c   :  { %v1273_v8 = vadd.f32 %v1943_v62, %v1176_v1  ;;  %v1179_v9 = vadd.f32 %v1882_v2, %v2459_v13 }
 0x13e   :  { %v1393_v10 = vadd.f32 %v2493_v6, %v1273_v8  ;;  %v1276_v12 = vadd.f32 %v1946_v7, %v1179_v9  ;;  %v1883_v14 = vpop.f32.mrb[36].mxu0 }
 0x13f   :  { %v1947_v15 = vpop.f32.mrb[36].mxu1  ;;  %v1884_v16 = vpop.f32.mrb[37].mxu0 }
 0x140   :  { %v1409_v17 = vmul.f32 0.2, %v1393_v10  ;;  %v1394_v11 = vadd.f32 %v2493_v6, %v1276_v12  ;;  %v1885_v18 = vadd.f32 %v1884_v16, %v1883_v14  ;;  %v1948_v20 = vpop.f32.mrb[37].mxu1  ;;  %v1886_v22 = vpop.f32.mrb[38].mxu0 }
 0x141   :  { %v1949_v23 = vadd.f32 %v1948_v20, %v1947_v15  ;;  %v1950_v24 = vpop.f32.mrb[38].mxu1  ;;  %v1887_v26 = vpop.f32.mrb[39].mxu0 }
 0x142   :  { %v1410_v28 = vmul.f32 0.2, %v1394_v11  ;;  %v1184_v29 = vadd.f32 %v1885_v18, %v2461_v25  ;;  %v1888_v30 = vadd.f32 %v1887_v26, %v1886_v22  ;;  %v1951_v13 = vpop.f32.mrb[39].mxu1  ;;  %v1425_v32 = vmax.f32 %v1393_v10, %v1409_v17 }
 0x143   :  { %v1952_v31 = vadd.f32 %v1951_v13, %v1950_v24 }
 0x144   :  { %v1426_v33 = vmax.f32 %v1394_v11, %v1410_v28  ;;  %v1281_v34 = vadd.f32 %v1949_v23, %v1184_v29  ;;  %v1187_v36 = vadd.f32 %v1888_v30, %v2463_v27 }
 0x146   :  { %v1689_v38 = vpack.c.bf16 %v1426_v33, %v1425_v32  ;;  %v1395_v40 = vadd.f32 %v2493_v6, %v1281_v34  ;;  %v1284_v42 = vadd.f32 %v1952_v31, %v1187_v36  ;;  %v1889_v43 = vpop.f32.mrb[40].mxu0 }
 0x147   :  { %v1953_v44 = vpop.f32.mrb[40].mxu1  ;;  %v1890_v45 = vpop.f32.mrb[41].mxu0 }
 0x148   :  { %1690 = vst [vmem:[%s2553_s3] sm:$0xff] %v1689_v38   ;;  %v1411_v25 = vmul.f32 0.2, %v1395_v40  ;;  %v1396_v46 = vadd.f32 %v2493_v6, %v1284_v42  ;;  %v1891_v47 = vadd.f32 %v1890_v45, %v1889_v43  ;;  %v1954_v48 = vpop.f32.mrb[41].mxu1  ;;  %v1892_v49 = vpop.f32.mrb[42].mxu0 }
 0x149   :  { %v1955_v50 = vadd.f32 %v1954_v48, %v1953_v44  ;;  %v1956_v52 = vpop.f32.mrb[42].mxu1  ;;  %v1893_v27 = vpop.f32.mrb[43].mxu0 }
 0x14a   :  { %v1412_v56 = vmul.f32 0.2, %v1396_v46  ;;  %v1192_v57 = vadd.f32 %v1891_v47, %v2465_v39  ;;  %v1894_v58 = vadd.f32 %v1893_v27, %v1892_v49  ;;  %v1957_v59 = vpop.f32.mrb[43].mxu1  ;;  %v1427_v61 = vmax.f32 %v1395_v40, %v1411_v25 }
 0x14b   :  { %v1958_v60 = vadd.f32 %v1957_v59, %v1956_v52 }
 0x14c   :  { %v1428_v62 = vmax.f32 %v1396_v46, %v1412_v56  ;;  %v1289_v63 = vadd.f32 %v1955_v50, %v1192_v57  ;;  %v1195_v0 = vadd.f32 %v1894_v58, %v2467_v41 }
 0x14e   :  { %v1694_v1 = vpack.c.bf16 %v1428_v62, %v1427_v61  ;;  %v1397_v2 = vadd.f32 %v2493_v6, %v1289_v63  ;;  %v1292_v4 = vadd.f32 %v1958_v60, %v1195_v0  ;;  %v1895_v7 = vpop.f32.mrb[44].mxu0 }
 0x14f   :  { %v1959_v8 = vpop.f32.mrb[44].mxu1  ;;  %v1896_v9 = vpop.f32.mrb[45].mxu0 }
 0x150   :  { %1726 = vst [vmem:[%s2553_s3 + $0x8] sm:$0xff] %v1694_v1   ;;  %v1413_v39 = vmul.f32 0.2, %v1397_v2  ;;  %v1398_v10 = vadd.f32 %v2493_v6, %v1292_v4  ;;  %v1897_v12 = vadd.f32 %v1896_v9, %v1895_v7  ;;  %v1960_v14 = vpop.f32.mrb[45].mxu1  ;;  %v1898_v15 = vpop.f32.mrb[46].mxu0 }
 0x151   :  { %v1961_v16 = vadd.f32 %v1960_v14, %v1959_v8  ;;  %v1962_v17 = vpop.f32.mrb[46].mxu1  ;;  %v1899_v41 = vpop.f32.mrb[47].mxu0 }
 0x152   :  { %v1414_v11 = vmul.f32 0.2, %v1398_v10  ;;  %v1200_v18 = vadd.f32 %v1897_v12, %v2469_v53  ;;  %v1900_v20 = vadd.f32 %v1899_v41, %v1898_v15  ;;  %v1963_v22 = vpop.f32.mrb[47].mxu1  ;;  %v1429_v24 = vmax.f32 %v1397_v2, %v1413_v39 }
 0x153   :  { %v1964_v23 = vadd.f32 %v1963_v22, %v1962_v17 }
 0x154   :  { %v1430_v26 = vmax.f32 %v1398_v10, %v1414_v11  ;;  %v1297_v28 = vadd.f32 %v1961_v16, %v1200_v18  ;;  %v1203_v29 = vadd.f32 %v1900_v20, %v2471_v55 }
 0x156   :  { %v1699_v30 = vpack.c.bf16 %v1430_v26, %v1429_v24  ;;  %v1399_v13 = vadd.f32 %v2493_v6, %v1297_v28  ;;  %v1300_v31 = vadd.f32 %v1964_v23, %v1203_v29  ;;  %v1901_v32 = vpop.f32.mrb[48].mxu0 }
 0x157   :  { %v1965_v33 = vpop.f32.mrb[48].mxu1  ;;  %v1902_v34 = vpop.f32.mrb[49].mxu0 }
 0x158   :  { %1727 = vst [vmem:[%s2553_s3 + $0x10] sm:$0xff] %v1699_v30   ;;  %v1415_v53 = vmul.f32 0.2, %v1399_v13  ;;  %v1400_v36 = vadd.f32 %v2493_v6, %v1300_v31  ;;  %v1903_v38 = vadd.f32 %v1902_v34, %v1901_v32  ;;  %v1966_v40 = vpop.f32.mrb[49].mxu1  ;;  %v1904_v42 = vpop.f32.mrb[50].mxu0 }
 0x159   :  { %v1967_v43 = vadd.f32 %v1966_v40, %v1965_v33  ;;  %v1968_v44 = vpop.f32.mrb[50].mxu1  ;;  %v1905_v55 = vpop.f32.mrb[51].mxu0 }
 0x15a   :  { %v1416_v45 = vmul.f32 0.2, %v1400_v36  ;;  %v1208_v25 = vadd.f32 %v1903_v38, %v2473_v3  ;;  %v1906_v46 = vadd.f32 %v1905_v55, %v1904_v42  ;;  %v1969_v47 = vpop.f32.mrb[51].mxu1  ;;  %v1431_v49 = vmax.f32 %v1399_v13, %v1415_v53 }
 0x15b   :  { %v1970_v48 = vadd.f32 %v1969_v47, %v1968_v44 }
 0x15c   :  { %v1432_v50 = vmax.f32 %v1400_v36, %v1416_v45  ;;  %v1305_v52 = vadd.f32 %v1967_v43, %v1208_v25  ;;  %v1211_v27 = vadd.f32 %v1906_v46, %v2475_v5 }
 0x15e   :  { %v1704_v56 = vpack.c.bf16 %v1432_v50, %v1431_v49  ;;  %v1401_v57 = vadd.f32 %v2493_v6, %v1305_v52  ;;  %v1308_v58 = vadd.f32 %v1970_v48, %v1211_v27  ;;  %v1907_v59 = vpop.f32.mrb[52].mxu0 }
 0x15f   :  { %v1971_v60 = vpop.f32.mrb[52].mxu1  ;;  %v1908_v61 = vpop.f32.mrb[53].mxu0 }
 0x160   :  { %1728 = vst [vmem:[%s2553_s3 + $0x18] sm:$0xff] %v1704_v56   ;;  %v1417_v3 = vmul.f32 0.2, %v1401_v57  ;;  %v1402_v62 = vadd.f32 %v2493_v6, %v1308_v58  ;;  %v1909_v63 = vadd.f32 %v1908_v61, %v1907_v59  ;;  %v1972_v0 = vpop.f32.mrb[53].mxu1  ;;  %v1910_v1 = vpop.f32.mrb[54].mxu0 }
 0x161   :  { %v1973_v2 = vadd.f32 %v1972_v0, %v1971_v60  ;;  %v1974_v4 = vpop.f32.mrb[54].mxu1  ;;  %v1911_v5 = vpop.f32.mrb[55].mxu0 }
 0x162   :  { %v1418_v7 = vmul.f32 0.2, %v1402_v62  ;;  %v1216_v8 = vadd.f32 %v1909_v63, %v2477_v19  ;;  %v1912_v9 = vadd.f32 %v1911_v5, %v1910_v1  ;;  %v1975_v39 = vpop.f32.mrb[55].mxu1  ;;  %v1433_v12 = vmax.f32 %v1401_v57, %v1417_v3 }
 0x163   :  { %v1976_v10 = vadd.f32 %v1975_v39, %v1974_v4 }
 0x164   :  { %v1434_v14 = vmax.f32 %v1402_v62, %v1418_v7  ;;  %v1313_v15 = vadd.f32 %v1973_v2, %v1216_v8  ;;  %v1219_v16 = vadd.f32 %v1912_v9, %v2479_v21 }
 0x166   :  { %v1709_v17 = vpack.c.bf16 %v1434_v14, %v1433_v12  ;;  %v1403_v41 = vadd.f32 %v2493_v6, %v1313_v15  ;;  %v1316_v11 = vadd.f32 %v1976_v10, %v1219_v16  ;;  %v1913_v18 = vpop.f32.mrb[56].mxu0 }
 0x167   :  { %v1977_v20 = vpop.f32.mrb[56].mxu1  ;;  %v1914_v22 = vpop.f32.mrb[57].mxu0 }
 0x168   :  { %1729 = vst [vmem:[%s2553_s3 + $0x20] sm:$0xff] %v1709_v17   ;;  %v1419_v19 = vmul.f32 0.2, %v1403_v41  ;;  %v1404_v23 = vadd.f32 %v2493_v6, %v1316_v11  ;;  %v1915_v24 = vadd.f32 %v1914_v22, %v1913_v18  ;;  %v1978_v26 = vpop.f32.mrb[57].mxu1  ;;  %v1916_v28 = vpop.f32.mrb[58].mxu0 }
 0x169   :  { %v1979_v29 = vadd.f32 %v1978_v26, %v1977_v20  ;;  %v1980_v30 = vpop.f32.mrb[58].mxu1  ;;  %v1917_v21 = vpop.f32.mrb[59].mxu0 }
 0x16a   :  { %v1420_v13 = vmul.f32 0.2, %v1404_v23  ;;  %v1224_v31 = vadd.f32 %v1915_v24, %v2481_v35  ;;  %v1918_v32 = vadd.f32 %v1917_v21, %v1916_v28  ;;  %v1981_v33 = vpop.f32.mrb[59].mxu1  ;;  %v1435_v53 = vmax.f32 %v1403_v41, %v1419_v19 }
 0x16b   :  { %v1982_v34 = vadd.f32 %v1981_v33, %v1980_v30 }
 0x16c   :  { %v1436_v36 = vmax.f32 %v1404_v23, %v1420_v13  ;;  %v1321_v38 = vadd.f32 %v1979_v29, %v1224_v31  ;;  %v1227_v40 = vadd.f32 %v1918_v32, %v2483_v37 }
 0x16e   :  { %v1714_v42 = vpack.c.bf16 %v1436_v36, %v1435_v53  ;;  %v1405_v43 = vadd.f32 %v2493_v6, %v1321_v38  ;;  %v1324_v44 = vadd.f32 %v1982_v34, %v1227_v40  ;;  %v1919_v55 = vpop.f32.mrb[60].mxu0 }
 0x16f   :  { %v1983_v45 = vpop.f32.mrb[60].mxu1  ;;  %v1920_v25 = vpop.f32.mrb[61].mxu0 }
 0x170   :  { %1730 = vst [vmem:[%s2553_s3 + $0x28] sm:$0xff] %v1714_v42   ;;  %v1421_v35 = vmul.f32 0.2, %v1405_v43  ;;  %v1406_v46 = vadd.f32 %v2493_v6, %v1324_v44  ;;  %v1921_v47 = vadd.f32 %v1920_v25, %v1919_v55  ;;  %v1984_v48 = vpop.f32.mrb[61].mxu1  ;;  %v1922_v49 = vpop.f32.mrb[62].mxu0 }
 0x171   :  { %v1985_v50 = vadd.f32 %v1984_v48, %v1983_v45  ;;  %v1986_v52 = vpop.f32.mrb[62].mxu1  ;;  %v1923_v37 = vpop.f32.mrb[63].mxu0 }
 0x172   :  { %v1422_v27 = vmul.f32 0.2, %v1406_v46  ;;  %v1232_v56 = vadd.f32 %v1921_v47, %v2485_v51  ;;  %v1924_v57 = vadd.f32 %v1923_v37, %v1922_v49  ;;  %v1987_v58 = vpop.f32.mrb[63].mxu1  ;;  %v1437_v60 = vmax.f32 %v1405_v43, %v1421_v35 }
 0x173   :  { %v1988_v59 = vadd.f32 %v1987_v58, %v1986_v52 }
 0x174   :  { %v1438_v61 = vmax.f32 %v1406_v46, %v1422_v27  ;;  %v1329_v3 = vadd.f32 %v1985_v50, %v1232_v56  ;;  %v1235_v62 = vadd.f32 %v1924_v57, %v2487_v54 }
 0x176   :  { %v1719_v63 = vpack.c.bf16 %v1438_v61, %v1437_v60  ;;  %v1407_v0 = vadd.f32 %v2493_v6, %v1329_v3  ;;  %v1332_v1 = vadd.f32 %v1988_v59, %v1235_v62 }
 0x178   :  { %1731 = vst [vmem:[%s2553_s3 + $0x30] sm:$0xff] %v1719_v63   ;;  %v1423_v2 = vmul.f32 0.2, %v1407_v0  ;;  %v1408_v4 = vadd.f32 %v2493_v6, %v1332_v1 }
 0x17a   :  { %v1424_v51 = vmul.f32 0.2, %v1408_v4  ;;  %v1439_v5 = vmax.f32 %v1407_v0, %v1423_v2 }
 0x17c   :  { %v1440_v7 = vmax.f32 %v1408_v4, %v1424_v51 }
 0x17e   :  { %v1724_v8 = vpack.c.bf16 %v1440_v7, %v1439_v5 }
 0x180   :  { %1732 = vst [vmem:[%s2553_s3 + $0x38] sm:$0xff] %v1724_v8  }

// kernel: _lambda_.8
= control target key start
LH: loop header
LB: loop body
LE: loop exit
PB: predicated region body
PF: predicated region fallthrough
CT: control target
= control target key end

     0   :  { %s3309_s1 = inlined_call_operand.vmem [shape: bf16[2048,128], index: 1, kind: input, shape index: {}]   ;;  %s3310_s0 = inlined_call_operand.vmem [shape: bf16[56,2048], index: 0, kind: input, shape index: {}]   ;;  %s3311_s2 = inlined_call_operand.vmem [shape: f32[1,128], index: 2, kind: input, shape index: {}]   ;;  %s3312_s3 = inlined_call_operand.vmem [shape: bf16[56,128], index: 3, kind: output, shape index: {}]  }
   0x1   :  { %v2557_v0 = vld [vmem:[%s3309_s1 + $0x40] sm:$0xff]   ;;  %v2561_v4 = vld [vmem:[%s3309_s1 + $0x48] sm:$0xff]   ;;  %v2565_v8 = vld [vmem:[%s3309_s1 + $0x50] sm:$0xff]  }
   0x2   :  { %v2558_v1 = vld [vmem:[%s3309_s1 + $0xc0] sm:$0xff]   ;;  %2237 = vmatprep.subr.bf16.mxu0 %v2557_v0  ;;  %v2562_v5 = vld [vmem:[%s3309_s1 + $0xc8] sm:$0xff]   ;;  %v2566_v9 = vld [vmem:[%s3309_s1 + $0xd0] sm:$0xff]  }
   0x3   :  { %v2559_v2 = vld [vmem:[%s3309_s1] sm:$0xff]   ;;  %2277 = vmatprep.subr.bf16.mxu1 %v2558_v1  ;;  %v2563_v6 = vld [vmem:[%s3309_s1 + $0x8] sm:$0xff]   ;;  %v2567_v10 = vld [vmem:[%s3309_s1 + $0x10] sm:$0xff]  }
   0x4   :  { %v2560_v3 = vld [vmem:[%s3309_s1 + $0x80] sm:$0xff]   ;;  %2238 = vmatpush3.bf16.msra.mxu0 %v2559_v2  ;;  %v2564_v7 = vld [vmem:[%s3309_s1 + $0x88] sm:$0xff]   ;;  %v2568_v11 = vld [vmem:[%s3309_s1 + $0x90] sm:$0xff]  }
   0x5   :  { %2278 = vmatpush3.bf16.msra.mxu1 %v2560_v3  ;;  %2239 = vmatprep.subr.bf16.mxu0 %v2561_v4  ;;  %v2569_v12 = vld [vmem:[%s3309_s1 + $0x58] sm:$0xff]   ;;  %v2573_v16 = vld [vmem:[%s3309_s1 + $0x60] sm:$0xff]   ;;  %v2577_v20 = vld [vmem:[%s3309_s1 + $0x68] sm:$0xff]  }
   0x6   :  { %2279 = vmatprep.subr.bf16.mxu1 %v2562_v5  ;;  %v2570_v13 = vld [vmem:[%s3309_s1 + $0xd8] sm:$0xff]   ;;  %v2574_v17 = vld [vmem:[%s3309_s1 + $0xe0] sm:$0xff]   ;;  %v2578_v21 = vld [vmem:[%s3309_s1 + $0xe8] sm:$0xff]  }
   0x7   :  { %v2571_v14 = vld [vmem:[%s3309_s1 + $0x18] sm:$0xff]   ;;  %v2575_v18 = vld [vmem:[%s3309_s1 + $0x20] sm:$0xff]   ;;  %v2579_v22 = vld [vmem:[%s3309_s1 + $0x28] sm:$0xff]  }
   0x8   :  { %2240 = vmatpush3.bf16.msra.mxu0 %v2563_v6  ;;  %v2572_v15 = vld [vmem:[%s3309_s1 + $0x98] sm:$0xff]   ;;  %v2576_v19 = vld [vmem:[%s3309_s1 + $0xa0] sm:$0xff]   ;;  %v2580_v23 = vld [vmem:[%s3309_s1 + $0xa8] sm:$0xff]  }
   0x9   :  { %2280 = vmatpush3.bf16.msra.mxu1 %v2564_v7  ;;  %2241 = vmatprep.subr.bf16.mxu0 %v2565_v8  ;;  %v2581_v24 = vld [vmem:[%s3309_s1 + $0x70] sm:$0xff]   ;;  %v2585_v28 = vld [vmem:[%s3309_s1 + $0x78] sm:$0xff]   ;;  %v33_v32 = vld [vmem:[%s3310_s0] sm:$0xff] }
   0xa   :  { %2281 = vmatprep.subr.bf16.mxu1 %v2566_v9  ;;  %v2582_v25 = vld [vmem:[%s3309_s1 + $0xf0] sm:$0xff]   ;;  %v2586_v29 = vld [vmem:[%s3309_s1 + $0xf8] sm:$0xff]   ;;  %v41_v33 = vld [vmem:[%s3310_s0 + $0x40] sm:$0xff] }
   0xb   :  { %v2583_v26 = vld [vmem:[%s3309_s1 + $0x30] sm:$0xff]   ;;  %v2587_v30 = vld [vmem:[%s3309_s1 + $0x38] sm:$0xff]   ;;  %v34_v34 = vld [vmem:[%s3310_s0 + $0x8] sm:$0xff]  ;;  %v2013_v35 = vcombine.low %v33_v32, %v41_v33  ;;  %v2014_v36 = vcombine.high %v33_v32, %v41_v33 }
   0xc   :  { %2242 = vmatpush3.bf16.msra.mxu0 %v2567_v10  ;;  %v2584_v27 = vld [vmem:[%s3309_s1 + $0xb0] sm:$0xff]   ;;  %v2588_v31 = vld [vmem:[%s3309_s1 + $0xb8] sm:$0xff]   ;;  %v42_v37 = vld [vmem:[%s3310_s0 + $0x48] sm:$0xff] }
   0xd   :  { %2282 = vmatpush3.bf16.msra.mxu1 %v2568_v11  ;;  %2243 = vmatprep.subr.bf16.mxu0 %v2569_v12  ;;  %v2015_v38 = vcombine.low %v34_v34, %v42_v37  ;;  %v2016_v39 = vcombine.high %v34_v34, %v42_v37  ;;  %v2589_v40 = vld [vmem:[%s3309_s1 + $0x140] sm:$0xff]   ;;  %v2593_v44 = vld [vmem:[%s3309_s1 + $0x148] sm:$0xff]   ;;  %v2597_v56 = vld [vmem:[%s3309_s1 + $0x150] sm:$0xff]  }
   0xe   :  { %2283 = vmatprep.subr.bf16.mxu1 %v2570_v13  ;;  %1441 = vmatprep.mubr.bf16.mxu0 %v2014_v36  ;;  %v2590_v41 = vld [vmem:[%s3309_s1 + $0x1c0] sm:$0xff]   ;;  %v2594_v45 = vld [vmem:[%s3309_s1 + $0x1c8] sm:$0xff]   ;;  %v2598_v57 = vld [vmem:[%s3309_s1 + $0x1d0] sm:$0xff]  }
   0xf   :  { %1505 = vmatprep.mubr.bf16.mxu1 %v2016_v39  ;;  %v2591_v42 = vld [vmem:[%s3309_s1 + $0x100] sm:$0xff]   ;;  %v2595_v46 = vld [vmem:[%s3309_s1 + $0x108] sm:$0xff]   ;;  %v2599_v58 = vld [vmem:[%s3309_s1 + $0x110] sm:$0xff]  }
  0x10   :  { %2244 = vmatpush3.bf16.msra.mxu0 %v2571_v14  ;;  %v2592_v43 = vld [vmem:[%s3309_s1 + $0x180] sm:$0xff]   ;;  %v2596_v47 = vld [vmem:[%s3309_s1 + $0x188] sm:$0xff]   ;;  %v2600_v59 = vld [vmem:[%s3309_s1 + $0x190] sm:$0xff]  }
  0x11   :  { %2284 = vmatpush3.bf16.msra.mxu1 %v2572_v15  ;;  %2245 = vmatprep.subr.bf16.mxu0 %v2573_v16  ;;  %v49_v48 = vld [vmem:[%s3310_s0 + $0x80] sm:$0xff]  ;;  %v50_v51 = vld [vmem:[%s3310_s0 + $0x88] sm:$0xff]  ;;  %v2601_v60 = vld [vmem:[%s3309_s1 + $0x158] sm:$0xff]  }
  0x12   :  { %2285 = vmatprep.subr.bf16.mxu1 %v2574_v17  ;;  %v57_v49 = vld [vmem:[%s3310_s0 + $0xc0] sm:$0xff]  ;;  %v58_v52 = vld [vmem:[%s3310_s0 + $0xc8] sm:$0xff]  ;;  %v2602_v61 = vld [vmem:[%s3309_s1 + $0x1d8] sm:$0xff]  }
  0x13   :  { %v2030_v50 = vcombine.high %v49_v48, %v57_v49  ;;  %v2029_v53 = vcombine.low %v49_v48, %v57_v49  ;;  %v2032_v54 = vcombine.high %v50_v51, %v58_v52  ;;  %v2031_v55 = vcombine.low %v50_v51, %v58_v52  ;;  %v2603_v62 = vld [vmem:[%s3309_s1 + $0x118] sm:$0xff]   ;;  %v65_v0 = vld [vmem:[%s3310_s0 + $0x100] sm:$0xff]  ;;  %v66_v2 = vld [vmem:[%s3310_s0 + $0x108] sm:$0xff] }
  0x14   :  { %2246 = vmatpush3.bf16.msra.mxu0 %v2575_v18  ;;  %v2604_v63 = vld [vmem:[%s3309_s1 + $0x198] sm:$0xff]   ;;  %v73_v1 = vld [vmem:[%s3310_s0 + $0x140] sm:$0xff]  ;;  %v74_v3 = vld [vmem:[%s3310_s0 + $0x148] sm:$0xff] }
  0x15   :  { %2286 = vmatpush3.bf16.msra.mxu1 %v2576_v19  ;;  %2247 = vmatprep.subr.bf16.mxu0 %v2577_v20  ;;  %v2046_v4 = vcombine.high %v65_v0, %v73_v1  ;;  %v2048_v5 = vcombine.high %v66_v2, %v74_v3  ;;  %v2045_v6 = vcombine.low %v65_v0, %v73_v1  ;;  %v2605_v8 = vld [vmem:[%s3309_s1 + $0x160] sm:$0xff]   ;;  %v2609_v12 = vld [vmem:[%s3309_s1 + $0x168] sm:$0xff]   ;;  %v36_v32 = vld [vmem:[%s3310_s0 + $0x18] sm:$0xff] }
  0x16   :  { %2287 = vmatprep.subr.bf16.mxu1 %v2578_v21  ;;  %v2047_v7 = vcombine.low %v66_v2, %v74_v3  ;;  %v2606_v9 = vld [vmem:[%s3309_s1 + $0x1e0] sm:$0xff]   ;;  %v2610_v13 = vld [vmem:[%s3309_s1 + $0x1e8] sm:$0xff]   ;;  %v2617_v21 = vld [vmem:[%s3309_s1 + $0x170] sm:$0xff]  }
  0x17   :  { %v2607_v10 = vld [vmem:[%s3309_s1 + $0x120] sm:$0xff]   ;;  %v2611_v14 = vld [vmem:[%s3309_s1 + $0x128] sm:$0xff]   ;;  %v44_v33 = vld [vmem:[%s3310_s0 + $0x58] sm:$0xff] }
  0x18   :  { %2248 = vmatpush3.bf16.msra.mxu0 %v2579_v22  ;;  %v2608_v11 = vld [vmem:[%s3309_s1 + $0x1a0] sm:$0xff]   ;;  %v2612_v15 = vld [vmem:[%s3309_s1 + $0x1a8] sm:$0xff]   ;;  %v2019_v36 = vcombine.low %v36_v32, %v44_v33  ;;  %v52_v48 = vld [vmem:[%s3310_s0 + $0x98] sm:$0xff] }
  0x19   :  { %2288 = vmatpush3.bf16.msra.mxu1 %v2580_v23  ;;  %2249 = vmatprep.subr.bf16.mxu0 %v2581_v24  ;;  %v81_v16 = vld [vmem:[%s3310_s0 + $0x180] sm:$0xff]  ;;  %v82_v17 = vld [vmem:[%s3310_s0 + $0x188] sm:$0xff]  ;;  %v2618_v23 = vld [vmem:[%s3309_s1 + $0x1f0] sm:$0xff]  }
  0x1a   :  { %2289 = vmatprep.subr.bf16.mxu1 %v2582_v25  ;;  %v2062_v18 = vcombine.high %v81_v16, %v81_v16  ;;  %v2064_v19 = vcombine.high %v82_v17, %v82_v17  ;;  %v2061_v20 = vcombine.low %v81_v16, %v81_v16  ;;  %v2063_v22 = vcombine.low %v82_v17, %v82_v17  ;;  %v2619_v24 = vld [vmem:[%s3309_s1 + $0x130] sm:$0xff]   ;;  %v2625_v37 = vld [vmem:[%s3309_s1 + $0x240] sm:$0xff]   ;;  %v68_v1 = vld [vmem:[%s3310_s0 + $0x118] sm:$0xff] }
  0x1b   :  { %v2620_v25 = vld [vmem:[%s3309_s1 + $0x1b0] sm:$0xff]   ;;  %v2626_v39 = vld [vmem:[%s3309_s1 + $0x2c0] sm:$0xff]   ;;  %v76_v2 = vld [vmem:[%s3310_s0 + $0x158] sm:$0xff] }
  0x1c   :  { %2250 = vmatpush3.bf16.msra.mxu0 %v2583_v26  ;;  %v2621_v26 = vld [vmem:[%s3309_s1 + $0x178] sm:$0xff]  }
  0x1d   :  { %2290 = vmatpush3.bf16.msra.mxu1 %v2584_v27  ;;  %2251 = vmatprep.subr.bf16.mxu0 %v2585_v28  ;;  %v2622_v27 = vld [vmem:[%s3309_s1 + $0x1f8] sm:$0xff]  }
  0x1e   :  { %2291 = vmatprep.subr.bf16.mxu1 %v2586_v29  ;;  %v2623_v28 = vld [vmem:[%s3309_s1 + $0x138] sm:$0xff]  }
  0x1f   :  { %v2624_v29 = vld [vmem:[%s3309_s1 + $0x1b8] sm:$0xff]  }
  0x20   :  { %2252 = vmatpush3.bf16.msra.mxu0 %v2587_v30  ;;  %v35_v30 = vld [vmem:[%s3310_s0 + $0x10] sm:$0xff]  ;;  %v84_v16 = vld [vmem:[%s3310_s0 + $0x198] sm:$0xff] }
  0x21   :  { %2292 = vmatpush3.bf16.msra.mxu1 %v2588_v31  ;;  %2317 = vmatprep.subr.bf16.mxu0 %v2589_v40  ;;  %v43_v31 = vld [vmem:[%s3310_s0 + $0x50] sm:$0xff]  ;;  %v2627_v40 = vld [vmem:[%s3309_s1 + $0x200] sm:$0xff]  }
  0x22   :  { %2357 = vmatprep.subr.bf16.mxu1 %v2590_v41  ;;  %v2017_v34 = vcombine.low %v35_v30, %v43_v31  ;;  %v2628_v41 = vld [vmem:[%s3309_s1 + $0x280] sm:$0xff]  }
  0x23   :  { %1442 = vmatmul.mubr.bf16.vlgmr.msra.gmra.mrb[0].mxu0 %v2013_v35  ;;  %v2018_v35 = vcombine.high %v35_v30, %v43_v31 }
  0x24   :  { %1506 = vmatmul.mubr.bf16.vlgmr.msra.gmra.mrb[0].mxu1 %v2015_v38  ;;  %2318 = vmatpush3.bf16.msra.mxu0 %v2591_v42  ;;  %v2020_v38 = vcombine.high %v36_v32, %v44_v33  ;;  %v2629_v42 = vld [vmem:[%s3309_s1 + $0x248] sm:$0xff]  }
  0x25   :  { %2358 = vmatpush3.bf16.msra.mxu1 %v2592_v43  ;;  %2319 = vmatprep.subr.bf16.mxu0 %v2593_v44  ;;  %v2630_v43 = vld [vmem:[%s3309_s1 + $0x2c8] sm:$0xff]  }
  0x26   :  { %2359 = vmatprep.subr.bf16.mxu1 %v2594_v45  ;;  %1449 = vmatprep.mubr.bf16.mxu0 %v2030_v50  ;;  %v2631_v44 = vld [vmem:[%s3309_s1 + $0x208] sm:$0xff]   ;;  %v60_v50 = vld [vmem:[%s3310_s0 + $0xd8] sm:$0xff] }
  0x27   :  { %1513 = vmatprep.mubr.bf16.mxu1 %v2032_v54  ;;  %v2632_v45 = vld [vmem:[%s3309_s1 + $0x288] sm:$0xff]   ;;  %v2036_v52 = vcombine.high %v52_v48, %v60_v50  ;;  %v2633_v54 = vld [vmem:[%s3309_s1 + $0x250] sm:$0xff]  }
  0x28   :  { %2320 = vmatpush3.bf16.msra.mxu0 %v2595_v46  ;;  %v51_v46 = vld [vmem:[%s3310_s0 + $0x90] sm:$0xff]  ;;  %v38_v32 = vld [vmem:[%s3310_s0 + $0x28] sm:$0xff] }
  0x29   :  { %2360 = vmatpush3.bf16.msra.mxu1 %v2596_v47  ;;  %2321 = vmatprep.subr.bf16.mxu0 %v2597_v56  ;;  %v59_v47 = vld [vmem:[%s3310_s0 + $0xd0] sm:$0xff]  ;;  %v46_v33 = vld [vmem:[%s3310_s0 + $0x68] sm:$0xff] }
  0x2a   :  { %2361 = vmatprep.subr.bf16.mxu1 %v2598_v57  ;;  %v2034_v49 = vcombine.high %v51_v46, %v59_v47  ;;  %v2033_v51 = vcombine.low %v51_v46, %v59_v47  ;;  %v2635_v56 = vld [vmem:[%s3309_s1 + $0x210] sm:$0xff]   ;;  %v54_v46 = vld [vmem:[%s3310_s0 + $0xa8] sm:$0xff] }
  0x2b   :  { %1450 = vmatmul.mubr.bf16.gmra.mrb[4].mxu0 %v2029_v53  ;;  %v2035_v53 = vcombine.low %v52_v48, %v60_v50  ;;  %v2636_v57 = vld [vmem:[%s3309_s1 + $0x290] sm:$0xff]   ;;  %v62_v47 = vld [vmem:[%s3310_s0 + $0xe8] sm:$0xff] }
  0x2c   :  { %1514 = vmatmul.mubr.bf16.gmra.mrb[4].mxu1 %v2031_v55  ;;  %2322 = vmatpush3.bf16.msra.mxu0 %v2599_v58  ;;  %v2634_v55 = vld [vmem:[%s3309_s1 + $0x2d0] sm:$0xff]   ;;  %v2637_v58 = vld [vmem:[%s3309_s1 + $0x258] sm:$0xff]  }
  0x2d   :  { %2362 = vmatpush3.bf16.msra.mxu1 %v2600_v59  ;;  %2323 = vmatprep.subr.bf16.mxu0 %v2601_v60  ;;  %v2638_v59 = vld [vmem:[%s3309_s1 + $0x2d8] sm:$0xff]  }
  0x2e   :  { %2363 = vmatprep.subr.bf16.mxu1 %v2602_v61  ;;  %1457 = vmatprep.mubr.bf16.mxu0 %v2046_v4  ;;  %v2639_v60 = vld [vmem:[%s3309_s1 + $0x218] sm:$0xff]   ;;  %v2052_v4 = vcombine.high %v68_v1, %v76_v2 }
  0x2f   :  { %1521 = vmatprep.mubr.bf16.mxu1 %v2048_v5  ;;  %v2640_v61 = vld [vmem:[%s3309_s1 + $0x298] sm:$0xff]   ;;  %v2051_v5 = vcombine.low %v68_v1, %v76_v2 }
  0x30   :  { %2324 = vmatpush3.bf16.msra.mxu0 %v2603_v62  ;;  %v67_v62 = vld [vmem:[%s3310_s0 + $0x110] sm:$0xff] }
  0x31   :  { %2364 = vmatpush3.bf16.msra.mxu1 %v2604_v63  ;;  %2325 = vmatprep.subr.bf16.mxu0 %v2605_v8  ;;  %v75_v63 = vld [vmem:[%s3310_s0 + $0x150] sm:$0xff]  ;;  %v2643_v8 = vld [vmem:[%s3309_s1 + $0x220] sm:$0xff]  }
  0x32   :  { %2365 = vmatprep.subr.bf16.mxu1 %v2606_v9  ;;  %v2050_v0 = vcombine.high %v67_v62, %v75_v63  ;;  %v2049_v3 = vcombine.low %v67_v62, %v75_v63  ;;  %v2644_v9 = vld [vmem:[%s3309_s1 + $0x2a0] sm:$0xff]   ;;  %v70_v62 = vld [vmem:[%s3310_s0 + $0x128] sm:$0xff] }
  0x33   :  { %1458 = vmatmul.mubr.bf16.gmra.mrb[8].mxu0 %v2045_v6  ;;  %v2641_v6 = vld [vmem:[%s3309_s1 + $0x260] sm:$0xff]  }
  0x34   :  { %1522 = vmatmul.mubr.bf16.gmra.mrb[8].mxu1 %v2047_v7  ;;  %2326 = vmatpush3.bf16.msra.mxu0 %v2607_v10  ;;  %v2642_v7 = vld [vmem:[%s3309_s1 + $0x2e0] sm:$0xff]   ;;  %v2645_v10 = vld [vmem:[%s3309_s1 + $0x268] sm:$0xff]  }
  0x35   :  { %2366 = vmatpush3.bf16.msra.mxu1 %v2608_v11  ;;  %2327 = vmatprep.subr.bf16.mxu0 %v2609_v12  ;;  %v2646_v11 = vld [vmem:[%s3309_s1 + $0x2e8] sm:$0xff]  }
  0x36   :  { %2367 = vmatprep.subr.bf16.mxu1 %v2610_v13  ;;  %1465 = vmatprep.mubr.bf16.mxu0 %v2062_v18  ;;  %v2647_v12 = vld [vmem:[%s3309_s1 + $0x228] sm:$0xff]   ;;  %v2068_v18 = vcombine.high %v84_v16, %v84_v16 }
  0x37   :  { %1529 = vmatprep.mubr.bf16.mxu1 %v2064_v19  ;;  %v2648_v13 = vld [vmem:[%s3309_s1 + $0x2a8] sm:$0xff]   ;;  %v2067_v19 = vcombine.low %v84_v16, %v84_v16 }
  0x38   :  { %2328 = vmatpush3.bf16.msra.mxu0 %v2611_v14  ;;  %v83_v14 = vld [vmem:[%s3310_s0 + $0x190] sm:$0xff] }
  0x39   :  { %2368 = vmatpush3.bf16.msra.mxu1 %v2612_v15  ;;  %2329 = vmatprep.subr.bf16.mxu0 %v2617_v21  ;;  %v2066_v15 = vcombine.high %v83_v14, %v83_v14  ;;  %v2065_v17 = vcombine.low %v83_v14, %v83_v14  ;;  %v2654_v21 = vld [vmem:[%s3309_s1 + $0x2f0] sm:$0xff]  }
  0x3a   :  { %2369 = vmatprep.subr.bf16.mxu1 %v2618_v23  ;;  %v2656_v23 = vld [vmem:[%s3309_s1 + $0x2b0] sm:$0xff]  }
  0x3b   :  { %1466 = vmatmul.mubr.bf16.gmra.mrb[12].mxu0 %v2061_v20  ;;  %v2653_v20 = vld [vmem:[%s3309_s1 + $0x270] sm:$0xff]  }
  0x3c   :  { %1530 = vmatmul.mubr.bf16.gmra.mrb[12].mxu1 %v2063_v22  ;;  %2330 = vmatpush3.bf16.msra.mxu0 %v2619_v24  ;;  %v2655_v22 = vld [vmem:[%s3309_s1 + $0x230] sm:$0xff]   ;;  %v2657_v24 = vld [vmem:[%s3309_s1 + $0x278] sm:$0xff]  }
  0x3d   :  { %2370 = vmatpush3.bf16.msra.mxu1 %v2620_v25  ;;  %2331 = vmatprep.subr.bf16.mxu0 %v2621_v26  ;;  %v2658_v25 = vld [vmem:[%s3309_s1 + $0x2f8] sm:$0xff]  }
  0x3e   :  { %2371 = vmatprep.subr.bf16.mxu1 %v2622_v27  ;;  %1569 = vmatprep.mubr.bf16.mxu0 %v2018_v35  ;;  %v2659_v26 = vld [vmem:[%s3309_s1 + $0x238] sm:$0xff]   ;;  %v2024_v35 = vcombine.high %v38_v32, %v46_v33 }
  0x3f   :  { %1633 = vmatprep.mubr.bf16.mxu1 %v2020_v38  ;;  %v2660_v27 = vld [vmem:[%s3309_s1 + $0x2b8] sm:$0xff]   ;;  %v2663_v38 = vld [vmem:[%s3309_s1 + $0x300] sm:$0xff]  }
  0x40   :  { %2332 = vmatpush3.bf16.msra.mxu0 %v2623_v28  ;;  %v37_v28 = vld [vmem:[%s3310_s0 + $0x20] sm:$0xff] }
  0x41   :  { %2372 = vmatpush3.bf16.msra.mxu1 %v2624_v29  ;;  %2397 = vmatprep.subr.bf16.mxu0 %v2625_v37  ;;  %v45_v29 = vld [vmem:[%s3310_s0 + $0x60] sm:$0xff] }
  0x42   :  { %2437 = vmatprep.subr.bf16.mxu1 %v2626_v39  ;;  %v2021_v30 = vcombine.low %v37_v28, %v45_v29  ;;  %v2022_v31 = vcombine.high %v37_v28, %v45_v29  ;;  %v2662_v37 = vld [vmem:[%s3309_s1 + $0x3c0] sm:$0xff]   ;;  %v40_v28 = vld [vmem:[%s3310_s0 + $0x38] sm:$0xff] }
  0x43   :  { %1570 = vmatmul.mubr.bf16.vlgmr.msra.gmra.mrb[16].mxu0 %v2017_v34  ;;  %v2023_v34 = vcombine.low %v38_v32, %v46_v33  ;;  %v2664_v39 = vld [vmem:[%s3309_s1 + $0x380] sm:$0xff]   ;;  %v55_v32 = vld [vmem:[%s3310_s0 + $0xb0] sm:$0xff] }
  0x44   :  { %1634 = vmatmul.mubr.bf16.vlgmr.msra.gmra.mrb[16].mxu1 %v2019_v36  ;;  %2398 = vmatpush3.bf16.msra.mxu0 %v2627_v40  ;;  %v2661_v36 = vld [vmem:[%s3309_s1 + $0x340] sm:$0xff]   ;;  %v2665_v40 = vld [vmem:[%s3309_s1 + $0x348] sm:$0xff]   ;;  %v63_v33 = vld [vmem:[%s3310_s0 + $0xf0] sm:$0xff] }
  0x45   :  { %2438 = vmatpush3.bf16.msra.mxu1 %v2628_v41  ;;  %2399 = vmatprep.subr.bf16.mxu0 %v2629_v42  ;;  %v2666_v41 = vld [vmem:[%s3309_s1 + $0x3c8] sm:$0xff]  }
  0x46   :  { %2439 = vmatprep.subr.bf16.mxu1 %v2630_v43  ;;  %1577 = vmatprep.mubr.bf16.mxu0 %v2034_v49  ;;  %v2667_v42 = vld [vmem:[%s3309_s1 + $0x308] sm:$0xff]   ;;  %v2040_v49 = vcombine.high %v54_v46, %v62_v47 }
  0x47   :  { %1641 = vmatprep.mubr.bf16.mxu1 %v2036_v52  ;;  %v2668_v43 = vld [vmem:[%s3309_s1 + $0x388] sm:$0xff]   ;;  %v2669_v52 = vld [vmem:[%s3309_s1 + $0x350] sm:$0xff]  }
  0x48   :  { %2400 = vmatpush3.bf16.msra.mxu0 %v2631_v44  ;;  %v53_v44 = vld [vmem:[%s3310_s0 + $0xa0] sm:$0xff] }
  0x49   :  { %2440 = vmatpush3.bf16.msra.mxu1 %v2632_v45  ;;  %2401 = vmatprep.subr.bf16.mxu0 %v2633_v54  ;;  %v61_v45 = vld [vmem:[%s3310_s0 + $0xe0] sm:$0xff]  ;;  %v2671_v54 = vld [vmem:[%s3309_s1 + $0x310] sm:$0xff]  }
  0x4a   :  { %2441 = vmatprep.subr.bf16.mxu1 %v2634_v55  ;;  %v2038_v48 = vcombine.high %v53_v44, %v61_v45  ;;  %v2037_v50 = vcombine.low %v53_v44, %v61_v45  ;;  %v2672_v55 = vld [vmem:[%s3309_s1 + $0x390] sm:$0xff]   ;;  %v2041_v44 = vcombine.low %v55_v32, %v63_v33 }
  0x4b   :  { %1578 = vmatmul.mubr.bf16.gmra.mrb[20].mxu0 %v2033_v51  ;;  %v2039_v51 = vcombine.low %v54_v46, %v62_v47 }
  0x4c   :  { %1642 = vmatmul.mubr.bf16.gmra.mrb[20].mxu1 %v2035_v53  ;;  %2402 = vmatpush3.bf16.msra.mxu0 %v2635_v56  ;;  %v2670_v53 = vld [vmem:[%s3309_s1 + $0x3d0] sm:$0xff]   ;;  %v2673_v56 = vld [vmem:[%s3309_s1 + $0x358] sm:$0xff]  }
  0x4d   :  { %2442 = vmatpush3.bf16.msra.mxu1 %v2636_v57  ;;  %2403 = vmatprep.subr.bf16.mxu0 %v2637_v58  ;;  %v2674_v57 = vld [vmem:[%s3309_s1 + $0x3d8] sm:$0xff]  }
  0x4e   :  { %2443 = vmatprep.subr.bf16.mxu1 %v2638_v59  ;;  %1585 = vmatprep.mubr.bf16.mxu0 %v2050_v0  ;;  %v2675_v58 = vld [vmem:[%s3309_s1 + $0x318] sm:$0xff]   ;;  %v78_v0 = vld [vmem:[%s3310_s0 + $0x168] sm:$0xff] }
  0x4f   :  { %1649 = vmatprep.mubr.bf16.mxu1 %v2052_v4  ;;  %v2676_v59 = vld [vmem:[%s3309_s1 + $0x398] sm:$0xff]   ;;  %v2056_v2 = vcombine.high %v70_v62, %v78_v0  ;;  %v2677_v4 = vld [vmem:[%s3309_s1 + $0x360] sm:$0xff]  }
  0x50   :  { %2404 = vmatpush3.bf16.msra.mxu0 %v2639_v60  ;;  %v69_v60 = vld [vmem:[%s3310_s0 + $0x120] sm:$0xff] }
  0x51   :  { %2444 = vmatpush3.bf16.msra.mxu1 %v2640_v61  ;;  %2405 = vmatprep.subr.bf16.mxu0 %v2641_v6  ;;  %v77_v61 = vld [vmem:[%s3310_s0 + $0x160] sm:$0xff] }
  0x52   :  { %2445 = vmatprep.subr.bf16.mxu1 %v2642_v7  ;;  %v2054_v63 = vcombine.high %v69_v60, %v77_v61  ;;  %v2053_v1 = vcombine.low %v69_v60, %v77_v61  ;;  %v2679_v6 = vld [vmem:[%s3309_s1 + $0x320] sm:$0xff]  }
  0x53   :  { %1586 = vmatmul.mubr.bf16.gmra.mrb[24].mxu0 %v2049_v3  ;;  %v2055_v3 = vcombine.low %v70_v62, %v78_v0  ;;  %v2680_v7 = vld [vmem:[%s3309_s1 + $0x3a0] sm:$0xff]  }
  0x54   :  { %1650 = vmatmul.mubr.bf16.gmra.mrb[24].mxu1 %v2051_v5  ;;  %2406 = vmatpush3.bf16.msra.mxu0 %v2643_v8  ;;  %v2678_v5 = vld [vmem:[%s3309_s1 + $0x3e0] sm:$0xff]   ;;  %v2681_v8 = vld [vmem:[%s3309_s1 + $0x368] sm:$0xff]  }
  0x55   :  { %2446 = vmatpush3.bf16.msra.mxu1 %v2644_v9  ;;  %2407 = vmatprep.subr.bf16.mxu0 %v2645_v10  ;;  %v2682_v9 = vld [vmem:[%s3309_s1 + $0x3e8] sm:$0xff]  }
  0x56   :  { %2447 = vmatprep.subr.bf16.mxu1 %v2646_v11  ;;  %1593 = vmatprep.mubr.bf16.mxu0 %v2066_v15  ;;  %v2683_v10 = vld [vmem:[%s3309_s1 + $0x328] sm:$0xff]  }
  0x57   :  { %1657 = vmatprep.mubr.bf16.mxu1 %v2068_v18  ;;  %v2684_v11 = vld [vmem:[%s3309_s1 + $0x3a8] sm:$0xff]   ;;  %v2689_v18 = vld [vmem:[%s3309_s1 + $0x370] sm:$0xff]  }
  0x58   :  { %2408 = vmatpush3.bf16.msra.mxu0 %v2647_v12  ;;  %v85_v12 = vld [vmem:[%s3310_s0 + $0x1a0] sm:$0xff] }
  0x59   :  { %2448 = vmatpush3.bf16.msra.mxu1 %v2648_v13  ;;  %2409 = vmatprep.subr.bf16.mxu0 %v2653_v20  ;;  %v86_v13 = vld [vmem:[%s3310_s0 + $0x1a8] sm:$0xff]  ;;  %v2070_v14 = vcombine.high %v85_v12, %v85_v12  ;;  %v2069_v16 = vcombine.low %v85_v12, %v85_v12  ;;  %v2691_v20 = vld [vmem:[%s3309_s1 + $0x330] sm:$0xff]  }
  0x5a   :  { %2449 = vmatprep.subr.bf16.mxu1 %v2654_v21  ;;  %v2072_v15 = vcombine.high %v86_v13, %v86_v13  ;;  %v2692_v21 = vld [vmem:[%s3309_s1 + $0x3b0] sm:$0xff]  }
  0x5b   :  { %1594 = vmatmul.mubr.bf16.gmra.mrb[28].mxu0 %v2065_v17  ;;  %v2071_v17 = vcombine.low %v86_v13, %v86_v13 }
  0x5c   :  { %1658 = vmatmul.mubr.bf16.gmra.mrb[28].mxu1 %v2067_v19  ;;  %2410 = vmatpush3.bf16.msra.mxu0 %v2655_v22  ;;  %v2690_v19 = vld [vmem:[%s3309_s1 + $0x3f0] sm:$0xff]   ;;  %v2693_v22 = vld [vmem:[%s3309_s1 + $0x378] sm:$0xff]  }
  0x5d   :  { %2450 = vmatpush3.bf16.msra.mxu1 %v2656_v23  ;;  %2411 = vmatprep.subr.bf16.mxu0 %v2657_v24  ;;  %v2694_v23 = vld [vmem:[%s3309_s1 + $0x3f8] sm:$0xff]  }
  0x5e   :  { %2451 = vmatprep.subr.bf16.mxu1 %v2658_v25  ;;  %1697 = vmatprep.mubr.bf16.mxu0 %v2022_v31  ;;  %v2695_v24 = vld [vmem:[%s3309_s1 + $0x338] sm:$0xff]  }
  0x5f   :  { %1761 = vmatprep.mubr.bf16.mxu1 %v2024_v35  ;;  %v2696_v25 = vld [vmem:[%s3309_s1 + $0x3b8] sm:$0xff]  }
  0x60   :  { %2412 = vmatpush3.bf16.msra.mxu0 %v2659_v26  ;;  %v39_v26 = vld [vmem:[%s3310_s0 + $0x30] sm:$0xff]  ;;  %v48_v31 = vld [vmem:[%s3310_s0 + $0x78] sm:$0xff] }
  0x61   :  { %2452 = vmatpush3.bf16.msra.mxu1 %v2660_v27  ;;  %2477 = vmatprep.subr.bf16.mxu0 %v2661_v36  ;;  %v47_v27 = vld [vmem:[%s3310_s0 + $0x70] sm:$0xff]  ;;  %v2028_v35 = vcombine.high %v40_v28, %v48_v31  ;;  %v2042_v36 = vcombine.high %v55_v32, %v63_v33 }
  0x62   :  { %2517 = vmatprep.subr.bf16.mxu1 %v2662_v37  ;;  %v2025_v29 = vcombine.low %v39_v26, %v47_v27  ;;  %v56_v37 = vld [vmem:[%s3310_s0 + $0xb8] sm:$0xff] }
  0x63   :  { %1698 = vmatmul.mubr.bf16.vlgmr.msra.gmra.mrb[32].mxu0 %v2021_v30  ;;  %v2026_v30 = vcombine.high %v39_v26, %v47_v27 }
  0x64   :  { %1762 = vmatmul.mubr.bf16.vlgmr.msra.gmra.mrb[32].mxu1 %v2023_v34  ;;  %2478 = vmatpush3.bf16.msra.mxu0 %v2663_v38  ;;  %v2027_v34 = vcombine.low %v40_v28, %v48_v31  ;;  %v64_v38 = vld [vmem:[%s3310_s0 + $0xf8] sm:$0xff] }
  0x65   :  { %2518 = vmatpush3.bf16.msra.mxu1 %v2664_v39  ;;  %2479 = vmatprep.subr.bf16.mxu0 %v2665_v40  ;;  %v2044_v39 = vcombine.high %v56_v37, %v64_v38  ;;  %v71_v40 = vld [vmem:[%s3310_s0 + $0x130] sm:$0xff]  ;;  %v2043_v45 = vcombine.low %v56_v37, %v64_v38 }
  0x66   :  { %2519 = vmatprep.subr.bf16.mxu1 %v2666_v41  ;;  %1705 = vmatprep.mubr.bf16.mxu0 %v2038_v48  ;;  %v79_v41 = vld [vmem:[%s3310_s0 + $0x170] sm:$0xff] }
  0x67   :  { %1769 = vmatprep.mubr.bf16.mxu1 %v2040_v49  ;;  %v2058_v46 = vcombine.high %v71_v40, %v79_v41  ;;  %v87_v48 = vld [vmem:[%s3310_s0 + $0x1b0] sm:$0xff]  ;;  %v88_v49 = vld [vmem:[%s3310_s0 + $0x1b8] sm:$0xff] }
  0x68   :  { %2480 = vmatpush3.bf16.msra.mxu0 %v2667_v42  ;;  %v72_v42 = vld [vmem:[%s3310_s0 + $0x138] sm:$0xff] }
  0x69   :  { %2520 = vmatpush3.bf16.msra.mxu1 %v2668_v43  ;;  %2481 = vmatprep.subr.bf16.mxu0 %v2669_v52  ;;  %v80_v43 = vld [vmem:[%s3310_s0 + $0x178] sm:$0xff]  ;;  %v2074_v52 = vcombine.high %v87_v48, %v87_v48 }
  0x6a   :  { %2521 = vmatprep.subr.bf16.mxu1 %v2670_v53  ;;  %v2060_v47 = vcombine.high %v72_v42, %v80_v43  ;;  %v2076_v53 = vcombine.high %v88_v49, %v88_v49 }
  0x6b   :  { %1706 = vmatmul.mubr.bf16.gmra.mrb[36].mxu0 %v2037_v50  ;;  %v2057_v50 = vcombine.low %v71_v40, %v79_v41 }
  0x6c   :  { %1770 = vmatmul.mubr.bf16.gmra.mrb[36].mxu1 %v2039_v51  ;;  %2482 = vmatpush3.bf16.msra.mxu0 %v2671_v54  ;;  %v2059_v51 = vcombine.low %v72_v42, %v80_v43  ;;  %v2073_v54 = vcombine.low %v87_v48, %v87_v48 }
  0x6d   :  { %2522 = vmatpush3.bf16.msra.mxu1 %v2672_v55  ;;  %2483 = vmatprep.subr.bf16.mxu0 %v2673_v56  ;;  %v2075_v55 = vcombine.low %v88_v49, %v88_v49 }
  0x6e   :  { %2523 = vmatprep.subr.bf16.mxu1 %v2674_v57  ;;  %1713 = vmatprep.mubr.bf16.mxu0 %v2054_v63 }
  0x6f   :  { %1777 = vmatprep.mubr.bf16.mxu1 %v2056_v2 }
  0x70   :  { %2484 = vmatpush3.bf16.msra.mxu0 %v2675_v58 }
  0x71   :  { %2524 = vmatpush3.bf16.msra.mxu1 %v2676_v59  ;;  %2485 = vmatprep.subr.bf16.mxu0 %v2677_v4 }
  0x72   :  { %2525 = vmatprep.subr.bf16.mxu1 %v2678_v5 }
  0x73   :  { %1714 = vmatmul.mubr.bf16.gmra.mrb[40].mxu0 %v2053_v1 }
  0x74   :  { %1778 = vmatmul.mubr.bf16.gmra.mrb[40].mxu1 %v2055_v3  ;;  %2486 = vmatpush3.bf16.msra.mxu0 %v2679_v6 }
  0x75   :  { %2526 = vmatpush3.bf16.msra.mxu1 %v2680_v7  ;;  %2487 = vmatprep.subr.bf16.mxu0 %v2681_v8 }
  0x76   :  { %2527 = vmatprep.subr.bf16.mxu1 %v2682_v9  ;;  %1721 = vmatprep.mubr.bf16.mxu0 %v2070_v14 }
  0x77   :  { %1785 = vmatprep.mubr.bf16.mxu1 %v2072_v15 }
  0x78   :  { %2488 = vmatpush3.bf16.msra.mxu0 %v2683_v10 }
  0x79   :  { %2528 = vmatpush3.bf16.msra.mxu1 %v2684_v11  ;;  %2489 = vmatprep.subr.bf16.mxu0 %v2689_v18 }
  0x7a   :  { %2529 = vmatprep.subr.bf16.mxu1 %v2690_v19 }
  0x7b   :  { %1722 = vmatmul.mubr.bf16.gmra.mrb[44].mxu0 %v2069_v16 }
  0x7c   :  { %1786 = vmatmul.mubr.bf16.gmra.mrb[44].mxu1 %v2071_v17  ;;  %2490 = vmatpush3.bf16.msra.mxu0 %v2691_v20 }
  0x7d   :  { %2530 = vmatpush3.bf16.msra.mxu1 %v2692_v21  ;;  %2491 = vmatprep.subr.bf16.mxu0 %v2693_v22 }
  0x7e   :  { %2531 = vmatprep.subr.bf16.mxu1 %v2694_v23  ;;  %1825 = vmatprep.mubr.bf16.mxu0 %v2026_v30 }
  0x7f   :  { %1889 = vmatprep.mubr.bf16.mxu1 %v2028_v35 }
  0x80   :  { %2492 = vmatpush3.bf16.msra.mxu0 %v2695_v24 }
  0x81   :  { %2532 = vmatpush3.bf16.msra.mxu1 %v2696_v25 }
  0x83   :  { %1826 = vmatmul.mubr.bf16.vlgmr.msra.gmra.mrb[48].mxu0 %v2025_v29 }
  0x84   :  { %1890 = vmatmul.mubr.bf16.vlgmr.msra.gmra.mrb[48].mxu1 %v2027_v34  ;;  %1833 = vmatprep.mubr.bf16.mxu0 %v2042_v36 }
  0x85   :  { %1897 = vmatprep.mubr.bf16.mxu1 %v2044_v39 }
  0x8b   :  { %1834 = vmatmul.mubr.bf16.gmra.mrb[52].mxu0 %v2041_v44 }
  0x8c   :  { %1898 = vmatmul.mubr.bf16.gmra.mrb[52].mxu1 %v2043_v45  ;;  %1841 = vmatprep.mubr.bf16.mxu0 %v2058_v46 }
  0x8d   :  { %1905 = vmatprep.mubr.bf16.mxu1 %v2060_v47 }
  0x93   :  { %1842 = vmatmul.mubr.bf16.gmra.mrb[56].mxu0 %v2057_v50 }
  0x94   :  { %1906 = vmatmul.mubr.bf16.gmra.mrb[56].mxu1 %v2059_v51  ;;  %1849 = vmatprep.mubr.bf16.mxu0 %v2074_v52 }
  0x95   :  { %1913 = vmatprep.mubr.bf16.mxu1 %v2076_v53 }
  0x9b   :  { %1850 = vmatmul.mubr.bf16.gmra.mrb[60].mxu0 %v2073_v54 }
  0x9c   :  { %1914 = vmatmul.mubr.bf16.gmra.mrb[60].mxu1 %v2075_v55 }
  0xf6   :  { %v2253_v56 = vpop.f32.mrb[0].mxu0 }
  0xf7   :  { %v2293_v57 = vpop.f32.mrb[0].mxu1  ;;  %v2254_v58 = vpop.f32.mrb[1].mxu0 }
  0xf8   :  { %v2255_v59 = vadd.f32 %v2254_v58, %v2253_v56  ;;  %v2294_v60 = vpop.f32.mrb[1].mxu1  ;;  %v2256_v61 = vpop.f32.mrb[2].mxu0 }
  0xf9   :  { %v2295_v62 = vadd.f32 %v2294_v60, %v2293_v57  ;;  %v2296_v63 = vpop.f32.mrb[2].mxu1  ;;  %v2257_v0 = vpop.f32.mrb[3].mxu0 }
  0xfa   :  { %v2258_v1 = vadd.f32 %v2257_v0, %v2256_v61  ;;  %v2297_v2 = vpop.f32.mrb[3].mxu1 }
  0xfb   :  { %v1508_v3 = vadd.f32 %v2295_v62, %v2255_v59  ;;  %v2298_v4 = vadd.f32 %v2297_v2, %v2296_v63 }
  0xfd   :  { %v1511_v5 = vadd.f32 %v2298_v4, %v2258_v1 }
  0xfe   :  { %v2259_v6 = vpop.f32.mrb[4].mxu0 }
  0xff   :  { %v2299_v7 = vpop.f32.mrb[4].mxu1  ;;  %v2260_v8 = vpop.f32.mrb[5].mxu0 }
 0x100   :  { %v2261_v9 = vadd.f32 %v2260_v8, %v2259_v6  ;;  %v2300_v10 = vpop.f32.mrb[5].mxu1  ;;  %v2262_v11 = vpop.f32.mrb[6].mxu0 }
 0x101   :  { %v2301_v12 = vadd.f32 %v2300_v10, %v2299_v7  ;;  %v2302_v13 = vpop.f32.mrb[6].mxu1  ;;  %v2263_v14 = vpop.f32.mrb[7].mxu0 }
 0x102   :  { %v2264_v15 = vadd.f32 %v2263_v14, %v2262_v11  ;;  %v2303_v16 = vpop.f32.mrb[7].mxu1 }
 0x103   :  { %v1516_v17 = vadd.f32 %v2301_v12, %v2261_v9  ;;  %v2304_v18 = vadd.f32 %v2303_v16, %v2302_v13 }
 0x105   :  { %v1519_v19 = vadd.f32 %v2304_v18, %v2264_v15 }
 0x106   :  { %v2265_v20 = vpop.f32.mrb[8].mxu0 }
 0x107   :  { %v2305_v21 = vpop.f32.mrb[8].mxu1  ;;  %v2266_v22 = vpop.f32.mrb[9].mxu0 }
 0x108   :  { %v2306_v23 = vpop.f32.mrb[9].mxu1  ;;  %v2267_v24 = vadd.f32 %v2266_v22, %v2265_v20  ;;  %v2268_v26 = vpop.f32.mrb[10].mxu0 }
 0x109   :  { %v2307_v25 = vadd.f32 %v2306_v23, %v2305_v21  ;;  %v2308_v27 = vpop.f32.mrb[10].mxu1  ;;  %v2269_v28 = vpop.f32.mrb[11].mxu0 }
 0x10a   :  { %v2309_v29 = vpop.f32.mrb[11].mxu1  ;;  %v2270_v31 = vadd.f32 %v2269_v28, %v2268_v26 }
 0x10b   :  { %v1524_v30 = vadd.f32 %v2307_v25, %v2267_v24  ;;  %v2310_v32 = vadd.f32 %v2309_v29, %v2308_v27 }
 0x10d   :  { %v1527_v33 = vadd.f32 %v2310_v32, %v2270_v31 }
 0x10e   :  { %v2271_v34 = vpop.f32.mrb[12].mxu0 }
 0x10f   :  { %v2311_v35 = vpop.f32.mrb[12].mxu1  ;;  %v2272_v36 = vpop.f32.mrb[13].mxu0 }
 0x110   :  { %v2312_v37 = vpop.f32.mrb[13].mxu1  ;;  %v2273_v38 = vadd.f32 %v2272_v36, %v2271_v34  ;;  %v2274_v40 = vpop.f32.mrb[14].mxu0 }
 0x111   :  { %v2313_v39 = vadd.f32 %v2312_v37, %v2311_v35  ;;  %v2314_v41 = vpop.f32.mrb[14].mxu1  ;;  %v2275_v42 = vpop.f32.mrb[15].mxu0 }
 0x112   :  { %v2315_v43 = vpop.f32.mrb[15].mxu1 }
 0x113   :  { %v1532_v44 = vadd.f32 %v2313_v39, %v2273_v38 }
 0x116   :  { %v2333_v45 = vpop.f32.mrb[16].mxu0 }
 0x117   :  { %v2373_v46 = vpop.f32.mrb[16].mxu1  ;;  %v2334_v47 = vpop.f32.mrb[17].mxu0 }
 0x118   :  { %v2335_v48 = vadd.f32 %v2334_v47, %v2333_v45  ;;  %v2374_v49 = vpop.f32.mrb[17].mxu1  ;;  %v2336_v50 = vpop.f32.mrb[18].mxu0 }
 0x119   :  { %v2375_v51 = vadd.f32 %v2374_v49, %v2373_v46  ;;  %v2376_v52 = vpop.f32.mrb[18].mxu1  ;;  %v2337_v53 = vpop.f32.mrb[19].mxu0 }
 0x11a   :  { %v1572_v54 = vadd.f32 %v2335_v48, %v1508_v3  ;;  %v2338_v55 = vadd.f32 %v2337_v53, %v2336_v50  ;;  %v2377_v56 = vpop.f32.mrb[19].mxu1 }
 0x11b   :  { %v2378_v57 = vadd.f32 %v2377_v56, %v2376_v52 }
 0x11c   :  { %v1636_v58 = vadd.f32 %v2375_v51, %v1572_v54  ;;  %v1575_v59 = vadd.f32 %v2338_v55, %v1511_v5 }
 0x11e   :  { %v1639_v60 = vadd.f32 %v2378_v57, %v1575_v59  ;;  %v2339_v61 = vpop.f32.mrb[20].mxu0 }
 0x11f   :  { %v2379_v62 = vpop.f32.mrb[20].mxu1  ;;  %v2340_v63 = vpop.f32.mrb[21].mxu0 }
 0x120   :  { %v2341_v0 = vadd.f32 %v2340_v63, %v2339_v61  ;;  %v2380_v1 = vpop.f32.mrb[21].mxu1  ;;  %v2342_v2 = vpop.f32.mrb[22].mxu0 }
 0x121   :  { %v2381_v4 = vadd.f32 %v2380_v1, %v2379_v62  ;;  %v2382_v6 = vpop.f32.mrb[22].mxu1  ;;  %v2343_v7 = vpop.f32.mrb[23].mxu0 }
 0x122   :  { %v1580_v8 = vadd.f32 %v2341_v0, %v1516_v17  ;;  %v2344_v9 = vadd.f32 %v2343_v7, %v2342_v2  ;;  %v2383_v10 = vpop.f32.mrb[23].mxu1 }
 0x123   :  { %v2384_v11 = vadd.f32 %v2383_v10, %v2382_v6 }
 0x124   :  { %v1644_v3 = vadd.f32 %v2381_v4, %v1580_v8  ;;  %v1583_v12 = vadd.f32 %v2344_v9, %v1519_v19 }
 0x126   :  { %v1647_v13 = vadd.f32 %v2384_v11, %v1583_v12  ;;  %v2345_v14 = vpop.f32.mrb[24].mxu0 }
 0x127   :  { %v2385_v15 = vpop.f32.mrb[24].mxu1  ;;  %v2346_v5 = vpop.f32.mrb[25].mxu0 }
 0x128   :  { %v2347_v16 = vadd.f32 %v2346_v5, %v2345_v14  ;;  %v2386_v18 = vpop.f32.mrb[25].mxu1  ;;  %v2348_v20 = vpop.f32.mrb[26].mxu0 }
 0x129   :  { %v2387_v21 = vadd.f32 %v2386_v18, %v2385_v15  ;;  %v2388_v22 = vpop.f32.mrb[26].mxu1  ;;  %v2349_v23 = vpop.f32.mrb[27].mxu0 }
 0x12a   :  { %v1588_v24 = vadd.f32 %v2347_v16, %v1524_v30  ;;  %v2350_v25 = vadd.f32 %v2349_v23, %v2348_v20  ;;  %v2389_v26 = vpop.f32.mrb[27].mxu1 }
 0x12b   :  { %v2390_v27 = vadd.f32 %v2389_v26, %v2388_v22 }
 0x12c   :  { %v1652_v17 = vadd.f32 %v2387_v21, %v1588_v24  ;;  %v1591_v28 = vadd.f32 %v2350_v25, %v1527_v33 }
 0x12e   :  { %v1655_v29 = vadd.f32 %v2390_v27, %v1591_v28  ;;  %v2351_v31 = vpop.f32.mrb[28].mxu0 }
 0x12f   :  { %v2391_v32 = vpop.f32.mrb[28].mxu1  ;;  %v2352_v19 = vpop.f32.mrb[29].mxu0 }
 0x130   :  { %v2353_v34 = vadd.f32 %v2352_v19, %v2351_v31  ;;  %v2392_v35 = vpop.f32.mrb[29].mxu1  ;;  %v2354_v36 = vpop.f32.mrb[30].mxu0 }
 0x131   :  { %v2393_v37 = vadd.f32 %v2392_v35, %v2391_v32  ;;  %v2394_v38 = vpop.f32.mrb[30].mxu1  ;;  %v2355_v39 = vpop.f32.mrb[31].mxu0 }
 0x132   :  { %v1596_v40 = vadd.f32 %v2353_v34, %v1532_v44  ;;  %v2395_v41 = vpop.f32.mrb[31].mxu1 }
 0x134   :  { %v1660_v42 = vadd.f32 %v2393_v37, %v1596_v40 }
 0x136   :  { %v2413_v43 = vpop.f32.mrb[32].mxu0 }
 0x137   :  { %v2453_v30 = vpop.f32.mrb[32].mxu1  ;;  %v2414_v45 = vpop.f32.mrb[33].mxu0 }
 0x138   :  { %v2415_v46 = vadd.f32 %v2414_v45, %v2413_v43  ;;  %v2454_v47 = vpop.f32.mrb[33].mxu1  ;;  %v2416_v48 = vpop.f32.mrb[34].mxu0 }
 0x139   :  { %v2455_v33 = vadd.f32 %v2454_v47, %v2453_v30  ;;  %v2456_v49 = vpop.f32.mrb[34].mxu1  ;;  %v2417_v50 = vpop.f32.mrb[35].mxu0 }
 0x13a   :  { %v1700_v51 = vadd.f32 %v2415_v46, %v1636_v58  ;;  %v2418_v52 = vadd.f32 %v2417_v50, %v2416_v48  ;;  %v2457_v53 = vpop.f32.mrb[35].mxu1 }
 0x13b   :  { %v2458_v54 = vadd.f32 %v2457_v53, %v2456_v49 }
 0x13c   :  { %v1764_v55 = vadd.f32 %v2455_v33, %v1700_v51  ;;  %v1703_v56 = vadd.f32 %v2418_v52, %v1639_v60  ;;  %v3284_v51 = vld [vmem:[%s3311_s2] ss:$0 sm:$0xff] }
 0x13e   :  { %v1767_v57 = vadd.f32 %v2458_v54, %v1703_v56  ;;  %v2419_v59 = vpop.f32.mrb[36].mxu0 }
 0x13f   :  { %v2459_v44 = vpop.f32.mrb[36].mxu1  ;;  %v2420_v61 = vpop.f32.mrb[37].mxu0 }
 0x140   :  { %v2460_v62 = vpop.f32.mrb[37].mxu1  ;;  %v2421_v63 = vadd.f32 %v2420_v61, %v2419_v59  ;;  %v2422_v1 = vpop.f32.mrb[38].mxu0 }
 0x141   :  { %v2461_v0 = vadd.f32 %v2460_v62, %v2459_v44  ;;  %v2462_v2 = vpop.f32.mrb[38].mxu1  ;;  %v2423_v4 = vpop.f32.mrb[39].mxu0 }
 0x142   :  { %v2463_v6 = vpop.f32.mrb[39].mxu1  ;;  %v1708_v7 = vadd.f32 %v2421_v63, %v1644_v3  ;;  %v2424_v8 = vadd.f32 %v2423_v4, %v2422_v1 }
 0x143   :  { %v2464_v9 = vadd.f32 %v2463_v6, %v2462_v2 }
 0x144   :  { %v1772_v58 = vadd.f32 %v2461_v0, %v1708_v7  ;;  %v1711_v10 = vadd.f32 %v2424_v8, %v1647_v13 }
 0x146   :  { %v3273_v11 = vadd.f32 %v2464_v9, %v1711_v10  ;;  %v2425_v12 = vpop.f32.mrb[40].mxu0 }
 0x147   :  { %v2465_v60 = vpop.f32.mrb[40].mxu1  ;;  %v2426_v14 = vpop.f32.mrb[41].mxu0 }
 0x148   :  { %v2427_v15 = vadd.f32 %v2426_v14, %v2425_v12  ;;  %v2466_v5 = vpop.f32.mrb[41].mxu1  ;;  %v2428_v16 = vpop.f32.mrb[42].mxu0 }
 0x149   :  { %v2467_v18 = vadd.f32 %v2466_v5, %v2465_v60  ;;  %v2468_v20 = vpop.f32.mrb[42].mxu1  ;;  %v2429_v21 = vpop.f32.mrb[43].mxu0 }
 0x14a   :  { %v1716_v22 = vadd.f32 %v2427_v15, %v1652_v17  ;;  %v2430_v23 = vadd.f32 %v2429_v21, %v2428_v16  ;;  %v2469_v24 = vpop.f32.mrb[43].mxu1 }
 0x14b   :  { %v2470_v25 = vadd.f32 %v2469_v24, %v2468_v20 }
 0x14c   :  { %v3275_v3 = vadd.f32 %v2467_v18, %v1716_v22  ;;  %v1719_v26 = vadd.f32 %v2430_v23, %v1655_v29 }
 0x14e   :  { %v3277_v27 = vadd.f32 %v2470_v25, %v1719_v26  ;;  %v2431_v13 = vpop.f32.mrb[44].mxu0 }
 0x14f   :  { %v2471_v28 = vpop.f32.mrb[44].mxu1  ;;  %v2432_v31 = vpop.f32.mrb[45].mxu0 }
 0x150   :  { %v2472_v32 = vpop.f32.mrb[45].mxu1  ;;  %v2433_v19 = vadd.f32 %v2432_v31, %v2431_v13  ;;  %v2434_v35 = vpop.f32.mrb[46].mxu0 }
 0x151   :  { %v2473_v34 = vadd.f32 %v2472_v32, %v2471_v28  ;;  %v2474_v36 = vpop.f32.mrb[46].mxu1  ;;  %v2435_v37 = vpop.f32.mrb[47].mxu0 }
 0x152   :  { %v2475_v38 = vpop.f32.mrb[47].mxu1  ;;  %v1724_v39 = vadd.f32 %v2433_v19, %v1660_v42 }
 0x154   :  { %v3279_v17 = vadd.f32 %v2473_v34, %v1724_v39 }
 0x156   :  { %v2493_v40 = vpop.f32.mrb[48].mxu0 }
 0x157   :  { %v2533_v41 = vpop.f32.mrb[48].mxu1  ;;  %v2494_v43 = vpop.f32.mrb[49].mxu0 }
 0x158   :  { %v2495_v30 = vadd.f32 %v2494_v43, %v2493_v40  ;;  %v2534_v29 = vpop.f32.mrb[49].mxu1  ;;  %v2496_v45 = vpop.f32.mrb[50].mxu0 }
 0x159   :  { %v2535_v46 = vadd.f32 %v2534_v29, %v2533_v41  ;;  %v2536_v47 = vpop.f32.mrb[50].mxu1  ;;  %v2497_v48 = vpop.f32.mrb[51].mxu0 }
 0x15a   :  { %v1828_v33 = vadd.f32 %v2495_v30, %v1764_v55  ;;  %v2498_v49 = vadd.f32 %v2497_v48, %v2496_v45  ;;  %v2537_v50 = vpop.f32.mrb[51].mxu1 }
 0x15b   :  { %v2538_v42 = vadd.f32 %v2537_v50, %v2536_v47 }
 0x15c   :  { %v1892_v52 = vadd.f32 %v2535_v46, %v1828_v33  ;;  %v1831_v53 = vadd.f32 %v2498_v49, %v1767_v57 }
 0x15e   :  { %v1952_v54 = vadd.f32 %v3284_v51, %v1892_v52  ;;  %v1895_v56 = vadd.f32 %v2538_v42, %v1831_v53  ;;  %v2499_v59 = vpop.f32.mrb[52].mxu0 }
 0x15f   :  { %v2539_v44 = vpop.f32.mrb[52].mxu1  ;;  %v2500_v61 = vpop.f32.mrb[53].mxu0 }
 0x160   :  { %v1959_v62 = vmul.f32 0.2, %v1952_v54  ;;  %v1953_v63 = vadd.f32 %v3284_v51, %v1895_v56  ;;  %v2501_v55 = vadd.f32 %v2500_v61, %v2499_v59  ;;  %v2540_v0 = vpop.f32.mrb[53].mxu1  ;;  %v2502_v1 = vpop.f32.mrb[54].mxu0 }
 0x161   :  { %v2541_v2 = vadd.f32 %v2540_v0, %v2539_v44  ;;  %v2542_v4 = vpop.f32.mrb[54].mxu1  ;;  %v2503_v6 = vpop.f32.mrb[55].mxu0 }
 0x162   :  { %v1960_v7 = vmul.f32 0.2, %v1953_v63  ;;  %v1836_v8 = vadd.f32 %v2501_v55, %v1772_v58  ;;  %v2504_v9 = vadd.f32 %v2503_v6, %v2502_v1  ;;  %v2543_v10 = vpop.f32.mrb[55].mxu1  ;;  %v1966_v12 = vmax.f32 %v1952_v54, %v1959_v62 }
 0x163   :  { %v2544_v57 = vadd.f32 %v2543_v10, %v2542_v4 }
 0x164   :  { %v1967_v60 = vmax.f32 %v1953_v63, %v1960_v7  ;;  %v1900_v14 = vadd.f32 %v2541_v2, %v1836_v8  ;;  %v1839_v15 = vadd.f32 %v2504_v9, %v3273_v11 }
 0x166   :  { %v2223_v5 = vpack.c.bf16 %v1967_v60, %v1966_v12  ;;  %v1954_v16 = vadd.f32 %v3284_v51, %v1900_v14  ;;  %v1903_v18 = vadd.f32 %v2544_v57, %v1839_v15  ;;  %v2505_v20 = vpop.f32.mrb[56].mxu0 }
 0x167   :  { %v2545_v21 = vpop.f32.mrb[56].mxu1  ;;  %v2506_v22 = vpop.f32.mrb[57].mxu0 }
 0x168   :  { %2224 = vst [vmem:[%s3312_s3] sm:$0xff] %v2223_v5   ;;  %v1961_v58 = vmul.f32 0.2, %v1954_v16  ;;  %v1955_v23 = vadd.f32 %v3284_v51, %v1903_v18  ;;  %v2507_v24 = vadd.f32 %v2506_v22, %v2505_v20  ;;  %v2546_v25 = vpop.f32.mrb[57].mxu1  ;;  %v2508_v26 = vpop.f32.mrb[58].mxu0 }
 0x169   :  { %v2547_v13 = vadd.f32 %v2546_v25, %v2545_v21  ;;  %v2548_v28 = vpop.f32.mrb[58].mxu1  ;;  %v2509_v11 = vpop.f32.mrb[59].mxu0 }
 0x16a   :  { %v1962_v31 = vmul.f32 0.2, %v1955_v23  ;;  %v1844_v32 = vadd.f32 %v2507_v24, %v3275_v3  ;;  %v2510_v19 = vadd.f32 %v2509_v11, %v2508_v26  ;;  %v2549_v34 = vpop.f32.mrb[59].mxu1  ;;  %v1968_v36 = vmax.f32 %v1954_v16, %v1961_v58 }
 0x16b   :  { %v2550_v35 = vadd.f32 %v2549_v34, %v2548_v28 }
 0x16c   :  { %v1969_v37 = vmax.f32 %v1955_v23, %v1962_v31  ;;  %v1908_v38 = vadd.f32 %v2547_v13, %v1844_v32  ;;  %v1847_v39 = vadd.f32 %v2510_v19, %v3277_v27 }
 0x16e   :  { %v2228_v40 = vpack.c.bf16 %v1969_v37, %v1968_v36  ;;  %v1956_v41 = vadd.f32 %v3284_v51, %v1908_v38  ;;  %v1911_v43 = vadd.f32 %v2550_v35, %v1847_v39  ;;  %v2511_v30 = vpop.f32.mrb[60].mxu0 }
 0x16f   :  { %v2551_v29 = vpop.f32.mrb[60].mxu1  ;;  %v2512_v45 = vpop.f32.mrb[61].mxu0 }
 0x170   :  { %2235 = vst [vmem:[%s3312_s3 + $0x8] sm:$0xff] %v2228_v40   ;;  %v1963_v3 = vmul.f32 0.2, %v1956_v41  ;;  %v1957_v46 = vadd.f32 %v3284_v51, %v1911_v43  ;;  %v2513_v47 = vadd.f32 %v2512_v45, %v2511_v30  ;;  %v2552_v48 = vpop.f32.mrb[61].mxu1  ;;  %v2514_v33 = vpop.f32.mrb[62].mxu0 }
 0x171   :  { %v2553_v49 = vadd.f32 %v2552_v48, %v2551_v29  ;;  %v2554_v50 = vpop.f32.mrb[62].mxu1  ;;  %v2515_v27 = vpop.f32.mrb[63].mxu0 }
 0x172   :  { %v1964_v42 = vmul.f32 0.2, %v1957_v46  ;;  %v1852_v52 = vadd.f32 %v2513_v47, %v3279_v17  ;;  %v2555_v53 = vpop.f32.mrb[63].mxu1  ;;  %v1970_v54 = vmax.f32 %v1956_v41, %v1963_v3 }
 0x174   :  { %v1971_v56 = vmax.f32 %v1957_v46, %v1964_v42  ;;  %v1916_v59 = vadd.f32 %v2553_v49, %v1852_v52 }
 0x176   :  { %v2233_v44 = vpack.c.bf16 %v1971_v56, %v1970_v54  ;;  %v1958_v61 = vadd.f32 %v3284_v51, %v1916_v59 }
 0x178   :  { %2236 = vst [vmem:[%s3312_s3 + $0x10] sm:$0xff] %v2233_v44   ;;  %v1965_v62 = vmul.f32 0.2, %v1958_v61 }
 0x17a   :  { %v1972_v63 = vmax.f32 %v1958_v61, %v1965_v62 }
 0x17c   :  { %v2219_v55 = vpack.c.bf16 %v1972_v63, %v1972_v63 }
 0x17e   :  { %2008 = vst [vmem:[%s3312_s3 + $0x18] sm:$0xf] %v2219_v55 }

// kernel: _lambda_.9
= control target key start
LH: loop header
LB: loop body
LE: loop exit
PB: predicated region body
PF: predicated region fallthrough
CT: control target
= control target key end

     0   :  { %s2461_s12 = smov 0   ;;  %s2463_s13 = smov 0   ;;  %s2703_s0 = inlined_call_operand.vmem [shape: bf16[16,4096], index: 0, kind: input, shape index: {}]   ;;  %s2704_s1 = inlined_call_operand.vmem [shape: bf16[4096,128], index: 1, kind: input, shape index: {}]   ;;  %s2705_s2 = inlined_call_operand.vmem [shape: f32[1,128], index: 2, kind: input, shape index: {}]   ;;  %s2706_s3 = inlined_call_operand.vmem [shape: f32[16,128], index: 3, kind: output, shape index: {}]  }
   0x1   :  { %s2465_s14 = smov 0   ;;  %s2467_s15 = smov 0  }
   0x2   :  { %s2469_s16 = smov 0  }
   0x3 LB: > { %s25_s17 = sadd.s32 1, %s2434_s15  ;;  %p48_p1 = scmp.ne.s32.totalorder %s2426_s13, %s2422_s12  ;;  %s2438_s16 = sphi %s2469_s16, %s13_s16   ;;  %s2434_s15 = sphi %s2467_s15, %s2710_s15   ;;  %s2430_s14 = sphi %s2465_s14, %s2709_s14   ;;  %s2426_s13 = sphi %s2463_s13, %s2708_s13   ;;  %s2422_s12 = sphi %s2461_s12, %s2707_s12  }
   0x4   : > { %p26_p0 = scmp.ge.s32.totalorder %s25_s17, 2  ;;  %p49_p2 = scmp.eq.s32.totalorder %s2438_s16, 0 }
   0x5   : > { %s41_s19 = sadd.s32 1, %s2426_s13  ;;  %p1895_p5 = scmp.ge.s32.totalorder %s2438_s16, 2 }
   0x6   : > { %s2712_s17 = smov (%p26_p0, %s25_s17), 0  ;;  %p50_p3 = por %p49_p2, %p48_p1 }
   0x7   : > { %s37_s18 = ssub.s32 %s2434_s15, %s2712_s17  ;;  %162 = sbr.rel (%p1895_p5) target bundleno = 26 (0x1a), region = 20 }
   0x8   : > { %p39_p4 = scmp.eq.s32.totalorder %s37_s18, 0 }
   0xa   : > { %s2496_s20 = scalar_select %p39_p4, %s2426_s13, %s41_s19  }
   0xe   : > { %165 = sbr.rel (!%p50_p3) target bundleno = 26 (0x1a), region = 24  ;;  %s167_s21 = sand.u32 (%p50_p3), 1, %s2426_s13  }
   0xf   : > { %s2054_s22 = sshll.u32 (%p50_p3), %s2434_s15, 6  ;;  %s1896_s23 = sshll.u32 (%p50_p3), %s167_s21, 7 }
  0x10   : > { %s2504_s26 = scalar_lea.vmem (%p50_p3), %s2703_s0, %s2054_s22  ;;  %s169_s27 = scalar_lea.vmem (%p50_p3), [#allocation3], %s1896_s23 }
  0x11   : > { %v188_v0 = vld [vmem:[%s2504_s26] sm:$0xff] (%p50_p3)  ;;  %v190_v1 = vld [vmem:[%s2504_s26 + $0x8] sm:$0xff] (%p50_p3)  ;;  %v192_v2 = vld [vmem:[%s2504_s26 + $0x10] sm:$0xff] (%p50_p3) }
  0x12   : > { %189 = vst [vmem:[%s169_s27] sm:$0xff] (%p50_p3), %v188_v0  ;;  %191 = vst [vmem:[%s169_s27 + $0x8] sm:$0xff] (%p50_p3), %v190_v1  ;;  %v194_v3 = vld [vmem:[%s2504_s26 + $0x18] sm:$0xff] (%p50_p3)  ;;  %v196_v4 = vld [vmem:[%s2504_s26 + $0x20] sm:$0xff] (%p50_p3) }
  0x13   : > { %193 = vst [vmem:[%s169_s27 + $0x10] sm:$0xff] (%p50_p3), %v192_v2  ;;  %v198_v5 = vld [vmem:[%s2504_s26 + $0x28] sm:$0xff] (%p50_p3)  ;;  %195 = vst [vmem:[%s169_s27 + $0x18] sm:$0xff] (%p50_p3), %v194_v3  ;;  %v200_v6 = vld [vmem:[%s2504_s26 + $0x30] sm:$0xff] (%p50_p3) }
  0x14   : > { %197 = vst [vmem:[%s169_s27 + $0x20] sm:$0xff] (%p50_p3), %v196_v4  ;;  %199 = vst [vmem:[%s169_s27 + $0x28] sm:$0xff] (%p50_p3), %v198_v5  ;;  %v202_v7 = vld [vmem:[%s2504_s26 + $0x38] sm:$0xff] (%p50_p3)  ;;  %v204_v8 = vld [vmem:[%s2504_s26 + $0x80] sm:$0xff] (%p50_p3) }
  0x15   : > { %201 = vst [vmem:[%s169_s27 + $0x30] sm:$0xff] %v200_v6  ;;  %203 = vst [vmem:[%s169_s27 + $0x38] sm:$0xff] %v202_v7  ;;  %v206_v9 = vld [vmem:[%s2504_s26 + $0x88] sm:$0xff]  ;;  %v208_v10 = vld [vmem:[%s2504_s26 + $0x90] sm:$0xff] }
  0x16   : > { %205 = vst [vmem:[%s169_s27 + $0x40] sm:$0xff] %v204_v8  ;;  %v210_v11 = vld [vmem:[%s2504_s26 + $0x98] sm:$0xff]  ;;  %207 = vst [vmem:[%s169_s27 + $0x48] sm:$0xff] %v206_v9  ;;  %v212_v12 = vld [vmem:[%s2504_s26 + $0xa0] sm:$0xff] }
  0x17   : > { %209 = vst [vmem:[%s169_s27 + $0x50] sm:$0xff] %v208_v10  ;;  %211 = vst [vmem:[%s169_s27 + $0x58] sm:$0xff] %v210_v11  ;;  %v214_v13 = vld [vmem:[%s2504_s26 + $0xa8] sm:$0xff]  ;;  %v216_v14 = vld [vmem:[%s2504_s26 + $0xb0] sm:$0xff] }
  0x18   : > { %213 = vst [vmem:[%s169_s27 + $0x60] sm:$0xff] %v212_v12  ;;  %215 = vst [vmem:[%s169_s27 + $0x68] sm:$0xff] %v214_v13  ;;  %v218_v15 = vld [vmem:[%s2504_s26 + $0xb8] sm:$0xff] }
  0x19   : > { %217 = vst [vmem:[%s169_s27 + $0x70] sm:$0xff] %v216_v14  ;;  %219 = vst [vmem:[%s169_s27 + $0x78] sm:$0xff] %v218_v15 }
  0x1a PF: > { %p1899_p6 = scmp.ge.s32.totalorder %s2438_s16, 1  ;;  %p236_p7 = scmp.lt.s32.totalorder %s2438_s16, 3 }
  0x1c   : > { %p237_p8 = pnand %p1899_p6, %p236_p7 }
  0x1d   : > { %s243_s28 = sand.u32 (!%p237_p8), 1, %s2422_s12   ;;  %s1901_s29 = sshll.u32 (!%p237_p8), %s2430_s14, 8 }
  0x1e   : > { %240 = sbr.rel (%p237_p8) target bundleno = 408 (0x198), region = 51  ;;  %s1900_s30 = sshll.u32 (!%p237_p8), %s243_s28, 7 }
  0x1f   : > { %p283_p9 = scmp.lt.s32.totalorder (!%p237_p8), %s1901_s29, 511  ;;  %s2531_s8 = scalar_lea.vmem (!%p237_p8), [#allocation3], %s1900_s30 }
  0x20   : > { %p1903_p10 = scmp.ne.s32.totalorder (!%p237_p8), %s2430_s14, 0 }
  0x25   : > { %s2714_s29 = smov (!%p283_p9, %s1901_s29), 511  ;;  %307 = sbr.rel (%p1903_p10) target bundleno = 44 (0x2c), region = 59 }
  0x26   : > { %s1902_s4 = sshll.u32 %s2714_s29, 2  ;;  %v2440_v16 = vmov (!%p1903_p10), 0.0  }
  0x27   : > { %s2529_s7 = scalar_lea.vmem %s2704_s1, %s1902_s4  ;;  %308 = vst [vmem:[#allocation2] sm:$0xff] (!%p1903_p10), %v2440_v16  ;;  %309 = vst [vmem:[#allocation2 + $0x8] sm:$0xff] (!%p1903_p10), %v2440_v16 }
  0x2c PF: > { %v2272_v17 = vld [vmem:[%s2529_s7 + $0x40] sm:$0xff]   ;;  %v2276_v21 = vld [vmem:[%s2529_s7 + $0x48] sm:$0xff]   ;;  %v2280_v25 = vld [vmem:[%s2529_s7 + $0x50] sm:$0xff]   ;;  %p2048_p11 = scmp.ne.s32.totalorder %s2430_s14, 1 }
  0x2d   : > { %v2273_v18 = vld [vmem:[%s2529_s7 + $0xc0] sm:$0xff]   ;;  %2055 = vmatprep.subr.bf16.mxu0 %v2272_v17  ;;  %v2277_v22 = vld [vmem:[%s2529_s7 + $0xc8] sm:$0xff]   ;;  %v2281_v26 = vld [vmem:[%s2529_s7 + $0xd0] sm:$0xff]  }
  0x2e   : > { %v2274_v19 = vld [vmem:[%s2529_s7] sm:$0xff]   ;;  %2077 = vmatprep.subr.bf16.mxu1 %v2273_v18  ;;  %v2278_v23 = vld [vmem:[%s2529_s7 + $0x8] sm:$0xff]   ;;  %v2282_v27 = vld [vmem:[%s2529_s7 + $0x10] sm:$0xff]  }
  0x2f   : > { %v2275_v20 = vld [vmem:[%s2529_s7 + $0x80] sm:$0xff]   ;;  %2056 = vmatpush3.bf16.msra.mxu0 %v2274_v19  ;;  %v2279_v24 = vld [vmem:[%s2529_s7 + $0x88] sm:$0xff]   ;;  %v2283_v28 = vld [vmem:[%s2529_s7 + $0x90] sm:$0xff]  }
  0x30   : > { %2078 = vmatpush3.bf16.msra.mxu1 %v2275_v20  ;;  %2057 = vmatprep.subr.bf16.mxu0 %v2276_v21  ;;  %v2284_v29 = vld [vmem:[%s2529_s7 + $0x58] sm:$0xff]   ;;  %v2288_v33 = vld [vmem:[%s2529_s7 + $0x60] sm:$0xff]   ;;  %v2292_v37 = vld [vmem:[%s2529_s7 + $0x68] sm:$0xff]  }
  0x31   : > { %2079 = vmatprep.subr.bf16.mxu1 %v2277_v22  ;;  %v2285_v30 = vld [vmem:[%s2529_s7 + $0xd8] sm:$0xff]   ;;  %v2289_v34 = vld [vmem:[%s2529_s7 + $0xe0] sm:$0xff]   ;;  %v2293_v38 = vld [vmem:[%s2529_s7 + $0xe8] sm:$0xff]  }
  0x32   : > { %v2286_v31 = vld [vmem:[%s2529_s7 + $0x18] sm:$0xff]   ;;  %v2290_v35 = vld [vmem:[%s2529_s7 + $0x20] sm:$0xff]   ;;  %v2294_v39 = vld [vmem:[%s2529_s7 + $0x28] sm:$0xff]  }
  0x33   : > { %2058 = vmatpush3.bf16.msra.mxu0 %v2278_v23  ;;  %v2287_v32 = vld [vmem:[%s2529_s7 + $0x98] sm:$0xff]   ;;  %v2291_v36 = vld [vmem:[%s2529_s7 + $0xa0] sm:$0xff]   ;;  %v2295_v40 = vld [vmem:[%s2529_s7 + $0xa8] sm:$0xff]  }
  0x34   : > { %2080 = vmatpush3.bf16.msra.mxu1 %v2279_v24  ;;  %2059 = vmatprep.subr.bf16.mxu0 %v2280_v25  ;;  %v2296_v41 = vld [vmem:[%s2529_s7 + $0x70] sm:$0xff]   ;;  %v2300_v45 = vld [vmem:[%s2529_s7 + $0x78] sm:$0xff]   ;;  %v2304_v57 = vld [vmem:[%s2529_s7 + $0x140] sm:$0xff]  }
  0x35   : > { %2081 = vmatprep.subr.bf16.mxu1 %v2281_v26  ;;  %v2297_v42 = vld [vmem:[%s2529_s7 + $0xf0] sm:$0xff]   ;;  %v2301_v46 = vld [vmem:[%s2529_s7 + $0xf8] sm:$0xff]   ;;  %v2305_v58 = vld [vmem:[%s2529_s7 + $0x1c0] sm:$0xff]  }
  0x36   : > { %v2298_v43 = vld [vmem:[%s2529_s7 + $0x30] sm:$0xff]   ;;  %v2302_v47 = vld [vmem:[%s2529_s7 + $0x38] sm:$0xff]   ;;  %v2306_v59 = vld [vmem:[%s2529_s7 + $0x100] sm:$0xff]  }
  0x37   : > { %2060 = vmatpush3.bf16.msra.mxu0 %v2282_v27  ;;  %v2299_v44 = vld [vmem:[%s2529_s7 + $0xb0] sm:$0xff]   ;;  %v2303_v48 = vld [vmem:[%s2529_s7 + $0xb8] sm:$0xff]   ;;  %v2307_v60 = vld [vmem:[%s2529_s7 + $0x180] sm:$0xff]  }
  0x38   : > { %2082 = vmatpush3.bf16.msra.mxu1 %v2283_v28  ;;  %2061 = vmatprep.subr.bf16.mxu0 %v2284_v29  ;;  %v312_v49 = vld [vmem:[%s2531_s8] sm:$0xff]  ;;  %v313_v51 = vld [vmem:[%s2531_s8 + $0x8] sm:$0xff]  ;;  %v2308_v61 = vld [vmem:[%s2529_s7 + $0x148] sm:$0xff]  }
  0x39   : > { %2083 = vmatprep.subr.bf16.mxu1 %v2285_v30  ;;  %v320_v50 = vld [vmem:[%s2531_s8 + $0x40] sm:$0xff]  ;;  %v321_v54 = vld [vmem:[%s2531_s8 + $0x48] sm:$0xff]  ;;  %v2309_v62 = vld [vmem:[%s2529_s7 + $0x1c8] sm:$0xff]  }
  0x3a   : > { %v1904_v52 = vcombine.low %v312_v49, %v320_v50  ;;  %v1905_v53 = vcombine.high %v312_v49, %v320_v50  ;;  %v1906_v55 = vcombine.low %v313_v51, %v321_v54  ;;  %v1907_v56 = vcombine.high %v313_v51, %v321_v54  ;;  %v2310_v63 = vld [vmem:[%s2529_s7 + $0x108] sm:$0xff]   ;;  %v2312_v1 = vld [vmem:[%s2529_s7 + $0x150] sm:$0xff]   ;;  %v2316_v5 = vld [vmem:[%s2529_s7 + $0x158] sm:$0xff]  }
  0x3b   : > { %2062 = vmatpush3.bf16.msra.mxu0 %v2286_v31  ;;  %v2311_v0 = vld [vmem:[%s2529_s7 + $0x188] sm:$0xff]   ;;  %v2313_v2 = vld [vmem:[%s2529_s7 + $0x1d0] sm:$0xff]   ;;  %v2317_v6 = vld [vmem:[%s2529_s7 + $0x1d8] sm:$0xff]  }
  0x3c   : > { %2084 = vmatpush3.bf16.msra.mxu1 %v2287_v32  ;;  %2063 = vmatprep.subr.bf16.mxu0 %v2288_v33  ;;  %v2314_v3 = vld [vmem:[%s2529_s7 + $0x110] sm:$0xff]   ;;  %v2318_v7 = vld [vmem:[%s2529_s7 + $0x118] sm:$0xff]   ;;  %v2320_v9 = vld [vmem:[%s2529_s7 + $0x160] sm:$0xff]  }
  0x3d   : > { %2085 = vmatprep.subr.bf16.mxu1 %v2289_v34  ;;  %1464 = vmatprep.mubr.bf16.mxu0 %v1905_v53  ;;  %v2315_v4 = vld [vmem:[%s2529_s7 + $0x190] sm:$0xff]   ;;  %v2319_v8 = vld [vmem:[%s2529_s7 + $0x198] sm:$0xff]   ;;  %v2321_v10 = vld [vmem:[%s2529_s7 + $0x1e0] sm:$0xff]  }
  0x3e   : > { %1505 = vmatprep.mubr.bf16.mxu1 %v1907_v56  ;;  %v2322_v11 = vld [vmem:[%s2529_s7 + $0x120] sm:$0xff]   ;;  %v2324_v13 = vld [vmem:[%s2529_s7 + $0x168] sm:$0xff]   ;;  %v2328_v17 = vld [vmem:[%s2529_s7 + $0x170] sm:$0xff]  }
  0x3f   : > { %2064 = vmatpush3.bf16.msra.mxu0 %v2290_v35  ;;  %v2323_v12 = vld [vmem:[%s2529_s7 + $0x1a0] sm:$0xff]   ;;  %v2325_v14 = vld [vmem:[%s2529_s7 + $0x1e8] sm:$0xff]   ;;  %v2329_v18 = vld [vmem:[%s2529_s7 + $0x1f0] sm:$0xff]  }
  0x40   : > { %2086 = vmatpush3.bf16.msra.mxu1 %v2291_v36  ;;  %2065 = vmatprep.subr.bf16.mxu0 %v2292_v37  ;;  %v2326_v15 = vld [vmem:[%s2529_s7 + $0x128] sm:$0xff]   ;;  %v2330_v19 = vld [vmem:[%s2529_s7 + $0x130] sm:$0xff]   ;;  %v2332_v21 = vld [vmem:[%s2529_s7 + $0x178] sm:$0xff]  }
  0x41   : > { %2087 = vmatprep.subr.bf16.mxu1 %v2293_v38  ;;  %v2327_v16 = vld [vmem:[%s2529_s7 + $0x1a8] sm:$0xff]   ;;  %v2331_v20 = vld [vmem:[%s2529_s7 + $0x1b0] sm:$0xff]   ;;  %v2333_v22 = vld [vmem:[%s2529_s7 + $0x1f8] sm:$0xff]  }
  0x42   : > { %v2334_v23 = vld [vmem:[%s2529_s7 + $0x138] sm:$0xff]   ;;  %v314_v25 = vld [vmem:[%s2531_s8 + $0x10] sm:$0xff]  ;;  %v315_v29 = vld [vmem:[%s2531_s8 + $0x18] sm:$0xff] }
  0x43   : > { %2066 = vmatpush3.bf16.msra.mxu0 %v2294_v39  ;;  %v2335_v24 = vld [vmem:[%s2529_s7 + $0x1b8] sm:$0xff]   ;;  %v322_v26 = vld [vmem:[%s2531_s8 + $0x50] sm:$0xff]  ;;  %v323_v30 = vld [vmem:[%s2531_s8 + $0x58] sm:$0xff] }
  0x44   : > { %2088 = vmatpush3.bf16.msra.mxu1 %v2295_v40  ;;  %2067 = vmatprep.subr.bf16.mxu0 %v2296_v41  ;;  %v1908_v27 = vcombine.low %v314_v25, %v322_v26  ;;  %v1909_v28 = vcombine.high %v314_v25, %v322_v26  ;;  %v1910_v31 = vcombine.low %v315_v29, %v323_v30  ;;  %v2336_v33 = vld [vmem:[%s2529_s7 + $0x240] sm:$0xff]   ;;  %v2340_v37 = vld [vmem:[%s2529_s7 + $0x248] sm:$0xff]   ;;  %v2344_v41 = vld [vmem:[%s2529_s7 + $0x250] sm:$0xff]  }
  0x45   : > { %2089 = vmatprep.subr.bf16.mxu1 %v2297_v42  ;;  %v1911_v32 = vcombine.high %v315_v29, %v323_v30  ;;  %v2337_v34 = vld [vmem:[%s2529_s7 + $0x2c0] sm:$0xff]   ;;  %v2341_v38 = vld [vmem:[%s2529_s7 + $0x2c8] sm:$0xff]   ;;  %v2345_v42 = vld [vmem:[%s2529_s7 + $0x2d0] sm:$0xff]  }
  0x46   : > { %v2338_v35 = vld [vmem:[%s2529_s7 + $0x200] sm:$0xff]   ;;  %v2342_v39 = vld [vmem:[%s2529_s7 + $0x208] sm:$0xff]  }
  0x47   : > { %2068 = vmatpush3.bf16.msra.mxu0 %v2298_v43  ;;  %v2339_v36 = vld [vmem:[%s2529_s7 + $0x280] sm:$0xff]   ;;  %v2343_v40 = vld [vmem:[%s2529_s7 + $0x288] sm:$0xff]   ;;  %v2346_v43 = vld [vmem:[%s2529_s7 + $0x210] sm:$0xff]  }
  0x48   : > { %2090 = vmatpush3.bf16.msra.mxu1 %v2299_v44  ;;  %2069 = vmatprep.subr.bf16.mxu0 %v2300_v45  ;;  %v2347_v44 = vld [vmem:[%s2529_s7 + $0x290] sm:$0xff]   ;;  %v2348_v45 = vld [vmem:[%s2529_s7 + $0x258] sm:$0xff]   ;;  %v2352_v49 = vld [vmem:[%s2529_s7 + $0x260] sm:$0xff]  }
  0x49   : > { %2091 = vmatprep.subr.bf16.mxu1 %v2301_v46  ;;  %v2349_v46 = vld [vmem:[%s2529_s7 + $0x2d8] sm:$0xff]   ;;  %v2353_v50 = vld [vmem:[%s2529_s7 + $0x2e0] sm:$0xff]   ;;  %v2356_v53 = vld [vmem:[%s2529_s7 + $0x268] sm:$0xff]  }
  0x4a   : > { %v2354_v51 = vld [vmem:[%s2529_s7 + $0x220] sm:$0xff]   ;;  %v2357_v54 = vld [vmem:[%s2529_s7 + $0x2e8] sm:$0xff]  }
  0x4b   : > { %2070 = vmatpush3.bf16.msra.mxu0 %v2302_v47  ;;  %v2350_v47 = vld [vmem:[%s2529_s7 + $0x218] sm:$0xff]   ;;  %v2359_v56 = vld [vmem:[%s2529_s7 + $0x2a8] sm:$0xff]   ;;  %v2384_v25 = vld [vmem:[%s2529_s7 + $0x360] sm:$0xff]  }
  0x4c   : > { %2092 = vmatpush3.bf16.msra.mxu1 %v2303_v48  ;;  %2099 = vmatprep.subr.bf16.mxu0 %v2304_v57  ;;  %v2351_v48 = vld [vmem:[%s2529_s7 + $0x298] sm:$0xff]   ;;  %v2360_v57 = vld [vmem:[%s2529_s7 + $0x270] sm:$0xff]   ;;  %v2385_v26 = vld [vmem:[%s2529_s7 + $0x3e0] sm:$0xff]  }
  0x4d   : > { %2121 = vmatprep.subr.bf16.mxu1 %v2305_v58  ;;  %v2361_v58 = vld [vmem:[%s2529_s7 + $0x2f0] sm:$0xff]   ;;  %v2388_v29 = vld [vmem:[%s2529_s7 + $0x368] sm:$0xff]  }
  0x4e   : > { %1465 = vmatmul.mubr.bf16.vlgmr.msra.gmra.mrb[0].mxu0 %v1904_v52  ;;  %v2355_v52 = vld [vmem:[%s2529_s7 + $0x2a0] sm:$0xff]   ;;  %v2389_v30 = vld [vmem:[%s2529_s7 + $0x3e8] sm:$0xff]  }
  0x4f   : > { %1506 = vmatmul.mubr.bf16.vlgmr.msra.gmra.mrb[0].mxu1 %v1906_v55  ;;  %2100 = vmatpush3.bf16.msra.mxu0 %v2306_v59  ;;  %v2358_v55 = vld [vmem:[%s2529_s7 + $0x228] sm:$0xff]   ;;  %v2362_v59 = vld [vmem:[%s2529_s7 + $0x230] sm:$0xff]  }
  0x50   : > { %2122 = vmatpush3.bf16.msra.mxu1 %v2307_v60  ;;  %2101 = vmatprep.subr.bf16.mxu0 %v2308_v61  ;;  %v2363_v60 = vld [vmem:[%s2529_s7 + $0x2b0] sm:$0xff]   ;;  %v2364_v61 = vld [vmem:[%s2529_s7 + $0x278] sm:$0xff]  }
  0x51   : > { %2123 = vmatprep.subr.bf16.mxu1 %v2309_v62  ;;  %1546 = vmatprep.mubr.bf16.mxu0 %v1909_v28  ;;  %v2365_v62 = vld [vmem:[%s2529_s7 + $0x2f8] sm:$0xff]   ;;  %v2387_v28 = vld [vmem:[%s2529_s7 + $0x3a0] sm:$0xff]  }
  0x52   : > { %1587 = vmatprep.mubr.bf16.mxu1 %v1911_v32  ;;  %v2391_v32 = vld [vmem:[%s2529_s7 + $0x3a8] sm:$0xff]  }
  0x53   : > { %2102 = vmatpush3.bf16.msra.mxu0 %v2310_v63  ;;  %v2366_v63 = vld [vmem:[%s2529_s7 + $0x238] sm:$0xff]  }
  0x54   : > { %2124 = vmatpush3.bf16.msra.mxu1 %v2311_v0  ;;  %2103 = vmatprep.subr.bf16.mxu0 %v2312_v1  ;;  %v2367_v0 = vld [vmem:[%s2529_s7 + $0x2b8] sm:$0xff]   ;;  %v316_v1 = vld [vmem:[%s2531_s8 + $0x20] sm:$0xff] }
  0x55   : > { %2125 = vmatprep.subr.bf16.mxu1 %v2313_v2  ;;  %v324_v2 = vld [vmem:[%s2531_s8 + $0x60] sm:$0xff] }
  0x57   : > { %2104 = vmatpush3.bf16.msra.mxu0 %v2314_v3  ;;  %v317_v3 = vld [vmem:[%s2531_s8 + $0x28] sm:$0xff] }
  0x58   : > { %2126 = vmatpush3.bf16.msra.mxu1 %v2315_v4  ;;  %2105 = vmatprep.subr.bf16.mxu0 %v2316_v5  ;;  %v325_v4 = vld [vmem:[%s2531_s8 + $0x68] sm:$0xff]  ;;  %v1912_v5 = vcombine.low %v316_v1, %v324_v2 }
  0x59   : > { %2127 = vmatprep.subr.bf16.mxu1 %v2317_v6  ;;  %v1913_v6 = vcombine.high %v316_v1, %v324_v2 }
  0x5b   : > { %2106 = vmatpush3.bf16.msra.mxu0 %v2318_v7  ;;  %v1914_v7 = vcombine.low %v317_v3, %v325_v4 }
  0x5c   : > { %2128 = vmatpush3.bf16.msra.mxu1 %v2319_v8  ;;  %2107 = vmatprep.subr.bf16.mxu0 %v2320_v9  ;;  %v1915_v8 = vcombine.high %v317_v3, %v325_v4  ;;  %v2368_v9 = vld [vmem:[%s2529_s7 + $0x340] sm:$0xff]  }
  0x5d   : > { %2129 = vmatprep.subr.bf16.mxu1 %v2321_v10  ;;  %v2369_v10 = vld [vmem:[%s2529_s7 + $0x3c0] sm:$0xff]  }
  0x5f   : > { %2108 = vmatpush3.bf16.msra.mxu0 %v2322_v11  ;;  %v2370_v11 = vld [vmem:[%s2529_s7 + $0x300] sm:$0xff]  }
  0x60   : > { %2130 = vmatpush3.bf16.msra.mxu1 %v2323_v12  ;;  %2109 = vmatprep.subr.bf16.mxu0 %v2324_v13  ;;  %v2371_v12 = vld [vmem:[%s2529_s7 + $0x380] sm:$0xff]   ;;  %v2372_v13 = vld [vmem:[%s2529_s7 + $0x348] sm:$0xff]  }
  0x61   : > { %2131 = vmatprep.subr.bf16.mxu1 %v2325_v14  ;;  %v2373_v14 = vld [vmem:[%s2529_s7 + $0x3c8] sm:$0xff]  }
  0x63   : > { %2110 = vmatpush3.bf16.msra.mxu0 %v2326_v15  ;;  %v2374_v15 = vld [vmem:[%s2529_s7 + $0x308] sm:$0xff]  }
  0x64   : > { %2132 = vmatpush3.bf16.msra.mxu1 %v2327_v16  ;;  %2111 = vmatprep.subr.bf16.mxu0 %v2328_v17  ;;  %v2375_v16 = vld [vmem:[%s2529_s7 + $0x388] sm:$0xff]   ;;  %v2376_v17 = vld [vmem:[%s2529_s7 + $0x350] sm:$0xff]  }
  0x65   : > { %2133 = vmatprep.subr.bf16.mxu1 %v2329_v18  ;;  %v2377_v18 = vld [vmem:[%s2529_s7 + $0x3d0] sm:$0xff]  }
  0x67   : > { %2112 = vmatpush3.bf16.msra.mxu0 %v2330_v19  ;;  %v2378_v19 = vld [vmem:[%s2529_s7 + $0x310] sm:$0xff]  }
  0x68   : > { %2134 = vmatpush3.bf16.msra.mxu1 %v2331_v20  ;;  %2113 = vmatprep.subr.bf16.mxu0 %v2332_v21  ;;  %v2379_v20 = vld [vmem:[%s2529_s7 + $0x390] sm:$0xff]   ;;  %v2380_v21 = vld [vmem:[%s2529_s7 + $0x358] sm:$0xff]  }
  0x69   : > { %2135 = vmatprep.subr.bf16.mxu1 %v2333_v22  ;;  %v2381_v22 = vld [vmem:[%s2529_s7 + $0x3d8] sm:$0xff]  }
  0x6b   : > { %2114 = vmatpush3.bf16.msra.mxu0 %v2334_v23  ;;  %v2382_v23 = vld [vmem:[%s2529_s7 + $0x318] sm:$0xff]  }
  0x6c   : > { %2136 = vmatpush3.bf16.msra.mxu1 %v2335_v24  ;;  %2143 = vmatprep.subr.bf16.mxu0 %v2336_v33  ;;  %v2383_v24 = vld [vmem:[%s2529_s7 + $0x398] sm:$0xff]   ;;  %v2392_v33 = vld [vmem:[%s2529_s7 + $0x370] sm:$0xff]  }
  0x6d   : > { %2165 = vmatprep.subr.bf16.mxu1 %v2337_v34  ;;  %v2393_v34 = vld [vmem:[%s2529_s7 + $0x3f0] sm:$0xff]  }
  0x6e   : > { %1547 = vmatmul.mubr.bf16.vlgmr.msra.gmra.mrb[4].mxu0 %v1908_v27  ;;  %v2386_v27 = vld [vmem:[%s2529_s7 + $0x320] sm:$0xff]  }
  0x6f   : > { %1588 = vmatmul.mubr.bf16.vlgmr.msra.gmra.mrb[4].mxu1 %v1910_v31  ;;  %2144 = vmatpush3.bf16.msra.mxu0 %v2338_v35  ;;  %v2390_v31 = vld [vmem:[%s2529_s7 + $0x328] sm:$0xff]   ;;  %v2394_v35 = vld [vmem:[%s2529_s7 + $0x330] sm:$0xff]  }
  0x70   : > { %2166 = vmatpush3.bf16.msra.mxu1 %v2339_v36  ;;  %2145 = vmatprep.subr.bf16.mxu0 %v2340_v37  ;;  %v2395_v36 = vld [vmem:[%s2529_s7 + $0x3b0] sm:$0xff]   ;;  %v2396_v37 = vld [vmem:[%s2529_s7 + $0x378] sm:$0xff]  }
  0x71   : > { %2167 = vmatprep.subr.bf16.mxu1 %v2341_v38  ;;  %1628 = vmatprep.mubr.bf16.mxu0 %v1913_v6  ;;  %v2397_v38 = vld [vmem:[%s2529_s7 + $0x3f8] sm:$0xff]  }
  0x72   : > { %1669 = vmatprep.mubr.bf16.mxu1 %v1915_v8 }
  0x73   : > { %2146 = vmatpush3.bf16.msra.mxu0 %v2342_v39  ;;  %v2398_v39 = vld [vmem:[%s2529_s7 + $0x338] sm:$0xff]  }
  0x74   : > { %2168 = vmatpush3.bf16.msra.mxu1 %v2343_v40  ;;  %2147 = vmatprep.subr.bf16.mxu0 %v2344_v41  ;;  %v2399_v40 = vld [vmem:[%s2529_s7 + $0x3b8] sm:$0xff]   ;;  %v318_v41 = vld [vmem:[%s2531_s8 + $0x30] sm:$0xff] }
  0x75   : > { %2169 = vmatprep.subr.bf16.mxu1 %v2345_v42  ;;  %v326_v42 = vld [vmem:[%s2531_s8 + $0x70] sm:$0xff] }
  0x77   : > { %2148 = vmatpush3.bf16.msra.mxu0 %v2346_v43  ;;  %v319_v43 = vld [vmem:[%s2531_s8 + $0x38] sm:$0xff] }
  0x78   : > { %2170 = vmatpush3.bf16.msra.mxu1 %v2347_v44  ;;  %2149 = vmatprep.subr.bf16.mxu0 %v2348_v45  ;;  %v1916_v44 = vcombine.low %v318_v41, %v326_v42  ;;  %v1917_v45 = vcombine.high %v318_v41, %v326_v42 }
  0x79   : > { %2171 = vmatprep.subr.bf16.mxu1 %v2349_v46  ;;  %v327_v46 = vld [vmem:[%s2531_s8 + $0x78] sm:$0xff] }
  0x7b   : > { %2150 = vmatpush3.bf16.msra.mxu0 %v2350_v47  ;;  %v1918_v47 = vcombine.low %v319_v43, %v327_v46 }
  0x7c   : > { %2172 = vmatpush3.bf16.msra.mxu1 %v2351_v48  ;;  %2151 = vmatprep.subr.bf16.mxu0 %v2352_v49  ;;  %v1919_v48 = vcombine.high %v319_v43, %v327_v46  ;;  %v310_v43 = vld [vmem:[#allocation2] sm:$0xff] }
  0x7d   : > { %2173 = vmatprep.subr.bf16.mxu1 %v2353_v50 }
  0x7f   : > { %2152 = vmatpush3.bf16.msra.mxu0 %v2354_v51 }
  0x80   : > { %2174 = vmatpush3.bf16.msra.mxu1 %v2355_v52  ;;  %2153 = vmatprep.subr.bf16.mxu0 %v2356_v53 }
  0x81   : > { %2175 = vmatprep.subr.bf16.mxu1 %v2357_v54 }
  0x83   : > { %2154 = vmatpush3.bf16.msra.mxu0 %v2358_v55 }
  0x84   : > { %2176 = vmatpush3.bf16.msra.mxu1 %v2359_v56  ;;  %2155 = vmatprep.subr.bf16.mxu0 %v2360_v57 }
  0x85   : > { %2177 = vmatprep.subr.bf16.mxu1 %v2361_v58 }
  0x87   : > { %2156 = vmatpush3.bf16.msra.mxu0 %v2362_v59 }
  0x88   : > { %2178 = vmatpush3.bf16.msra.mxu1 %v2363_v60  ;;  %2157 = vmatprep.subr.bf16.mxu0 %v2364_v61 }
  0x89   : > { %2179 = vmatprep.subr.bf16.mxu1 %v2365_v62 }
  0x8b   : > { %2158 = vmatpush3.bf16.msra.mxu0 %v2366_v63 }
  0x8c   : > { %2180 = vmatpush3.bf16.msra.mxu1 %v2367_v0  ;;  %2187 = vmatprep.subr.bf16.mxu0 %v2368_v9 }
  0x8d   : > { %2209 = vmatprep.subr.bf16.mxu1 %v2369_v10 }
  0x8e   : > { %1629 = vmatmul.mubr.bf16.vlgmr.msra.gmra.mrb[8].mxu0 %v1912_v5 }
  0x8f   : > { %1670 = vmatmul.mubr.bf16.vlgmr.msra.gmra.mrb[8].mxu1 %v1914_v7  ;;  %2188 = vmatpush3.bf16.msra.mxu0 %v2370_v11 }
  0x90   : > { %2210 = vmatpush3.bf16.msra.mxu1 %v2371_v12  ;;  %2189 = vmatprep.subr.bf16.mxu0 %v2372_v13 }
  0x91   : > { %2211 = vmatprep.subr.bf16.mxu1 %v2373_v14  ;;  %1710 = vmatprep.mubr.bf16.mxu0 %v1917_v45 }
  0x92   : > { %1751 = vmatprep.mubr.bf16.mxu1 %v1919_v48 }
  0x93   : > { %2190 = vmatpush3.bf16.msra.mxu0 %v2374_v15 }
  0x94   : > { %2212 = vmatpush3.bf16.msra.mxu1 %v2375_v16  ;;  %2191 = vmatprep.subr.bf16.mxu0 %v2376_v17 }
  0x95   : > { %2213 = vmatprep.subr.bf16.mxu1 %v2377_v18 }
  0x97   : > { %2192 = vmatpush3.bf16.msra.mxu0 %v2378_v19 }
  0x98   : > { %2214 = vmatpush3.bf16.msra.mxu1 %v2379_v20  ;;  %2193 = vmatprep.subr.bf16.mxu0 %v2380_v21 }
  0x99   : > { %2215 = vmatprep.subr.bf16.mxu1 %v2381_v22 }
  0x9b   : > { %2194 = vmatpush3.bf16.msra.mxu0 %v2382_v23 }
  0x9c   : > { %2216 = vmatpush3.bf16.msra.mxu1 %v2383_v24  ;;  %2195 = vmatprep.subr.bf16.mxu0 %v2384_v25 }
  0x9d   : > { %2217 = vmatprep.subr.bf16.mxu1 %v2385_v26 }
  0x9f   : > { %2196 = vmatpush3.bf16.msra.mxu0 %v2386_v27 }
  0xa0   : > { %2218 = vmatpush3.bf16.msra.mxu1 %v2387_v28  ;;  %2197 = vmatprep.subr.bf16.mxu0 %v2388_v29 }
  0xa1   : > { %2219 = vmatprep.subr.bf16.mxu1 %v2389_v30 }
  0xa3   : > { %2198 = vmatpush3.bf16.msra.mxu0 %v2390_v31 }
  0xa4   : > { %2220 = vmatpush3.bf16.msra.mxu1 %v2391_v32  ;;  %2199 = vmatprep.subr.bf16.mxu0 %v2392_v33 }
  0xa5   : > { %2221 = vmatprep.subr.bf16.mxu1 %v2393_v34 }
  0xa7   : > { %2200 = vmatpush3.bf16.msra.mxu0 %v2394_v35 }
  0xa8   : > { %2222 = vmatpush3.bf16.msra.mxu1 %v2395_v36  ;;  %2201 = vmatprep.subr.bf16.mxu0 %v2396_v37 }
  0xa9   : > { %2223 = vmatprep.subr.bf16.mxu1 %v2397_v38 }
  0xab   : > { %2202 = vmatpush3.bf16.msra.mxu0 %v2398_v39 }
  0xac   : > { %2224 = vmatpush3.bf16.msra.mxu1 %v2399_v40 }
  0xae   : > { %1711 = vmatmul.mubr.bf16.vlgmr.msra.gmra.mrb[12].mxu0 %v1916_v44 }
  0xaf   : > { %1752 = vmatmul.mubr.bf16.vlgmr.msra.gmra.mrb[12].mxu1 %v1918_v47  ;;  %v311_v47 = vld [vmem:[#allocation2 + $0x8] sm:$0xff] }
 0x121   : > { %v2071_v49 = vpop.f32.mrb[0].mxu0 }
 0x122   : > { %v2093_v50 = vpop.f32.mrb[0].mxu1  ;;  %v2072_v51 = vpop.f32.mrb[1].mxu0 }
 0x123   : > { %v2073_v52 = vadd.f32 %v2072_v51, %v2071_v49  ;;  %v2094_v53 = vpop.f32.mrb[1].mxu1  ;;  %v2074_v54 = vpop.f32.mrb[2].mxu0 }
 0x124   : > { %v2095_v55 = vadd.f32 %v2094_v53, %v2093_v50  ;;  %v2096_v56 = vpop.f32.mrb[2].mxu1  ;;  %v2075_v57 = vpop.f32.mrb[3].mxu0 }
 0x125   : > { %v2076_v58 = vadd.f32 %v2075_v57, %v2074_v54  ;;  %v2097_v59 = vpop.f32.mrb[3].mxu1 }
 0x126   : > { %v1508_v60 = vadd.f32 %v2095_v55, %v2073_v52  ;;  %v2098_v61 = vadd.f32 %v2097_v59, %v2096_v56  ;;  %v2049_v52 = vld [vmem:[%s2705_s2] ss:$0 sm:$0xff] (!%p2048_p11) }
 0x128   : > { %v1511_v62 = vadd.f32 %v2098_v61, %v2076_v58 }
 0x141   : > { %v2115_v63 = vpop.f32.mrb[4].mxu0 }
 0x142   : > { %v2137_v0 = vpop.f32.mrb[4].mxu1  ;;  %v2116_v1 = vpop.f32.mrb[5].mxu0 }
 0x143   : > { %v2117_v2 = vadd.f32 %v2116_v1, %v2115_v63  ;;  %v2138_v3 = vpop.f32.mrb[5].mxu1  ;;  %v2118_v4 = vpop.f32.mrb[6].mxu0 }
 0x144   : > { %v2139_v5 = vadd.f32 %v2138_v3, %v2137_v0  ;;  %v2140_v6 = vpop.f32.mrb[6].mxu1  ;;  %v2119_v7 = vpop.f32.mrb[7].mxu0 }
 0x145   : > { %v1549_v8 = vadd.f32 %v2117_v2, %v1508_v60  ;;  %v2120_v9 = vadd.f32 %v2119_v7, %v2118_v4  ;;  %v2141_v10 = vpop.f32.mrb[7].mxu1 }
 0x146   : > { %v2142_v11 = vadd.f32 %v2141_v10, %v2140_v6 }
 0x147   : > { %v1590_v12 = vadd.f32 %v2139_v5, %v1549_v8  ;;  %v1552_v13 = vadd.f32 %v2120_v9, %v1511_v62 }
 0x149   : > { %v1593_v14 = vadd.f32 %v2142_v11, %v1552_v13 }
 0x161   : > { %v2159_v15 = vpop.f32.mrb[8].mxu0 }
 0x162   : > { %v2181_v16 = vpop.f32.mrb[8].mxu1  ;;  %v2160_v17 = vpop.f32.mrb[9].mxu0 }
 0x163   : > { %v2182_v18 = vpop.f32.mrb[9].mxu1  ;;  %v2161_v19 = vadd.f32 %v2160_v17, %v2159_v15  ;;  %v2162_v21 = vpop.f32.mrb[10].mxu0 }
 0x164   : > { %v2183_v20 = vadd.f32 %v2182_v18, %v2181_v16  ;;  %v2184_v22 = vpop.f32.mrb[10].mxu1  ;;  %v2163_v23 = vpop.f32.mrb[11].mxu0 }
 0x165   : > { %v2185_v24 = vpop.f32.mrb[11].mxu1  ;;  %v1631_v25 = vadd.f32 %v2161_v19, %v1590_v12  ;;  %v2164_v26 = vadd.f32 %v2163_v23, %v2162_v21 }
 0x166   : > { %v2186_v27 = vadd.f32 %v2185_v24, %v2184_v22 }
 0x167   : > { %v1672_v28 = vadd.f32 %v2183_v20, %v1631_v25  ;;  %v1634_v29 = vadd.f32 %v2164_v26, %v1593_v14 }
 0x169   : > { %v1675_v30 = vadd.f32 %v2186_v27, %v1634_v29 }
 0x181   : > { %v2203_v31 = vpop.f32.mrb[12].mxu0 }
 0x182   : > { %v2225_v32 = vpop.f32.mrb[12].mxu1  ;;  %v2204_v33 = vpop.f32.mrb[13].mxu0 }
 0x183   : > { %v2205_v34 = vadd.f32 %v2204_v33, %v2203_v31  ;;  %v2226_v35 = vpop.f32.mrb[13].mxu1  ;;  %v2206_v36 = vpop.f32.mrb[14].mxu0 }
 0x184   : > { %v2227_v37 = vadd.f32 %v2226_v35, %v2225_v32  ;;  %v2228_v38 = vpop.f32.mrb[14].mxu1  ;;  %v2207_v39 = vpop.f32.mrb[15].mxu0 }
 0x185   : > { %v1713_v40 = vadd.f32 %v2205_v34, %v1672_v28  ;;  %v2208_v41 = vadd.f32 %v2207_v39, %v2206_v36  ;;  %v2229_v42 = vpop.f32.mrb[15].mxu1 }
 0x186   : > { %v2230_v44 = vadd.f32 %v2229_v42, %v2228_v38 }
 0x187   : > { %v1754_v45 = vadd.f32 %v2227_v37, %v1713_v40  ;;  %v1716_v46 = vadd.f32 %v2208_v41, %v1675_v30  ;;  %1767 = sbr.rel (%p2048_p11) target bundleno = 408 (0x198), region = 63 }
 0x189   : > { %v1760_v48 = vadd.f32 %v1754_v45, %v310_v43  ;;  %v1757_v49 = vadd.f32 %v2230_v44, %v1716_v46 }
 0x18b   : > { %1762 = vst [vmem:[#allocation2] sm:$0xff] %v1760_v48  ;;  %v1761_v50 = vadd.f32 %v1757_v49, %v311_v47 }
 0x18d   : > { %1763 = vst [vmem:[#allocation2 + $0x8] sm:$0xff] %v1761_v50 }
 0x192   : > { %v1768_v51 = vld [vmem:[#allocation2] sm:$0xff] }
 0x193   : > { %v1777_v54 = vadd.f32 %v2049_v52, %v1768_v51 }
 0x194   : > { %v1769_v53 = vld [vmem:[#allocation2 + $0x8] sm:$0xff] }
 0x195   : > { %v1778_v55 = vadd.f32 %v2049_v52, %v1769_v53  ;;  %1779 = vst [vmem:[%s2706_s3] sm:$0xff] %v1777_v54 }
 0x197   : > { %1780 = vst [vmem:[%s2706_s3 + $0x8] sm:$0xff] %v1778_v55 }
 0x198 PF: > { %s13_s16 = sadd.s32 1, %s2438_s16   ;;  %s2707_s12 = smov %s2426_s13 }
 0x199   : > { %p10_p12 = scmp.ge.s32.totalorder %s13_s16, 4   ;;  %s2708_s13 = smov %s2496_s20 }
 0x19a   : > { %s2709_s14 = smov %s2434_s15  ;;  %s2710_s15 = smov %s2712_s17 }
 0x19b   :  { %12 = sbr.rel (!%p10_p12) target bundleno = 3 (0x3), region = 104 }

</bundles_post_ra>
